<compile_context>
chip_gen: v7x
topology: tpu7x:2x2x1
jax: 0.10.0
libtpu: 0.0.40
codegen_flags: <defaults>
</compile_context>

<pallas_src>
import jax
import jax.numpy as jnp
from jax.experimental import pallas as pl
from jax.experimental.pallas import tpu as pltpu

EPS = 1e-5


def gkt_layer_kernel(q_ref, k_ref, v_ref,
                     mqk_ref, wv_ref, w1_ref, w2_ref,
                     g1_ref, b1_ref, g2_ref, b2_ref,
                     out_ref):
    """One lane-dense spatial tile of the full GKT transformer layer.

    q_ref:   (1, C, tP) f32       k_ref / v_ref: (N, C, tP) f32
    mqk_ref: (C, C) = Wk^T @ Wq   wv_ref / w1_ref / w2_ref: (C, C)
    g*/b*:   (C, 1) layer-norm affine params
    out_ref: (1, C, tP)

    Channels sit on the sublane axis, pixels on the lane axis: every 1x1 conv is a
    (C, C) @ (C, tP) MXU matmul and every store is an unmasked full-lane store.
    """

    def layer_norm(x, g, b):
        # sum / sum-of-squares form: the two cross-sublane (XLU) reductions are
        # independent instead of chained through a broadcast/subtract.
        mu = jnp.mean(x, axis=0, keepdims=True)
        ms = jnp.mean(x * x, axis=0, keepdims=True)
        var = ms - mu * mu
        return (x - mu) * jax.lax.rsqrt(var + EPS) * g + b

    q = q_ref[0]                                                 # (C, tP)
    norm_q = layer_norm(q, g1_ref[...], b1_ref[...])             # norm1

    # Folded Q/K projection (exact): sum_C((Wq nq)*(Wk k_n)) == sum_C(((Wk^T Wq) nq)*k_n)
    qm = jnp.dot(mqk_ref[...], norm_q, preferred_element_type=jnp.float32)   # (C, tP)

    # Dense softmax over the kernel-point axis: N on sublanes, pixels on lanes.
    logits = jnp.sum(qm[None, :, :] * k_ref[...], axis=1)        # (N, tP)  sublane reduce
    m = jnp.max(logits, axis=0, keepdims=True)                   # (1, tP)
    e = jnp.exp(logits - m)                                      # (N, tP)  one dense EUP pass
    att = e / jnp.sum(e, axis=0, keepdims=True)                  # pre-normalized, exact

    # Attention-weighted sum over RAW v, then ONE deferred Wv matmul (exact by linearity).
    x_raw = jnp.sum(att[:, None, :] * v_ref[...], axis=0)        # (C, tP)
    x = jnp.dot(wv_ref[...], x_raw, preferred_element_type=jnp.float32)

    # dropout1 == identity (eval); residual + norm2.
    tgt = layer_norm(x + norm_q, g2_ref[...], b2_ref[...])

    # FFN: W2 @ relu(W1 @ tgt); dropout2/3 == identity.
    h = jnp.maximum(jnp.dot(w1_ref[...], tgt, preferred_element_type=jnp.float32), 0.0)
    tgt2 = jnp.dot(w2_ref[...], h, preferred_element_type=jnp.float32)

    out_ref[0] = (tgt + tgt2).astype(out_ref.dtype)


def _round_up(x, m):
    return (x + m - 1) // m * m


def _pick_tile_p(p_total, *, max_tile=2048):
    """Lane-dense (multiple-of-128) pixel tile size.

    Single-TensorCore parts (v5e/v6e, CPU interpret): as big as the cap allows —
    fewer grid steps (~0.35us fixed cost each) and longer DMA rows.  v7x has two
    TensorCores sharing the 'parallel' grid axis: aim for >= 4 steps so both cores
    get >= 2 pipelined iterations.  max_tile=2048 keeps the double-buffered f32
    working set (~9.4 MiB at C=32, N=8) far under every generation's VMEM budget,
    including v7x's 64 MiB/TC.
    """
    try:
        kind = jax.devices()[0].device_kind.lower()
    except Exception:  # pragma: no cover - device query unavailable
        kind = ""
    min_steps = 4 if "v7" in kind else 1
    p128 = _round_up(max(p_total, 1), 128)
    tile = min(max_tile, p128)
    if min_steps > 1:
        tile = min(tile, _round_up(-(-p128 // min_steps), 128))
    return max(tile, 128)


def gkt_transformer_layer(q, k, v, params, *, tile_p=None):
    """q: (1, C, H, W); k, v: (N, C, H, W); all f32.  Returns (1, C, H, W)."""
    n_pts, c, h, w = k.shape
    p_total = h * w
    if tile_p is None:
        tile_p = _pick_tile_p(p_total)

    # Pad H*W up to a multiple of the tile so output stores stay full-lane dense
    # (no masked vst.msk partial stores).  No-op for aligned sizes.
    p_pad = _round_up(p_total, tile_p)

    # NCHW -> (N, C, H*W) is a pure view: channels land on the sublane axis, pixels on
    # the lane axis.  NO dtype casts here — k/v are the dominant HBM traffic and a
    # wrapper-side convert would add a full extra HBM round trip.
    qk = q.reshape(1, c, p_total)
    kk = k.reshape(n_pts, c, p_total)
    vk = v.reshape(n_pts, c, p_total)
    if p_pad != p_total:
        pad = ((0, 0), (0, 0), (0, p_pad - p_total))
        qk, kk, vk = jnp.pad(qk, pad), jnp.pad(kk, pad), jnp.pad(vk, pad)

    # Trace-time parameter algebra: Mqk = Wk^T @ Wq folds the Q and K projections into
    # a single in-kernel matmul.  Done at HIGHEST precision (one-off 32x32) so it does
    # not introduce bf16 error vs. an f32 reference.
    mqk = jnp.matmul(params["wk"].T, params["wq"],
                     precision=jax.lax.Precision.HIGHEST)        # (C, C)

    w_spec = pl.BlockSpec((c, c), lambda i: (0, 0))
    g_spec = pl.BlockSpec((c, 1), lambda i: (0, 0))

    out = pl.pallas_call(
        gkt_layer_kernel,
        out_shape=jax.ShapeDtypeStruct((1, c, p_pad), q.dtype),
        grid_spec=pltpu.PrefetchScalarGridSpec(
            num_scalar_prefetch=0,
            grid=(p_pad // tile_p,),
            in_specs=[
                pl.BlockSpec((1, c, tile_p), lambda i: (0, 0, i)),       # q
                pl.BlockSpec((n_pts, c, tile_p), lambda i: (0, 0, i)),   # k
                pl.BlockSpec((n_pts, c, tile_p), lambda i: (0, 0, i)),   # v
                w_spec, w_spec, w_spec, w_spec,                          # mqk, wv, w1, w2
                g_spec, g_spec, g_spec, g_spec,                          # g1, b1, g2, b2
            ],
            out_specs=pl.BlockSpec((1, c, tile_p), lambda i: (0, 0, i)),
        ),
        compiler_params=pltpu.CompilerParams(
            dimension_semantics=("parallel",),
            vmem_limit_bytes=32 * 1024 * 1024,
        ),
    )(qk, kk, vk,
      mqk, params["wv"], params["w1"], params["w2"],
      params["g1"].reshape(c, 1), params["b1"].reshape(c, 1),
      params["g2"].reshape(c, 1), params["b2"].reshape(c, 1))

    # Drop padding and go back to NCHW (pure reshape, no transpose).
    return out[:, :, :p_total].reshape(1, c, h, w)


def reference_jax(q, k, v, p):
    """Pure-JAX NCHW reference mirroring the PyTorch forward (eval mode)."""
    hp = jax.lax.Precision.HIGHEST   # keep the reference f32-accurate on TPU MXUs

    def ln(x, g, b):
        mu = x.mean(axis=1, keepdims=True)
        var = ((x - mu) ** 2).mean(axis=1, keepdims=True)
        return ((x - mu) / jnp.sqrt(var + EPS)
                * g[None, :, None, None] + b[None, :, None, None])

    def conv1x1(x, w):  # w: (Cout, Cin)
        return jnp.einsum('nchw,dc->ndhw', x, w, precision=hp)

    norm_q = ln(q, p["g1"], p["b1"])
    qq = conv1x1(norm_q, p["wq"])
    kk = conv1x1(k, p["wk"])
    vv = conv1x1(v, p["wv"])
    att = jnp.sum(qq * kk, axis=1, keepdims=True)
    att = jax.nn.softmax(att, axis=0)
    x = jnp.sum(att * vv, axis=0, keepdims=True)
    tgt = ln(x + norm_q, p["g2"], p["b2"])
    tgt2 = conv1x1(jnp.maximum(conv1x1(tgt, p["w1"]), 0.0), p["w2"])
    return tgt + tgt2


if __name__ == "__main__":
    embed_dims = 32        # C
    n_points = 8           # kernel points (dim 0 of k/v); q has batch 1
    height = width = 32    # H*W = 1024 pixels

    key = jax.random.PRNGKey(0)
    keys = jax.random.split(key, 12)

    q = jax.random.normal(keys[0], (1, embed_dims, height, width), jnp.float32)
    k = jax.random.normal(keys[1], (n_points, embed_dims, height, width), jnp.float32)
    v = jax.random.normal(keys[2], (n_points, embed_dims, height, width), jnp.float32)

    def w_init(kk_):
        return 0.1 * jax.random.normal(kk_, (embed_dims, embed_dims), jnp.float32)

    params = {
        "wq": w_init(keys[3]),
        "wk": w_init(keys[4]),
        "wv": w_init(keys[5]),
        "w1": w_init(keys[6]),
        "w2": w_init(keys[7]),
        "g1": 1.0 + 0.1 * jax.random.normal(keys[8], (embed_dims,), jnp.float32),
        "b1": 0.1 * jax.random.normal(keys[9], (embed_dims,), jnp.float32),
        "g2": 1.0 + 0.1 * jax.random.normal(keys[10], (embed_dims,), jnp.float32),
        "b2": 0.1 * jax.random.normal(keys[11], (embed_dims,), jnp.float32),
    }

    out = gkt_transformer_layer(q, k, v, params)
    out = jax.block_until_ready(out)
    assert out.shape == (1, embed_dims, height, width)

    # Kernel is f32 end to end with an exact softmax divide; the only deltas vs. the
    # reference are f32 accumulation-order differences from the (exact) algebraic folds.
    ref = reference_jax(q, k, v, params)
    assert jnp.allclose(out, ref, rtol=2e-3, atol=2e-3), (
        float(jnp.max(jnp.abs(out - ref))))

    print("KERNEL_OK")
</pallas_src>

<mosaic_0001>
module attributes {stable_mosaic.version = 11 : i64} {
  func.func @gkt_layer_kernel(%arg0: i32, %arg1: memref<1x32x1024xf32, #tpu.memory_space<vmem>>, %arg2: memref<8x32x1024xf32, #tpu.memory_space<vmem>>, %arg3: memref<8x32x1024xf32, #tpu.memory_space<vmem>>, %arg4: memref<32x32xf32, #tpu.memory_space<vmem>>, %arg5: memref<32x32xf32, #tpu.memory_space<vmem>>, %arg6: memref<32x32xf32, #tpu.memory_space<vmem>>, %arg7: memref<32x32xf32, #tpu.memory_space<vmem>>, %arg8: memref<32x1xf32, #tpu.memory_space<vmem>>, %arg9: memref<32x1xf32, #tpu.memory_space<vmem>>, %arg10: memref<32x1xf32, #tpu.memory_space<vmem>>, %arg11: memref<32x1xf32, #tpu.memory_space<vmem>>, %arg12: memref<1x32x1024xf32, #tpu.memory_space<vmem>>) attributes {dimension_semantics = [#tpu.dimension_semantics<parallel>], iteration_bounds = array<i64: 1>, scalar_prefetch = 0 : i64, scratch_operands = 0 : i64, tpu.core_type = #tpu.core_type<tc>, window_params = [{transform_indices = @transform_0, window_bounds = array<i64: 1, 32, 1024>}, {transform_indices = @transform_1, window_bounds = array<i64: 8, 32, 1024>}, {transform_indices = @transform_2, window_bounds = array<i64: 8, 32, 1024>}, {pipeline_mode = #tpu.pipeline_mode<synchronous>, transform_indices = @transform_3, window_bounds = array<i64: 32, 32>}, {pipeline_mode = #tpu.pipeline_mode<synchronous>, transform_indices = @transform_4, window_bounds = array<i64: 32, 32>}, {pipeline_mode = #tpu.pipeline_mode<synchronous>, transform_indices = @transform_5, window_bounds = array<i64: 32, 32>}, {pipeline_mode = #tpu.pipeline_mode<synchronous>, transform_indices = @transform_6, window_bounds = array<i64: 32, 32>}, {pipeline_mode = #tpu.pipeline_mode<synchronous>, transform_indices = @transform_7, window_bounds = array<i64: 32, 1>}, {pipeline_mode = #tpu.pipeline_mode<synchronous>, transform_indices = @transform_8, window_bounds = array<i64: 32, 1>}, {pipeline_mode = #tpu.pipeline_mode<synchronous>, transform_indices = @transform_9, window_bounds = array<i64: 32, 1>}, {pipeline_mode = #tpu.pipeline_mode<synchronous>, transform_indices = @transform_10, window_bounds = array<i64: 32, 1>}, {transform_indices = @transform_11, window_bounds = array<i64: 1, 32, 1024>}]} {
    %c0 = arith.constant 0 : index
    %c0_0 = arith.constant 0 : index
    %c0_1 = arith.constant 0 : index
    %0 = vector.load %arg1[%c0, %c0_0, %c0_1] : memref<1x32x1024xf32, #tpu.memory_space<vmem>>, vector<1x32x1024xf32>
    %1 = vector.shape_cast %0 : vector<1x32x1024xf32> to vector<32x1024xf32>
    %c0_2 = arith.constant 0 : index
    %c0_3 = arith.constant 0 : index
    %2 = vector.load %arg8[%c0_2, %c0_3] : memref<32x1xf32, #tpu.memory_space<vmem>>, vector<32x1xf32>
    %c0_4 = arith.constant 0 : index
    %c0_5 = arith.constant 0 : index
    %3 = vector.load %arg9[%c0_4, %c0_5] : memref<32x1xf32, #tpu.memory_space<vmem>>, vector<32x1xf32>
    %cst = arith.constant dense<0.000000e+00> : vector<1024xf32>
    %4 = vector.multi_reduction <add>, %1, %cst [0] : vector<32x1024xf32> to vector<1024xf32>
    %5 = vector.shape_cast %4 : vector<1024xf32> to vector<1x1024xf32>
    %cst_6 = arith.constant 3.200000e+01 : f32
    %6 = vector.broadcast %cst_6 : f32 to vector<1x1024xf32>
    %7 = arith.divf %5, %6 : vector<1x1024xf32>
    %8 = arith.mulf %1, %1 : vector<32x1024xf32>
    %cst_7 = arith.constant dense<0.000000e+00> : vector<1024xf32>
    %9 = vector.multi_reduction <add>, %8, %cst_7 [0] : vector<32x1024xf32> to vector<1024xf32>
    %10 = vector.shape_cast %9 : vector<1024xf32> to vector<1x1024xf32>
    %cst_8 = arith.constant 3.200000e+01 : f32
    %11 = vector.broadcast %cst_8 : f32 to vector<1x1024xf32>
    %12 = arith.divf %10, %11 : vector<1x1024xf32>
    %13 = arith.mulf %7, %7 : vector<1x1024xf32>
    %14 = arith.subf %12, %13 : vector<1x1024xf32>
    %15 = vector.broadcast %7 : vector<1x1024xf32> to vector<32x1024xf32>
    %16 = arith.subf %1, %15 : vector<32x1024xf32>
    %cst_9 = arith.constant 9.99999974E-6 : f32
    %17 = vector.broadcast %cst_9 : f32 to vector<1x1024xf32>
    %18 = arith.addf %14, %17 : vector<1x1024xf32>
    %19 = math.rsqrt %18 : vector<1x1024xf32>
    %20 = vector.broadcast %19 : vector<1x1024xf32> to vector<32x1024xf32>
    %21 = arith.mulf %16, %20 : vector<32x1024xf32>
    %22 = vector.broadcast %2 : vector<32x1xf32> to vector<32x1024xf32>
    %23 = arith.mulf %21, %22 : vector<32x1024xf32>
    %24 = vector.broadcast %3 : vector<32x1xf32> to vector<32x1024xf32>
    %25 = arith.addf %23, %24 : vector<32x1024xf32>
    %c0_10 = arith.constant 0 : index
    %c0_11 = arith.constant 0 : index
    %26 = vector.load %arg4[%c0_10, %c0_11] : memref<32x32xf32, #tpu.memory_space<vmem>>, vector<32x32xf32>
    %cst_12 = arith.constant dense<0.000000e+00> : vector<32x1024xf32>
    %27 = tpu.matmul %26, %25, %cst_12 {dimension_numbers = #tpu.dot_dimension_numbers<[1], [0], [0], [1], [0, 0, 1, 1], [], []>} : vector<32x32xf32>, vector<32x1024xf32>, vector<32x1024xf32> -> vector<32x1024xf32>
    %28 = vector.shape_cast %27 : vector<32x1024xf32> to vector<1x32x1024xf32>
    %c0_13 = arith.constant 0 : index
    %c0_14 = arith.constant 0 : index
    %c0_15 = arith.constant 0 : index
    %29 = vector.load %arg2[%c0_13, %c0_14, %c0_15] : memref<8x32x1024xf32, #tpu.memory_space<vmem>>, vector<8x32x1024xf32>
    %30 = vector.broadcast %28 : vector<1x32x1024xf32> to vector<8x32x1024xf32>
    %31 = arith.mulf %30, %29 : vector<8x32x1024xf32>
    %cst_16 = arith.constant dense<0.000000e+00> : vector<8x1024xf32>
    %32 = vector.multi_reduction <add>, %31, %cst_16 [1] : vector<8x32x1024xf32> to vector<8x1024xf32>
    %cst_17 = arith.constant dense<0xFF800000> : vector<1024xf32>
    %33 = vector.multi_reduction <maximumf>, %32, %cst_17 [0] : vector<8x1024xf32> to vector<1024xf32>
    %34 = vector.shape_cast %33 : vector<1024xf32> to vector<1x1024xf32>
    %35 = vector.broadcast %34 : vector<1x1024xf32> to vector<8x1024xf32>
    %36 = arith.subf %32, %35 : vector<8x1024xf32>
    %37 = math.exp %36 : vector<8x1024xf32>
    %cst_18 = arith.constant dense<0.000000e+00> : vector<1024xf32>
    %38 = vector.multi_reduction <add>, %37, %cst_18 [0] : vector<8x1024xf32> to vector<1024xf32>
    %39 = vector.shape_cast %38 : vector<1024xf32> to vector<1x1024xf32>
    %40 = vector.broadcast %39 : vector<1x1024xf32> to vector<8x1024xf32>
    %41 = arith.divf %37, %40 : vector<8x1024xf32>
    %42 = vector.shape_cast %41 : vector<8x1024xf32> to vector<8x1x1024xf32>
    %c0_19 = arith.constant 0 : index
    %c0_20 = arith.constant 0 : index
    %c0_21 = arith.constant 0 : index
    %43 = vector.load %arg3[%c0_19, %c0_20, %c0_21] : memref<8x32x1024xf32, #tpu.memory_space<vmem>>, vector<8x32x1024xf32>
    %44 = vector.broadcast %42 : vector<8x1x1024xf32> to vector<8x32x1024xf32>
    %45 = arith.mulf %44, %43 : vector<8x32x1024xf32>
    %cst_22 = arith.constant dense<0.000000e+00> : vector<32x1024xf32>
    %46 = vector.multi_reduction <add>, %45, %cst_22 [0] : vector<8x32x1024xf32> to vector<32x1024xf32>
    %c0_23 = arith.constant 0 : index
    %c0_24 = arith.constant 0 : index
    %47 = vector.load %arg5[%c0_23, %c0_24] : memref<32x32xf32, #tpu.memory_space<vmem>>, vector<32x32xf32>
    %cst_25 = arith.constant dense<0.000000e+00> : vector<32x1024xf32>
    %48 = tpu.matmul %47, %46, %cst_25 {dimension_numbers = #tpu.dot_dimension_numbers<[1], [0], [0], [1], [0, 0, 1, 1], [], []>} : vector<32x32xf32>, vector<32x1024xf32>, vector<32x1024xf32> -> vector<32x1024xf32>
    %49 = arith.addf %48, %25 : vector<32x1024xf32>
    %c0_26 = arith.constant 0 : index
    %c0_27 = arith.constant 0 : index
    %50 = vector.load %arg10[%c0_26, %c0_27] : memref<32x1xf32, #tpu.memory_space<vmem>>, vector<32x1xf32>
    %c0_28 = arith.constant 0 : index
    %c0_29 = arith.constant 0 : index
    %51 = vector.load %arg11[%c0_28, %c0_29] : memref<32x1xf32, #tpu.memory_space<vmem>>, vector<32x1xf32>
    %cst_30 = arith.constant dense<0.000000e+00> : vector<1024xf32>
    %52 = vector.multi_reduction <add>, %49, %cst_30 [0] : vector<32x1024xf32> to vector<1024xf32>
    %53 = vector.shape_cast %52 : vector<1024xf32> to vector<1x1024xf32>
    %cst_31 = arith.constant 3.200000e+01 : f32
    %54 = vector.broadcast %cst_31 : f32 to vector<1x1024xf32>
    %55 = arith.divf %53, %54 : vector<1x1024xf32>
    %56 = arith.mulf %49, %49 : vector<32x1024xf32>
    %cst_32 = arith.constant dense<0.000000e+00> : vector<1024xf32>
    %57 = vector.multi_reduction <add>, %56, %cst_32 [0] : vector<32x1024xf32> to vector<1024xf32>
    %58 = vector.shape_cast %57 : vector<1024xf32> to vector<1x1024xf32>
    %cst_33 = arith.constant 3.200000e+01 : f32
    %59 = vector.broadcast %cst_33 : f32 to vector<1x1024xf32>
    %60 = arith.divf %58, %59 : vector<1x1024xf32>
    %61 = arith.mulf %55, %55 : vector<1x1024xf32>
    %62 = arith.subf %60, %61 : vector<1x1024xf32>
    %63 = vector.broadcast %55 : vector<1x1024xf32> to vector<32x1024xf32>
    %64 = arith.subf %49, %63 : vector<32x1024xf32>
    %cst_34 = arith.constant 9.99999974E-6 : f32
    %65 = vector.broadcast %cst_34 : f32 to vector<1x1024xf32>
    %66 = arith.addf %62, %65 : vector<1x1024xf32>
    %67 = math.rsqrt %66 : vector<1x1024xf32>
    %68 = vector.broadcast %67 : vector<1x1024xf32> to vector<32x1024xf32>
    %69 = arith.mulf %64, %68 : vector<32x1024xf32>
    %70 = vector.broadcast %50 : vector<32x1xf32> to vector<32x1024xf32>
    %71 = arith.mulf %69, %70 : vector<32x1024xf32>
    %72 = vector.broadcast %51 : vector<32x1xf32> to vector<32x1024xf32>
    %73 = arith.addf %71, %72 : vector<32x1024xf32>
    %c0_35 = arith.constant 0 : index
    %c0_36 = arith.constant 0 : index
    %74 = vector.load %arg6[%c0_35, %c0_36] : memref<32x32xf32, #tpu.memory_space<vmem>>, vector<32x32xf32>
    %cst_37 = arith.constant dense<0.000000e+00> : vector<32x1024xf32>
    %75 = tpu.matmul %74, %73, %cst_37 {dimension_numbers = #tpu.dot_dimension_numbers<[1], [0], [0], [1], [0, 0, 1, 1], [], []>} : vector<32x32xf32>, vector<32x1024xf32>, vector<32x1024xf32> -> vector<32x1024xf32>
    %cst_38 = arith.constant 0.000000e+00 : f32
    %76 = vector.broadcast %cst_38 : f32 to vector<32x1024xf32>
    %77 = arith.maximumf %75, %76 : vector<32x1024xf32>
    %c0_39 = arith.constant 0 : index
    %c0_40 = arith.constant 0 : index
    %78 = vector.load %arg7[%c0_39, %c0_40] : memref<32x32xf32, #tpu.memory_space<vmem>>, vector<32x32xf32>
    %cst_41 = arith.constant dense<0.000000e+00> : vector<32x1024xf32>
    %79 = tpu.matmul %78, %77, %cst_41 {dimension_numbers = #tpu.dot_dimension_numbers<[1], [0], [0], [1], [0, 0, 1, 1], [], []>} : vector<32x32xf32>, vector<32x1024xf32>, vector<32x1024xf32> -> vector<32x1024xf32>
    %80 = arith.addf %73, %79 : vector<32x1024xf32>
    %c0_42 = arith.constant 0 : index
    %c0_43 = arith.constant 0 : index
    %c0_44 = arith.constant 0 : index
    %81 = vector.load %arg12[%c0_42, %c0_43, %c0_44] : memref<1x32x1024xf32, #tpu.memory_space<vmem>>, vector<1x32x1024xf32>
    %82 = vector.shape_cast %81 : vector<1x32x1024xf32> to vector<32x1024xf32>
    %83 = vector.shape_cast %80 : vector<32x1024xf32> to vector<1x32x1024xf32>
    tpu.vector_store %arg12[%c0_42, %c0_43, %c0_44], %83 {strides = array<i32>} : memref<1x32x1024xf32, #tpu.memory_space<vmem>>, vector<1x32x1024xf32>,
    return
  }
  func.func @transform_0(%arg0: i32) -> (i32, i32, i32) {
    %c0_i32 = arith.constant 0 : i32
    %c0_i32_0 = arith.constant 0 : i32
    %c0_i32_1 = arith.constant 0 : i32
    return %c0_i32, %c0_i32_0, %arg0 : i32, i32, i32
  }
  func.func @transform_1(%arg0: i32) -> (i32, i32, i32) {
    %c0_i32 = arith.constant 0 : i32
    %c0_i32_0 = arith.constant 0 : i32
    %c0_i32_1 = arith.constant 0 : i32
    return %c0_i32, %c0_i32_0, %arg0 : i32, i32, i32
  }
  func.func @transform_2(%arg0: i32) -> (i32, i32, i32) {
    %c0_i32 = arith.constant 0 : i32
    %c0_i32_0 = arith.constant 0 : i32
    %c0_i32_1 = arith.constant 0 : i32
    return %c0_i32, %c0_i32_0, %arg0 : i32, i32, i32
  }
  func.func @transform_3(%arg0: i32) -> (i32, i32) {
    %c0_i32 = arith.constant 0 : i32
    %c0_i32_0 = arith.constant 0 : i32
    %c0_i32_1 = arith.constant 0 : i32
    return %c0_i32, %c0_i32_0 : i32, i32
  }
  func.func @transform_4(%arg0: i32) -> (i32, i32) {
    %c0_i32 = arith.constant 0 : i32
    %c0_i32_0 = arith.constant 0 : i32
    %c0_i32_1 = arith.constant 0 : i32
    return %c0_i32, %c0_i32_0 : i32, i32
  }
  func.func @transform_5(%arg0: i32) -> (i32, i32) {
    %c0_i32 = arith.constant 0 : i32
    %c0_i32_0 = arith.constant 0 : i32
    %c0_i32_1 = arith.constant 0 : i32
    return %c0_i32, %c0_i32_0 : i32, i32
  }
  func.func @transform_6(%arg0: i32) -> (i32, i32) {
    %c0_i32 = arith.constant 0 : i32
    %c0_i32_0 = arith.constant 0 : i32
    %c0_i32_1 = arith.constant 0 : i32
    return %c0_i32, %c0_i32_0 : i32, i32
  }
  func.func @transform_7(%arg0: i32) -> (i32, i32) {
    %c0_i32 = arith.constant 0 : i32
    %c0_i32_0 = arith.constant 0 : i32
    %c0_i32_1 = arith.constant 0 : i32
    return %c0_i32, %c0_i32_0 : i32, i32
  }
  func.func @transform_8(%arg0: i32) -> (i32, i32) {
    %c0_i32 = arith.constant 0 : i32
    %c0_i32_0 = arith.constant 0 : i32
    %c0_i32_1 = arith.constant 0 : i32
    return %c0_i32, %c0_i32_0 : i32, i32
  }
  func.func @transform_9(%arg0: i32) -> (i32, i32) {
    %c0_i32 = arith.constant 0 : i32
    %c0_i32_0 = arith.constant 0 : i32
    %c0_i32_1 = arith.constant 0 : i32
    return %c0_i32, %c0_i32_0 : i32, i32
  }
  func.func @transform_10(%arg0: i32) -> (i32, i32) {
    %c0_i32 = arith.constant 0 : i32
    %c0_i32_0 = arith.constant 0 : i32
    %c0_i32_1 = arith.constant 0 : i32
    return %c0_i32, %c0_i32_0 : i32, i32
  }
  func.func @transform_11(%arg0: i32) -> (i32, i32, i32) {
    %c0_i32 = arith.constant 0 : i32
    %c0_i32_0 = arith.constant 0 : i32
    %c0_i32_1 = arith.constant 0 : i32
    return %c0_i32, %c0_i32_0, %arg0 : i32, i32, i32
  }
}

</mosaic_0001>

<bundles_post_ra>
// kernel: tpu_custom_call.1
= control target key start
LH: loop header
LB: loop body
LE: loop exit
PB: predicated region body
PF: predicated region fallthrough
CT: control target
= control target key end

     0   :  { %16 = vsyncpa [#allocation3], 0  ;;  %s9198_s0 = inlined_call_operand.hbm [shape: f32[1,32,1024], index: 0, kind: input, shape index: {}]   ;;  %s9199_s1 = inlined_call_operand.hbm [shape: f32[8,32,1024], index: 1, kind: input, shape index: {}]   ;;  %s9200_s2 = inlined_call_operand.hbm [shape: f32[8,32,1024], index: 2, kind: input, shape index: {}]   ;;  %s9201_s3 = inlined_call_operand.vmem [shape: f32[32,32], index: 3, kind: input, shape index: {}]   ;;  %s9202_s4 = inlined_call_operand.vmem [shape: f32[32,32], index: 4, kind: input, shape index: {}]   ;;  %s9203_s5 = inlined_call_operand.vmem [shape: f32[32,32], index: 5, kind: input, shape index: {}]   ;;  %s9204_s6 = inlined_call_operand.vmem [shape: f32[32,32], index: 6, kind: input, shape index: {}]   ;;  %s9205_s7 = inlined_call_operand.vmem [shape: f32[32,1], index: 7, kind: input, shape index: {}]   ;;  %s9206_s8 = inlined_call_operand.vmem [shape: f32[32,1], index: 8, kind: input, shape index: {}]   ;;  %s9207_s9 = inlined_call_operand.vmem [shape: f32[32,1], index: 9, kind: input, shape index: {}]   ;;  %s9208_s10 = inlined_call_operand.vmem [shape: f32[32,1], index: 10, kind: input, shape index: {}]   ;;  %s9209_s11 = inlined_call_operand.hbm [shape: f32[1,32,1024], index: 11, kind: output, shape index: {}]  }
   0x1   :  { %17 = vsyncpa [#allocation6], 0 }
   0x2   :  { %18 = vsyncpa [#allocation4], 0  ;;  %s5659_s17 = smov [#allocation5]   ;;  %s5660_s19 = smov [#allocation2]  }
   0x3   :  { %s36_s18 = sshll.u32 %s5659_s17, 4  ;;  %s24_s20 = sshll.u32 %s5660_s19, 4  ;;  %s37_s18 = int_to_ptr.vmem [resolvable:$true] %s36_s18  ;;  %s5727_s20 = int_to_ptr.vmem [resolvable:$true] %s24_s20 }
   0x4   :  { %s5565_s23 = scalar_lea.hbm %s9199_s1, 32768 }
   0x5   :  { %p5566_p0 = scmp.ne.s32.totalorder %s9199_s1, %s5565_s23  ;;  %p5569_p1 = scmp.lt.u32.totalorder %s5565_s23, %s9199_s1 }
   0x7   :  { %p5571_p2 = pnand %p5569_p1, %p5566_p0 }
   0x9   :  { %5574 = shalt.err (!%p5571_p2)
}
   0xa   :  { %s5575_s28 = scalar_lea.vmem %s37_s18, 32768  ;;  %p5580_p4 = scmp.lt.s32.totalorder %s37_s18, %s37_s18 }
   0xb   :  { %p5576_p3 = scmp.ne.s32.totalorder %s37_s18, %s5575_s28  ;;  %p5581_p5 = scmp.lt.s32.totalorder %s5575_s28, %s5575_s28 }
   0xd   :  { %p5582_p6 = por %p5581_p5, %p5580_p4 }
   0xf   :  { %p5583_p7 = pnand %p5582_p6, %p5576_p3 }
  0x11   :  { %5586 = shalt.err (!%p5583_p7)
}
  0x12   :  { %s5661_s29 = smov 1024   ;;  %s5662_s30 = smov 64  }
  0x13   :  { %42 = dma.hbm_to_vmem [thread:$0]  %s9199_s1, 32768, %s37_s18, [#allocation6], %s5661_s29, %s5661_s29, %s5662_s30  }
  0x14   :  { %s5587_s16 = scalar_lea.hbm %s9198_s0, 4096 }
  0x15   :  { %p5588_p8 = scmp.ne.s32.totalorder %s9198_s0, %s5587_s16  ;;  %p5591_p9 = scmp.lt.u32.totalorder %s5587_s16, %s9198_s0 }
  0x17   :  { %p5593_p10 = pnand %p5591_p9, %p5588_p8 }
  0x19   :  { %5596 = shalt.err (!%p5593_p10)
}
  0x1a   :  { %s5597_s23 = scalar_lea.vmem %s5727_s20, 4096  ;;  %p5602_p12 = scmp.lt.s32.totalorder %s5727_s20, %s5727_s20 }
  0x1b   :  { %p5598_p11 = scmp.ne.s32.totalorder %s5727_s20, %s5597_s23  ;;  %p5603_p13 = scmp.lt.s32.totalorder %s5597_s23, %s5597_s23 }
  0x1d   :  { %p5604_p0 = por %p5603_p13, %p5602_p12 }
  0x1f   :  { %p5605_p1 = pnand %p5604_p0, %p5598_p11 }
  0x21   :  { %5608 = shalt.err (!%p5605_p1)
}
  0x22   :  { %30 = dma.hbm_to_vmem [thread:$0]  %s9198_s0, 4096, %s5727_s20, [#allocation3], %s5661_s29, %s5661_s29, %s5662_s30  }
  0x23   :  { %s5663_s24 = smov [#allocation7]   ;;  %s5609_s28 = scalar_lea.hbm %s9200_s2, 32768 }
  0x24   :  { %s48_s25 = sshll.u32 %s5663_s24, 4  ;;  %p5610_p2 = scmp.ne.s32.totalorder %s9200_s2, %s5609_s28  ;;  %s49_s25 = int_to_ptr.vmem [resolvable:$true] %s48_s25 }
  0x25   :  { %p5613_p3 = scmp.lt.u32.totalorder %s5609_s28, %s9200_s2 }
  0x27   :  { %p5615_p4 = pnand %p5613_p3, %p5610_p2 }
  0x29   :  { %5618 = shalt.err (!%p5615_p4)
}
  0x2a   :  { %s5619_s16 = scalar_lea.vmem %s49_s25, 32768  ;;  %p5624_p6 = scmp.lt.s32.totalorder %s49_s25, %s49_s25 }
  0x2b   :  { %p5620_p5 = scmp.ne.s32.totalorder %s49_s25, %s5619_s16  ;;  %p5625_p7 = scmp.lt.s32.totalorder %s5619_s16, %s5619_s16 }
  0x2d   :  { %p5626_p8 = por %p5625_p7, %p5624_p6 }
  0x2f   :  { %p5627_p9 = pnand %p5626_p8, %p5620_p5 }
  0x31   :  { %5630 = shalt.err (!%p5627_p9)
}
  0x32   :  { %54 = dma.hbm_to_vmem [thread:$0]  %s9200_s2, 32768, %s49_s25, [#allocation6], %s5661_s29, %s5661_s29, %s5662_s30  }
  0x33   :  { %5653 = dma.done.wait [#allocation3], 4096  }
  0x34   :  { %5654 = vsyncadd [#allocation3], 4294963200 }
  0x35   :  { %5655 = dma.done.wait [#allocation6], 65536  }
  0x36   :  { %5656 = vsyncadd [#allocation6], 4294901760  ;;  %v5664_v0 = vmov 0   ;;  %v116_v1 = vld [vmem:[%s9206_s8] sm:$0xff]  ;;  %v117_v3 = vld [vmem:[%s9206_s8 + $0x8] sm:$0xff]  ;;  %v9210_v27 = vmov 0.0  }
  0x37   :  { %5388 = vset.pattern.permute.xlu1 %v5664_v0  ;;  %5387 = vset.pattern.permute.xlu0 %v5664_v0  ;;  %v112_v2 = vld [vmem:[%s9205_s7] sm:$0xff]  ;;  %v113_v4 = vld [vmem:[%s9205_s7 + $0x8] sm:$0xff]  ;;  %v115_v5 = vld [vmem:[%s9205_s7 + $0x18] sm:$0xff]  ;;  %vm517_vm0 = vcmask 261120   ;;  %vm2287_vm1 = vcmask 1041409   ;;  %vm2290_vm2 = vcmask 1042434  }
  0x38   :  { %463 = vperm.xlu1 %5388, %v116_v1   ;;  %411 = vperm.xlu0 %5387, %v112_v2   ;;  %v114_v6 = vld [vmem:[%s9205_s7 + $0x10] sm:$0xff]  ;;  %v119_v7 = vld [vmem:[%s9206_s8 + $0x18] sm:$0xff]  ;;  %v3930_v9 = vld [vmem:[%s9207_s9 + $0x8] sm:$0xff]  ;;  %vm2293_vm3 = vcmask 1043459   ;;  %vm2296_vm4 = vcmask 1044484   ;;  %vm2299_vm5 = vcmask 1045509  }
  0x39   :  { %v118_v8 = vld [vmem:[%s9206_s8 + $0x10] sm:$0xff]  ;;  %v3929_v10 = vld [vmem:[%s9207_s9] sm:$0xff]  ;;  %v3934_v11 = vld [vmem:[%s9208_s10 + $0x8] sm:$0xff]  ;;  %594 = vmatprep.mubr.f32.mxu0 %v9210_v27  ;;  %683 = vmatprep.mubr.f32.mxu1 %v9210_v27  ;;  %vm2302_vm6 = vcmask 1046534   ;;  %vm2305_vm7 = vcmask 1047559  }
  0x3a   :  { %v3933_v12 = vld [vmem:[%s9208_s10] sm:$0xff]  ;;  %v3932_v13 = vld [vmem:[%s9207_s9 + $0x18] sm:$0xff]  ;;  %v3931_v14 = vld [vmem:[%s9207_s9 + $0x10] sm:$0xff] }
  0x3b   :  { %v3936_v15 = vld [vmem:[%s9208_s10 + $0x18] sm:$0xff]  ;;  %v3935_v16 = vld [vmem:[%s9208_s10 + $0x10] sm:$0xff]  ;;  %v5827_v17 = vld [vmem:[#allocation2 + $0x8] sm:$0xff] }
  0x3c   :  { %468 = vperm.xlu1 %5388, %v117_v3   ;;  %416 = vperm.xlu0 %5387, %v113_v4   ;;  %v5829_v18 = vld [vmem:[#allocation2 + $0x48] sm:$0xff]  ;;  %v202_v20 = vmul.f32 %v5827_v17, %v5827_v17  ;;  %v5839_v23 = vld [vmem:[#allocation2 + $0x18] sm:$0xff]  ;;  %v5843_v25 = vld [vmem:[#allocation2] sm:$0xff] }
  0x3d   :  { %v129_v19 = vadd.f32 %v5829_v18, %v5827_v17  ;;  %v210_v21 = vmul.f32 %v5829_v18, %v5829_v18  ;;  %v5837_v22 = vld [vmem:[#allocation2 + $0x88] sm:$0xff]  ;;  %v5841_v24 = vld [vmem:[#allocation2 + $0x58] sm:$0xff]  ;;  %v5845_v26 = vld [vmem:[#allocation2 + $0x40] sm:$0xff]  ;;  %v204_v34 = vmul.f32 %v5839_v23, %v5839_v23  ;;  %v201_v46 = vmul.f32 %v5843_v25, %v5843_v25 }
  0x3e   :  { %v5849_v28 = vld [vmem:[#allocation2 + $0xc8] sm:$0xff]  ;;  %v218_v30 = vmul.f32 %v5837_v22, %v5837_v22  ;;  %v147_v32 = vadd.f32 %v5841_v24, %v5839_v23  ;;  %v5856_v33 = vld [vmem:[#allocation2 + $0x98] sm:$0xff]  ;;  %v212_v35 = vmul.f32 %v5841_v24, %v5841_v24  ;;  %v120_v36 = vadd.f32 %v5845_v26, %v5843_v25  ;;  %v5864_v37 = vld [vmem:[#allocation2 + $0x80] sm:$0xff] }
  0x3f   :  { %v130_v29 = vadd.f32 %v129_v19, %v5837_v22  ;;  %v242_v31 = vadd.f32 %v210_v21, %v202_v20  ;;  %v226_v38 = vmul.f32 %v5849_v28, %v5849_v28  ;;  %v5869_v41 = vld [vmem:[#allocation2 + $0xd8] sm:$0xff]  ;;  %v220_v43 = vmul.f32 %v5856_v33, %v5856_v33  ;;  %v5879_v48 = vld [vmem:[#allocation2 + $0xc0] sm:$0xff]  ;;  %v5881_v49 = vld [vmem:[#allocation2 + $0x10] sm:$0xff] }
  0x40   :  { %426 = vperm.xlu1 %5388, %v115_v5   ;;  %421 = vperm.xlu0 %5387, %v114_v6   ;;  %v148_v42 = vadd.f32 %v147_v32, %v5856_v33  ;;  %v260_v44 = vadd.f32 %v212_v35, %v204_v34  ;;  %v121_v45 = vadd.f32 %v120_v36, %v5864_v37  ;;  %v5883_v50 = vld [vmem:[#allocation2 + $0x50] sm:$0xff]  ;;  %v5903_v63 = vld [vmem:[#allocation2 + $0x28] sm:$0xff]  ;;  %v5912_v5 = vld [vmem:[#allocation2 + $0x38] sm:$0xff] }
  0x41   :  { %v131_v39 = vadd.f32 %v130_v29, %v5849_v28  ;;  %v243_v40 = vadd.f32 %v242_v31, %v218_v30  ;;  %v209_v47 = vmul.f32 %v5845_v26, %v5845_v26  ;;  %v228_v51 = vmul.f32 %v5869_v41, %v5869_v41  ;;  %v5897_v60 = vld [vmem:[#allocation2 + $0x90] sm:$0xff]  ;;  %v5905_v0 = vld [vmem:[#allocation2 + $0x68] sm:$0xff]  ;;  %9395 = vst [vmem:[#allocation12_spill] sm:$0xff] %v5912_v5  ;;  %v5914_v6 = vld [vmem:[#allocation2 + $0x78] sm:$0xff] }
  0x42   :  { %v149_v54 = vadd.f32 %v148_v42, %v5869_v41  ;;  %v217_v55 = vmul.f32 %v5864_v37, %v5864_v37  ;;  %v261_v56 = vadd.f32 %v260_v44, %v220_v43  ;;  %v5893_v57 = vadd.f32 %v121_v45, %v5879_v48  ;;  %9396 = vst [vmem:[#allocation13_spill] sm:$0xff] %v5914_v6  ;;  %v5934_v20 = vld [vmem:[#allocation2 + $0x30] sm:$0xff]  ;;  %v5938_v30 = vld [vmem:[#allocation2 + $0xa8] sm:$0xff]  ;;  %v5948_v36 = vld [vmem:[#allocation2 + $0xb8] sm:$0xff] }
  0x43   :  { %v132_v52 = vrot.slane %v131_v39, 4  ;;  %v5887_v53 = vadd.f32 %v243_v40, %v226_v38  ;;  %v233_v58 = vadd.f32 %v209_v47, %v201_v46  ;;  %v138_v59 = vadd.f32 %v5883_v50, %v5881_v49  ;;  %9399 = vst [vmem:[#allocation16_spill] sm:$0xff] %v5934_v20  ;;  %v5936_v21 = vld [vmem:[#allocation2 + $0x70] sm:$0xff]  ;;  %9401 = vst [vmem:[#allocation18_spill] sm:$0xff] %v5948_v36  ;;  %v5957_v43 = vld [vmem:[#allocation2 + $0xa0] sm:$0xff] }
  0x44   :  { %478 = vperm.xlu1 %5388, %v119_v7   ;;  %473 = vperm.xlu0 %5387, %v118_v8   ;;  %v203_v61 = vmul.f32 %v5881_v49, %v5881_v49  ;;  %v211_v62 = vmul.f32 %v5883_v50, %v5883_v50  ;;  %v150_v3 = vrot.slane %v149_v54, 4  ;;  %v225_v4 = vmul.f32 %v5879_v48, %v5879_v48 }
  0x45   :  { %v5907_v1 = vadd.f32 %v132_v52, %v131_v39  ;;  %v5916_v7 = vadd.f32 %v261_v56, %v228_v51  ;;  %v123_v8 = vrot.slane %v5893_v57, 4  ;;  %v214_v19 = vmul.f32 %v5905_v0, %v5905_v0  ;;  %9400 = vst [vmem:[#allocation17_spill] sm:$0xff] %v5936_v21  ;;  %9402 = vst [vmem:[#allocation19_spill] sm:$0xff] %v5957_v43 }
  0x46   :  { %v251_v29 = vadd.f32 %v211_v62, %v203_v61  ;;  %v183_v31 = vadd.f32 %v5914_v6, %v5912_v5  ;;  %v208_v32 = vmul.f32 %v5912_v5, %v5912_v5  ;;  %v216_v34 = vmul.f32 %v5914_v6, %v5914_v6 }
  0x47   :  { %v5946_v35 = vadd.f32 %v150_v3, %v149_v54  ;;  %v174_v44 = vadd.f32 %v5936_v21, %v5934_v20  ;;  %v207_v45 = vmul.f32 %v5934_v20, %v5934_v20  ;;  %v215_v46 = vmul.f32 %v5936_v21, %v5936_v21 }
  0x48   :  { %4232 = vperm.xlu1 %5388, %v3930_v9   ;;  %4227 = vperm.xlu0 %5387, %v3929_v10   ;;  %v234_v9 = vadd.f32 %v233_v58, %v217_v55  ;;  %v139_v10 = vadd.f32 %v138_v59, %v5897_v60  ;;  %v222_v52 = vmul.f32 %v5938_v30, %v5938_v30  ;;  %v5970_v55 = vld [vmem:[#allocation2 + $0xb0] sm:$0xff]  ;;  %v5972_v58 = vld [vmem:[#allocation2 + $0xe8] sm:$0xff]  ;;  %v263_v3 = vrot.slane %v5916_v7, 4 }
  0x49   :  { %9403 = vst [vmem:[#allocation20_spill] sm:$0xff] %v5970_v55  ;;  %9404 = vst [vmem:[#allocation21_spill] sm:$0xff] %v5972_v58  ;;  %v184_v59 = vadd.f32 %v183_v31, %v5948_v36  ;;  %v224_v61 = vmul.f32 %v5948_v36, %v5948_v36  ;;  %v296_v62 = vadd.f32 %v216_v34, %v208_v32  ;;  %v5991_v36 = vld [vmem:[#allocation2 + $0xf0] sm:$0xff] }
  0x4a   :  { %v235_v27 = vadd.f32 %v234_v9, %v225_v4  ;;  %v223_v31 = vmul.f32 %v5970_v55, %v5970_v55  ;;  %v287_v2 = vadd.f32 %v215_v46, %v207_v45  ;;  %v230_v21 = vmul.f32 %v5972_v58, %v5972_v58  ;;  %9407 = vst [vmem:[#allocation24_spill] sm:$0xff] %v5991_v36 }
  0x4c   :  { %4284 = vperm.xlu1 %5388, %v3934_v11   ;;  %4279 = vperm.xlu0 %5387, %v3933_v12   ;;  %v5920_v11 = vld [vmem:[#allocation2 + $0x20] sm:$0xff] }
  0x4d   :  { %9397 = vst [vmem:[#allocation14_spill] sm:$0xff] %v5920_v11  ;;  %v5922_v12 = vld [vmem:[#allocation2 + $0x60] sm:$0xff]  ;;  %v205_v39 = vmul.f32 %v5920_v11, %v5920_v11 }
  0x4e   :  { %9398 = vst [vmem:[#allocation15_spill] sm:$0xff] %v5922_v12  ;;  %v156_v38 = vadd.f32 %v5922_v12, %v5920_v11  ;;  %v213_v40 = vmul.f32 %v5922_v12, %v5922_v12 }
  0x50   :  { %4242 = vperm.xlu1 %5388, %v3932_v13   ;;  %4237 = vperm.xlu0 %5387, %v3931_v14   ;;  %v5924_v13 = vld [vmem:[#allocation2 + $0xd0] sm:$0xff]  ;;  %v219_v14 = vmul.f32 %v5897_v60, %v5897_v60 }
  0x51   :  { %v140_v42 = vadd.f32 %v139_v10, %v5924_v13  ;;  %v227_v47 = vmul.f32 %v5924_v13, %v5924_v13  ;;  %v5978_v10 = vld [vmem:[#allocation2 + $0xf8] sm:$0xff] }
  0x52   :  { %v252_v56 = vadd.f32 %v251_v29, %v219_v14  ;;  %9405 = vst [vmem:[#allocation22_spill] sm:$0xff] %v5978_v10  ;;  %v5983_v14 = vld [vmem:[#allocation2 + $0xe0] sm:$0xff]  ;;  %v175_v29 = vadd.f32 %v174_v44, %v5970_v55  ;;  %v185_v4 = vadd.f32 %v184_v59, %v5978_v10  ;;  %v232_v9 = vmul.f32 %v5978_v10, %v5978_v10 }
  0x53   :  { %9406 = vst [vmem:[#allocation23_spill] sm:$0xff] %v5983_v14  ;;  %v141_v32 = vrot.slane %v140_v42, 4  ;;  %v229_v45 = vmul.f32 %v5983_v14, %v5983_v14  ;;  %v9408_v59 = vrot.slane %v5887_v53, 4 }
  0x54   :  { %4294 = vperm.xlu1 %5388, %v3936_v15   ;;  %4289 = vperm.xlu0 %5387, %v3935_v16   ;;  %v165_v15 = vadd.f32 %v5905_v0, %v5903_v63  ;;  %v206_v16 = vmul.f32 %v5903_v63, %v5903_v63  ;;  %v186_v55 = vrot.slane %v185_v4, 4 }
  0x56   :  { %v166_v51 = vadd.f32 %v165_v15, %v5938_v30  ;;  %v278_v54 = vadd.f32 %v214_v19, %v206_v16  ;;  %v157_v15 = vadd.f32 %v156_v38, %v5957_v43  ;;  %v221_v16 = vmul.f32 %v5957_v43, %v5957_v43 }
  0x57   :  { %v269_v19 = vadd.f32 %v213_v40, %v205_v39  ;;  %v253_v43 = vadd.f32 %v252_v56, %v227_v47  ;;  %v297_v39 = vadd.f32 %v296_v62, %v224_v61  ;;  %v124_v40 = vadd.f32 %v123_v8, %v5893_v57 }
  0x58   :  { %v167_v34 = vadd.f32 %v166_v51, %v5972_v58  ;;  %v279_v38 = vadd.f32 %v278_v54, %v222_v52  ;;  %v158_v44 = vadd.f32 %v157_v15, %v5983_v14  ;;  %v236_v51 = vrot.slane %v235_v27, 4 }
  0x59   :  { %v270_v46 = vadd.f32 %v269_v19, %v221_v16  ;;  %v176_v52 = vadd.f32 %v175_v29, %v5991_v36  ;;  %v231_v47 = vmul.f32 %v5991_v36, %v5991_v36  ;;  %v288_v54 = vadd.f32 %v287_v2, %v223_v31 }
  0x5a   :  { %v134_v56 = vrot.slane %v5907_v1, 2  ;;  %v246_v61 = vadd.f32 %v9408_v59, %v5887_v53  ;;  %v168_v57 = vrot.slane %v167_v34, 4  ;;  %v280_v8 = vadd.f32 %v279_v38, %v230_v21 }
  0x5b   :  { %v142_v62 = vadd.f32 %v141_v32, %v140_v42  ;;  %v254_v15 = vrot.slane %v253_v43, 4  ;;  %v298_v14 = vadd.f32 %v297_v39, %v232_v9  ;;  %v152_v16 = vrot.slane %v5946_v35, 2 }
  0x5c   :  { %v264_v19 = vadd.f32 %v263_v3, %v5916_v7  ;;  %v159_v29 = vrot.slane %v158_v44, 4  ;;  %v271_v10 = vadd.f32 %v270_v46, %v229_v45  ;;  %v125_v36 = vrot.slane %v124_v40, 2 }
  0x5d   :  { %v237_v2 = vadd.f32 %v236_v51, %v235_v27  ;;  %v177_v31 = vrot.slane %v176_v52, 4  ;;  %v289_v20 = vadd.f32 %v288_v54, %v231_v47  ;;  %v135_v12 = vadd.f32 %v134_v56, %v5907_v1 }
  0x5e   :  { %v247_v11 = vrot.slane %v246_v61, 2  ;;  %v169_v53 = vadd.f32 %v168_v57, %v167_v34  ;;  %v281_v59 = vrot.slane %v280_v8, 4  ;;  %v143_v21 = vrot.slane %v142_v62, 2 }
  0x5f   :  { %v255_v42 = vadd.f32 %v254_v15, %v253_v43  ;;  %v187_v32 = vadd.f32 %v186_v55, %v185_v4  ;;  %v299_v38 = vrot.slane %v298_v14, 4  ;;  %v153_v9 = vadd.f32 %v152_v16, %v5946_v35 }
  0x60   :  { %v265_v39 = vrot.slane %v264_v19, 2  ;;  %v160_v6 = vadd.f32 %v159_v29, %v158_v44  ;;  %v272_v7 = vrot.slane %v271_v10, 4  ;;  %v126_v3 = vadd.f32 %v125_v36, %v124_v40 }
  0x61   :  { %v238_v45 = vrot.slane %v237_v2, 2  ;;  %v178_v46 = vadd.f32 %v177_v31, %v176_v52  ;;  %v290_v27 = vrot.slane %v289_v20, 4  ;;  %v136_v51 = vrot.slane %v135_v12, 1 }
  0x62   :  { %v248_v47 = vadd.f32 %v247_v11, %v246_v61  ;;  %v170_v54 = vrot.slane %v169_v53, 2  ;;  %v282_v1 = vadd.f32 %v281_v59, %v280_v8  ;;  %v144_v56 = vadd.f32 %v143_v21, %v142_v62 }
  0x63   :  { %v256_v34 = vrot.slane %v255_v42, 2  ;;  %v188_v57 = vrot.slane %v187_v32, 2  ;;  %v300_v5 = vadd.f32 %v299_v38, %v298_v14  ;;  %v154_v43 = vrot.slane %v153_v9, 1 }
  0x64   :  { %v266_v55 = vadd.f32 %v265_v39, %v264_v19  ;;  %v161_v4 = vrot.slane %v160_v6, 2  ;;  %v273_v15 = vadd.f32 %v272_v7, %v271_v10  ;;  %v127_v35 = vrot.slane %v126_v3, 1 }
  0x65   :  { %v239_v16 = vadd.f32 %v238_v45, %v237_v2  ;;  %v179_v44 = vrot.slane %v178_v46, 2  ;;  %v291_v29 = vadd.f32 %v290_v27, %v289_v20  ;;  %v137_v36 = vadd.f32 %v136_v51, %v135_v12 }
  0x66   :  { %v249_v40 = vrot.slane %v248_v47, 1  ;;  %v171_v52 = vadd.f32 %v170_v54, %v169_v53  ;;  %v283_v31 = vrot.slane %v282_v1, 2  ;;  %v145_v58 = vrot.slane %v144_v56, 1 }
  0x67   :  { %v257_v11 = vadd.f32 %v256_v34, %v255_v42  ;;  %v189_v61 = vadd.f32 %v188_v57, %v187_v32  ;;  %v301_v8 = vrot.slane %v300_v5, 2  ;;  %v155_v62 = vadd.f32 %v154_v43, %v153_v9 }
  0x68   :  { %v267_v59 = vrot.slane %v266_v55, 1  ;;  %v162_v21 = vadd.f32 %v161_v4, %v160_v6  ;;  %v274_v14 = vrot.slane %v273_v15, 2  ;;  %v128_v38 = vadd.f32 %v127_v35, %v126_v3 }
  0x69   :  { %v240_v19 = vrot.slane %v239_v16, 1  ;;  %v180_v39 = vadd.f32 %v179_v44, %v178_v46  ;;  %v292_v10 = vrot.slane %v291_v29, 2  ;;  %v6011_v7 = vmul.f32 0.03125, %v137_v36 }
  0x6a   :  { %v250_v2 = vadd.f32 %v249_v40, %v248_v47  ;;  %v172_v20 = vrot.slane %v171_v52, 1  ;;  %v284_v12 = vadd.f32 %v283_v31, %v282_v1  ;;  %v146_v45 = vadd.f32 %v145_v58, %v144_v56 }
  0x6b   :  { %v258_v53 = vrot.slane %v257_v11, 1  ;;  %v190_v27 = vrot.slane %v189_v61, 1  ;;  %v302_v51 = vadd.f32 %v301_v8, %v300_v5  ;;  %v6013_v42 = vmul.f32 0.03125, %v155_v62 }
  0x6c   :  { %v268_v32 = vadd.f32 %v267_v59, %v266_v55  ;;  %v163_v9 = vrot.slane %v162_v21, 1  ;;  %v275_v54 = vadd.f32 %v274_v14, %v273_v15  ;;  %v6015_v6 = vmul.f32 0.03125, %v128_v38 }
  0x6d   :  { %v241_v3 = vadd.f32 %v240_v19, %v239_v16  ;;  %v181_v34 = vrot.slane %v180_v39, 1  ;;  %v293_v46 = vadd.f32 %v292_v10, %v291_v29  ;;  %v306_v57 = vmul.f32 0.03125, %v250_v2 }
  0x6e   :  { %v314_v47 = vmul.f32 %v6011_v7, %v6011_v7  ;;  %v173_v43 = vadd.f32 %v172_v20, %v171_v52  ;;  %v285_v1 = vrot.slane %v284_v12, 1  ;;  %v6019_v58 = vmul.f32 0.03125, %v146_v45 }
  0x6f   :  { %v259_v56 = vadd.f32 %v258_v53, %v257_v11  ;;  %v191_v5 = vadd.f32 %v190_v27, %v189_v61  ;;  %v303_v4 = vrot.slane %v302_v51, 1  ;;  %v308_v35 = vmul.f32 0.03125, %v268_v32 }
  0x70   :  { %v316_v55 = vmul.f32 %v6013_v42, %v6013_v42  ;;  %v164_v15 = vadd.f32 %v163_v9, %v162_v21  ;;  %v276_v44 = vrot.slane %v275_v54, 1  ;;  %v305_v16 = vmul.f32 0.03125, %v241_v3 }
  0x71   :  { %v313_v29 = vmul.f32 %v6015_v6, %v6015_v6  ;;  %v182_v36 = vadd.f32 %v181_v34, %v180_v39  ;;  %v294_v40 = vrot.slane %v293_v46, 1  ;;  %v322_v31 = vsub.f32 %v306_v57, %v314_v47 }
  0x72   :  { %v6025_v52 = vmul.f32 0.03125, %v173_v43  ;;  %v286_v8 = vadd.f32 %v285_v1, %v284_v12  ;;  %v307_v62 = vmul.f32 0.03125, %v259_v56  ;;  %v315_v11 = vmul.f32 %v6019_v58, %v6019_v58 }
  0x73   :  { %v6029_v61 = vmul.f32 0.03125, %v191_v5  ;;  %v304_v59 = vadd.f32 %v303_v4, %v302_v51  ;;  %v324_v14 = vsub.f32 %v308_v35, %v316_v55  ;;  %v6031_v21 = vmul.f32 0.03125, %v164_v15 }
  0x74   :  { %v277_v38 = vadd.f32 %v276_v44, %v275_v54  ;;  %v321_v19 = vsub.f32 %v305_v16, %v313_v29  ;;  %v6033_v10 = vmul.f32 0.03125, %v182_v36  ;;  %v295_v39 = vadd.f32 %v294_v40, %v293_v46 }
  0x75   :  { %v310_v2 = vmul.f32 0.03125, %v286_v8  ;;  %v318_v20 = vmul.f32 %v6025_v52, %v6025_v52  ;;  %v362_v12 = vadd.f32 1e-05, %v322_v31  ;;  %v323_v45 = vsub.f32 %v307_v62, %v315_v11 }
  0x76   :  { %v312_v53 = vmul.f32 0.03125, %v304_v59  ;;  %v320_v27 = vmul.f32 %v6029_v61, %v6029_v61  ;;  %v364_v32 = vadd.f32 1e-05, %v324_v14  ;;  %v309_v51 = vmul.f32 0.03125, %v277_v38 }
  0x77   :  { %v317_v9 = vmul.f32 %v6031_v21, %v6031_v21  ;;  %v361_v54 = vadd.f32 1e-05, %v321_v19  ;;  %v311_v3 = vmul.f32 0.03125, %v295_v39  ;;  %v319_v34 = vmul.f32 %v6033_v10, %v6033_v10 }
  0x78   :  { %v326_v46 = vsub.f32 %v310_v2, %v318_v20  ;;  %5389 = vrsqrt.f32 %v362_v12  ;;  %v363_v57 = vadd.f32 1e-05, %v323_v45  ;;  %v328_v47 = vsub.f32 %v312_v53, %v320_v27  ;;  %v9409_v45 = vld [vmem:[#allocation21_spill] sm:$0xff] }
  0x79   :  { %5391 = vrsqrt.f32 %v364_v32  ;;  %v325_v43 = vsub.f32 %v309_v51, %v317_v9  ;;  %v327_v1 = vsub.f32 %v311_v3, %v319_v34  ;;  %v330_v55 = vsub.f32 %v5827_v17, %v6011_v7  ;;  %v9410_v51 = vld [vmem:[#allocation12_spill] sm:$0xff]  ;;  %v9411_v9 = vld [vmem:[#allocation13_spill] sm:$0xff]  ;;  %v9413_v34 = vld [vmem:[#allocation15_spill] sm:$0xff] }
  0x7a   :  { %5393 = vrsqrt.f32 %v361_v54  ;;  %v366_v56 = vadd.f32 1e-05, %v326_v46  ;;  %v368_v5 = vadd.f32 1e-05, %v328_v47  ;;  %v338_v15 = vsub.f32 %v5829_v18, %v6011_v7  ;;  %v9412_v54 = vld [vmem:[#allocation14_spill] sm:$0xff] }
  0x7b   :  { %5395 = vrsqrt.f32 %v363_v57  ;;  %v365_v4 = vadd.f32 1e-05, %v325_v43  ;;  %v367_v35 = vadd.f32 1e-05, %v327_v1  ;;  %v332_v44 = vsub.f32 %v5839_v23, %v6013_v42  ;;  %v9414_v57 = vld [vmem:[#allocation16_spill] sm:$0xff]  ;;  %v9416_v1 = vld [vmem:[#allocation22_spill] sm:$0xff] }
  0x7c   :  { %5397 = vrsqrt.f32 %v366_v56  ;;  %v346_v16 = vsub.f32 %v5837_v22, %v6011_v7  ;;  %v340_v36 = vsub.f32 %v5841_v24, %v6013_v42  ;;  %v354_v40 = vsub.f32 %v5849_v28, %v6011_v7 }
  0x7d   :  { %5399 = vrsqrt.f32 %v368_v5  ;;  %v348_v17 = vsub.f32 %v5856_v33, %v6013_v42  ;;  %v329_v18 = vsub.f32 %v5843_v25, %v6015_v6  ;;  %v337_v23 = vsub.f32 %v5845_v26, %v6015_v6 }
  0x7e   :  { %5401 = vrsqrt.f32 %v365_v4  ;;  %v356_v22 = vsub.f32 %v5869_v41, %v6013_v42  ;;  %v345_v24 = vsub.f32 %v5864_v37, %v6015_v6  ;;  %v331_v28 = vsub.f32 %v5881_v49, %v6019_v58  ;;  %v9417_v4 = vld [vmem:[#allocation17_spill] sm:$0xff] }
  0x7f   :  { %5403 = vrsqrt.f32 %v367_v35  ;;  %v339_v33 = vsub.f32 %v5883_v50, %v6019_v58  ;;  %v353_v7 = vsub.f32 %v5879_v48, %v6015_v6  ;;  %v347_v25 = vsub.f32 %v5897_v60, %v6019_v58 }
  0x80   :  { %v355_v37 = vsub.f32 %v5924_v13, %v6019_v58  ;;  %v334_v13 = vsub.f32 %v5903_v63, %v6025_v52  ;;  %v342_v58 = vsub.f32 %v5905_v0, %v6025_v52  ;;  %v350_v19 = vsub.f32 %v5938_v30, %v6025_v52 }
  0x81   :  { %v358_v53 = vsub.f32 %v9409_v45, %v6025_v52  ;;  %v336_v63 = vsub.f32 %v9410_v51, %v6029_v61  ;;  %v344_v0 = vsub.f32 %v9411_v9, %v6029_v61  ;;  %v333_v30 = vsub.f32 %v9412_v54, %v6031_v21  ;;  %v9415_v52 = vld [vmem:[#allocation18_spill] sm:$0xff] }
  0x82   :  { %v5390_v29 = vpop.eup %5389  ;;  %v341_v46 = vsub.f32 %v9413_v34, %v6031_v21  ;;  %v335_v47 = vsub.f32 %v9414_v57, %v6033_v10  ;;  %v352_v43 = vsub.f32 %v9415_v52, %v6029_v61  ;;  %v360_v56 = vsub.f32 %v9416_v1, %v6029_v61 }
  0x83   :  { %v5392_v31 = vpop.eup %5391  ;;  %v378_v26 = vmul.f32 %v5390_v29, %v330_v55  ;;  %v6073_v62 = vmul.f32 %v5390_v29, %v338_v15  ;;  %v6075_v41 = vmul.f32 %v5390_v29, %v346_v16  ;;  %v6081_v59 = vmul.f32 %v5390_v29, %v354_v40  ;;  %v9418_v55 = vld [vmem:[#allocation19_spill] sm:$0xff]  ;;  %v9420_v29 = vld [vmem:[#allocation20_spill] sm:$0xff] }
  0x84   :  { %v5394_v8 = vpop.eup %5393  ;;  %v380_v11 = vmul.f32 %v5392_v31, %v332_v44  ;;  %v6079_v49 = vmul.f32 %v5392_v31, %v340_v36  ;;  %v6083_v50 = vmul.f32 %v5392_v31, %v348_v17  ;;  %v6087_v60 = vmul.f32 %v5392_v31, %v356_v22  ;;  %v9419_v44 = vld [vmem:[#allocation23_spill] sm:$0xff] }
  0x85   :  { %v5396_v42 = vpop.eup %5395  ;;  %v377_v48 = vmul.f32 %v5394_v8, %v329_v18  ;;  %v6085_v6 = vmul.f32 %v5394_v8, %v337_v23  ;;  %v6089_v14 = vmul.f32 %v5394_v8, %v345_v24  ;;  %v6091_v38 = vmul.f32 %v5394_v8, %v353_v7  ;;  %v9421_v24 = vld [vmem:[#allocation24_spill] sm:$0xff] }
  0x86   :  { %v5398_v39 = vpop.eup %5397  ;;  %v379_v2 = vmul.f32 %v5396_v42, %v331_v28  ;;  %v387_v20 = vmul.f32 %v5396_v42, %v339_v33  ;;  %v6099_v12 = vmul.f32 %v5396_v42, %v347_v25  ;;  %v6103_v32 = vmul.f32 %v5396_v42, %v355_v37 }
  0x87   :  { %v5400_v27 = vpop.eup %5399  ;;  %v343_v35 = vsub.f32 %v9417_v4, %v6033_v10  ;;  %v349_v15 = vsub.f32 %v9418_v55, %v6031_v21  ;;  %v357_v16 = vsub.f32 %v9419_v44, %v6031_v21  ;;  %v351_v36 = vsub.f32 %v9420_v29, %v6033_v10 }
  0x88   :  { %v5402_v3 = vpop.eup %5401  ;;  %v382_v40 = vmul.f32 %v5398_v39, %v334_v13  ;;  %v390_v17 = vmul.f32 %v5398_v39, %v342_v58  ;;  %v6127_v31 = vmul.f32 %v5398_v39, %v350_v19  ;;  %v6129_v18 = vmul.f32 %v5398_v39, %v358_v53 }
  0x89   :  { %v5404_v5 = vpop.eup %5403  ;;  %v384_v61 = vmul.f32 %v5400_v27, %v336_v63  ;;  %v392_v23 = vmul.f32 %v5400_v27, %v344_v0  ;;  %v381_v22 = vmul.f32 %v5402_v3, %v333_v30  ;;  %v359_v8 = vsub.f32 %v9421_v24, %v6033_v10 }
  0x8a   :  { %v389_v28 = vmul.f32 %v5402_v3, %v341_v46  ;;  %v383_v33 = vmul.f32 %v5404_v5, %v335_v47  ;;  %v6133_v7 = vmul.f32 %v5400_v27, %v352_v43  ;;  %v6135_v21 = vmul.f32 %v5400_v27, %v360_v56 }
  0x8b   :  { %v391_v42 = vmul.f32 %v5404_v5, %v343_v35  ;;  %v6137_v13 = vmul.f32 %v5402_v3, %v349_v15  ;;  %v6139_v58 = vmul.f32 %v5402_v3, %v357_v16  ;;  %v6141_v19 = vmul.f32 %v5404_v5, %v351_v36 }
  0x8c   :  { %v6143_v0 = vmul.f32 %v5404_v5, %v359_v8 }
  0xb7   :  { %v464_v25 = vpop.permute.xlu1 %463  ;;  %v412_v37 = vpop.permute.xlu0 %411 }
  0xb8   :  { %v430_v39 = vmul.f32 %v412_v37, %v378_v26  ;;  %v432_v45 = vmul.f32 %v412_v37, %v380_v11  ;;  %v429_v53 = vmul.f32 %v412_v37, %v377_v48  ;;  %v431_v51 = vmul.f32 %v412_v37, %v379_v2 }
  0xb9   :  { %v434_v10 = vmul.f32 %v412_v37, %v382_v40  ;;  %v436_v63 = vmul.f32 %v412_v37, %v384_v61  ;;  %v433_v9 = vmul.f32 %v412_v37, %v381_v22  ;;  %v435_v34 = vmul.f32 %v412_v37, %v383_v33 }
  0xba   :  { %v6145_v27 = vadd.f32 %v464_v25, %v430_v39  ;;  %v6147_v54 = vadd.f32 %v464_v25, %v432_v45  ;;  %v6149_v30 = vadd.f32 %v464_v25, %v429_v53  ;;  %v6151_v57 = vadd.f32 %v464_v25, %v431_v51 }
  0xbb   :  { %v469_v3 = vpop.permute.xlu1 %468  ;;  %v417_v46 = vpop.permute.xlu0 %416  ;;  %v6153_v26 = vadd.f32 %v464_v25, %v434_v10  ;;  %v6155_v11 = vadd.f32 %v464_v25, %v436_v63  ;;  %v6157_v48 = vadd.f32 %v464_v25, %v433_v9 }
  0xbc   :  { %9422 = vst [vmem:[#allocation21_spill] sm:$0xff] %v6145_v27  ;;  %9423 = vst [vmem:[#allocation12_spill] sm:$0xff] %v6147_v54  ;;  %v438_v2 = vmul.f32 %v417_v46, %v6073_v62  ;;  %v440_v47 = vmul.f32 %v417_v46, %v6079_v49  ;;  %v437_v52 = vmul.f32 %v417_v46, %v6085_v6 }
  0xbd   :  { %9424 = vst [vmem:[#allocation13_spill] sm:$0xff] %v6149_v30  ;;  %9425 = vst [vmem:[#allocation14_spill] sm:$0xff] %v6151_v57  ;;  %v439_v43 = vmul.f32 %v417_v46, %v387_v20  ;;  %v442_v1 = vmul.f32 %v417_v46, %v390_v17  ;;  %v444_v56 = vmul.f32 %v417_v46, %v392_v23 }
  0xbe   :  { %9426 = vst [vmem:[#allocation15_spill] sm:$0xff] %v6153_v26  ;;  %9427 = vst [vmem:[#allocation16_spill] sm:$0xff] %v6155_v11  ;;  %v441_v5 = vmul.f32 %v417_v46, %v389_v28  ;;  %v443_v4 = vmul.f32 %v417_v46, %v391_v42  ;;  %v6162_v35 = vadd.f32 %v469_v3, %v438_v2 }
  0xbf   :  { %9428 = vst [vmem:[#allocation18_spill] sm:$0xff] %v6157_v48  ;;  %v6164_v55 = vadd.f32 %v469_v3, %v440_v47  ;;  %v6166_v15 = vadd.f32 %v469_v3, %v437_v52  ;;  %v6168_v44 = vadd.f32 %v469_v3, %v439_v43  ;;  %v427_v16 = vpop.permute.xlu1 %426  ;;  %v422_v29 = vpop.permute.xlu0 %421  ;;  %v6170_v62 = vadd.f32 %v469_v3, %v442_v1  ;;  %v513_v1 = vld [vmem:[%s9201_s3] sm:$0xff] }
  0xc0   :  { %9429 = vst [vmem:[#allocation22_spill] sm:$0xff] %v6162_v35  ;;  %v6172_v49 = vadd.f32 %v469_v3, %v444_v56  ;;  %v6174_v6 = vadd.f32 %v469_v3, %v441_v5  ;;  %v6176_v20 = vadd.f32 %v464_v25, %v435_v34  ;;  %v5251_v36 = vpack.c.bf16 %v6162_v35, %v6145_v27  ;;  %v1024_v27 = vld [vmem:[#allocation5 + $0x450] sm:$0xff] }
  0xc1   :  { %9430 = vst [vmem:[#allocation17_spill] sm:$0xff] %v6164_v55  ;;  %9431 = vst [vmem:[#allocation19_spill] sm:$0xff] %v6166_v15  ;;  %v5259_v40 = vpack.c.bf16 %v6164_v55, %v6147_v54  ;;  %v5253_v17 = vpack.c.bf16 %v6166_v15, %v6149_v30  ;;  %v5261_v61 = vpack.c.bf16 %v6168_v44, %v6151_v57  ;;  %v928_v57 = vld [vmem:[#allocation5 + $0x150] sm:$0xff] }
  0xc2   :  { %9432 = vst [vmem:[#allocation23_spill] sm:$0xff] %v6168_v44  ;;  %9433 = vst [vmem:[#allocation20_spill] sm:$0xff] %v6170_v62  ;;  %v446_v23 = vmul.f32 %v422_v29, %v6075_v41  ;;  %v454_v22 = vmul.f32 %v427_v16, %v6081_v59  ;;  %v448_v24 = vmul.f32 %v422_v29, %v6083_v50  ;;  %5252 = vmatprep.subr.bf16.mxu0 %v5251_v36  ;;  %v1118_v44 = vld [vmem:[#allocation5 + $0x740] sm:$0xff] }
  0xc3   :  { %9434 = vst [vmem:[#allocation24_spill] sm:$0xff] %v6172_v49  ;;  %9435 = vst [vmem:[#allocation25_spill] sm:$0xff] %v6174_v6  ;;  %v6189_v8 = vadd.f32 %v469_v3, %v443_v4  ;;  %5260 = vmatprep.subr.bf16.mxu1 %v5259_v40  ;;  %v456_v28 = vmul.f32 %v427_v16, %v6087_v60  ;;  %v445_v33 = vmul.f32 %v422_v29, %v6089_v14  ;;  %v479_v37 = vpop.permute.xlu1 %478  ;;  %v474_v42 = vpop.permute.xlu0 %473 }
  0xc4   :  { %9436 = vst [vmem:[#allocation26_spill] sm:$0xff] %v6176_v20  ;;  %v453_v25 = vmul.f32 %v427_v16, %v6091_v38  ;;  %5254 = vmatpush1.bf16.msra.mxu0 %v5253_v17  ;;  %5262 = vmatpush1.bf16.msra.mxu1 %v5261_v61  ;;  %v447_v41 = vmul.f32 %v422_v29, %v6099_v12  ;;  %v514_v61 = vld [vmem:[%s9201_s3 + $0x8] sm:$0xff] }
  0xc5   :  { %9437 = vst [vmem:[#allocation27_spill] sm:$0xff] %v6189_v8  ;;  %v455_v59 = vmul.f32 %v427_v16, %v6103_v32  ;;  %v5267_v50 = vpack.c.bf16 %v6170_v62, %v6153_v26  ;;  %v6198_v39 = vadd.f32 %v474_v42, %v446_v23  ;;  %v6200_v45 = vadd.f32 %v479_v37, %v454_v22  ;;  %v515_v22 = vld [vmem:[%s9201_s3 + $0x10] sm:$0xff] }
  0xc6   :  { %v6202_v60 = vadd.f32 %v474_v42, %v448_v24  ;;  %v6204_v14 = vadd.f32 %v479_v37, %v456_v28  ;;  %v6206_v38 = vadd.f32 %v474_v42, %v445_v33  ;;  %v6208_v53 = vadd.f32 %v479_v37, %v453_v25  ;;  %v516_v24 = vld [vmem:[%s9201_s3 + $0x18] sm:$0xff]  ;;  %v886_v28 = vld [vmem:[#allocation5] sm:$0xff] }
  0xc7   :  { %9438 = vst [vmem:[#allocation28_spill] sm:$0xff] %v6198_v39  ;;  %9439 = vst [vmem:[#allocation29_spill] sm:$0xff] %v6200_v45  ;;  %v6210_v51 = vadd.f32 %v474_v42, %v447_v41  ;;  %v6212_v12 = vadd.f32 %v479_v37, %v455_v59  ;;  %v5255_v32 = vpack.c.bf16 %v6200_v45, %v6198_v39  ;;  %v918_v33 = vld [vmem:[#allocation5 + $0x100] sm:$0xff]  ;;  %v896_v39 = vld [vmem:[#allocation5 + $0x50] sm:$0xff] }
  0xc8   :  { %9440 = vst [vmem:[#allocation30_spill] sm:$0xff] %v6202_v60  ;;  %9441 = vst [vmem:[#allocation31_spill] sm:$0xff] %v6204_v14  ;;  %v5263_v10 = vpack.c.bf16 %v6204_v14, %v6202_v60  ;;  %v5275_v63 = vpack.c.bf16 %v6172_v49, %v6155_v11  ;;  %v5269_v9 = vpack.c.bf16 %v6174_v6, %v6157_v48  ;;  %v950_v25 = vld [vmem:[#allocation5 + $0x200] sm:$0xff]  ;;  %v889_v49 = vld [vmem:[#allocation5 + $0x18] sm:$0xff] }
  0xc9   :  { %9442 = vst [vmem:[#allocation32_spill] sm:$0xff] %v6206_v38  ;;  %9443 = vst [vmem:[#allocation33_spill] sm:$0xff] %v6208_v53  ;;  %v5257_v34 = vpack.c.bf16 %v6208_v53, %v6206_v38  ;;  %v5265_v3 = vpack.c.bf16 %v6212_v12, %v6210_v51  ;;  %v450_v46 = vmul.f32 %v422_v29, %v6127_v31  ;;  %5256 = vmatprep.subr.bf16.mxu0 %v5255_v32  ;;  %v1014_v41 = vld [vmem:[#allocation5 + $0x400] sm:$0xff]  ;;  %v985_v11 = vld [vmem:[#allocation5 + $0x318] sm:$0xff] }
  0xca   :  { %9444 = vst [vmem:[#allocation34_spill] sm:$0xff] %v6210_v51  ;;  %9445 = vst [vmem:[#allocation35_spill] sm:$0xff] %v6212_v12  ;;  %v458_v2 = vmul.f32 %v427_v16, %v6129_v18  ;;  %5264 = vmatprep.subr.bf16.mxu1 %v5263_v10  ;;  %v452_v47 = vmul.f32 %v422_v29, %v6133_v7  ;;  %v460_v52 = vmul.f32 %v427_v16, %v6135_v21  ;;  %v1046_v59 = vld [vmem:[#allocation5 + $0x500] sm:$0xff]  ;;  %v888_v10 = vld [vmem:[#allocation5 + $0x10] sm:$0xff] }
  0xcb   :  { %v449_v43 = vmul.f32 %v422_v29, %v6137_v13  ;;  %5258 = vmatpush1.bf16.msra.mxu0 %v5257_v34  ;;  %5266 = vmatpush1.bf16.msra.mxu1 %v5265_v3  ;;  %v6234_v56 = vadd.f32 %v474_v42, %v450_v46  ;;  %v457_v18 = vmul.f32 %v427_v16, %v6139_v58  ;;  %v1110_v32 = vld [vmem:[#allocation5 + $0x700] sm:$0xff]  ;;  %v984_v34 = vld [vmem:[#allocation5 + $0x310] sm:$0xff] }
  0xcc   :  { %v6236_v31 = vadd.f32 %v479_v37, %v458_v2  ;;  %5268 = vmatprep.subr.bf16.mxu0 %v5267_v50  ;;  %5276 = vmatprep.subr.bf16.mxu1 %v5275_v63  ;;  %v5277_v7 = vpack.c.bf16 %v6189_v8, %v6176_v20  ;;  %v6241_v21 = vadd.f32 %v474_v42, %v452_v47  ;;  %v1078_v50 = vld [vmem:[#allocation5 + $0x600] sm:$0xff]  ;;  %v920_v63 = vld [vmem:[#allocation5 + $0x110] sm:$0xff]  ;;  %v1017_v20 = vld [vmem:[#allocation5 + $0x418] sm:$0xff] }
  0xcd   :  { %9446 = vst [vmem:[#allocation36_spill] sm:$0xff] %v6234_v56  ;;  %v6243_v13 = vadd.f32 %v479_v37, %v460_v52  ;;  %v6245_v5 = vadd.f32 %v474_v42, %v449_v43  ;;  %v6247_v4 = vadd.f32 %v479_v37, %v457_v18  ;;  %v451_v36 = vmul.f32 %v422_v29, %v6141_v19  ;;  %v1016_v3 = vld [vmem:[#allocation5 + $0x410] sm:$0xff]  ;;  %v919_v18 = vld [vmem:[#allocation5 + $0x108] sm:$0xff]  ;;  %v894_v6 = vld [vmem:[#allocation5 + $0x40] sm:$0xff] }
  0xce   :  { %9447 = vst [vmem:[#allocation37_spill] sm:$0xff] %v6236_v31  ;;  %9448 = vst [vmem:[#allocation38_spill] sm:$0xff] %v6241_v21  ;;  %v459_v40 = vmul.f32 %v427_v16, %v6143_v0  ;;  %5187 = vmatmul.mubr.msk.f32.vlgmr.msra.gmra.mrb[0].mxu0 %vm517_vm0, %v513_v1  ;;  %5191 = vmatmul.mubr.msk.f32.vlgmr.msra.gmra.mrb[0].mxu1 %vm517_vm0, %v513_v1  ;;  %v5271_v58 = vpack.c.bf16 %v6236_v31, %v6234_v56  ;;  %v9454_v0 = vmov 0.0   ;;  %v1048_v46 = vld [vmem:[#allocation5 + $0x510] sm:$0xff]  ;;  %v1081_v56 = vld [vmem:[#allocation5 + $0x618] sm:$0xff] }
  0xcf   :  { %9449 = vst [vmem:[#allocation39_spill] sm:$0xff] %v6243_v13  ;;  %9450 = vst [vmem:[#allocation40_spill] sm:$0xff] %v6245_v5  ;;  %v5279_v17 = vpack.c.bf16 %v6243_v13, %v6241_v21  ;;  %5270 = vmatpush1.bf16.msra.mxu0 %v5269_v9  ;;  %5278 = vmatpush1.bf16.msra.mxu1 %v5277_v7  ;;  %v6260_v23 = vadd.f32 %v474_v42, %v451_v36  ;;  %v2461_v42 = vlaneseq  ;;  %v952_v9 = vld [vmem:[#allocation5 + $0x210] sm:$0xff]  ;;  %v951_v7 = vld [vmem:[#allocation5 + $0x208] sm:$0xff] }
  0xd0   :  { %9451 = vst [vmem:[#allocation41_spill] sm:$0xff] %v6247_v4  ;;  %v6262_v19 = vadd.f32 %v479_v37, %v459_v40  ;;  %5272 = vmatprep.subr.bf16.mxu0 %v5271_v58  ;;  %600 = vmatprep.mubr.f32.mxu0 %v9454_v0  ;;  %v5273_v16 = vpack.c.bf16 %v6247_v4, %v6245_v5  ;;  %v982_v37 = vld [vmem:[#allocation5 + $0x300] sm:$0xff]  ;;  %v1080_v2 = vld [vmem:[#allocation5 + $0x610] sm:$0xff]  ;;  %v921_v4 = vld [vmem:[#allocation5 + $0x118] sm:$0xff] }
  0xd1   :  { %9452 = vst [vmem:[#allocation42_spill] sm:$0xff] %v6260_v23  ;;  %5280 = vmatprep.subr.bf16.mxu1 %v5279_v17  ;;  %689 = vmatprep.mubr.f32.mxu1 %v9454_v0  ;;  %v1112_v47 = vld [vmem:[#allocation5 + $0x710] sm:$0xff]  ;;  %v6304_v36 = vshrl.u32 %v2461_v42, 7  ;;  %v1022_v12 = vld [vmem:[#allocation5 + $0x440] sm:$0xff] }
  0xd2   :  { %9453 = vst [vmem:[#allocation43_spill] sm:$0xff] %v6262_v19  ;;  %v5281_v29 = vpack.c.bf16 %v6262_v19, %v6260_v23  ;;  %5188 = vmatmul.mubr.msk.f32.gmra.mrb[2].mxu0 %vm517_vm0, %v514_v61  ;;  %5192 = vmatmul.mubr.msk.f32.gmra.mrb[2].mxu1 %vm517_vm0, %v514_v61  ;;  %v1054_v45 = vld [vmem:[#allocation5 + $0x540] sm:$0xff] }
  0xd3   :  { %5274 = vmatpush1.bf16.msra.mxu0 %v5273_v16  ;;  %606 = vmatprep.mubr.f32.mxu0 %v9454_v0 }
  0xd4   :  { %5282 = vmatpush1.bf16.msra.mxu1 %v5281_v29  ;;  %695 = vmatprep.mubr.f32.mxu1 %v9454_v0  ;;  %v983_v29 = vld [vmem:[#allocation5 + $0x308] sm:$0xff] }
  0xd6   :  { %5189 = vmatmul.mubr.msk.f32.gmra.mrb[4].mxu0 %vm517_vm0, %v515_v22  ;;  %5193 = vmatmul.mubr.msk.f32.gmra.mrb[4].mxu1 %vm517_vm0, %v515_v22 }
  0xd7   :  { %612 = vmatprep.mubr.f32.mxu0 %v9454_v0  ;;  %701 = vmatprep.mubr.f32.mxu1 %v9454_v0 }
  0xda   :  { %5190 = vmatmul.mubr.msk.f32.gmra.mrb[6].mxu0 %vm517_vm0, %v516_v24  ;;  %5194 = vmatmul.mubr.msk.f32.gmra.mrb[6].mxu1 %vm517_vm0, %v516_v24 }
  0xdb   :  { %772 = vmatprep.mubr.f32.mxu0 %v9454_v0  ;;  %861 = vmatprep.mubr.f32.mxu1 %v9454_v0 }
  0xde   :  { %5195 = vmatmul.mubr.msk.f32.vlgmr.msra.gmra.mrb[8].mxu0 %vm517_vm0, %v513_v1  ;;  %5199 = vmatmul.mubr.msk.f32.vlgmr.msra.gmra.mrb[8].mxu1 %vm517_vm0, %v513_v1  ;;  %v887_v1 = vld [vmem:[#allocation5 + $0x8] sm:$0xff] }
  0xdf   :  { %778 = vmatprep.mubr.f32.mxu0 %v9454_v0  ;;  %867 = vmatprep.mubr.f32.mxu1 %v9454_v0 }
  0xe2   :  { %5196 = vmatmul.mubr.msk.f32.gmra.mrb[10].mxu0 %vm517_vm0, %v514_v61  ;;  %5200 = vmatmul.mubr.msk.f32.gmra.mrb[10].mxu1 %vm517_vm0, %v514_v61 }
  0xe3   :  { %784 = vmatprep.mubr.f32.mxu0 %v9454_v0  ;;  %873 = vmatprep.mubr.f32.mxu1 %v9454_v0 }
  0xe6   :  { %5197 = vmatmul.mubr.msk.f32.gmra.mrb[12].mxu0 %vm517_vm0, %v515_v22  ;;  %5201 = vmatmul.mubr.msk.f32.gmra.mrb[12].mxu1 %vm517_vm0, %v515_v22  ;;  %v1015_v22 = vld [vmem:[#allocation5 + $0x408] sm:$0xff] }
  0xe7   :  { %790 = vmatprep.mubr.f32.mxu0 %v9454_v0  ;;  %879 = vmatprep.mubr.f32.mxu1 %v9454_v0 }
  0xea   :  { %5198 = vmatmul.mubr.msk.f32.gmra.mrb[14].mxu0 %vm517_vm0, %v516_v24  ;;  %5202 = vmatmul.mubr.msk.f32.gmra.mrb[14].mxu1 %vm517_vm0, %v516_v24  ;;  %v1047_v24 = vld [vmem:[#allocation5 + $0x508] sm:$0xff] }
  0xeb   :  { %3637 = vmatprep.mubr.f32.mxu0 %v9454_v0  ;;  %3726 = vmatprep.mubr.f32.mxu1 %v9454_v0 }
 0x1a1   :  { %v596_v52 = vpop.f32.mrb[0].mxu0  ;;  %v685_v43 = vpop.f32.mrb[0].mxu1 }
 0x1a2   :  { %v6306_v40 = vmul.f32 %v886_v28, %v596_v52  ;;  %v6308_v58 = vmul.f32 %v918_v33, %v596_v52  ;;  %v6310_v17 = vmul.f32 %v950_v25, %v596_v52  ;;  %v6312_v61 = vmul.f32 %v982_v37, %v596_v52  ;;  %v598_v16 = vpop.f32.mrb[1].mxu0  ;;  %v687_v13 = vpop.f32.mrb[1].mxu1  ;;  %v1079_v28 = vld [vmem:[#allocation5 + $0x608] sm:$0xff] }
 0x1a3   :  { %v6314_v19 = vmul.f32 %v1014_v41, %v596_v52  ;;  %v6316_v21 = vmul.f32 %v1046_v59, %v596_v52  ;;  %v6318_v23 = vmul.f32 %v1078_v50, %v596_v52  ;;  %v6320_v42 = vmul.f32 %v1110_v32, %v596_v52  ;;  %v1111_v33 = vld [vmem:[#allocation5 + $0x708] sm:$0xff]  ;;  %v953_v41 = vld [vmem:[#allocation5 + $0x218] sm:$0xff] }
 0x1a4   :  { %v6322_v25 = vmul.f32 %v888_v10, %v685_v43  ;;  %v6324_v37 = vmul.f32 %v920_v63, %v685_v43  ;;  %v6326_v8 = vmul.f32 %v952_v9, %v685_v43  ;;  %v6328_v31 = vmul.f32 %v984_v34, %v685_v43  ;;  %v1049_v10 = vld [vmem:[#allocation5 + $0x518] sm:$0xff] }
 0x1a5   :  { %v6330_v59 = vmul.f32 %v1016_v3, %v685_v43  ;;  %v6332_v50 = vmul.f32 %v1048_v46, %v685_v43  ;;  %v6334_v32 = vmul.f32 %v1080_v2, %v685_v43  ;;  %v6336_v52 = vmul.f32 %v1112_v47, %v685_v43  ;;  %v602_v63 = vpop.f32.mrb[2].mxu0  ;;  %v6338_v5 = vpop.f32.mrb[2].mxu1  ;;  %v1113_v46 = vld [vmem:[#allocation5 + $0x718] sm:$0xff]  ;;  %v926_v2 = vld [vmem:[#allocation5 + $0x140] sm:$0xff] }
 0x1a6   :  { %v6340_v9 = vmul.f32 %v887_v1, %v598_v16  ;;  %v6342_v34 = vmul.f32 %v919_v18, %v598_v16  ;;  %v6344_v62 = vmul.f32 %v951_v7, %v598_v16  ;;  %v6346_v3 = vmul.f32 %v983_v29, %v598_v16  ;;  %v6348_v26 = vpop.f32.mrb[3].mxu0  ;;  %v6350_v47 = vpop.f32.mrb[3].mxu1  ;;  %v958_v18 = vld [vmem:[#allocation5 + $0x240] sm:$0xff] }
 0x1a7   :  { %v6352_v43 = vmul.f32 %v1015_v22, %v598_v16  ;;  %v6354_v48 = vmul.f32 %v1047_v24, %v598_v16  ;;  %v6356_v14 = vmul.f32 %v1079_v28, %v598_v16  ;;  %v6358_v1 = vmul.f32 %v1111_v33, %v598_v16  ;;  %v990_v7 = vld [vmem:[#allocation5 + $0x340] sm:$0xff] }
 0x1a8   :  { %v6360_v29 = vmul.f32 %v889_v49, %v687_v13  ;;  %v6362_v60 = vmul.f32 %v921_v4, %v687_v13  ;;  %v6364_v51 = vmul.f32 %v953_v41, %v687_v13  ;;  %v6366_v55 = vmul.f32 %v985_v11, %v687_v13  ;;  %v1086_v22 = vld [vmem:[#allocation5 + $0x640] sm:$0xff] }
 0x1a9   :  { %v6368_v24 = vmul.f32 %v1017_v20, %v687_v13  ;;  %v6370_v28 = vmul.f32 %v1049_v10, %v687_v13  ;;  %v6372_v16 = vmul.f32 %v1081_v56, %v687_v13  ;;  %v6374_v33 = vmul.f32 %v1113_v46, %v687_v13  ;;  %v6376_v53 = vpop.f32.mrb[4].mxu0  ;;  %v6378_v49 = vpop.f32.mrb[4].mxu1  ;;  %v960_v13 = vld [vmem:[#allocation5 + $0x250] sm:$0xff] }
 0x1aa   :  { %v1150_v4 = vmul.f32 %v894_v6, %v602_v63  ;;  %v1182_v41 = vmul.f32 %v926_v2, %v602_v63  ;;  %v1214_v54 = vmul.f32 %v958_v18, %v602_v63  ;;  %v1246_v11 = vmul.f32 %v990_v7, %v602_v63  ;;  %v6380_v38 = vpop.f32.mrb[5].mxu0  ;;  %v6382_v20 = vpop.f32.mrb[5].mxu1  ;;  %v992_v46 = vld [vmem:[#allocation5 + $0x350] sm:$0xff] }
 0x1ab   :  { %v1278_v10 = vmul.f32 %v1022_v12, %v602_v63  ;;  %v1310_v35 = vmul.f32 %v1054_v45, %v602_v63  ;;  %v1342_v56 = vmul.f32 %v1086_v22, %v602_v63  ;;  %v1374_v15 = vmul.f32 %v1118_v44, %v602_v63  ;;  %v1056_v7 = vld [vmem:[#allocation5 + $0x550] sm:$0xff] }
 0x1ac   :  { %v6385_v30 = vadd.f32 %v1150_v4, %v6306_v40  ;;  %v6388_v6 = vadd.f32 %v1182_v41, %v6308_v58  ;;  %v6391_v2 = vadd.f32 %v1214_v54, %v6310_v17  ;;  %v6394_v18 = vadd.f32 %v1246_v11, %v6312_v61  ;;  %v1088_v12 = vld [vmem:[#allocation5 + $0x650] sm:$0xff] }
 0x1ad   :  { %v1120_v45 = vld [vmem:[#allocation5 + $0x750] sm:$0xff]  ;;  %v6397_v44 = vadd.f32 %v1278_v10, %v6314_v19  ;;  %v6400_v63 = vadd.f32 %v1310_v35, %v6316_v21  ;;  %v6403_v40 = vadd.f32 %v1342_v56, %v6318_v23  ;;  %v6406_v58 = vadd.f32 %v1374_v15, %v6320_v42  ;;  %v6408_v54 = vpop.f32.mrb[6].mxu0  ;;  %v6410_v17 = vpop.f32.mrb[6].mxu1  ;;  %v895_v35 = vld [vmem:[#allocation5 + $0x48] sm:$0xff] }
 0x1ae   :  { %v1152_v61 = vmul.f32 %v896_v39, %v6338_v5  ;;  %v1184_v22 = vmul.f32 %v928_v57, %v6338_v5  ;;  %v1216_v19 = vmul.f32 %v960_v13, %v6338_v5  ;;  %v1248_v4 = vmul.f32 %v992_v46, %v6338_v5  ;;  %v927_v21 = vld [vmem:[#allocation5 + $0x148] sm:$0xff]  ;;  %v6416_v41 = vpop.f32.mrb[7].mxu0  ;;  %v6418_v23 = vpop.f32.mrb[7].mxu1 }
 0x1af   :  { %9455 = vst [vmem:[#allocation44_spill] sm:$0xff] %v6418_v23  ;;  %v1280_v15 = vmul.f32 %v1024_v27, %v6338_v5  ;;  %v1312_v42 = vmul.f32 %v1056_v7, %v6338_v5  ;;  %v1344_v11 = vmul.f32 %v1088_v12, %v6338_v5  ;;  %v1376_v39 = vmul.f32 %v1120_v45, %v6338_v5  ;;  %v959_v10 = vld [vmem:[#allocation5 + $0x248] sm:$0xff] }
 0x1b0   :  { %v991_v57 = vld [vmem:[#allocation5 + $0x348] sm:$0xff]  ;;  %v6425_v13 = vadd.f32 %v1152_v61, %v6322_v25  ;;  %v6428_v46 = vadd.f32 %v1184_v22, %v6324_v37  ;;  %v6431_v0 = vadd.f32 %v1216_v19, %v6326_v8  ;;  %v6434_v27 = vadd.f32 %v1248_v4, %v6328_v31  ;;  %v929_v4 = vld [vmem:[#allocation5 + $0x158] sm:$0xff] }
 0x1b1   :  { %v1023_v56 = vld [vmem:[#allocation5 + $0x448] sm:$0xff]  ;;  %v6437_v5 = vadd.f32 %v1280_v15, %v6330_v59  ;;  %v6440_v45 = vadd.f32 %v1312_v42, %v6332_v50  ;;  %v6443_v25 = vadd.f32 %v1344_v11, %v6334_v32  ;;  %v6446_v37 = vadd.f32 %v1376_v39, %v6336_v52  ;;  %v6448_v8 = vpop.f32.mrb[8].mxu0  ;;  %v6450_v61 = vpop.f32.mrb[8].mxu1  ;;  %v897_v50 = vld [vmem:[#allocation5 + $0x58] sm:$0xff] }
 0x1b2   :  { %v1055_v7 = vld [vmem:[#allocation5 + $0x548] sm:$0xff]  ;;  %9456 = vst [vmem:[#allocation45_spill] sm:$0xff] %v6450_v61  ;;  %v1151_v31 = vmul.f32 %v895_v35, %v6348_v26  ;;  %v1183_v22 = vmul.f32 %v927_v21, %v6348_v26  ;;  %v1215_v59 = vmul.f32 %v959_v10, %v6348_v26  ;;  %v1247_v19 = vmul.f32 %v991_v57, %v6348_v26  ;;  %v961_v11 = vld [vmem:[#allocation5 + $0x258] sm:$0xff]  ;;  %v6460_v35 = vpop.f32.mrb[9].mxu0 }
 0x1b3   :  { %v1087_v23 = vld [vmem:[#allocation5 + $0x648] sm:$0xff]  ;;  %v1279_v32 = vmul.f32 %v1023_v56, %v6348_v26  ;;  %v1311_v15 = vmul.f32 %v1055_v7, %v6348_v26  ;;  %v993_v39 = vld [vmem:[#allocation5 + $0x358] sm:$0xff]  ;;  %9457 = vst [vmem:[#allocation46_spill] sm:$0xff] %v6460_v35 }
 0x1b4   :  { %v1119_v12 = vld [vmem:[#allocation5 + $0x748] sm:$0xff]  ;;  %v1343_v52 = vmul.f32 %v1087_v23, %v6348_v26  ;;  %v1025_v61 = vld [vmem:[#allocation5 + $0x458] sm:$0xff]  ;;  %v6463_v21 = vadd.f32 %v1151_v31, %v6340_v9  ;;  %v6466_v10 = vadd.f32 %v1183_v22, %v6342_v34  ;;  %v6469_v57 = vadd.f32 %v1215_v59, %v6344_v62  ;;  %v6486_v62 = vpop.f32.mrb[9].mxu1  ;;  %v902_v59 = vld [vmem:[#allocation5 + $0x80] sm:$0xff] }
 0x1b5   :  { %v1375_v42 = vmul.f32 %v1119_v12, %v6348_v26  ;;  %v6472_v56 = vadd.f32 %v1247_v19, %v6346_v3  ;;  %v1057_v23 = vld [vmem:[#allocation5 + $0x558] sm:$0xff]  ;;  %v6475_v12 = vadd.f32 %v1279_v32, %v6352_v43  ;;  %v6478_v35 = vadd.f32 %v1311_v15, %v6354_v48  ;;  %v934_v19 = vld [vmem:[#allocation5 + $0x180] sm:$0xff] }
 0x1b6   :  { %v1089_v7 = vld [vmem:[#allocation5 + $0x658] sm:$0xff]  ;;  %v6481_v9 = vadd.f32 %v1343_v52, %v6356_v14  ;;  %v1153_v3 = vmul.f32 %v897_v50, %v6350_v47  ;;  %v1185_v31 = vmul.f32 %v929_v4, %v6350_v47  ;;  %v1217_v22 = vmul.f32 %v961_v11, %v6350_v47  ;;  %v966_v15 = vld [vmem:[#allocation5 + $0x280] sm:$0xff] }
 0x1b7   :  { %v1121_v26 = vld [vmem:[#allocation5 + $0x758] sm:$0xff]  ;;  %v6484_v34 = vadd.f32 %v1375_v42, %v6358_v1  ;;  %v1249_v43 = vmul.f32 %v993_v39, %v6350_v47  ;;  %v1281_v48 = vmul.f32 %v1025_v61, %v6350_v47  ;;  %v1313_v14 = vmul.f32 %v1057_v23, %v6350_v47  ;;  %v998_v52 = vld [vmem:[#allocation5 + $0x380] sm:$0xff] }
 0x1b8   :  { %v1345_v32 = vmul.f32 %v1089_v7, %v6350_v47  ;;  %v1377_v1 = vmul.f32 %v1121_v26, %v6350_v47  ;;  %v1030_v42 = vld [vmem:[#allocation5 + $0x480] sm:$0xff]  ;;  %v6497_v50 = vadd.f32 %v1153_v3, %v6360_v29  ;;  %v6500_v4 = vadd.f32 %v1185_v31, %v6362_v60 }
 0x1b9   :  { %v6503_v11 = vadd.f32 %v1217_v22, %v6364_v51  ;;  %v6506_v61 = vadd.f32 %v1249_v43, %v6366_v55  ;;  %v1062_v39 = vld [vmem:[#allocation5 + $0x580] sm:$0xff]  ;;  %v6509_v47 = vadd.f32 %v1281_v48, %v6368_v24  ;;  %v6512_v26 = vadd.f32 %v1313_v14, %v6370_v28  ;;  %v904_v22 = vld [vmem:[#allocation5 + $0x90] sm:$0xff] }
 0x1ba   :  { %v1094_v23 = vld [vmem:[#allocation5 + $0x680] sm:$0xff]  ;;  %v6515_v29 = vadd.f32 %v1345_v32, %v6372_v16  ;;  %v6518_v60 = vadd.f32 %v1377_v1, %v6374_v33  ;;  %v1158_v51 = vmul.f32 %v902_v59, %v6376_v53  ;;  %v1190_v55 = vmul.f32 %v934_v19, %v6376_v53  ;;  %v936_v24 = vld [vmem:[#allocation5 + $0x190] sm:$0xff] }
 0x1bb   :  { %v1126_v7 = vld [vmem:[#allocation5 + $0x780] sm:$0xff]  ;;  %v1222_v3 = vmul.f32 %v966_v15, %v6376_v53  ;;  %v1254_v31 = vmul.f32 %v998_v52, %v6376_v53  ;;  %v1286_v43 = vmul.f32 %v1030_v42, %v6376_v53  ;;  %v1318_v28 = vmul.f32 %v1062_v39, %v6376_v53  ;;  %v968_v33 = vld [vmem:[#allocation5 + $0x290] sm:$0xff] }
 0x1bc   :  { %v1350_v16 = vmul.f32 %v1094_v23, %v6376_v53  ;;  %v1382_v48 = vmul.f32 %v1126_v7, %v6376_v53  ;;  %v1000_v14 = vld [vmem:[#allocation5 + $0x390] sm:$0xff]  ;;  %v6529_v59 = vadd.f32 %v6385_v30, %v1158_v51  ;;  %v6532_v19 = vadd.f32 %v6388_v6, %v1190_v55  ;;  %v903_v55 = vld [vmem:[#allocation5 + $0x88] sm:$0xff] }
 0x1bd   :  { %v1032_v32 = vld [vmem:[#allocation5 + $0x490] sm:$0xff]  ;;  %v6535_v1 = vadd.f32 %v6391_v2, %v1222_v3  ;;  %v6538_v15 = vadd.f32 %v6394_v18, %v1254_v31  ;;  %v6541_v53 = vadd.f32 %v6397_v44, %v1286_v43  ;;  %v6544_v23 = vadd.f32 %v6400_v63, %v1318_v28  ;;  %v6552_v2 = vpop.f32.mrb[10].mxu0  ;;  %v935_v3 = vld [vmem:[#allocation5 + $0x188] sm:$0xff]  ;;  %v6558_v63 = vpop.f32.mrb[10].mxu1 }
 0x1be   :  { %v1064_v52 = vld [vmem:[#allocation5 + $0x590] sm:$0xff]  ;;  %v6547_v30 = vadd.f32 %v6403_v40, %v1350_v16  ;;  %v6550_v6 = vadd.f32 %v6406_v58, %v1382_v48  ;;  %v1160_v18 = vmul.f32 %v904_v22, %v6378_v49  ;;  %v1192_v7 = vmul.f32 %v936_v24, %v6378_v49  ;;  %9458 = vst [vmem:[#allocation47_spill] sm:$0xff] %v6558_v63  ;;  %v967_v28 = vld [vmem:[#allocation5 + $0x288] sm:$0xff] }
 0x1bf   :  { %v1096_v42 = vld [vmem:[#allocation5 + $0x690] sm:$0xff]  ;;  %v1224_v51 = vmul.f32 %v968_v33, %v6378_v49  ;;  %v1256_v44 = vmul.f32 %v1000_v14, %v6378_v49  ;;  %v1288_v40 = vmul.f32 %v1032_v32, %v6378_v49  ;;  %v1320_v31 = vmul.f32 %v1064_v52, %v6378_v49  ;;  %v999_v22 = vld [vmem:[#allocation5 + $0x388] sm:$0xff] }
 0x1c0   :  { %v1128_v39 = vld [vmem:[#allocation5 + $0x790] sm:$0xff]  ;;  %v1352_v58 = vmul.f32 %v1096_v42, %v6378_v49  ;;  %v1031_v16 = vld [vmem:[#allocation5 + $0x488] sm:$0xff]  ;;  %v6565_v24 = vadd.f32 %v6425_v13, %v1160_v18  ;;  %v6568_v48 = vadd.f32 %v6428_v46, %v1192_v7  ;;  %v1223_v18 = vmul.f32 %v967_v28, %v6380_v38 }
 0x1c1   :  { %v1384_v43 = vmul.f32 %v1128_v39, %v6378_v49  ;;  %v6571_v33 = vadd.f32 %v6431_v0, %v1224_v51  ;;  %v6574_v14 = vadd.f32 %v6434_v27, %v1256_v44  ;;  %v1063_v32 = vld [vmem:[#allocation5 + $0x588] sm:$0xff]  ;;  %v6577_v49 = vadd.f32 %v6437_v5, %v1288_v40  ;;  %v905_v51 = vld [vmem:[#allocation5 + $0x98] sm:$0xff] }
 0x1c2   :  { %v1095_v52 = vld [vmem:[#allocation5 + $0x688] sm:$0xff]  ;;  %v6580_v39 = vadd.f32 %v6440_v45, %v1320_v31  ;;  %v6583_v13 = vadd.f32 %v6443_v25, %v1352_v58  ;;  %v1159_v0 = vmul.f32 %v903_v55, %v6380_v38  ;;  %v1191_v27 = vmul.f32 %v935_v3, %v6380_v38  ;;  %v937_v5 = vld [vmem:[#allocation5 + $0x198] sm:$0xff]  ;;  %v6596_v55 = vpop.f32.mrb[11].mxu0 }
 0x1c3   :  { %v1127_v42 = vld [vmem:[#allocation5 + $0x788] sm:$0xff]  ;;  %v6586_v46 = vadd.f32 %v6446_v37, %v1384_v43  ;;  %v1255_v7 = vmul.f32 %v999_v22, %v6380_v38  ;;  %v1287_v44 = vmul.f32 %v1031_v16, %v6380_v38  ;;  %v1319_v45 = vmul.f32 %v1063_v32, %v6380_v38  ;;  %v969_v37 = vld [vmem:[#allocation5 + $0x298] sm:$0xff]  ;;  %9459 = vst [vmem:[#allocation48_spill] sm:$0xff] %v6596_v55 }
 0x1c4   :  { %v1351_v25 = vmul.f32 %v1095_v52, %v6380_v38  ;;  %v1383_v40 = vmul.f32 %v1127_v42, %v6380_v38  ;;  %v1001_v31 = vld [vmem:[#allocation5 + $0x398] sm:$0xff]  ;;  %v6599_v3 = vadd.f32 %v6463_v21, %v1159_v0  ;;  %v6602_v43 = vadd.f32 %v6466_v10, %v1191_v27 }
 0x1c5   :  { %v1033_v58 = vld [vmem:[#allocation5 + $0x498] sm:$0xff]  ;;  %v6605_v28 = vadd.f32 %v6469_v57, %v1223_v18  ;;  %v6608_v22 = vadd.f32 %v6472_v56, %v1255_v7  ;;  %v6611_v52 = vadd.f32 %v6475_v12, %v1287_v44  ;;  %v6614_v42 = vadd.f32 %v6478_v35, %v1319_v45  ;;  %v910_v18 = vld [vmem:[#allocation5 + $0xc0] sm:$0xff] }
 0x1c6   :  { %v1065_v16 = vld [vmem:[#allocation5 + $0x598] sm:$0xff]  ;;  %v6617_v21 = vadd.f32 %v6481_v9, %v1351_v25  ;;  %v6620_v10 = vadd.f32 %v6484_v34, %v1383_v40  ;;  %v1161_v57 = vmul.f32 %v905_v51, %v6382_v20  ;;  %v1193_v56 = vmul.f32 %v937_v5, %v6382_v20  ;;  %v942_v12 = vld [vmem:[#allocation5 + $0x1c0] sm:$0xff]  ;;  %v6630_v51 = vpop.f32.mrb[11].mxu1 }
 0x1c7   :  { %v1097_v32 = vld [vmem:[#allocation5 + $0x698] sm:$0xff]  ;;  %v1225_v0 = vmul.f32 %v969_v37, %v6382_v20  ;;  %v1257_v27 = vmul.f32 %v1001_v31, %v6382_v20  ;;  %v1289_v7 = vmul.f32 %v1033_v58, %v6382_v20  ;;  %v1321_v35 = vmul.f32 %v1065_v16, %v6382_v20  ;;  %v974_v34 = vld [vmem:[#allocation5 + $0x2c0] sm:$0xff]  ;;  %9460 = vst [vmem:[#allocation49_spill] sm:$0xff] %v6630_v51 }
 0x1c8   :  { %v1129_v38 = vld [vmem:[#allocation5 + $0x798] sm:$0xff]  ;;  %v1353_v9 = vmul.f32 %v1097_v32, %v6382_v20  ;;  %v1006_v45 = vld [vmem:[#allocation5 + $0x3c0] sm:$0xff]  ;;  %v6633_v5 = vadd.f32 %v6497_v50, %v1161_v57  ;;  %v6636_v40 = vadd.f32 %v6500_v4, %v1193_v56  ;;  %v1230_v57 = vmul.f32 %v974_v34, %v6408_v54 }
 0x1c9   :  { %v1385_v44 = vmul.f32 %v1129_v38, %v6382_v20  ;;  %v1038_v25 = vld [vmem:[#allocation5 + $0x4c0] sm:$0xff]  ;;  %v6639_v37 = vadd.f32 %v6503_v11, %v1225_v0  ;;  %v6642_v31 = vadd.f32 %v6506_v61, %v1257_v27  ;;  %v6645_v32 = vadd.f32 %v6509_v47, %v1289_v7 }
 0x1ca   :  { %v1070_v58 = vld [vmem:[#allocation5 + $0x5c0] sm:$0xff]  ;;  %v6648_v38 = vadd.f32 %v6512_v26, %v1321_v35  ;;  %v6651_v50 = vadd.f32 %v6515_v29, %v1353_v9  ;;  %v1166_v11 = vmul.f32 %v910_v18, %v6408_v54  ;;  %v1198_v61 = vmul.f32 %v942_v12, %v6408_v54 }
 0x1cb   :  { %v1102_v16 = vld [vmem:[#allocation5 + $0x6c0] sm:$0xff]  ;;  %v6654_v4 = vadd.f32 %v6518_v60, %v1385_v44  ;;  %v1262_v56 = vmul.f32 %v1006_v45, %v6408_v54  ;;  %v1294_v47 = vmul.f32 %v1038_v25, %v6408_v54  ;;  %v1326_v0 = vmul.f32 %v1070_v58, %v6408_v54 }
 0x1cc   :  { %v1134_v20 = vld [vmem:[#allocation5 + $0x7c0] sm:$0xff]  ;;  %v1358_v26 = vmul.f32 %v1102_v16, %v6408_v54  ;;  %v1400_v27 = vadd.f32 %v6529_v59, %v1166_v11  ;;  %v1472_v60 = vadd.f32 %v6532_v19, %v1198_v61  ;;  %v1544_v18 = vadd.f32 %v6535_v1, %v1230_v57  ;;  %v6672_v61 = vpop.f32.mrb[12].mxu0 }
 0x1cd   :  { %v1390_v29 = vmul.f32 %v1134_v20, %v6408_v54  ;;  %v1616_v12 = vadd.f32 %v6538_v15, %v1262_v56  ;;  %v1688_v7 = vadd.f32 %v6541_v53, %v1294_v47  ;;  %v1760_v35 = vadd.f32 %v6544_v23, %v1326_v0  ;;  %9461 = vst [vmem:[#allocation50_spill] sm:$0xff] %v6672_v61  ;;  %v6674_v56 = vpop.f32.mrb[12].mxu1 }
 0x1ce   :  { %v1832_v9 = vadd.f32 %v6547_v30, %v1358_v26  ;;  %v1401_v34 = vrot.slane %v1400_v27, 4  ;;  %v1473_v45 = vrot.slane %v1472_v60, 4  ;;  %v1545_v25 = vrot.slane %v1544_v18, 4  ;;  %9462 = vst [vmem:[#allocation51_spill] sm:$0xff] %v6674_v56 }
 0x1cf   :  { %v1904_v44 = vadd.f32 %v6550_v6, %v1390_v29  ;;  %v1617_v54 = vrot.slane %v1616_v12, 4  ;;  %v1689_v58 = vrot.slane %v1688_v7, 4  ;;  %v1761_v59 = vrot.slane %v1760_v35, 4 }
 0x1d0   :  { %v1833_v16 = vrot.slane %v1832_v9, 4  ;;  %v1402_v20 = vadd.f32 %v1401_v34, %v1400_v27  ;;  %v1474_v1 = vadd.f32 %v1473_v45, %v1472_v60  ;;  %v1546_v11 = vadd.f32 %v1545_v25, %v1544_v18 }
 0x1d1   :  { %v1905_v19 = vrot.slane %v1904_v44, 4  ;;  %v1618_v15 = vadd.f32 %v1617_v54, %v1616_v12  ;;  %v1690_v53 = vadd.f32 %v1689_v58, %v1688_v7  ;;  %v1762_v23 = vadd.f32 %v1761_v59, %v1760_v35  ;;  %v944_v59 = vld [vmem:[#allocation5 + $0x1d0] sm:$0xff] }
 0x1d2   :  { %v1834_v57 = vadd.f32 %v1833_v16, %v1832_v9  ;;  %v1403_v6 = vrot.slane %v1402_v20, 2  ;;  %v1475_v47 = vrot.slane %v1474_v1, 2  ;;  %v1547_v0 = vrot.slane %v1546_v11, 2  ;;  %v912_v9 = vld [vmem:[#allocation5 + $0xd0] sm:$0xff]  ;;  %v6676_v16 = vpop.f32.mrb[13].mxu0 }
 0x1d3   :  { %v1906_v30 = vadd.f32 %v1905_v19, %v1904_v44  ;;  %v1619_v26 = vrot.slane %v1618_v15, 2  ;;  %v1691_v29 = vrot.slane %v1690_v53, 2  ;;  %v1763_v51 = vrot.slane %v1762_v23, 2 }
 0x1d4   :  { %v1835_v55 = vrot.slane %v1834_v57, 2  ;;  %v1404_v27 = vadd.f32 %v1403_v6, %v1402_v20  ;;  %v1476_v60 = vadd.f32 %v1475_v47, %v1474_v1  ;;  %v1548_v18 = vadd.f32 %v1547_v0, %v1546_v11  ;;  %v976_v1 = vld [vmem:[#allocation5 + $0x2d0] sm:$0xff]  ;;  %v6695_v0 = vpop.f32.mrb[13].mxu1 }
 0x1d5   :  { %v1907_v63 = vrot.slane %v1906_v30, 2  ;;  %v1620_v12 = vadd.f32 %v1619_v26, %v1618_v15  ;;  %v1692_v34 = vadd.f32 %v1691_v29, %v1690_v53  ;;  %v1764_v45 = vadd.f32 %v1763_v51, %v1762_v23  ;;  %v1008_v11 = vld [vmem:[#allocation5 + $0x3d0] sm:$0xff]  ;;  %9464 = vst [vmem:[#allocation53_spill] sm:$0xff] %v6695_v0 }
 0x1d6   :  { %v1836_v7 = vadd.f32 %v1835_v55, %v1834_v57  ;;  %v1405_v44 = vrot.slane %v1404_v27, 1  ;;  %v1477_v25 = vrot.slane %v1476_v60, 1  ;;  %v1549_v54 = vrot.slane %v1548_v18, 1  ;;  %v1040_v53 = vld [vmem:[#allocation5 + $0x4d0] sm:$0xff] }
 0x1d7   :  { %v1908_v35 = vadd.f32 %v1907_v63, %v1906_v30  ;;  %v1621_v58 = vrot.slane %v1620_v12, 1  ;;  %v1693_v19 = vrot.slane %v1692_v34, 1  ;;  %v1765_v56 = vrot.slane %v1764_v45, 1  ;;  %v1072_v23 = vld [vmem:[#allocation5 + $0x5d0] sm:$0xff] }
 0x1d8   :  { %v1837_v61 = vrot.slane %v1836_v7, 1  ;;  %v6679_v20 = vsub.s32 0, %v6304_v36  ;;  %v6681_v15 = vadd.f32 %v1405_v44, %v1404_v27  ;;  %v6683_v55 = vadd.f32 %v1477_v25, %v1476_v60  ;;  %v1104_v57 = vld [vmem:[#allocation5 + $0x6d0] sm:$0xff] }
 0x1d9   :  { %v6685_v63 = vadd.f32 %v1549_v54, %v1548_v18  ;;  %v1909_v51 = vrot.slane %v1908_v35, 1  ;;  %v6687_v30 = vadd.f32 %v1621_v58, %v1620_v12  ;;  %v6689_v6 = vadd.f32 %v1693_v19, %v1692_v34 }
 0x1da   :  { %9463 = vst [vmem:[#allocation52_spill] sm:$0xff] %v6679_v20  ;;  %v6691_v47 = vadd.f32 %v1765_v56, %v1764_v45  ;;  %v6693_v36 = vadd.f32 %v1837_v61, %v1836_v7  ;;  %v1974_v26 = vmax.f32 %v6681_v15, %v6683_v55  ;;  %v1168_v29 = vmul.f32 %v912_v9, %v6410_v17 }
 0x1db   :  { %v1200_v27 = vmul.f32 %v944_v59, %v6410_v17  ;;  %v1232_v60 = vmul.f32 %v976_v1, %v6410_v17  ;;  %v1264_v18 = vmul.f32 %v1008_v11, %v6410_v17  ;;  %v1296_v12 = vmul.f32 %v1040_v53, %v6410_v17 }
 0x1dc   :  { %v1328_v56 = vmul.f32 %v1072_v23, %v6410_v17  ;;  %v1360_v61 = vmul.f32 %v1104_v57, %v6410_v17  ;;  %v6706_v34 = vadd.f32 %v1909_v51, %v1908_v35  ;;  %v1975_v45 = vmax.f32 %v1974_v26, %v6685_v63 }
 0x1dd   :  { %v1418_v7 = vadd.f32 %v6565_v24, %v1168_v29  ;;  %v1490_v9 = vadd.f32 %v6568_v48, %v1200_v27  ;;  %v1562_v44 = vadd.f32 %v6571_v33, %v1232_v60  ;;  %v1634_v25 = vadd.f32 %v6574_v14, %v1264_v18  ;;  %v6718_v14 = vpop.f32.mrb[14].mxu0  ;;  %v1136_v60 = vld [vmem:[#allocation5 + $0x7d0] sm:$0xff] }
 0x1de   :  { %v1706_v54 = vadd.f32 %v6577_v49, %v1296_v12  ;;  %v1778_v58 = vadd.f32 %v6580_v39, %v1328_v56  ;;  %v1976_v59 = vmax.f32 %v1975_v45, %v6687_v30  ;;  %v1850_v35 = vadd.f32 %v6583_v13, %v1360_v61  ;;  %9465 = vst [vmem:[#allocation54_spill] sm:$0xff] %v6718_v14  ;;  %v6724_v14 = vpop.f32.mrb[14].mxu1 }
 0x1df   :  { %v1419_v19 = vrot.slane %v1418_v7, 4  ;;  %v1491_v1 = vrot.slane %v1490_v9, 4  ;;  %v1563_v11 = vrot.slane %v1562_v44, 4  ;;  %v1635_v51 = vrot.slane %v1634_v25, 4  ;;  %9466 = vst [vmem:[#allocation55_spill] sm:$0xff] %v6724_v14 }
 0x1e0   :  { %v1707_v53 = vrot.slane %v1706_v54, 4  ;;  %v1779_v24 = vrot.slane %v1778_v58, 4  ;;  %v1977_v48 = vmax.f32 %v1976_v59, %v6689_v6  ;;  %v1851_v57 = vrot.slane %v1850_v35, 4 }
 0x1e1   :  { %v1420_v23 = vadd.f32 %v1419_v19, %v1418_v7  ;;  %v1492_v33 = vadd.f32 %v1491_v1, %v1490_v9  ;;  %v1564_v49 = vadd.f32 %v1563_v11, %v1562_v44  ;;  %v1636_v26 = vadd.f32 %v1635_v51, %v1634_v25 }
 0x1e2   :  { %v1708_v39 = vadd.f32 %v1707_v53, %v1706_v54  ;;  %v1780_v29 = vadd.f32 %v1779_v24, %v1778_v58  ;;  %v1978_v27 = vmax.f32 %v1977_v48, %v6691_v47  ;;  %v1852_v12 = vadd.f32 %v1851_v57, %v1850_v35 }
 0x1e3   :  { %v1421_v18 = vrot.slane %v1420_v23, 2  ;;  %v1493_v13 = vrot.slane %v1492_v33, 2  ;;  %v1565_v56 = vrot.slane %v1564_v49, 2  ;;  %v1637_v61 = vrot.slane %v1636_v26, 2 }
 0x1e4   :  { %v1709_v45 = vrot.slane %v1708_v39, 2  ;;  %v1781_v0 = vrot.slane %v1780_v29, 2  ;;  %v1979_v7 = vmax.f32 %v1978_v27, %v6693_v36  ;;  %v1853_v19 = vrot.slane %v1852_v12, 2 }
 0x1e5   :  { %v1422_v9 = vadd.f32 %v1421_v18, %v1420_v23  ;;  %v1494_v59 = vadd.f32 %v1493_v13, %v1492_v33  ;;  %v1392_v44 = vmul.f32 %v1136_v60, %v6410_v17  ;;  %v1566_v25 = vadd.f32 %v1565_v56, %v1564_v49 }
 0x1e6   :  { %v1638_v54 = vadd.f32 %v1637_v61, %v1636_v26  ;;  %v1710_v58 = vadd.f32 %v1709_v45, %v1708_v39  ;;  %v1980_v1 = vmax.f32 %v1979_v7, %v6706_v34  ;;  %v1782_v53 = vadd.f32 %v1781_v0, %v1780_v29  ;;  %v975_v7 = vld [vmem:[#allocation5 + $0x2c8] sm:$0xff] }
 0x1e7   :  { %v1423_v11 = vrot.slane %v1422_v9, 1  ;;  %v1495_v51 = vrot.slane %v1494_v59, 1  ;;  %v1567_v35 = vrot.slane %v1566_v25, 1  ;;  %v1854_v57 = vadd.f32 %v1853_v19, %v1852_v12 }
 0x1e8   :  { %v1639_v24 = vrot.slane %v1638_v54, 1  ;;  %v1711_v48 = vrot.slane %v1710_v58, 1  ;;  %v2030_v23 = vsub.f32 %v6681_v15, %v1980_v1  ;;  %v2038_v33 = vsub.f32 %v6683_v55, %v1980_v1  ;;  %v911_v15 = vld [vmem:[#allocation5 + $0xc8] sm:$0xff] }
 0x1e9   :  { %v2046_v17 = vsub.f32 %v6685_v63, %v1980_v1  ;;  %v2054_v49 = vsub.f32 %v6687_v30, %v1980_v1  ;;  %v2062_v26 = vsub.f32 %v6689_v6, %v1980_v1  ;;  %v2070_v39 = vsub.f32 %v6691_v47, %v1980_v1  ;;  %v943_v30 = vld [vmem:[#allocation5 + $0x1c8] sm:$0xff] }
 0x1ea   :  { %v2078_v0 = vsub.f32 %v6693_v36, %v1980_v1  ;;  %v2086_v29 = vsub.f32 %v6706_v34, %v1980_v1  ;;  %v2094_v27 = vmul.f32 1.442695, %v2030_v23  ;;  %v2110_v60 = vmul.f32 1.442695, %v2038_v33  ;;  %v1007_v1 = vld [vmem:[#allocation5 + $0x3c8] sm:$0xff] }
 0x1eb   :  { %v2126_v18 = vmul.f32 1.442695, %v2046_v17  ;;  %v6734_v13 = vadd.f32 %v1423_v11, %v1422_v9  ;;  %v2142_v12 = vmul.f32 1.442695, %v2054_v49  ;;  %v2158_v55 = vmul.f32 1.442695, %v2062_v26 }
 0x1ec   :  { %v6736_v56 = vadd.f32 %v1495_v51, %v1494_v59  ;;  %v1783_v63 = vrot.slane %v1782_v53, 1  ;;  %5405 = vpow2.f32 %v2094_v27  ;;  %v2174_v6 = vmul.f32 1.442695, %v2070_v39  ;;  %v1039_v11 = vld [vmem:[#allocation5 + $0x4c8] sm:$0xff] }
 0x1ed   :  { %v2190_v61 = vmul.f32 1.442695, %v2078_v0  ;;  %v2206_v47 = vmul.f32 1.442695, %v2086_v29  ;;  %5407 = vpow2.f32 %v2110_v60  ;;  %v6738_v36 = vadd.f32 %v1567_v35, %v1566_v25  ;;  %v1071_v51 = vld [vmem:[#allocation5 + $0x5c8] sm:$0xff] }
 0x1ee   :  { %v6740_v34 = vadd.f32 %v1639_v24, %v1638_v54  ;;  %v6742_v45 = vadd.f32 %v1711_v48, %v1710_v58  ;;  %5409 = vpow2.f32 %v2126_v18  ;;  %v1855_v9 = vrot.slane %v1854_v57, 1  ;;  %v1135_v60 = vld [vmem:[#allocation5 + $0x7c8] sm:$0xff] }
 0x1ef   :  { %v1922_v19 = vadd.f32 %v6586_v46, %v1392_v44  ;;  %v1988_v59 = vmax.f32 %v6734_v13, %v6736_v56  ;;  %5411 = vpow2.f32 %v2142_v12  ;;  %v6747_v23 = vadd.f32 %v1783_v63, %v1782_v53  ;;  %v1103_v46 = vld [vmem:[#allocation5 + $0x6c8] sm:$0xff] }
 0x1f0   :  { %v1167_v25 = vmul.f32 %v911_v15, %v6416_v41  ;;  %v1199_v54 = vmul.f32 %v943_v30, %v6416_v41  ;;  %5413 = vpow2.f32 %v2158_v55  ;;  %v1231_v44 = vmul.f32 %v975_v7, %v6416_v41 }
 0x1f1   :  { %v1923_v58 = vrot.slane %v1922_v19, 4  ;;  %v1989_v35 = vmax.f32 %v1988_v59, %v6738_v36  ;;  %5415 = vpow2.f32 %v2174_v6  ;;  %v1263_v24 = vmul.f32 %v1007_v1, %v6416_v41 }
 0x1f2   :  { %v1295_v48 = vmul.f32 %v1039_v11, %v6416_v41  ;;  %v1327_v53 = vmul.f32 %v1071_v51, %v6416_v41  ;;  %5417 = vpow2.f32 %v2190_v61  ;;  %v6756_v33 = vadd.f32 %v1855_v9, %v1854_v57 }
 0x1f3   :  { %v1924_v17 = vadd.f32 %v1923_v58, %v1922_v19  ;;  %v1990_v49 = vmax.f32 %v1989_v35, %v6740_v34  ;;  %5419 = vpow2.f32 %v2206_v47  ;;  %v6760_v26 = vmul.f32 %v1103_v46, %v6416_v41 }
 0x1f4   :  { %v1409_v39 = vadd.f32 %v6599_v3, %v1167_v25  ;;  %v1481_v0 = vadd.f32 %v6602_v43, %v1199_v54  ;;  %v1553_v57 = vadd.f32 %v6605_v28, %v1231_v44  ;;  %v1625_v18 = vadd.f32 %v6608_v22, %v1263_v24 }
 0x1f5   :  { %v1925_v29 = vrot.slane %v1924_v17, 2  ;;  %v1991_v27 = vmax.f32 %v1990_v49, %v6742_v45  ;;  %v6768_v55 = vadd.f32 %v6611_v52, %v1295_v48  ;;  %v6771_v63 = vadd.f32 %v6614_v42, %v1327_v53 }
 0x1f6   :  { %v1410_v15 = vrot.slane %v1409_v39, 4  ;;  %v1482_v12 = vrot.slane %v1481_v0, 4  ;;  %v6773_v3 = vpop.eup %5405  ;;  %v1554_v6 = vrot.slane %v1553_v57, 4  ;;  %v1626_v61 = vrot.slane %v1625_v18, 4 }
 0x1f7   :  { %9467 = vst [vmem:[#allocation56_spill] sm:$0xff] %v6773_v3  ;;  %v1926_v43 = vadd.f32 %v1925_v29, %v1924_v17  ;;  %v1992_v30 = vmax.f32 %v1991_v27, %v6747_v23  ;;  %v6776_v47 = vpop.eup %5407  ;;  %v6779_v28 = vmul.f32 %v1135_v60, %v6416_v41  ;;  %v1698_v52 = vrot.slane %v6768_v55, 4 }
 0x1f8   :  { %9468 = vst [vmem:[#allocation57_spill] sm:$0xff] %v6776_v47  ;;  %v1411_v22 = vadd.f32 %v1410_v15, %v1409_v39  ;;  %v1483_v7 = vadd.f32 %v1482_v12, %v1481_v0  ;;  %v6782_v9 = vpop.eup %5409  ;;  %v2286_v42 = vrot.slane %v6776_v47, 7  ;;  %v1555_v1 = vadd.f32 %v1554_v6, %v1553_v57 }
 0x1f9   :  { %9469 = vst [vmem:[#allocation58_spill] sm:$0xff] %v6782_v9  ;;  %v1927_v19 = vrot.slane %v1926_v43, 1  ;;  %v1993_v59 = vmax.f32 %v1992_v30, %v6756_v33  ;;  %v6786_v11 = vpop.eup %5411  ;;  %v2289_v51 = vrot.slane %v6782_v9, 6  ;;  %v1770_v41 = vrot.slane %v6771_v63, 4  ;;  %v1026_v9 = vld [vmem:[#allocation5 + $0x460] sm:$0xff] }
 0x1fa   :  { %9470 = vst [vmem:[#allocation59_spill] sm:$0xff] %v6786_v11  ;;  %v1412_v25 = vrot.slane %v1411_v22, 2  ;;  %v1484_v54 = vrot.slane %v1483_v7, 2  ;;  %v6790_v58 = vpop.eup %5413  ;;  %v2288_v35 = vsel %vm2287_vm1, %v2286_v42, %v6773_v3  ;;  %v2292_v46 = vrot.slane %v6786_v11, 5  ;;  %v962_v11 = vld [vmem:[#allocation5 + $0x260] sm:$0xff] }
 0x1fb   :  { %9471 = vst [vmem:[#allocation60_spill] sm:$0xff] %v6790_v58  ;;  %v1928_v44 = vadd.f32 %v1927_v19, %v1926_v43  ;;  %v1627_v24 = vadd.f32 %v1626_v61, %v1625_v18  ;;  %v6795_v48 = vpop.eup %5415  ;;  %v2291_v53 = vsel %vm2290_vm2, %v2289_v51, %v2288_v35  ;;  %v2295_v17 = vrot.slane %v6790_v58, 4  ;;  %v930_v58 = vld [vmem:[#allocation5 + $0x160] sm:$0xff] }
 0x1fc   :  { %9472 = vst [vmem:[#allocation61_spill] sm:$0xff] %v6795_v48  ;;  %v1413_v49 = vadd.f32 %v1412_v25, %v1411_v22  ;;  %v1485_v39 = vadd.f32 %v1484_v54, %v1483_v7  ;;  %v6799_v0 = vpop.eup %5417  ;;  %v2294_v29 = vsel %vm2293_vm3, %v2292_v46, %v2291_v53  ;;  %v2298_v27 = vrot.slane %v6795_v48, 3  ;;  %v1122_v3 = vld [vmem:[#allocation5 + $0x760] sm:$0xff] }
 0x1fd   :  { %9473 = vst [vmem:[#allocation62_spill] sm:$0xff] %v6799_v0  ;;  %v1994_v60 = vmax.f32 %v1993_v59, %v1928_v44  ;;  %v1556_v57 = vrot.slane %v1555_v1, 2  ;;  %v6803_v15 = vpop.eup %5419  ;;  %v2297_v18 = vsel %vm2296_vm4, %v2295_v17, %v2294_v29  ;;  %v2301_v12 = vrot.slane %v6799_v0, 2  ;;  %v1085_v0 = vld [vmem:[#allocation5 + $0x638] sm:$0xff] }
 0x1fe   :  { %9474 = vst [vmem:[#allocation63_spill] sm:$0xff] %v6803_v15  ;;  %v1414_v43 = vrot.slane %v1413_v49, 1  ;;  %v1486_v30 = vrot.slane %v1485_v39, 1  ;;  %v2300_v6 = vsel %vm2299_vm5, %v2298_v27, %v2297_v18  ;;  %v2304_v61 = vrot.slane %v6803_v15, 1  ;;  %v1053_v15 = vld [vmem:[#allocation5 + $0x538] sm:$0xff] }
 0x1ff   :  { %v2032_v22 = vsub.f32 %v6734_v13, %v1994_v60  ;;  %v2040_v7 = vsub.f32 %v6736_v56, %v1994_v60  ;;  %v2303_v42 = vsel %vm2302_vm6, %v2301_v12, %v2300_v6  ;;  %v2048_v19 = vsub.f32 %v6738_v36, %v1994_v60  ;;  %v6822_v6 = vpop.f32.mrb[15].mxu0 }
 0x200   :  { %v2056_v59 = vsub.f32 %v6740_v34, %v1994_v60  ;;  %v2064_v51 = vsub.f32 %v6742_v45, %v1994_v60  ;;  %v2306_v25 = vsel %vm2305_vm7, %v2304_v61, %v2303_v42  ;;  %v2072_v54 = vsub.f32 %v6747_v23, %v1994_v60  ;;  %9475 = vst [vmem:[#allocation64_spill] sm:$0xff] %v6822_v6 }
 0x201   :  { %v2080_v35 = vsub.f32 %v6756_v33, %v1994_v60  ;;  %v2088_v46 = vsub.f32 %v1928_v44, %v1994_v60  ;;  %v2413_v53 = vrot.slane %v2306_v25, 4  ;;  %v2098_v17 = vmul.f32 1.442695, %v2032_v22 }
 0x202   :  { %v2114_v13 = vmul.f32 1.442695, %v2040_v7  ;;  %v1557_v29 = vadd.f32 %v1556_v57, %v1555_v1  ;;  %v2130_v56 = vmul.f32 1.442695, %v2048_v19  ;;  %v2146_v27 = vmul.f32 1.442695, %v2056_v59 }
 0x203   :  { %v2162_v18 = vmul.f32 1.442695, %v2064_v51  ;;  %v6818_v12 = vadd.f32 %v1414_v43, %v1413_v49  ;;  %v2414_v36 = vadd.f32 %v2413_v53, %v2306_v25  ;;  %5421 = vpow2.f32 %v2098_v17  ;;  %v977_v53 = vld [vmem:[#allocation5 + $0x2d8] sm:$0xff] }
 0x204   :  { %v2178_v34 = vmul.f32 1.442695, %v2072_v54  ;;  %v6820_v45 = vadd.f32 %v1486_v30, %v1485_v39  ;;  %5423 = vpow2.f32 %v2114_v13  ;;  %v2194_v23 = vmul.f32 1.442695, %v2080_v35  ;;  %v1009_v17 = vld [vmem:[#allocation5 + $0x3d8] sm:$0xff] }
 0x205   :  { %v2210_v33 = vmul.f32 1.442695, %v2088_v46  ;;  %v1628_v44 = vrot.slane %v1627_v24, 2  ;;  %v2415_v60 = vrot.slane %v2414_v36, 2  ;;  %5425 = vpow2.f32 %v2130_v56 }
 0x206   :  { %v1699_v1 = vadd.f32 %v1698_v52, %v6768_v55  ;;  %v1771_v57 = vadd.f32 %v1770_v41, %v6771_v63  ;;  %5427 = vpow2.f32 %v2146_v27  ;;  %v1558_v49 = vrot.slane %v1557_v29, 1  ;;  %v1041_v27 = vld [vmem:[#allocation5 + $0x4d8] sm:$0xff] }
 0x207   :  { %v1629_v43 = vadd.f32 %v1628_v44, %v1627_v24  ;;  %v1841_v61 = vadd.f32 %v6617_v21, %v6760_v26  ;;  %v2416_v39 = vadd.f32 %v2415_v60, %v2414_v36  ;;  %5429 = vpow2.f32 %v2162_v18  ;;  %v913_v21 = vld [vmem:[#allocation5 + $0xd8] sm:$0xff]  ;;  %v9477_v18 = vld [vmem:[#allocation44_spill] sm:$0xff] }
 0x208   :  { %v1700_v30 = vrot.slane %v1699_v1, 2  ;;  %v1772_v22 = vrot.slane %v1771_v57, 2  ;;  %5431 = vpow2.f32 %v2178_v34  ;;  %v1913_v19 = vadd.f32 %v6620_v10, %v6779_v28  ;;  %v945_v26 = vld [vmem:[#allocation5 + $0x1d8] sm:$0xff] }
 0x209   :  { %v1630_v7 = vrot.slane %v1629_v43, 1  ;;  %v1842_v42 = vrot.slane %v1841_v61, 4  ;;  %v2417_v59 = vrot.slane %v2416_v39, 1  ;;  %5433 = vpow2.f32 %v2194_v23 }
 0x20a   :  { %v1701_v55 = vadd.f32 %v1700_v30, %v1699_v1  ;;  %v1773_v63 = vadd.f32 %v1772_v22, %v1771_v57  ;;  %5435 = vpow2.f32 %v2210_v33  ;;  %v6830_v52 = vadd.f32 %v1558_v49, %v1557_v29  ;;  %v1073_v57 = vld [vmem:[#allocation5 + $0x5d8] sm:$0xff] }
 0x20b   :  { %v1843_v41 = vadd.f32 %v1842_v42, %v1841_v61  ;;  %v1914_v24 = vrot.slane %v1913_v19, 4  ;;  %v6832_v51 = vadd.f32 %v2417_v59, %v2416_v39  ;;  %v1981_v35 = vmax.f32 %v6818_v12, %v6820_v45  ;;  %v1105_v39 = vld [vmem:[#allocation5 + $0x6d8] sm:$0xff] }
 0x20c   :  { %v1702_v25 = vrot.slane %v1701_v55, 1  ;;  %v1774_v54 = vrot.slane %v1773_v63, 1  ;;  %v6836_v46 = vadd.f32 %v1630_v7, %v1629_v43  ;;  %v1169_v36 = vmul.f32 %v913_v21, %v9477_v18 }
 0x20d   :  { %v1844_v10 = vrot.slane %v1843_v41, 2  ;;  %v1915_v28 = vadd.f32 %v1914_v24, %v1913_v19  ;;  %v6838_v13 = vpop.eup %5421  ;;  %v1982_v56 = vmax.f32 %v1981_v35, %v6830_v52  ;;  %v1201_v34 = vmul.f32 %v945_v26, %v9477_v18 }
 0x20e   :  { %9476 = vst [vmem:[#allocation65_spill] sm:$0xff] %v6838_v13  ;;  %v6845_v23 = vpop.eup %5423  ;;  %v6847_v33 = vadd.f32 %v1702_v25, %v1701_v55  ;;  %v6849_v44 = vadd.f32 %v1774_v54, %v1773_v63  ;;  %v1233_v30 = vmul.f32 %v977_v53, %v9477_v18  ;;  %v1265_v22 = vmul.f32 %v1009_v17, %v9477_v18 }
 0x20f   :  { %9478 = vst [vmem:[#allocation44_spill] sm:$0xff] %v6845_v23  ;;  %v1845_v60 = vadd.f32 %v1844_v10, %v1843_v41  ;;  %v1916_v1 = vrot.slane %v1915_v28, 2  ;;  %v6851_v49 = vpop.eup %5425  ;;  %v2321_v43 = vrot.slane %v6845_v23, 7  ;;  %v1983_v61 = vmax.f32 %v1982_v56, %v6836_v46  ;;  %v9500_v23 = vld [vmem:[#allocation46_spill] sm:$0xff] }
 0x210   :  { %9479 = vst [vmem:[#allocation66_spill] sm:$0xff] %v6851_v49  ;;  %v6857_v7 = vpop.eup %5427  ;;  %v2323_v42 = vrot.slane %v6851_v49, 6  ;;  %v1297_v55 = vmul.f32 %v1041_v27, %v9477_v18  ;;  %v6868_v26 = vmul.f32 %v1073_v57, %v9477_v18  ;;  %v957_v49 = vld [vmem:[#allocation5 + $0x238] sm:$0xff] }
 0x211   :  { %9480 = vst [vmem:[#allocation67_spill] sm:$0xff] %v6857_v7  ;;  %v1846_v19 = vrot.slane %v1845_v60, 1  ;;  %v1917_v59 = vadd.f32 %v1916_v1, %v1915_v28  ;;  %v6861_v63 = vpop.eup %5429  ;;  %v2322_v41 = vsel %vm2287_vm1, %v2321_v43, %v6838_v13  ;;  %v2325_v24 = vrot.slane %v6857_v7, 5  ;;  %v925_v7 = vld [vmem:[#allocation5 + $0x138] sm:$0xff] }
 0x212   :  { %9481 = vst [vmem:[#allocation68_spill] sm:$0xff] %v6861_v63  ;;  %v1984_v21 = vmax.f32 %v1983_v61, %v6847_v33  ;;  %v6870_v25 = vpop.eup %5431  ;;  %v2324_v54 = vsel %vm2290_vm2, %v2323_v42, %v2322_v41  ;;  %v2327_v35 = vrot.slane %v6861_v63, 4  ;;  %v6875_v28 = vmul.f32 %v1105_v39, %v9477_v18 }
 0x213   :  { %9482 = vst [vmem:[#allocation69_spill] sm:$0xff] %v6870_v25  ;;  %v1918_v10 = vrot.slane %v1917_v59, 1  ;;  %v6877_v53 = vpop.eup %5433  ;;  %v2326_v17 = vsel %vm2293_vm3, %v2325_v24, %v2324_v54  ;;  %v2329_v56 = vrot.slane %v6870_v25, 3  ;;  %v1847_v27 = vadd.f32 %v1846_v19, %v1845_v60 }
 0x214   :  { %9483 = vst [vmem:[#allocation70_spill] sm:$0xff] %v6877_v53  ;;  %v1985_v1 = vmax.f32 %v1984_v21, %v6849_v44  ;;  %v6882_v57 = vpop.eup %5435  ;;  %v2328_v43 = vsel %vm2296_vm4, %v2327_v35, %v2326_v17  ;;  %v2331_v61 = vrot.slane %v6877_v53, 2  ;;  %v1427_v39 = vadd.f32 %v6633_v5, %v1169_v36 }
 0x215   :  { %9484 = vst [vmem:[#allocation71_spill] sm:$0xff] %v6882_v57  ;;  %v6886_v42 = vadd.f32 %v1918_v10, %v1917_v59  ;;  %v2330_v41 = vsel %vm2299_vm5, %v2329_v56, %v2328_v43  ;;  %v2333_v29 = vrot.slane %v6882_v57, 1  ;;  %v1499_v54 = vadd.f32 %v6636_v40, %v1201_v34 }
 0x216   :  { %v1986_v24 = vmax.f32 %v1985_v1, %v1847_v27  ;;  %v2332_v60 = vsel %vm2302_vm6, %v2331_v61, %v2330_v41  ;;  %v1428_v19 = vrot.slane %v1427_v39, 4  ;;  %v1571_v21 = vadd.f32 %v6639_v37, %v1233_v30 }
 0x217   :  { %9485 = vst [vmem:[#allocation72_spill] sm:$0xff] %v6886_v42  ;;  %v1643_v35 = vadd.f32 %v6642_v31, %v1265_v22  ;;  %v2334_v17 = vsel %vm2305_vm7, %v2333_v29, %v2332_v60  ;;  %v1500_v5 = vrot.slane %v1499_v54, 4  ;;  %v1715_v36 = vadd.f32 %v6645_v32, %v1297_v55 }
 0x218   :  { %v6897_v59 = vmax.f32 %v1986_v24, %v6886_v42  ;;  %v2425_v10 = vrot.slane %v2334_v17, 4  ;;  %v1429_v56 = vadd.f32 %v1428_v19, %v1427_v39  ;;  %v1572_v1 = vrot.slane %v1571_v21, 4  ;;  %v1137_v19 = vld [vmem:[#allocation5 + $0x7d8] sm:$0xff] }
 0x219   :  { %v1644_v43 = vrot.slane %v1643_v35, 4 }
 0x21a   :  { %9486 = vst [vmem:[#allocation73_spill] sm:$0xff] %v6897_v59  ;;  %v2031_v40 = vsub.f32 %v6818_v12, %v6897_v59  ;;  %v2039_v37 = vsub.f32 %v6820_v45, %v6897_v59  ;;  %v2047_v31 = vsub.f32 %v6830_v52, %v6897_v59  ;;  %v2055_v29 = vsub.f32 %v6836_v46, %v6897_v59 }
 0x21b   :  { %v2426_v34 = vadd.f32 %v2425_v10, %v2334_v17  ;;  %v2063_v32 = vsub.f32 %v6847_v33, %v6897_v59  ;;  %v2071_v30 = vsub.f32 %v6849_v44, %v6897_v59  ;;  %v2079_v22 = vsub.f32 %v1847_v27, %v6897_v59  ;;  %v6915_v17 = vpop.f32.mrb[15].mxu1 }
 0x21c   :  { %v2096_v55 = vmul.f32 1.442695, %v2031_v40  ;;  %v2112_v45 = vmul.f32 1.442695, %v2039_v37  ;;  %v2128_v61 = vmul.f32 1.442695, %v2047_v31  ;;  %v1501_v33 = vadd.f32 %v1500_v5, %v1499_v54 }
 0x21d   :  { %v2427_v39 = vrot.slane %v2426_v34, 2  ;;  %v2144_v52 = vmul.f32 1.442695, %v2055_v29  ;;  %v2160_v41 = vmul.f32 1.442695, %v2063_v32  ;;  %v1430_v24 = vrot.slane %v1429_v56, 2 }
 0x21e   :  { %5437 = vpow2.f32 %v2096_v55  ;;  %v2176_v46 = vmul.f32 1.442695, %v2071_v30  ;;  %v2192_v60 = vmul.f32 1.442695, %v2079_v22  ;;  %9487 = vst [vmem:[#allocation74_spill] sm:$0xff] %v6915_v17  ;;  %v1573_v10 = vadd.f32 %v1572_v1, %v1571_v21 }
 0x21f   :  { %v2428_v44 = vadd.f32 %v2427_v39, %v2426_v34  ;;  %5439 = vpow2.f32 %v2112_v45  ;;  %v1431_v27 = vadd.f32 %v1430_v24, %v1429_v56  ;;  %v1502_v12 = vrot.slane %v1501_v33, 2 }
 0x220   :  { %5441 = vpow2.f32 %v2128_v61  ;;  %v1645_v40 = vadd.f32 %v1644_v43, %v1643_v35  ;;  %v1716_v37 = vrot.slane %v1715_v36, 4  ;;  %v1393_v31 = vmul.f32 %v1137_v19, %v9477_v18 }
 0x221   :  { %5443 = vpow2.f32 %v2144_v52  ;;  %v1432_v29 = vrot.slane %v1431_v27, 1  ;;  %v1574_v32 = vrot.slane %v1573_v10, 2  ;;  %v1503_v30 = vadd.f32 %v1502_v12, %v1501_v33  ;;  %v890_v52 = vld [vmem:[#allocation5 + $0x20] sm:$0xff] }
 0x222   :  { %5445 = vpow2.f32 %v2160_v41  ;;  %v1646_v22 = vrot.slane %v1645_v40, 2  ;;  %v1717_v55 = vadd.f32 %v1716_v37, %v1715_v36  ;;  %v2429_v54 = vrot.slane %v2428_v44, 1  ;;  %v922_v41 = vld [vmem:[#allocation5 + $0x120] sm:$0xff] }
 0x223   :  { %5447 = vpow2.f32 %v2176_v46  ;;  %v6918_v5 = vadd.f32 %v1432_v29, %v1431_v27  ;;  %v1575_v34 = vadd.f32 %v1574_v32, %v1573_v10  ;;  %v1504_v21 = vrot.slane %v1503_v30, 1  ;;  %v954_v33 = vld [vmem:[#allocation5 + $0x220] sm:$0xff] }
 0x224   :  { %5449 = vpow2.f32 %v2192_v60  ;;  %v1647_v56 = vadd.f32 %v1646_v22, %v1645_v40  ;;  %v1718_v1 = vrot.slane %v1717_v55, 2  ;;  %v9488_v35 = vrot.slane %v6832_v51, %v6679_v20 }
 0x225   :  { %v1576_v18 = vrot.slane %v1575_v34, 1  ;;  %v1787_v43 = vadd.f32 %v6648_v38, %v6868_v26  ;;  %v1859_v36 = vadd.f32 %v6651_v50, %v6875_v28  ;;  %v6927_v12 = vadd.f32 %v1504_v21, %v1503_v30 }
 0x226   :  { %5451 = vrcp.f32 %v9488_v35  ;;  %v1648_v45 = vrot.slane %v1647_v56, 1  ;;  %v1719_v61 = vadd.f32 %v1718_v1, %v1717_v55  ;;  %v1931_v39 = vadd.f32 %v6654_v4, %v1393_v31 }
 0x227   :  { %v6930_v24 = vadd.f32 %v2429_v54, %v2428_v44  ;;  %v6932_v46 = vadd.f32 %v1576_v18, %v1575_v34  ;;  %v1788_v51 = vrot.slane %v1787_v43, 4  ;;  %v1860_v60 = vrot.slane %v1859_v36, 4 }
 0x228   :  { %v6934_v19 = vpop.eup %5437  ;;  %v6936_v38 = vadd.f32 %v1648_v45, %v1647_v56  ;;  %v1720_v26 = vrot.slane %v1719_v61, 1  ;;  %v1932_v50 = vrot.slane %v1931_v39, 4  ;;  %v1995_v28 = vmax.f32 %v6918_v5, %v6927_v12 }
 0x229   :  { %9489 = vst [vmem:[#allocation75_spill] sm:$0xff] %v6930_v24  ;;  %9490 = vst [vmem:[#allocation76_spill] sm:$0xff] %v6934_v19  ;;  %v6940_v27 = vpop.eup %5439  ;;  %v1789_v4 = vadd.f32 %v1788_v51, %v1787_v43  ;;  %v1861_v10 = vadd.f32 %v1860_v60, %v1859_v36  ;;  %v6943_v44 = vmul.f32 %v890_v52, %v6448_v8  ;;  %v1018_v51 = vld [vmem:[#allocation5 + $0x420] sm:$0xff] }
 0x22a   :  { %9491 = vst [vmem:[#allocation77_spill] sm:$0xff] %v6940_v27  ;;  %v6946_v40 = vmul.f32 %v922_v41, %v6448_v8  ;;  %v6948_v37 = vpop.eup %5441  ;;  %v2307_v31 = vrot.slane %v6940_v27, 7  ;;  %v6951_v29 = vadd.f32 %v1720_v26, %v1719_v61  ;;  %v1933_v32 = vadd.f32 %v1932_v50, %v1931_v39  ;;  %v986_v41 = vld [vmem:[#allocation5 + $0x320] sm:$0xff]  ;;  %v988_v27 = vld [vmem:[#allocation5 + $0x330] sm:$0xff] }
 0x22b   :  { %9492 = vst [vmem:[#allocation78_spill] sm:$0xff] %v6948_v37  ;;  %v1996_v30 = vmax.f32 %v1995_v28, %v6932_v46  ;;  %v6954_v22 = vpop.eup %5443  ;;  %v2309_v55 = vrot.slane %v6948_v37, 6  ;;  %v1790_v54 = vrot.slane %v1789_v4, 2  ;;  %v1862_v34 = vrot.slane %v1861_v10, 2  ;;  %v1050_v60 = vld [vmem:[#allocation5 + $0x520] sm:$0xff]  ;;  %v892_v37 = vld [vmem:[#allocation5 + $0x30] sm:$0xff] }
 0x22c   :  { %9493 = vst [vmem:[#allocation79_spill] sm:$0xff] %v6954_v22  ;;  %v6958_v21 = vmul.f32 %v954_v33, %v6448_v8  ;;  %v6960_v56 = vpop.eup %5445  ;;  %v2308_v1 = vsel %vm2287_vm1, %v2307_v31, %v6934_v19  ;;  %v2311_v35 = vrot.slane %v6954_v22, 5  ;;  %v1934_v18 = vrot.slane %v1933_v32, 2  ;;  %v1114_v22 = vld [vmem:[#allocation5 + $0x720] sm:$0xff]  ;;  %v1084_v19 = vld [vmem:[#allocation5 + $0x630] sm:$0xff] }
 0x22d   :  { %9494 = vst [vmem:[#allocation80_spill] sm:$0xff] %v6960_v56  ;;  %v1997_v43 = vmax.f32 %v1996_v30, %v6936_v38  ;;  %v6966_v36 = vpop.eup %5447  ;;  %v2310_v45 = vsel %vm2290_vm2, %v2309_v55, %v2308_v1  ;;  %v2313_v61 = vrot.slane %v6960_v56, 4  ;;  %v1791_v39 = vadd.f32 %v1790_v54, %v1789_v4  ;;  %v1082_v30 = vld [vmem:[#allocation5 + $0x620] sm:$0xff]  ;;  %v924_v1 = vld [vmem:[#allocation5 + $0x130] sm:$0xff] }
 0x22e   :  { %9495 = vst [vmem:[#allocation81_spill] sm:$0xff] %v6966_v36  ;;  %v1863_v52 = vadd.f32 %v1862_v34, %v1861_v10  ;;  %v6970_v26 = vpop.eup %5449  ;;  %v2312_v50 = vsel %vm2293_vm3, %v2311_v35, %v2310_v45  ;;  %v2315_v28 = vrot.slane %v6966_v36, 3  ;;  %v1935_v33 = vadd.f32 %v1934_v18, %v1933_v32  ;;  %v956_v56 = vld [vmem:[#allocation5 + $0x230] sm:$0xff] }
 0x22f   :  { %9496 = vst [vmem:[#allocation82_spill] sm:$0xff] %v6970_v26  ;;  %v1998_v31 = vmax.f32 %v1997_v43, %v6951_v29  ;;  %v2314_v4 = vsel %vm2296_vm4, %v2313_v61, %v2312_v50  ;;  %v2317_v10 = vrot.slane %v6970_v26, 2  ;;  %v1792_v54 = vrot.slane %v1791_v39, 1  ;;  %v1020_v43 = vld [vmem:[#allocation5 + $0x430] sm:$0xff] }
 0x230   :  { %v6975_v55 = vpop.eup %5451  ;;  %v1864_v34 = vrot.slane %v1863_v52, 1  ;;  %v2316_v35 = vsel %vm2299_vm5, %v2315_v28, %v2314_v4  ;;  %v1936_v45 = vrot.slane %v1935_v33, 1  ;;  %v6981_v32 = vmul.f32 %v986_v41, %v6448_v8  ;;  %v1052_v36 = vld [vmem:[#allocation5 + $0x530] sm:$0xff]  ;;  %v891_v4 = vld [vmem:[#allocation5 + $0x28] sm:$0xff] }
 0x231   :  { %9497 = vst [vmem:[#allocation83_spill] sm:$0xff] %v6975_v55  ;;  %v6984_v18 = vmul.f32 %v1018_v51, %v6448_v8  ;;  %v6987_v61 = vsel %vm2302_vm6, %v2317_v10, %v2316_v35  ;;  %v6989_v50 = vadd.f32 %v1792_v54, %v1791_v39  ;;  %v6994_v57 = vmul.f32 %v1050_v60, %v6448_v8  ;;  %v1116_v28 = vld [vmem:[#allocation5 + $0x730] sm:$0xff]  ;;  %v923_v41 = vld [vmem:[#allocation5 + $0x128] sm:$0xff]  ;;  %v1058_v55 = vld [vmem:[#allocation5 + $0x560] sm:$0xff] }
 0x232   :  { %9498 = vst [vmem:[#allocation84_spill] sm:$0xff] %v6987_v61  ;;  %v6991_v26 = vadd.f32 %v1864_v34, %v1863_v52  ;;  %v6996_v53 = vadd.f32 %v1936_v45, %v1935_v33  ;;  %v6999_v51 = vmul.f32 %v1082_v30, %v6448_v8  ;;  %v7002_v25 = vmul.f32 %v1114_v22, %v6448_v8  ;;  %v9499_v10 = vld [vmem:[#allocation45_spill] sm:$0xff]  ;;  %v989_v61 = vld [vmem:[#allocation5 + $0x338] sm:$0xff] }
 0x233   :  { %v7005_v35 = vmul.f32 %v892_v37, %v9499_v10  ;;  %v955_v39 = vld [vmem:[#allocation5 + $0x228] sm:$0xff]  ;;  %v1999_v60 = vmax.f32 %v1998_v31, %v6989_v50  ;;  %v7009_v34 = vmul.f32 %v924_v1, %v9499_v10  ;;  %v7012_v33 = vmul.f32 %v956_v56, %v9499_v10  ;;  %v893_v56 = vld [vmem:[#allocation5 + $0x38] sm:$0xff] }
 0x234   :  { %v987_v52 = vld [vmem:[#allocation5 + $0x328] sm:$0xff]  ;;  %v7015_v30 = vmul.f32 %v988_v27, %v9499_v10  ;;  %v7018_v37 = vmul.f32 %v1020_v43, %v9499_v10  ;;  %v7021_v63 = vmul.f32 %v1052_v36, %v9499_v10  ;;  %v7024_v31 = vmul.f32 %v1084_v19, %v9499_v10  ;;  %v1021_v19 = vld [vmem:[#allocation5 + $0x438] sm:$0xff] }
 0x235   :  { %v1019_v54 = vld [vmem:[#allocation5 + $0x428] sm:$0xff]  ;;  %v7027_v1 = vmul.f32 %v1116_v28, %v9499_v10  ;;  %v2000_v27 = vmax.f32 %v1999_v60, %v6991_v26  ;;  %v7031_v13 = vmul.f32 %v891_v4, %v9500_v23  ;;  %v7034_v43 = vmul.f32 %v923_v41, %v9500_v23 }
 0x236   :  { %v1051_v45 = vld [vmem:[#allocation5 + $0x528] sm:$0xff]  ;;  %v7037_v36 = vmul.f32 %v955_v39, %v9500_v23  ;;  %v7040_v28 = vmul.f32 %v987_v52, %v9500_v23  ;;  %v7043_v10 = vmul.f32 %v1019_v54, %v9500_v23  ;;  %v7058_v48 = vmul.f32 %v893_v56, %v6486_v62  ;;  %v1117_v54 = vld [vmem:[#allocation5 + $0x738] sm:$0xff] }
 0x237   :  { %v1083_v8 = vld [vmem:[#allocation5 + $0x628] sm:$0xff]  ;;  %v7046_v60 = vmul.f32 %v1051_v45, %v9500_v23  ;;  %v7052_v41 = vmax.f32 %v2000_v27, %v6996_v53  ;;  %v7061_v52 = vmul.f32 %v925_v7, %v6486_v62  ;;  %v7064_v45 = vmul.f32 %v957_v49, %v6486_v62 }
 0x238   :  { %v1115_v22 = vld [vmem:[#allocation5 + $0x728] sm:$0xff]  ;;  %v7049_v4 = vmul.f32 %v1083_v8, %v9500_v23  ;;  %v7067_v8 = vmul.f32 %v989_v61, %v6486_v62  ;;  %v7070_v27 = vmul.f32 %v1021_v19, %v6486_v62  ;;  %v994_v19 = vld [vmem:[#allocation5 + $0x360] sm:$0xff]  ;;  %v7092_v17 = vmul.f32 %v1085_v0, %v6486_v62 }
 0x239   :  { %v7055_v39 = vmul.f32 %v1115_v22, %v9500_v23  ;;  %v7073_v23 = vmul.f32 %v1053_v15, %v6486_v62  ;;  %v898_v22 = vld [vmem:[#allocation5 + $0x60] sm:$0xff]  ;;  %v2033_v56 = vsub.f32 %v6918_v5, %v7052_v41  ;;  %v2041_v7 = vsub.f32 %v6927_v12, %v7052_v41 }
 0x23a   :  { %v2049_v49 = vsub.f32 %v6932_v46, %v7052_v41  ;;  %v2057_v61 = vsub.f32 %v6936_v38, %v7052_v41  ;;  %v2065_v15 = vsub.f32 %v6951_v29, %v7052_v41  ;;  %v2073_v47 = vsub.f32 %v6989_v50, %v7052_v41  ;;  %v1090_v46 = vld [vmem:[#allocation5 + $0x660] sm:$0xff] }
 0x23b   :  { %v2081_v5 = vsub.f32 %v6991_v26, %v7052_v41  ;;  %v2100_v59 = vmul.f32 1.442695, %v2033_v56  ;;  %v2116_v38 = vmul.f32 1.442695, %v2041_v7  ;;  %v7095_v50 = vmul.f32 %v1117_v54, %v6486_v62  ;;  %v932_v54 = vld [vmem:[#allocation5 + $0x170] sm:$0xff] }
 0x23c   :  { %v2132_v42 = vmul.f32 1.442695, %v2049_v49  ;;  %v2148_v6 = vmul.f32 1.442695, %v2057_v61  ;;  %v2164_v29 = vmul.f32 1.442695, %v2065_v15  ;;  %v1154_v24 = vmul.f32 %v898_v22, %v6552_v2 }
 0x23d   :  { %v2180_v14 = vmul.f32 1.442695, %v2073_v47  ;;  %5453 = vpow2.f32 %v2100_v59  ;;  %v2196_v26 = vmul.f32 1.442695, %v2081_v5  ;;  %v1186_v12 = vmul.f32 %v930_v58, %v6552_v2  ;;  %v900_v59 = vld [vmem:[#allocation5 + $0x70] sm:$0xff]  ;;  %v899_v5 = vld [vmem:[#allocation5 + $0x68] sm:$0xff] }
 0x23e   :  { %5455 = vpow2.f32 %v2116_v38  ;;  %v1218_v56 = vmul.f32 %v962_v11, %v6552_v2  ;;  %v1250_v7 = vmul.f32 %v994_v19, %v6552_v2  ;;  %v1282_v0 = vmul.f32 %v1026_v9, %v6552_v2  ;;  %v964_v9 = vld [vmem:[#allocation5 + $0x270] sm:$0xff]  ;;  %v9501_v19 = vld [vmem:[#allocation47_spill] sm:$0xff]  ;;  %v963_v38 = vld [vmem:[#allocation5 + $0x268] sm:$0xff] }
 0x23f   :  { %5457 = vpow2.f32 %v2132_v42  ;;  %v1314_v49 = vmul.f32 %v1058_v55, %v6552_v2  ;;  %v1346_v47 = vmul.f32 %v1090_v46, %v6552_v2  ;;  %v1378_v62 = vmul.f32 %v1122_v3, %v6552_v2  ;;  %v996_v42 = vld [vmem:[#allocation5 + $0x370] sm:$0xff] }
 0x240   :  { %5459 = vpow2.f32 %v2148_v6  ;;  %v7106_v22 = vadd.f32 %v1154_v24, %v6943_v44  ;;  %v7109_v58 = vadd.f32 %v1186_v12, %v6946_v40  ;;  %v7112_v11 = vadd.f32 %v1218_v56, %v6958_v21  ;;  %v1028_v61 = vld [vmem:[#allocation5 + $0x470] sm:$0xff]  ;;  %v931_v12 = vld [vmem:[#allocation5 + $0x168] sm:$0xff] }
 0x241   :  { %5461 = vpow2.f32 %v2164_v29  ;;  %v7115_v55 = vadd.f32 %v1250_v7, %v6981_v32  ;;  %v7118_v2 = vadd.f32 %v1282_v0, %v6984_v18  ;;  %v7121_v3 = vadd.f32 %v1314_v49, %v6994_v57  ;;  %v1060_v6 = vld [vmem:[#allocation5 + $0x570] sm:$0xff]  ;;  %v995_v29 = vld [vmem:[#allocation5 + $0x368] sm:$0xff] }
 0x242   :  { %v1092_v24 = vld [vmem:[#allocation5 + $0x670] sm:$0xff]  ;;  %5463 = vpow2.f32 %v2180_v14  ;;  %v7124_v40 = vadd.f32 %v1346_v47, %v6999_v51  ;;  %v7127_v21 = vadd.f32 %v1378_v62, %v7002_v25  ;;  %v1156_v15 = vmul.f32 %v900_v59, %v9501_v19  ;;  %v1027_v56 = vld [vmem:[#allocation5 + $0x468] sm:$0xff] }
 0x243   :  { %v1124_v44 = vld [vmem:[#allocation5 + $0x770] sm:$0xff]  ;;  %5465 = vpow2.f32 %v2196_v26  ;;  %v1188_v32 = vmul.f32 %v932_v54, %v9501_v19  ;;  %v1220_v18 = vmul.f32 %v964_v9, %v9501_v19  ;;  %v1252_v57 = vmul.f32 %v996_v42, %v9501_v19  ;;  %v1059_v47 = vld [vmem:[#allocation5 + $0x568] sm:$0xff]  ;;  %v9503_v42 = vld [vmem:[#allocation48_spill] sm:$0xff] }
 0x244   :  { %v1284_v46 = vmul.f32 %v1028_v61, %v9501_v19  ;;  %v1316_v14 = vmul.f32 %v1060_v6, %v9501_v19  ;;  %v1348_v51 = vmul.f32 %v1092_v24, %v9501_v19  ;;  %v1380_v25 = vmul.f32 %v1124_v44, %v9501_v19  ;;  %v1091_v62 = vld [vmem:[#allocation5 + $0x668] sm:$0xff] }
 0x245   :  { %v7138_v26 = vadd.f32 %v1156_v15, %v7005_v35  ;;  %v7141_v7 = vadd.f32 %v1188_v32, %v7009_v34  ;;  %v7144_v0 = vadd.f32 %v1220_v18, %v7012_v33  ;;  %v7147_v49 = vadd.f32 %v1252_v57, %v7015_v30  ;;  %v1123_v59 = vld [vmem:[#allocation5 + $0x768] sm:$0xff] }
 0x246   :  { %v7150_v54 = vadd.f32 %v1284_v46, %v7018_v37  ;;  %v7153_v9 = vadd.f32 %v1316_v14, %v7021_v63  ;;  %v7156_v35 = vadd.f32 %v1348_v51, %v7024_v31  ;;  %v7159_v34 = vadd.f32 %v1380_v25, %v7027_v1 }
 0x247   :  { %v7161_v33 = vpop.eup %5453  ;;  %v1155_v30 = vmul.f32 %v899_v5, %v9503_v42  ;;  %v1187_v61 = vmul.f32 %v931_v12, %v9503_v42  ;;  %v1219_v6 = vmul.f32 %v963_v38, %v9503_v42  ;;  %v1251_v37 = vmul.f32 %v995_v29, %v9503_v42  ;;  %v901_v5 = vld [vmem:[#allocation5 + $0x78] sm:$0xff] }
 0x248   :  { %9502 = vst [vmem:[#allocation45_spill] sm:$0xff] %v7161_v33  ;;  %v7167_v24 = vpop.eup %5455  ;;  %v1283_v63 = vmul.f32 %v1027_v56, %v9503_v42  ;;  %v1315_v31 = vmul.f32 %v1059_v47, %v9503_v42  ;;  %v1347_v44 = vmul.f32 %v1091_v62, %v9503_v42  ;;  %v1379_v1 = vmul.f32 %v1123_v59, %v9503_v42  ;;  %v933_v12 = vld [vmem:[#allocation5 + $0x178] sm:$0xff] }
 0x249   :  { %9504 = vst [vmem:[#allocation46_spill] sm:$0xff] %v7167_v24  ;;  %v7173_v19 = vpop.eup %5457  ;;  %v2335_v15 = vrot.slane %v7167_v24, 7  ;;  %v7177_v32 = vadd.f32 %v1155_v30, %v7031_v13  ;;  %v7180_v18 = vadd.f32 %v1187_v61, %v7034_v43  ;;  %v7183_v57 = vadd.f32 %v1219_v6, %v7037_v36  ;;  %v965_v43 = vld [vmem:[#allocation5 + $0x278] sm:$0xff]  ;;  %v9509_v6 = vld [vmem:[#allocation49_spill] sm:$0xff] }
 0x24a   :  { %9505 = vst [vmem:[#allocation47_spill] sm:$0xff] %v7173_v19  ;;  %v7185_v46 = vpop.eup %5459  ;;  %v2337_v14 = vrot.slane %v7173_v19, 6  ;;  %v7189_v51 = vadd.f32 %v1251_v37, %v7040_v28  ;;  %v7192_v25 = vadd.f32 %v1283_v63, %v7043_v10  ;;  %v7195_v13 = vadd.f32 %v1315_v31, %v7046_v60  ;;  %v997_v38 = vld [vmem:[#allocation5 + $0x378] sm:$0xff] }
 0x24b   :  { %9506 = vst [vmem:[#allocation48_spill] sm:$0xff] %v7185_v46  ;;  %v7197_v29 = vpop.eup %5461  ;;  %v2336_v36 = vsel %vm2287_vm1, %v2335_v15, %v7161_v33  ;;  %v2339_v56 = vrot.slane %v7185_v46, 5  ;;  %v7203_v47 = vadd.f32 %v1347_v44, %v7049_v4  ;;  %v7206_v28 = vadd.f32 %v1379_v1, %v7055_v39  ;;  %v1029_v10 = vld [vmem:[#allocation5 + $0x478] sm:$0xff] }
 0x24c   :  { %9507 = vst [vmem:[#allocation85_spill] sm:$0xff] %v7197_v29  ;;  %v1061_v62 = vld [vmem:[#allocation5 + $0x578] sm:$0xff]  ;;  %v7208_v59 = vpop.eup %5463  ;;  %v2338_v60 = vsel %vm2290_vm2, %v2337_v14, %v2336_v36  ;;  %v2341_v42 = vrot.slane %v7197_v29, 4  ;;  %v1157_v37 = vmul.f32 %v901_v5, %v9509_v6  ;;  %v1189_v63 = vmul.f32 %v933_v12, %v9509_v6  ;;  %v906_v29 = vld [vmem:[#allocation5 + $0xa0] sm:$0xff] }
 0x24d   :  { %9508 = vst [vmem:[#allocation86_spill] sm:$0xff] %v7208_v59  ;;  %v1093_v30 = vld [vmem:[#allocation5 + $0x678] sm:$0xff]  ;;  %v7214_v31 = vpop.eup %5465  ;;  %v2340_v4 = vsel %vm2293_vm3, %v2339_v56, %v2338_v60  ;;  %v2343_v39 = vrot.slane %v7208_v59, 3  ;;  %v1221_v44 = vmul.f32 %v965_v43, %v9509_v6  ;;  %v1253_v1 = vmul.f32 %v997_v38, %v9509_v6  ;;  %v938_v12 = vld [vmem:[#allocation5 + $0x1a0] sm:$0xff] }
 0x24e   :  { %v1125_v61 = vld [vmem:[#allocation5 + $0x778] sm:$0xff]  ;;  %9510 = vst [vmem:[#allocation49_spill] sm:$0xff] %v7214_v31  ;;  %v2342_v15 = vsel %vm2296_vm4, %v2341_v42, %v2340_v4  ;;  %v2345_v14 = vrot.slane %v7214_v31, 2  ;;  %v1285_v36 = vmul.f32 %v1029_v10, %v9509_v6  ;;  %v1317_v5 = vmul.f32 %v1061_v62, %v9509_v6  ;;  %v970_v38 = vld [vmem:[#allocation5 + $0x2a0] sm:$0xff] }
 0x24f   :  { %v2344_v46 = vsel %vm2299_vm5, %v2343_v39, %v2342_v15  ;;  %v1349_v56 = vmul.f32 %v1093_v30, %v9509_v6  ;;  %v1381_v60 = vmul.f32 %v1125_v61, %v9509_v6  ;;  %v7228_v43 = vadd.f32 %v1157_v37, %v7058_v48  ;;  %v1002_v59 = vld [vmem:[#allocation5 + $0x3a0] sm:$0xff]  ;;  %v908_v15 = vld [vmem:[#allocation5 + $0xb0] sm:$0xff] }
 0x250   :  { %v1034_v42 = vld [vmem:[#allocation5 + $0x4a0] sm:$0xff]  ;;  %v7231_v4 = vsel %vm2302_vm6, %v2345_v14, %v2344_v46  ;;  %v7234_v10 = vadd.f32 %v1189_v63, %v7061_v52  ;;  %v7237_v62 = vadd.f32 %v1221_v44, %v7064_v45  ;;  %v7240_v39 = vadd.f32 %v1253_v1, %v7067_v8  ;;  %v9511_v45 = vld [vmem:[#allocation50_spill] sm:$0xff] }
 0x251   :  { %v1066_v30 = vld [vmem:[#allocation5 + $0x5a0] sm:$0xff]  ;;  %v7243_v48 = vadd.f32 %v1285_v36, %v7070_v27  ;;  %v7246_v37 = vadd.f32 %v1317_v5, %v7073_v23  ;;  %v7249_v46 = vadd.f32 %v1349_v56, %v7092_v17  ;;  %v7252_v52 = vadd.f32 %v1381_v60, %v7095_v50  ;;  %v940_v27 = vld [vmem:[#allocation5 + $0x1b0] sm:$0xff] }
 0x252   :  { %v1098_v61 = vld [vmem:[#allocation5 + $0x6a0] sm:$0xff]  ;;  %v1162_v63 = vmul.f32 %v906_v29, %v9511_v45  ;;  %v1194_v8 = vmul.f32 %v938_v12, %v9511_v45  ;;  %v1226_v44 = vmul.f32 %v970_v38, %v9511_v45  ;;  %v1258_v1 = vmul.f32 %v1002_v59, %v9511_v45  ;;  %v972_v50 = vld [vmem:[#allocation5 + $0x2b0] sm:$0xff] }
 0x253   :  { %v1130_v6 = vld [vmem:[#allocation5 + $0x7a0] sm:$0xff]  ;;  %v1290_v14 = vmul.f32 %v1034_v42, %v9511_v45  ;;  %v1322_v23 = vmul.f32 %v1066_v30, %v9511_v45  ;;  %v1354_v17 = vmul.f32 %v1098_v61, %v9511_v45  ;;  %v1004_v5 = vld [vmem:[#allocation5 + $0x3b0] sm:$0xff] }
 0x254   :  { %v1386_v36 = vmul.f32 %v1130_v6, %v9511_v45  ;;  %v1036_v56 = vld [vmem:[#allocation5 + $0x4b0] sm:$0xff]  ;;  %v7263_v29 = vadd.f32 %v7106_v22, %v1162_v63  ;;  %v7266_v12 = vadd.f32 %v7109_v58, %v1194_v8  ;;  %v7269_v59 = vadd.f32 %v7112_v11, %v1226_v44  ;;  %v9512_v11 = vld [vmem:[#allocation51_spill] sm:$0xff]  ;;  %v907_v44 = vld [vmem:[#allocation5 + $0xa8] sm:$0xff] }
 0x255   :  { %v7272_v60 = vadd.f32 %v7115_v55, %v1258_v1  ;;  %v1068_v38 = vld [vmem:[#allocation5 + $0x5b0] sm:$0xff]  ;;  %v7275_v61 = vadd.f32 %v7118_v2, %v1290_v14  ;;  %v7278_v6 = vadd.f32 %v7121_v3, %v1322_v23  ;;  %v7281_v22 = vadd.f32 %v7124_v40, %v1354_v17  ;;  %v939_v2 = vld [vmem:[#allocation5 + $0x1a8] sm:$0xff] }
 0x256   :  { %v1100_v42 = vld [vmem:[#allocation5 + $0x6b0] sm:$0xff]  ;;  %v7284_v58 = vadd.f32 %v7127_v21, %v1386_v36  ;;  %v1164_v45 = vmul.f32 %v908_v15, %v9512_v11  ;;  %v1196_v55 = vmul.f32 %v940_v27, %v9512_v11  ;;  %v1228_v63 = vmul.f32 %v972_v50, %v9512_v11  ;;  %v971_v21 = vld [vmem:[#allocation5 + $0x2a8] sm:$0xff] }
 0x257   :  { %v1132_v30 = vld [vmem:[#allocation5 + $0x7b0] sm:$0xff]  ;;  %v1260_v8 = vmul.f32 %v1004_v5, %v9512_v11  ;;  %v1292_v1 = vmul.f32 %v1036_v56, %v9512_v11  ;;  %v1324_v3 = vmul.f32 %v1068_v38, %v9512_v11  ;;  %v1356_v40 = vmul.f32 %v1100_v42, %v9512_v11  ;;  %v1003_v23 = vld [vmem:[#allocation5 + $0x3a8] sm:$0xff] }
 0x258   :  { %v1388_v14 = vmul.f32 %v1132_v30, %v9512_v11  ;;  %v1035_v17 = vld [vmem:[#allocation5 + $0x4a8] sm:$0xff]  ;;  %v7295_v15 = vadd.f32 %v7138_v26, %v1164_v45  ;;  %v7298_v27 = vadd.f32 %v7141_v7, %v1196_v55  ;;  %v7301_v36 = vadd.f32 %v7144_v0, %v1228_v63  ;;  %v909_v55 = vld [vmem:[#allocation5 + $0xb8] sm:$0xff] }
 0x259   :  { %v7304_v50 = vadd.f32 %v7147_v49, %v1260_v8  ;;  %v1067_v5 = vld [vmem:[#allocation5 + $0x5a8] sm:$0xff]  ;;  %v7307_v42 = vadd.f32 %v7150_v54, %v1292_v1  ;;  %v7310_v30 = vadd.f32 %v7153_v9, %v1324_v3  ;;  %v7313_v26 = vadd.f32 %v7156_v35, %v1356_v40  ;;  %v941_v54 = vld [vmem:[#allocation5 + $0x1b8] sm:$0xff] }
 0x25a   :  { %v1099_v56 = vld [vmem:[#allocation5 + $0x6a8] sm:$0xff]  ;;  %v7316_v7 = vadd.f32 %v7159_v34, %v1388_v14  ;;  %v1163_v0 = vmul.f32 %v907_v44, %v6676_v16  ;;  %v1195_v49 = vmul.f32 %v939_v2, %v6676_v16  ;;  %v1227_v11 = vmul.f32 %v971_v21, %v6676_v16  ;;  %v973_v34 = vld [vmem:[#allocation5 + $0x2b8] sm:$0xff] }
 0x25b   :  { %v1131_v38 = vld [vmem:[#allocation5 + $0x7a8] sm:$0xff]  ;;  %v1259_v45 = vmul.f32 %v1003_v23, %v6676_v16  ;;  %v1291_v63 = vmul.f32 %v1035_v17, %v6676_v16  ;;  %v1323_v9 = vmul.f32 %v1067_v5, %v6676_v16  ;;  %v1355_v35 = vmul.f32 %v1099_v56, %v6676_v16  ;;  %v1005_v1 = vld [vmem:[#allocation5 + $0x3b8] sm:$0xff] }
 0x25c   :  { %v1387_v8 = vmul.f32 %v1131_v38, %v6676_v16  ;;  %v1037_v3 = vld [vmem:[#allocation5 + $0x4b8] sm:$0xff]  ;;  %v7327_v44 = vadd.f32 %v7177_v32, %v1163_v0  ;;  %v7330_v2 = vadd.f32 %v7180_v18, %v1195_v49  ;;  %v7333_v40 = vadd.f32 %v7183_v57, %v1227_v11  ;;  %v9513_v57 = vld [vmem:[#allocation53_spill] sm:$0xff]  ;;  %v914_v49 = vld [vmem:[#allocation5 + $0xe0] sm:$0xff] }
 0x25d   :  { %v7336_v14 = vadd.f32 %v7189_v51, %v1259_v45  ;;  %v1069_v21 = vld [vmem:[#allocation5 + $0x5b8] sm:$0xff]  ;;  %v7339_v16 = vadd.f32 %v7192_v25, %v1291_v63  ;;  %v7342_v5 = vadd.f32 %v7195_v13, %v1323_v9  ;;  %v7345_v32 = vadd.f32 %v7203_v47, %v1355_v35  ;;  %v946_v25 = vld [vmem:[#allocation5 + $0x1e0] sm:$0xff] }
 0x25e   :  { %v1101_v23 = vld [vmem:[#allocation5 + $0x6b8] sm:$0xff]  ;;  %v7348_v18 = vadd.f32 %v7206_v28, %v1387_v8  ;;  %v1165_v56 = vmul.f32 %v909_v55, %v9513_v57  ;;  %v1197_v51 = vmul.f32 %v941_v54, %v9513_v57  ;;  %v1229_v38 = vmul.f32 %v973_v34, %v9513_v57  ;;  %v978_v28 = vld [vmem:[#allocation5 + $0x2e0] sm:$0xff] }
 0x25f   :  { %v1133_v17 = vld [vmem:[#allocation5 + $0x7b8] sm:$0xff]  ;;  %v1261_v0 = vmul.f32 %v1005_v1, %v9513_v57  ;;  %v1293_v11 = vmul.f32 %v1037_v3, %v9513_v57  ;;  %v1325_v13 = vmul.f32 %v1069_v21, %v9513_v57  ;;  %v1357_v47 = vmul.f32 %v1101_v23, %v9513_v57  ;;  %v1010_v63 = vld [vmem:[#allocation5 + $0x3e0] sm:$0xff] }
 0x260   :  { %v1389_v45 = vmul.f32 %v1133_v17, %v9513_v57  ;;  %v1042_v9 = vld [vmem:[#allocation5 + $0x4e0] sm:$0xff]  ;;  %v7359_v55 = vadd.f32 %v7228_v43, %v1165_v56  ;;  %v7362_v54 = vadd.f32 %v7234_v10, %v1197_v51  ;;  %v7365_v35 = vadd.f32 %v7237_v62, %v1229_v38  ;;  %v9514_v62 = vld [vmem:[#allocation54_spill] sm:$0xff] }
 0x261   :  { %v7368_v8 = vadd.f32 %v7240_v39, %v1261_v0  ;;  %v1074_v34 = vld [vmem:[#allocation5 + $0x5e0] sm:$0xff]  ;;  %v7371_v21 = vadd.f32 %v7243_v48, %v1293_v11  ;;  %v7374_v23 = vadd.f32 %v7246_v37, %v1325_v13  ;;  %v7377_v43 = vadd.f32 %v7249_v46, %v1357_v47 }
 0x262   :  { %v1106_v1 = vld [vmem:[#allocation5 + $0x6e0] sm:$0xff]  ;;  %v7380_v10 = vadd.f32 %v7252_v52, %v1389_v45  ;;  %v1170_v17 = vmul.f32 %v914_v49, %v9514_v62  ;;  %v1202_v39 = vmul.f32 %v946_v25, %v9514_v62  ;;  %v1234_v57 = vmul.f32 %v978_v28, %v9514_v62 }
 0x263   :  { %v1138_v3 = vld [vmem:[#allocation5 + $0x7e0] sm:$0xff]  ;;  %v1266_v56 = vmul.f32 %v1010_v63, %v9514_v62  ;;  %v1298_v48 = vmul.f32 %v1042_v9, %v9514_v62  ;;  %v1330_v51 = vmul.f32 %v1074_v34, %v9514_v62  ;;  %v1362_v37 = vmul.f32 %v1106_v1, %v9514_v62 }
 0x264   :  { %v1394_v46 = vmul.f32 %v1138_v3, %v9514_v62  ;;  %v1436_v38 = vadd.f32 %v7263_v29, %v1170_v17  ;;  %v1508_v52 = vadd.f32 %v7266_v12, %v1202_v39  ;;  %v1580_v0 = vadd.f32 %v7269_v59, %v1234_v57 }
 0x265   :  { %v1652_v49 = vadd.f32 %v7272_v60, %v1266_v56  ;;  %v1724_v25 = vadd.f32 %v7275_v61, %v1298_v48  ;;  %v1796_v11 = vadd.f32 %v7278_v6, %v1330_v51  ;;  %v1868_v13 = vadd.f32 %v7281_v22, %v1362_v37 }
 0x266   :  { %v1940_v47 = vadd.f32 %v7284_v58, %v1394_v46  ;;  %v1437_v45 = vrot.slane %v1436_v38, 4  ;;  %v1509_v28 = vrot.slane %v1508_v52, 4  ;;  %v1581_v63 = vrot.slane %v1580_v0, 4 }
 0x267   :  { %v1653_v9 = vrot.slane %v1652_v49, 4  ;;  %v1725_v34 = vrot.slane %v1724_v25, 4  ;;  %v1797_v29 = vrot.slane %v1796_v11, 4  ;;  %v1869_v1 = vrot.slane %v1868_v13, 4 }
 0x268   :  { %v1941_v12 = vrot.slane %v1940_v47, 4  ;;  %v1438_v3 = vadd.f32 %v1437_v45, %v1436_v38  ;;  %v1510_v59 = vadd.f32 %v1509_v28, %v1508_v52  ;;  %v1582_v62 = vadd.f32 %v1581_v63, %v1580_v0  ;;  %v916_v45 = vld [vmem:[#allocation5 + $0xf0] sm:$0xff]  ;;  %v9515_v28 = vld [vmem:[#allocation75_spill] sm:$0xff] }
 0x269   :  { %v1654_v60 = vadd.f32 %v1653_v9, %v1652_v49  ;;  %v1726_v17 = vadd.f32 %v1725_v34, %v1724_v25  ;;  %v1798_v61 = vadd.f32 %v1797_v29, %v1796_v11  ;;  %v1870_v39 = vadd.f32 %v1869_v1, %v1868_v13  ;;  %v948_v1 = vld [vmem:[#allocation5 + $0x1f0] sm:$0xff] }
 0x26a   :  { %v1942_v6 = vadd.f32 %v1941_v12, %v1940_v47  ;;  %v1439_v57 = vrot.slane %v1438_v3, 2  ;;  %v1511_v22 = vrot.slane %v1510_v59, 2  ;;  %v1583_v56 = vrot.slane %v1582_v62, 2  ;;  %v980_v12 = vld [vmem:[#allocation5 + $0x2f0] sm:$0xff] }
 0x26b   :  { %v1655_v58 = vrot.slane %v1654_v60, 2  ;;  %v1727_v48 = vrot.slane %v1726_v17, 2  ;;  %v1799_v51 = vrot.slane %v1798_v61, 2  ;;  %v1871_v37 = vrot.slane %v1870_v39, 2 }
 0x26c   :  { %v1943_v46 = vrot.slane %v1942_v6, 2  ;;  %v1440_v31 = vadd.f32 %v1439_v57, %v1438_v3  ;;  %v1512_v19 = vadd.f32 %v1511_v22, %v1510_v59  ;;  %v1584_v24 = vadd.f32 %v1583_v56, %v1582_v62  ;;  %v1012_v3 = vld [vmem:[#allocation5 + $0x3f0] sm:$0xff] }
 0x26d   :  { %v1656_v33 = vadd.f32 %v1655_v58, %v1654_v60  ;;  %v1728_v38 = vadd.f32 %v1727_v48, %v1726_v17  ;;  %v1800_v52 = vadd.f32 %v1799_v51, %v1798_v61  ;;  %v1872_v0 = vadd.f32 %v1871_v37, %v1870_v39  ;;  %v1044_v61 = vld [vmem:[#allocation5 + $0x4f0] sm:$0xff]  ;;  %v9516_v48 = vld [vmem:[#allocation55_spill] sm:$0xff] }
 0x26e   :  { %v1944_v49 = vadd.f32 %v1943_v46, %v1942_v6  ;;  %v1441_v25 = vrot.slane %v1440_v31, 1  ;;  %v1513_v11 = vrot.slane %v1512_v19, 1  ;;  %v1585_v13 = vrot.slane %v1584_v24, 1  ;;  %v1076_v39 = vld [vmem:[#allocation5 + $0x5f0] sm:$0xff] }
 0x26f   :  { %v1657_v47 = vrot.slane %v1656_v33, 1  ;;  %v2472_v63 = vrot.slane %v9515_v28, %v6679_v20  ;;  %v1729_v9 = vrot.slane %v1728_v38, 1  ;;  %v1801_v34 = vrot.slane %v1800_v52, 1  ;;  %v1108_v6 = vld [vmem:[#allocation5 + $0x6f0] sm:$0xff] }
 0x270   :  { %v1873_v29 = vrot.slane %v1872_v0, 1  ;;  %v7400_v59 = vadd.f32 %v1441_v25, %v1440_v31  ;;  %v7402_v62 = vadd.f32 %v1513_v11, %v1512_v19  ;;  %v7404_v60 = vadd.f32 %v1585_v13, %v1584_v24 }
 0x271   :  { %v1945_v17 = vrot.slane %v1944_v49, 1  ;;  %v7406_v57 = vadd.f32 %v1657_v47, %v1656_v33  ;;  %v7408_v22 = vadd.f32 %v1729_v9, %v1728_v38  ;;  %v7410_v56 = vadd.f32 %v1801_v34, %v1800_v52 }
 0x272   :  { %v7412_v58 = vadd.f32 %v1873_v29, %v1872_v0  ;;  %v2002_v31 = vmax.f32 %v7400_v59, %v7402_v62  ;;  %v1172_v19 = vmul.f32 %v916_v45, %v9516_v48  ;;  %v1204_v24 = vmul.f32 %v948_v1, %v9516_v48 }
 0x273   :  { %v1236_v51 = vmul.f32 %v980_v12, %v9516_v48  ;;  %v1268_v37 = vmul.f32 %v1012_v3, %v9516_v48  ;;  %v1300_v33 = vmul.f32 %v1044_v61, %v9516_v48  ;;  %v1332_v46 = vmul.f32 %v1076_v39, %v9516_v48 }
 0x274   :  { %v1364_v38 = vmul.f32 %v1108_v6, %v9516_v48  ;;  %v7423_v52 = vadd.f32 %v1945_v17, %v1944_v49  ;;  %v2003_v0 = vmax.f32 %v2002_v31, %v7404_v60  ;;  %v1454_v25 = vadd.f32 %v7295_v15, %v1172_v19  ;;  %v1140_v19 = vld [vmem:[#allocation5 + $0x7f0] sm:$0xff] }
 0x275   :  { %v1526_v11 = vadd.f32 %v7298_v27, %v1204_v24  ;;  %v1598_v13 = vadd.f32 %v7301_v36, %v1236_v51  ;;  %v1670_v47 = vadd.f32 %v7304_v50, %v1268_v37  ;;  %v1742_v45 = vadd.f32 %v7307_v42, %v1300_v33 }
 0x276   :  { %v1814_v9 = vadd.f32 %v7310_v30, %v1332_v46  ;;  %v2004_v34 = vmax.f32 %v2003_v0, %v7406_v57  ;;  %v1455_v29 = vrot.slane %v1454_v25, 4  ;;  %v1886_v49 = vadd.f32 %v7313_v26, %v1364_v38 }
 0x277   :  { %v1527_v1 = vrot.slane %v1526_v11, 4  ;;  %v1599_v12 = vrot.slane %v1598_v13, 4  ;;  %v1671_v3 = vrot.slane %v1670_v47, 4  ;;  %v1743_v17 = vrot.slane %v1742_v45, 4 }
 0x278   :  { %v1815_v15 = vrot.slane %v1814_v9, 4  ;;  %v2005_v27 = vmax.f32 %v2004_v34, %v7408_v22  ;;  %v1456_v61 = vadd.f32 %v1455_v29, %v1454_v25  ;;  %v1887_v39 = vrot.slane %v1886_v49, 4 }
 0x279   :  { %v1528_v36 = vadd.f32 %v1527_v1, %v1526_v11  ;;  %v1600_v50 = vadd.f32 %v1599_v12, %v1598_v13  ;;  %v1672_v6 = vadd.f32 %v1671_v3, %v1670_v47  ;;  %v1744_v42 = vadd.f32 %v1743_v17, %v1742_v45 }
 0x27a   :  { %v1816_v31 = vadd.f32 %v1815_v15, %v1814_v9  ;;  %v2006_v30 = vmax.f32 %v2005_v27, %v7410_v56  ;;  %v1457_v24 = vrot.slane %v1456_v61, 2  ;;  %v1888_v37 = vadd.f32 %v1887_v39, %v1886_v49 }
 0x27b   :  { %v1529_v51 = vrot.slane %v1528_v36, 2  ;;  %v1601_v26 = vrot.slane %v1600_v50, 2  ;;  %v1673_v33 = vrot.slane %v1672_v6, 2  ;;  %v1745_v46 = vrot.slane %v1744_v42, 2 }
 0x27c   :  { %v1817_v38 = vrot.slane %v1816_v31, 2  ;;  %v2007_v0 = vmax.f32 %v2006_v30, %v7412_v58  ;;  %v1458_v34 = vadd.f32 %v1457_v24, %v1456_v61  ;;  %v1889_v11 = vrot.slane %v1888_v37, 2 }
 0x27d   :  { %v1530_v25 = vadd.f32 %v1529_v51, %v1528_v36  ;;  %v1396_v13 = vmul.f32 %v1140_v19, %v9516_v48  ;;  %v1602_v47 = vadd.f32 %v1601_v26, %v1600_v50  ;;  %v1674_v45 = vadd.f32 %v1673_v33, %v1672_v6 }
 0x27e   :  { %v1746_v9 = vadd.f32 %v1745_v46, %v1744_v42  ;;  %v2008_v29 = vmax.f32 %v2007_v0, %v7423_v52  ;;  %v1459_v1 = vrot.slane %v1458_v34, 1  ;;  %v1818_v3 = vadd.f32 %v1817_v38, %v1816_v31  ;;  %v979_v38 = vld [vmem:[#allocation5 + $0x2e8] sm:$0xff] }
 0x27f   :  { %v1531_v12 = vrot.slane %v1530_v25, 1  ;;  %v1603_v49 = vrot.slane %v1602_v47, 1  ;;  %v1675_v17 = vrot.slane %v1674_v45, 1  ;;  %v1890_v27 = vadd.f32 %v1889_v11, %v1888_v37  ;;  %v1011_v11 = vld [vmem:[#allocation5 + $0x3e8] sm:$0xff] }
 0x280   :  { %v1747_v15 = vrot.slane %v1746_v9, 1  ;;  %v2034_v39 = vsub.f32 %v7400_v59, %v2008_v29  ;;  %v2042_v61 = vsub.f32 %v7402_v62, %v2008_v29  ;;  %v2050_v36 = vsub.f32 %v7404_v60, %v2008_v29  ;;  %v915_v59 = vld [vmem:[#allocation5 + $0xe8] sm:$0xff] }
 0x281   :  { %v2058_v48 = vsub.f32 %v7406_v57, %v2008_v29  ;;  %v2066_v50 = vsub.f32 %v7408_v22, %v2008_v29  ;;  %v2074_v6 = vsub.f32 %v7410_v56, %v2008_v29  ;;  %v2082_v42 = vsub.f32 %v7412_v58, %v2008_v29  ;;  %v947_v57 = vld [vmem:[#allocation5 + $0x1e8] sm:$0xff] }
 0x282   :  { %v2090_v31 = vsub.f32 %v7423_v52, %v2008_v29  ;;  %v2102_v30 = vmul.f32 1.442695, %v2034_v39  ;;  %v2118_v19 = vmul.f32 1.442695, %v2042_v61  ;;  %v2134_v24 = vmul.f32 1.442695, %v2050_v36 }
 0x283   :  { %v7447_v51 = vadd.f32 %v1459_v1, %v1458_v34  ;;  %v2150_v37 = vmul.f32 1.442695, %v2058_v48  ;;  %v2166_v62 = vmul.f32 1.442695, %v2066_v50  ;;  %v7449_v26 = vadd.f32 %v1531_v12, %v1530_v25  ;;  %v1043_v29 = vld [vmem:[#allocation5 + $0x4e8] sm:$0xff] }
 0x284   :  { %v1819_v60 = vrot.slane %v1818_v3, 1  ;;  %5467 = vpow2.f32 %v2102_v30  ;;  %v2182_v22 = vmul.f32 1.442695, %v2074_v6  ;;  %v2198_v33 = vmul.f32 1.442695, %v2082_v42  ;;  %v1075_v1 = vld [vmem:[#allocation5 + $0x5e8] sm:$0xff] }
 0x285   :  { %v2214_v56 = vmul.f32 1.442695, %v2090_v31  ;;  %5469 = vpow2.f32 %v2118_v19  ;;  %v7451_v58 = vadd.f32 %v1603_v49, %v1602_v47  ;;  %v7453_v52 = vadd.f32 %v1675_v17, %v1674_v45  ;;  %v9517_v47 = vld [vmem:[#allocation64_spill] sm:$0xff]  ;;  %v1139_v19 = vld [vmem:[#allocation5 + $0x7e8] sm:$0xff] }
 0x286   :  { %v7455_v46 = vadd.f32 %v1747_v15, %v1746_v9  ;;  %5471 = vpow2.f32 %v2134_v24  ;;  %v1891_v0 = vrot.slane %v1890_v27, 1  ;;  %v1958_v34 = vadd.f32 %v7316_v7, %v1396_v13  ;;  %v1107_v15 = vld [vmem:[#allocation5 + $0x6e8] sm:$0xff] }
 0x287   :  { %v2016_v25 = vmax.f32 %v7447_v51, %v7449_v26  ;;  %5473 = vpow2.f32 %v2150_v37  ;;  %v7460_v12 = vadd.f32 %v1819_v60, %v1818_v3  ;;  %v1171_v49 = vmul.f32 %v915_v59, %v9517_v47 }
 0x288   :  { %v1203_v45 = vmul.f32 %v947_v57, %v9517_v47  ;;  %5475 = vpow2.f32 %v2166_v62  ;;  %v1959_v9 = vrot.slane %v1958_v34, 4  ;;  %v1235_v7 = vmul.f32 %v979_v38, %v9517_v47 }
 0x289   :  { %v2017_v17 = vmax.f32 %v2016_v25, %v7451_v58  ;;  %5477 = vpow2.f32 %v2182_v22  ;;  %v1267_v13 = vmul.f32 %v1011_v11, %v9517_v47  ;;  %v1299_v39 = vmul.f32 %v1043_v29, %v9517_v47 }
 0x28a   :  { %v1331_v61 = vmul.f32 %v1075_v1, %v9517_v47  ;;  %5479 = vpow2.f32 %v2198_v33  ;;  %v7469_v3 = vadd.f32 %v1891_v0, %v1890_v27  ;;  %v1960_v36 = vadd.f32 %v1959_v9, %v1958_v34 }
 0x28b   :  { %v2018_v48 = vmax.f32 %v2017_v17, %v7453_v52  ;;  %5481 = vpow2.f32 %v2214_v56  ;;  %v7473_v50 = vmul.f32 %v1107_v15, %v9517_v47  ;;  %v1445_v6 = vadd.f32 %v7327_v44, %v1171_v49 }
 0x28c   :  { %v1517_v42 = vadd.f32 %v7330_v2, %v1203_v45  ;;  %v1961_v31 = vrot.slane %v1960_v36, 2  ;;  %v1589_v24 = vadd.f32 %v7333_v40, %v1235_v7  ;;  %v1661_v27 = vadd.f32 %v7336_v14, %v1267_v13 }
 0x28d   :  { %v2019_v30 = vmax.f32 %v2018_v48, %v7455_v46  ;;  %v1446_v59 = vrot.slane %v1445_v6, 4  ;;  %v7481_v62 = vadd.f32 %v7339_v16, %v1299_v39  ;;  %v7484_v60 = vadd.f32 %v7342_v5, %v1331_v61 }
 0x28e   :  { %v1518_v37 = vrot.slane %v1517_v42, 4  ;;  %v7486_v57 = vpop.eup %5467  ;;  %v1962_v44 = vadd.f32 %v1961_v31, %v1960_v36  ;;  %v1590_v22 = vrot.slane %v1589_v24, 4  ;;  %v1662_v33 = vrot.slane %v1661_v27, 4 }
 0x28f   :  { %9518 = vst [vmem:[#allocation50_spill] sm:$0xff] %v7486_v57  ;;  %v2020_v2 = vmax.f32 %v2019_v30, %v7460_v12  ;;  %v7489_v56 = vpop.eup %5469  ;;  %v7492_v40 = vmul.f32 %v1139_v19, %v9517_v47  ;;  %v1447_v14 = vadd.f32 %v1446_v59, %v1445_v6  ;;  %v1734_v16 = vrot.slane %v7481_v62, 4 }
 0x290   :  { %9519 = vst [vmem:[#allocation51_spill] sm:$0xff] %v7489_v56  ;;  %v1519_v38 = vadd.f32 %v1518_v37, %v1517_v42  ;;  %v7495_v0 = vpop.eup %5471  ;;  %v2349_v5 = vrot.slane %v7489_v56, 7  ;;  %v1963_v34 = vrot.slane %v1962_v44, 1  ;;  %v1591_v11 = vadd.f32 %v1590_v22, %v1589_v24 }
 0x291   :  { %9520 = vst [vmem:[#allocation53_spill] sm:$0xff] %v7495_v0  ;;  %v2021_v25 = vmax.f32 %v2020_v2, %v7469_v3  ;;  %v7499_v29 = vpop.eup %5473  ;;  %v2351_v1 = vrot.slane %v7495_v0, 6  ;;  %v1448_v49 = vrot.slane %v1447_v14, 2  ;;  %v1806_v47 = vrot.slane %v7484_v60, 4  ;;  %v2638_v0 = vld [vmem:[#allocation7 + $0x248] sm:$0xff] }
 0x292   :  { %9521 = vst [vmem:[#allocation54_spill] sm:$0xff] %v7499_v29  ;;  %v1520_v45 = vrot.slane %v1519_v38, 2  ;;  %v7503_v9 = vpop.eup %5475  ;;  %v2350_v17 = vsel %vm2287_vm1, %v2349_v5, %v7486_v57  ;;  %v2353_v15 = vrot.slane %v7499_v29, 5  ;;  %v1964_v7 = vadd.f32 %v1963_v34, %v1962_v44  ;;  %v2645_v29 = vld [vmem:[#allocation7 + $0x280] sm:$0xff]  ;;  %v2726_v57 = vld [vmem:[#allocation7 + $0x508] sm:$0xff] }
 0x293   :  { %9522 = vst [vmem:[#allocation75_spill] sm:$0xff] %v7503_v9  ;;  %v1663_v13 = vadd.f32 %v1662_v33, %v1661_v27  ;;  %v7508_v39 = vpop.eup %5477  ;;  %v2352_v61 = vsel %vm2290_vm2, %v2351_v1, %v2350_v17  ;;  %v2355_v36 = vrot.slane %v7503_v9, 4  ;;  %v1449_v48 = vadd.f32 %v1448_v49, %v1447_v14  ;;  %v2606_v9 = vld [vmem:[#allocation7 + $0x148] sm:$0xff] }
 0x294   :  { %9523 = vst [vmem:[#allocation55_spill] sm:$0xff] %v7508_v39  ;;  %v1521_v6 = vadd.f32 %v1520_v45, %v1519_v38  ;;  %v7512_v42 = vpop.eup %5479  ;;  %v2354_v31 = vsel %vm2293_vm3, %v2353_v15, %v2352_v61  ;;  %v2357_v30 = vrot.slane %v7508_v39, 3  ;;  %v2022_v19 = vmax.f32 %v2021_v25, %v1964_v7  ;;  %v2598_v39 = vld [vmem:[#allocation7 + $0x108] sm:$0xff] }
 0x295   :  { %9524 = vst [vmem:[#allocation64_spill] sm:$0xff] %v7512_v42  ;;  %v1592_v24 = vrot.slane %v1591_v11, 2  ;;  %v7516_v59 = vpop.eup %5481  ;;  %v2356_v27 = vsel %vm2296_vm4, %v2355_v36, %v2354_v31  ;;  %v2359_v37 = vrot.slane %v7512_v42, 2  ;;  %v1450_v44 = vrot.slane %v1449_v48, 1 }
 0x296   :  { %9525 = vst [vmem:[#allocation87_spill] sm:$0xff] %v7516_v59  ;;  %v1522_v2 = vrot.slane %v1521_v6, 1  ;;  %v2358_v22 = vsel %vm2299_vm5, %v2357_v30, %v2356_v27  ;;  %v2361_v33 = vrot.slane %v7516_v59, 1  ;;  %v2036_v14 = vsub.f32 %v7447_v51, %v2022_v19  ;;  %v9597_v59 = vld [vmem:[#allocation80_spill] sm:$0xff] }
 0x297   :  { %v2044_v38 = vsub.f32 %v7449_v26, %v2022_v19  ;;  %v2360_v5 = vsel %vm2302_vm6, %v2359_v37, %v2358_v22  ;;  %v2052_v34 = vsub.f32 %v7451_v58, %v2022_v19  ;;  %v2060_v25 = vsub.f32 %v7453_v52, %v2022_v19 }
 0x298   :  { %v2068_v1 = vsub.f32 %v7455_v46, %v2022_v19  ;;  %v2362_v49 = vsel %vm2305_vm7, %v2361_v33, %v2360_v5  ;;  %v2076_v45 = vsub.f32 %v7460_v12, %v2022_v19  ;;  %v2084_v17 = vsub.f32 %v7469_v3, %v2022_v19 }
 0x299   :  { %v2092_v15 = vsub.f32 %v1964_v7, %v2022_v19  ;;  %v2437_v61 = vrot.slane %v2362_v49, 4  ;;  %v2106_v36 = vmul.f32 1.442695, %v2036_v14  ;;  %v2122_v51 = vmul.f32 1.442695, %v2044_v38 }
 0x29a   :  { %v1593_v31 = vadd.f32 %v1592_v24, %v1591_v11  ;;  %v2138_v26 = vmul.f32 1.442695, %v2052_v34  ;;  %v2154_v30 = vmul.f32 1.442695, %v2060_v25  ;;  %v2170_v27 = vmul.f32 1.442695, %v2068_v1 }
 0x29b   :  { %v7531_v37 = vadd.f32 %v1450_v44, %v1449_v48  ;;  %v2438_v58 = vadd.f32 %v2437_v61, %v2362_v49  ;;  %5483 = vpow2.f32 %v2106_v36  ;;  %v2186_v52 = vmul.f32 1.442695, %v2076_v45  ;;  %v949_v25 = vld [vmem:[#allocation5 + $0x1f8] sm:$0xff] }
 0x29c   :  { %v7533_v46 = vadd.f32 %v1522_v2, %v1521_v6  ;;  %5485 = vpow2.f32 %v2122_v51  ;;  %v2202_v22 = vmul.f32 1.442695, %v2084_v17  ;;  %v2218_v12 = vmul.f32 1.442695, %v2092_v15  ;;  %v981_v17 = vld [vmem:[#allocation5 + $0x2f8] sm:$0xff] }
 0x29d   :  { %v1664_v33 = vrot.slane %v1663_v13, 2  ;;  %v2439_v3 = vrot.slane %v2438_v58, 2  ;;  %5487 = vpow2.f32 %v2138_v26  ;;  %v1735_v7 = vadd.f32 %v1734_v16, %v7481_v62  ;;  %v1013_v15 = vld [vmem:[#allocation5 + $0x3f8] sm:$0xff]  ;;  %v9527_v26 = vld [vmem:[#allocation74_spill] sm:$0xff] }
 0x29e   :  { %v1807_v11 = vadd.f32 %v1806_v47, %v7484_v60  ;;  %5489 = vpow2.f32 %v2154_v30  ;;  %v1594_v19 = vrot.slane %v1593_v31, 1  ;;  %v1877_v48 = vadd.f32 %v7345_v32, %v7473_v50 }
 0x29f   :  { %v1665_v24 = vadd.f32 %v1664_v33, %v1663_v13  ;;  %v2440_v44 = vadd.f32 %v2439_v3, %v2438_v58  ;;  %5491 = vpow2.f32 %v2170_v27  ;;  %v1736_v6 = vrot.slane %v1735_v7, 2  ;;  %v917_v13 = vld [vmem:[#allocation5 + $0xf8] sm:$0xff] }
 0x2a0   :  { %v1808_v2 = vrot.slane %v1807_v11, 2  ;;  %5493 = vpow2.f32 %v2186_v52  ;;  %v1878_v38 = vrot.slane %v1877_v48, 4  ;;  %v1949_v5 = vadd.f32 %v7348_v18, %v7492_v40 }
 0x2a1   :  { %v1666_v14 = vrot.slane %v1665_v24, 1  ;;  %v2441_v34 = vrot.slane %v2440_v44, 1  ;;  %5495 = vpow2.f32 %v2202_v22  ;;  %v1737_v62 = vadd.f32 %v1736_v6, %v1735_v7 }
 0x2a2   :  { %v1809_v60 = vadd.f32 %v1808_v2, %v1807_v11  ;;  %5497 = vpow2.f32 %v2218_v12  ;;  %v1879_v16 = vadd.f32 %v1878_v38, %v1877_v48  ;;  %v1950_v47 = vrot.slane %v1949_v5, 4  ;;  %v1077_v12 = vld [vmem:[#allocation5 + $0x5f8] sm:$0xff] }
 0x2a3   :  { %v7541_v32 = vadd.f32 %v1594_v19, %v1593_v31  ;;  %v1738_v50 = vrot.slane %v1737_v62, 1  ;;  %v2009_v49 = vmax.f32 %v7531_v37, %v7533_v46  ;;  %5499 = vrcp.f32 %v2472_v63  ;;  %v1045_v31 = vld [vmem:[#allocation5 + $0x4f8] sm:$0xff] }
 0x2a4   :  { %v1810_v1 = vrot.slane %v1809_v60, 1  ;;  %v7548_v18 = vadd.f32 %v1666_v14, %v1665_v24  ;;  %v1880_v40 = vrot.slane %v1879_v16, 2  ;;  %v1951_v45 = vadd.f32 %v1950_v47, %v1949_v5  ;;  %v1109_v11 = vld [vmem:[#allocation5 + $0x6f8] sm:$0xff] }
 0x2a5   :  { %v7550_v61 = vpop.eup %5483  ;;  %v7552_v36 = vadd.f32 %v2441_v34, %v2440_v44  ;;  %v2010_v51 = vmax.f32 %v2009_v49, %v7541_v32  ;;  %v1173_v30 = vmul.f32 %v917_v13, %v9527_v26  ;;  %v1205_v27 = vmul.f32 %v949_v25, %v9527_v26 }
 0x2a6   :  { %9526 = vst [vmem:[#allocation88_spill] sm:$0xff] %v7550_v61  ;;  %v7557_v58 = vpop.eup %5485  ;;  %v7559_v28 = vadd.f32 %v1738_v50, %v1737_v62  ;;  %v7561_v63 = vadd.f32 %v1810_v1, %v1809_v60  ;;  %v1881_v52 = vadd.f32 %v1880_v40, %v1879_v16  ;;  %v1952_v22 = vrot.slane %v1951_v45, 2 }
 0x2a7   :  { %9528 = vst [vmem:[#allocation74_spill] sm:$0xff] %v7557_v58  ;;  %v7563_v33 = vpop.eup %5487  ;;  %v2377_v3 = vrot.slane %v7557_v58, 7  ;;  %v2011_v7 = vmax.f32 %v2010_v51, %v7548_v18  ;;  %v1237_v19 = vmul.f32 %v981_v17, %v9527_v26  ;;  %v1269_v24 = vmul.f32 %v1013_v15, %v9527_v26  ;;  %v9594_v58 = vld [vmem:[#allocation77_spill] sm:$0xff] }
 0x2a8   :  { %9529 = vst [vmem:[#allocation89_spill] sm:$0xff] %v7563_v33  ;;  %v7569_v48 = vpop.eup %5489  ;;  %v2379_v44 = vrot.slane %v7563_v33, 6  ;;  %v1882_v6 = vrot.slane %v1881_v52, 1  ;;  %v1953_v2 = vadd.f32 %v1952_v22, %v1951_v45  ;;  %v1301_v14 = vmul.f32 %v1045_v31, %v9527_v26  ;;  %v2566_v33 = vld [vmem:[#allocation7 + $0x8] sm:$0xff] }
 0x2a9   :  { %9530 = vst [vmem:[#allocation90_spill] sm:$0xff] %v7569_v48  ;;  %v7573_v38 = vpop.eup %5491  ;;  %v2378_v5 = vsel %vm2287_vm1, %v2377_v3, %v7550_v61  ;;  %v2381_v34 = vrot.slane %v7569_v48, 5  ;;  %v2012_v62 = vmax.f32 %v2011_v7, %v7559_v28  ;;  %v7580_v60 = vmul.f32 %v1077_v12, %v9527_v26  ;;  %v2789_v48 = vld [vmem:[#allocation7 + $0x700] sm:$0xff] }
 0x2aa   :  { %9531 = vst [vmem:[#allocation91_spill] sm:$0xff] %v7573_v38  ;;  %v7582_v16 = vpop.eup %5493  ;;  %v2380_v47 = vsel %vm2290_vm2, %v2379_v44, %v2378_v5  ;;  %v2383_v13 = vrot.slane %v7573_v38, 4  ;;  %v1954_v25 = vrot.slane %v1953_v2, 1  ;;  %v7587_v50 = vmul.f32 %v1109_v11, %v9527_v26  ;;  %v9568_v38 = vld [vmem:[#allocation65_spill] sm:$0xff] }
 0x2ab   :  { %9532 = vst [vmem:[#allocation92_spill] sm:$0xff] %v7582_v16  ;;  %v7589_v1 = vpop.eup %5495  ;;  %v2382_v49 = vsel %vm2293_vm3, %v2381_v34, %v2380_v47  ;;  %v2385_v40 = vrot.slane %v7582_v16, 3  ;;  %v1883_v45 = vadd.f32 %v1882_v6, %v1881_v52  ;;  %v2013_v17 = vmax.f32 %v2012_v62, %v7561_v63 }
 0x2ac   :  { %9533 = vst [vmem:[#allocation93_spill] sm:$0xff] %v7589_v1  ;;  %v7594_v15 = vpop.eup %5497  ;;  %v2384_v51 = vsel %vm2296_vm4, %v2383_v13, %v2382_v49  ;;  %v2387_v31 = vrot.slane %v7589_v1, 2  ;;  %v7598_v22 = vadd.f32 %v1954_v25, %v1953_v2  ;;  %v1463_v12 = vadd.f32 %v7359_v55, %v1173_v30  ;;  %v2757_v1 = vld [vmem:[#allocation7 + $0x600] sm:$0xff] }
 0x2ad   :  { %9534 = vst [vmem:[#allocation94_spill] sm:$0xff] %v7594_v15  ;;  %v2386_v3 = vsel %vm2299_vm5, %v2385_v40, %v2384_v51  ;;  %v2389_v7 = vrot.slane %v7594_v15, 1  ;;  %v2014_v11 = vmax.f32 %v2013_v17, %v1883_v45  ;;  %v1535_v44 = vadd.f32 %v7362_v54, %v1205_v27  ;;  %v7604_v52 = vpop.eup %5499 }
 0x2ae   :  { %9535 = vst [vmem:[#allocation95_spill] sm:$0xff] %v7598_v22  ;;  %v2388_v6 = vsel %vm2302_vm6, %v2387_v31, %v2386_v3  ;;  %v1464_v5 = vrot.slane %v1463_v12, 4  ;;  %v1607_v34 = vadd.f32 %v7365_v35, %v1237_v19  ;;  %v1679_v62 = vadd.f32 %v7368_v8, %v1269_v24 }
 0x2af   :  { %v2390_v2 = vsel %vm2305_vm7, %v2389_v7, %v2388_v6  ;;  %v7611_v55 = vmax.f32 %v2014_v11, %v7598_v22  ;;  %v1536_v30 = vrot.slane %v1535_v44, 4  ;;  %v1751_v47 = vadd.f32 %v7371_v21, %v1301_v14  ;;  %v1141_v11 = vld [vmem:[#allocation5 + $0x7f8] sm:$0xff] }
 0x2b0   :  { %v2449_v13 = vrot.slane %v2390_v2, 4  ;;  %v1465_v25 = vadd.f32 %v1464_v5, %v1463_v12  ;;  %v1608_v54 = vrot.slane %v1607_v34, 4  ;;  %v1680_v27 = vrot.slane %v1679_v62, 4 }
 0x2b1   :  { %9536 = vst [vmem:[#allocation96_spill] sm:$0xff] %v7611_v55  ;;  %v2035_v49 = vsub.f32 %v7531_v37, %v7611_v55  ;;  %v2043_v35 = vsub.f32 %v7533_v46, %v7611_v55  ;;  %v2051_v8 = vsub.f32 %v7541_v32, %v7611_v55  ;;  %v2059_v19 = vsub.f32 %v7548_v18, %v7611_v55  ;;  %v2693_v37 = vld [vmem:[#allocation7 + $0x400] sm:$0xff] }
 0x2b2   :  { %v2450_v24 = vadd.f32 %v2449_v13, %v2390_v2  ;;  %v2067_v21 = vsub.f32 %v7559_v28, %v7611_v55  ;;  %v2075_v14 = vsub.f32 %v7561_v63, %v7611_v55  ;;  %v2083_v40 = vsub.f32 %v1883_v45, %v7611_v55 }
 0x2b3   :  { %v2104_v17 = vmul.f32 1.442695, %v2035_v49  ;;  %v2120_v46 = vmul.f32 1.442695, %v2043_v35  ;;  %v2136_v51 = vmul.f32 1.442695, %v2051_v8  ;;  %v1537_v28 = vadd.f32 %v1536_v30, %v1535_v44 }
 0x2b4   :  { %v2451_v31 = vrot.slane %v2450_v24, 2  ;;  %v2152_v32 = vmul.f32 1.442695, %v2059_v19  ;;  %v2168_v12 = vmul.f32 1.442695, %v2067_v21  ;;  %v1466_v3 = vrot.slane %v1465_v25, 2 }
 0x2b5   :  { %5501 = vpow2.f32 %v2104_v17  ;;  %v2184_v18 = vmul.f32 1.442695, %v2075_v14  ;;  %v2200_v7 = vmul.f32 1.442695, %v2083_v40  ;;  %v1609_v5 = vadd.f32 %v1608_v54, %v1607_v34 }
 0x2b6   :  { %v2452_v6 = vadd.f32 %v2451_v31, %v2450_v24  ;;  %5503 = vpow2.f32 %v2120_v46  ;;  %v1467_v63 = vadd.f32 %v1466_v3, %v1465_v25  ;;  %v1538_v45 = vrot.slane %v1537_v28, 2 }
 0x2b7   :  { %5505 = vpow2.f32 %v2136_v51  ;;  %v1681_v2 = vadd.f32 %v1680_v27, %v1679_v62  ;;  %v1752_v13 = vrot.slane %v1751_v47, 4  ;;  %v1397_v49 = vmul.f32 %v1141_v11, %v9527_v26 }
 0x2b8   :  { %5507 = vpow2.f32 %v2152_v32  ;;  %v1468_v35 = vrot.slane %v1467_v63, 1  ;;  %v1610_v8 = vrot.slane %v1609_v5, 2  ;;  %v1539_v19 = vadd.f32 %v1538_v45, %v1537_v28 }
 0x2b9   :  { %5509 = vpow2.f32 %v2168_v12  ;;  %v1682_v21 = vrot.slane %v1681_v2, 2  ;;  %v1753_v14 = vadd.f32 %v1752_v13, %v1751_v47  ;;  %v2453_v40 = vrot.slane %v2452_v6, 1 }
 0x2ba   :  { %5511 = vpow2.f32 %v2184_v18  ;;  %v7630_v44 = vadd.f32 %v1468_v35, %v1467_v63  ;;  %v1611_v30 = vadd.f32 %v1610_v8, %v1609_v5  ;;  %v1540_v34 = vrot.slane %v1539_v19, 1 }
 0x2bb   :  { %5513 = vpow2.f32 %v2200_v7  ;;  %v1683_v25 = vadd.f32 %v1682_v21, %v1681_v2  ;;  %v1754_v54 = vrot.slane %v1753_v14, 2  ;;  %v2480_v62 = vrot.slane %v7552_v36, %v6679_v20  ;;  %v2597_v36 = vld [vmem:[#allocation7 + $0x100] sm:$0xff] }
 0x2bc   :  { %v1612_v27 = vrot.slane %v1611_v30, 1  ;;  %v1823_v26 = vadd.f32 %v7374_v23, %v7580_v60  ;;  %v1895_v24 = vadd.f32 %v7377_v43, %v7587_v50  ;;  %v7638_v47 = vadd.f32 %v1540_v34, %v1539_v19 }
 0x2bd   :  { %v1684_v17 = vrot.slane %v1683_v25, 1  ;;  %v1755_v46 = vadd.f32 %v1754_v54, %v1753_v14  ;;  %v1967_v51 = vadd.f32 %v7380_v10, %v1397_v49  ;;  %v7641_v31 = vadd.f32 %v2453_v40, %v2452_v6  ;;  %v9539_v10 = vld [vmem:[#allocation72_spill] sm:$0xff]  ;;  %v9540_v6 = vld [vmem:[#allocation73_spill] sm:$0xff] }
 0x2be   :  { %v7643_v32 = vadd.f32 %v1612_v27, %v1611_v30  ;;  %v1824_v12 = vrot.slane %v1823_v26, 4  ;;  %v1896_v3 = vrot.slane %v1895_v24, 4  ;;  %v2023_v43 = vmax.f32 %v7630_v44, %v7638_v47 }
 0x2bf   :  { %v7645_v18 = vpop.eup %5501  ;;  %v7647_v7 = vadd.f32 %v1684_v17, %v1683_v25  ;;  %v1756_v23 = vrot.slane %v1755_v46, 1  ;;  %v1968_v60 = vrot.slane %v1967_v51, 4  ;;  %v9541_v63 = vsub.f32 %v9539_v10, %v9540_v6 }
 0x2c0   :  { %9537 = vst [vmem:[#allocation97_spill] sm:$0xff] %v7645_v18  ;;  %v7651_v50 = vpop.eup %5503  ;;  %v1825_v11 = vadd.f32 %v1824_v12, %v1823_v26  ;;  %v1897_v28 = vadd.f32 %v1896_v3, %v1895_v24  ;;  %v9542_v45 = vsub.f32 %v6996_v53, %v7052_v41  ;;  %v2024_v19 = vmax.f32 %v2023_v43, %v7643_v32 }
 0x2c1   :  { %9538 = vst [vmem:[#allocation98_spill] sm:$0xff] %v7651_v50  ;;  %v2208_v5 = vmul.f32 1.442695, %v9541_v63  ;;  %v7659_v13 = vpop.eup %5505  ;;  %v2363_v49 = vrot.slane %v7651_v50, 7  ;;  %v7662_v35 = vadd.f32 %v1756_v23, %v1755_v46  ;;  %v1969_v8 = vadd.f32 %v1968_v60, %v1967_v51 }
 0x2c2   :  { %v2212_v2 = vmul.f32 1.442695, %v9542_v45  ;;  %9543 = vst [vmem:[#allocation72_spill] sm:$0xff] %v7659_v13  ;;  %v7665_v21 = vpop.eup %5507  ;;  %v2365_v14 = vrot.slane %v7659_v13, 6  ;;  %v1826_v40 = vrot.slane %v1825_v11, 2  ;;  %v1898_v30 = vrot.slane %v1897_v28, 2 }
 0x2c3   :  { %9544 = vst [vmem:[#allocation73_spill] sm:$0xff] %v7665_v21  ;;  %5515 = vpow2.f32 %v2208_v5  ;;  %v7668_v34 = vpop.eup %5509  ;;  %v2364_v53 = vsel %vm2287_vm1, %v2363_v49, %v7645_v18  ;;  %v2367_v41 = vrot.slane %v7665_v21, 5  ;;  %v1970_v25 = vrot.slane %v1969_v8, 2  ;;  %v9549_v45 = vld [vmem:[#allocation83_spill] sm:$0xff]  ;;  %v2725_v13 = vld [vmem:[#allocation7 + $0x500] sm:$0xff] }
 0x2c4   :  { %9545 = vst [vmem:[#allocation99_spill] sm:$0xff] %v7668_v34  ;;  %v2025_v54 = vmax.f32 %v2024_v19, %v7647_v7  ;;  %v7674_v27 = vpop.eup %5511  ;;  %v2366_v26 = vsel %vm2290_vm2, %v2365_v14, %v2364_v53  ;;  %v2369_v24 = vrot.slane %v7668_v34, 4  ;;  %v1827_v17 = vadd.f32 %v1826_v40, %v1825_v11  ;;  %v9551_v40 = vld [vmem:[#allocation57_spill] sm:$0xff] }
 0x2c5   :  { %9546 = vst [vmem:[#allocation100_spill] sm:$0xff] %v7674_v27  ;;  %v1899_v46 = vadd.f32 %v1898_v30, %v1897_v28  ;;  %v7678_v51 = vpop.eup %5513  ;;  %v2368_v12 = vsel %vm2293_vm3, %v2367_v41, %v2366_v26  ;;  %v2371_v3 = vrot.slane %v7674_v27, 3  ;;  %v1971_v23 = vadd.f32 %v1970_v25, %v1969_v8  ;;  %v9548_v28 = vld [vmem:[#allocation56_spill] sm:$0xff]  ;;  %v9552_v41 = vld [vmem:[#allocation58_spill] sm:$0xff]  ;;  %v9553_v25 = vld [vmem:[#allocation59_spill] sm:$0xff] }
 0x2c6   :  { %9547 = vst [vmem:[#allocation101_spill] sm:$0xff] %v7678_v51  ;;  %v2026_v60 = vmax.f32 %v2025_v54, %v7662_v35  ;;  %v2370_v43 = vsel %vm2296_vm4, %v2369_v24, %v2368_v12  ;;  %v2373_v10 = vrot.slane %v7678_v51, 2  ;;  %v1828_v6 = vrot.slane %v1827_v17, 1  ;;  %v9554_v54 = vld [vmem:[#allocation60_spill] sm:$0xff]  ;;  %v9555_v12 = vld [vmem:[#allocation61_spill] sm:$0xff] }
 0x2c7   :  { %v1900_v63 = vrot.slane %v1899_v46, 1  ;;  %v2488_v5 = vrot.slane %v7641_v31, %v6679_v20  ;;  %v2372_v11 = vsel %vm2299_vm5, %v2371_v3, %v2370_v43  ;;  %5517 = vpow2.f32 %v2212_v2  ;;  %v9556_v3 = vld [vmem:[#allocation62_spill] sm:$0xff] }
 0x2c8   :  { %v2494_v49 = vmul.f32 %v9549_v45, %v9548_v28  ;;  %v7691_v19 = vsel %vm2302_vm6, %v2373_v10, %v2372_v11  ;;  %v7693_v8 = vadd.f32 %v1828_v6, %v1827_v17  ;;  %v1972_v14 = vrot.slane %v1971_v23, 1  ;;  %v9557_v10 = vld [vmem:[#allocation63_spill] sm:$0xff]  ;;  %v2565_v6 = vld [vmem:[#allocation7] sm:$0xff] }
 0x2c9   :  { %9550 = vst [vmem:[#allocation56_spill] sm:$0xff] %v7691_v19  ;;  %v2509_v30 = vmul.f32 %v9549_v45, %v9551_v40  ;;  %v7697_v53 = vadd.f32 %v1900_v63, %v1899_v46  ;;  %v2517_v31 = vmul.f32 %v9549_v45, %v9552_v41  ;;  %v2525_v2 = vmul.f32 %v9549_v45, %v9553_v25  ;;  %v2573_v63 = vld [vmem:[#allocation7 + $0x40] sm:$0xff]  ;;  %v2574_v19 = vld [vmem:[#allocation7 + $0x48] sm:$0xff] }
 0x2ca   :  { %v2533_v26 = vmul.f32 %v9549_v45, %v9554_v54  ;;  %v2027_v24 = vmax.f32 %v2026_v60, %v7693_v8  ;;  %v2541_v17 = vmul.f32 %v9549_v45, %v9555_v12  ;;  %v2549_v43 = vmul.f32 %v9549_v45, %v9556_v3  ;;  %v2629_v25 = vld [vmem:[#allocation7 + $0x200] sm:$0xff] }
 0x2cb   :  { %v2557_v46 = vmul.f32 %v9549_v45, %v9557_v10  ;;  %5519 = vrcp.f32 %v2480_v62  ;;  %v7716_v11 = vrot.slane %v2494_v49, %v6679_v20  ;;  %v7719_v60 = vrot.slane %v2509_v30, %v6679_v20  ;;  %v2605_v62 = vld [vmem:[#allocation7 + $0x140] sm:$0xff] }
 0x2cc   :  { %v7722_v28 = vrot.slane %v2517_v31, %v6679_v20  ;;  %5521 = vrcp.f32 %v2488_v5  ;;  %v7726_v41 = vadd.f32 %v1972_v14, %v1971_v23  ;;  %v2028_v45 = vmax.f32 %v2027_v24, %v7697_v53  ;;  %v9565_v12 = vld [vmem:[#allocation84_spill] sm:$0xff] }
 0x2cd   :  { %v7724_v40 = vpop.eup %5515  ;;  %v7730_v54 = vrot.slane %v2525_v2, %v6679_v20  ;;  %v7734_v30 = vrot.slane %v2533_v26, %v6679_v20  ;;  %v7737_v31 = vrot.slane %v2541_v17, %v6679_v20  ;;  %v7740_v5 = vrot.slane %v2549_v43, %v6679_v20  ;;  %v2637_v3 = vld [vmem:[#allocation7 + $0x240] sm:$0xff] }
 0x2ce   :  { %9558 = vst [vmem:[#allocation83_spill] sm:$0xff] %v7726_v41  ;;  %v2319_v49 = vrot.slane %v7724_v40, 1  ;;  %v7743_v23 = vmax.f32 %v2028_v45, %v7726_v41  ;;  %v7746_v14 = vrot.slane %v2557_v46, %v6679_v20  ;;  %v3077_v2 = vmul.f32 %v7716_v11, %v2565_v6 }
 0x2cf   :  { %9559 = vst [vmem:[#allocation57_spill] sm:$0xff] %v7730_v54  ;;  %9560 = vst [vmem:[#allocation58_spill] sm:$0xff] %v7734_v30  ;;  %v3085_v24 = vmul.f32 %v7716_v11, %v2573_v63  ;;  %v3109_v17 = vmul.f32 %v7719_v60, %v2597_v36  ;;  %v3117_v10 = vmul.f32 %v7719_v60, %v2605_v62 }
 0x2d0   :  { %9561 = vst [vmem:[#allocation59_spill] sm:$0xff] %v7737_v31  ;;  %9562 = vst [vmem:[#allocation60_spill] sm:$0xff] %v7740_v5  ;;  %v2320_v26 = vsel %vm2305_vm7, %v2319_v49, %v9565_v12  ;;  %v3141_v43 = vmul.f32 %v7722_v28, %v2629_v25  ;;  %v2037_v45 = vsub.f32 %v7630_v44, %v7743_v23  ;;  %v2661_v49 = vld [vmem:[#allocation7 + $0x300] sm:$0xff] }
 0x2d1   :  { %9563 = vst [vmem:[#allocation61_spill] sm:$0xff] %v7743_v23  ;;  %9564 = vst [vmem:[#allocation62_spill] sm:$0xff] %v7746_v14  ;;  %v2045_v46 = vsub.f32 %v7638_v47, %v7743_v23  ;;  %v2053_v6 = vsub.f32 %v7643_v32, %v7743_v23  ;;  %v2061_v63 = vsub.f32 %v7647_v7, %v7743_v23  ;;  %v2669_v12 = vld [vmem:[#allocation7 + $0x340] sm:$0xff]  ;;  %v7763_v36 = vpop.eup %5517 }
 0x2d2   :  { %v2069_v62 = vsub.f32 %v7662_v35, %v7743_v23  ;;  %v2077_v44 = vsub.f32 %v7693_v8, %v7743_v23  ;;  %v2085_v47 = vsub.f32 %v7697_v53, %v7743_v23  ;;  %v2701_v25 = vld [vmem:[#allocation7 + $0x440] sm:$0xff]  ;;  %v2108_v51 = vmul.f32 1.442695, %v2037_v45 }
 0x2d3   :  { %v2124_v7 = vmul.f32 1.442695, %v2045_v46  ;;  %v2140_v27 = vmul.f32 1.442695, %v2053_v6  ;;  %v3149_v34 = vmul.f32 %v7722_v28, %v2637_v3  ;;  %v2156_v21 = vmul.f32 1.442695, %v2061_v63 }
 0x2d4   :  { %v3173_v50 = vmul.f32 %v7730_v54, %v2661_v49  ;;  %v3181_v35 = vmul.f32 %v7730_v54, %v2669_v12  ;;  %v3205_v8 = vmul.f32 %v7734_v30, %v2693_v37  ;;  %5523 = vpow2.f32 %v2108_v51  ;;  %v2733_v32 = vld [vmem:[#allocation7 + $0x540] sm:$0xff] }
 0x2d5   :  { %v2172_v18 = vmul.f32 1.442695, %v2069_v62  ;;  %v2419_v53 = vrot.slane %v2320_v26, 4  ;;  %v2347_v15 = vrot.slane %v7763_v36, 1  ;;  %v7778_v45 = vpop.eup %5519  ;;  %5525 = vpow2.f32 %v2124_v7 }
 0x2d6   :  { %9566 = vst [vmem:[#allocation63_spill] sm:$0xff] %v7778_v45  ;;  %v2188_v46 = vmul.f32 1.442695, %v2077_v44  ;;  %v2204_v3 = vmul.f32 1.442695, %v2085_v47  ;;  %v3213_v6 = vmul.f32 %v7734_v30, %v2701_v25  ;;  %v7781_v63 = vpop.eup %5521  ;;  %5527 = vpow2.f32 %v2140_v27  ;;  %v2702_v45 = vld [vmem:[#allocation7 + $0x448] sm:$0xff] }
 0x2d7   :  { %9567 = vst [vmem:[#allocation84_spill] sm:$0xff] %v7781_v63  ;;  %v2420_v49 = vadd.f32 %v2419_v53, %v2320_v26  ;;  %v2348_v37 = vsel %vm2305_vm7, %v2347_v15, %v7231_v4  ;;  %v3237_v51 = vmul.f32 %v7737_v31, %v2725_v13  ;;  %5529 = vpow2.f32 %v2156_v21  ;;  %v9569_v26 = vld [vmem:[#allocation44_spill] sm:$0xff]  ;;  %v9595_v63 = vld [vmem:[#allocation78_spill] sm:$0xff] }
 0x2d8   :  { %v2431_v12 = vrot.slane %v2348_v37, 4  ;;  %v3245_v62 = vmul.f32 %v7737_v31, %v2733_v32  ;;  %v3269_v16 = vmul.f32 %v7740_v5, %v2757_v1  ;;  %5531 = vpow2.f32 %v2172_v18  ;;  %v2765_v13 = vld [vmem:[#allocation7 + $0x640] sm:$0xff]  ;;  %v9570_v1 = vld [vmem:[#allocation66_spill] sm:$0xff] }
 0x2d9   :  { %v2421_v44 = vrot.slane %v2420_v49, 2  ;;  %v3333_v47 = vadd.f32 %v3109_v17, %v3077_v2  ;;  %v3389_v7 = vadd.f32 %v3117_v10, %v3085_v24  ;;  %5533 = vpow2.f32 %v2188_v46  ;;  %v9571_v2 = vld [vmem:[#allocation67_spill] sm:$0xff]  ;;  %v9572_v17 = vld [vmem:[#allocation68_spill] sm:$0xff] }
 0x2da   :  { %v2432_v25 = vadd.f32 %v2431_v12, %v2348_v37  ;;  %v2498_v27 = vmul.f32 %v7604_v52, %v9568_v38  ;;  %v2511_v4 = vmul.f32 %v7604_v52, %v9569_v26  ;;  %5535 = vpow2.f32 %v2204_v3  ;;  %v2797_v46 = vld [vmem:[#allocation7 + $0x740] sm:$0xff]  ;;  %v9573_v3 = vld [vmem:[#allocation69_spill] sm:$0xff] }
 0x2db   :  { %v2422_v15 = vadd.f32 %v2421_v44, %v2420_v49  ;;  %v3334_v21 = vadd.f32 %v3333_v47, %v3141_v43  ;;  %v3390_v53 = vadd.f32 %v3389_v7, %v3149_v34  ;;  %v2519_v18 = vmul.f32 %v7604_v52, %v9570_v1  ;;  %v9574_v44 = vld [vmem:[#allocation70_spill] sm:$0xff]  ;;  %v9575_v7 = vld [vmem:[#allocation71_spill] sm:$0xff] }
 0x2dc   :  { %v2433_v32 = vrot.slane %v2432_v25, 2  ;;  %v2527_v24 = vmul.f32 %v7604_v52, %v9571_v2  ;;  %v2535_v10 = vmul.f32 %v7604_v52, %v9572_v17  ;;  %v2543_v49 = vmul.f32 %v7604_v52, %v9573_v3 }
 0x2dd   :  { %v2423_v38 = vrot.slane %v2422_v15, 1  ;;  %v3335_v37 = vadd.f32 %v3334_v21, %v3173_v50  ;;  %v3391_v12 = vadd.f32 %v3390_v53, %v3181_v35  ;;  %v3277_v34 = vmul.f32 %v7740_v5, %v2765_v13  ;;  %v2798_v5 = vld [vmem:[#allocation7 + $0x748] sm:$0xff] }
 0x2de   :  { %v2434_v43 = vadd.f32 %v2433_v32, %v2432_v25  ;;  %v2551_v47 = vmul.f32 %v7604_v52, %v9574_v44  ;;  %v7805_v26 = vmul.f32 %v7604_v52, %v9575_v7  ;;  %v7807_v1 = vpop.eup %5523  ;;  %v3301_v17 = vmul.f32 %v7746_v14, %v2789_v48 }
 0x2df   :  { %9576 = vst [vmem:[#allocation65_spill] sm:$0xff] %v7807_v1  ;;  %v2424_v2 = vadd.f32 %v2423_v38, %v2422_v15  ;;  %v3336_v50 = vadd.f32 %v3335_v37, %v3205_v8  ;;  %v3392_v35 = vadd.f32 %v3391_v12, %v3213_v6  ;;  %v7810_v21 = vpop.eup %5525  ;;  %v3309_v25 = vmul.f32 %v7746_v14, %v2797_v46 }
 0x2e0   :  { %9577 = vst [vmem:[#allocation44_spill] sm:$0xff] %v7810_v21  ;;  %v2435_v53 = vrot.slane %v2434_v43, 1  ;;  %v7814_v13 = vrot.slane %v2498_v27, %v6679_v20  ;;  %v7817_v32 = vrot.slane %v2511_v4, %v6679_v20  ;;  %v7819_v52 = vpop.eup %5527  ;;  %v2391_v3 = vrot.slane %v7810_v21, 7 }
 0x2e1   :  { %9580 = vst [vmem:[#allocation68_spill] sm:$0xff] %v7819_v52  ;;  %v2468_v15 = vrot.slane %v2424_v2, %v6679_v20  ;;  %v3337_v48 = vadd.f32 %v3336_v50, %v3237_v51  ;;  %v3393_v8 = vadd.f32 %v3392_v35, %v3245_v62  ;;  %v7823_v6 = vpop.eup %5529  ;;  %v2393_v38 = vrot.slane %v7819_v52, 6  ;;  %v2567_v2 = vld [vmem:[#allocation7 + $0x10] sm:$0xff] }
 0x2e2   :  { %9578 = vst [vmem:[#allocation66_spill] sm:$0xff] %v7814_v13  ;;  %9579 = vst [vmem:[#allocation67_spill] sm:$0xff] %v7817_v32  ;;  %v2436_v37 = vadd.f32 %v2435_v53, %v2434_v43  ;;  %v7827_v46 = vrot.slane %v2519_v18, %v6679_v20  ;;  %v7830_v27 = vrot.slane %v2527_v24, %v6679_v20  ;;  %v7832_v4 = vpop.eup %5531  ;;  %v2395_v44 = vrot.slane %v7823_v6, 5  ;;  %v2599_v50 = vld [vmem:[#allocation7 + $0x110] sm:$0xff] }
 0x2e3   :  { %9581 = vst [vmem:[#allocation69_spill] sm:$0xff] %v7823_v6  ;;  %9584 = vst [vmem:[#allocation102_spill] sm:$0xff] %v7832_v4  ;;  %v2392_v12 = vsel %vm2287_vm1, %v2391_v3, %v7807_v1  ;;  %5537 = vrcp.f32 %v2468_v15  ;;  %v3338_v51 = vadd.f32 %v3337_v48, %v3269_v16  ;;  %v7837_v62 = vpop.eup %5533  ;;  %v2397_v43 = vrot.slane %v7832_v4, 4  ;;  %v2575_v48 = vld [vmem:[#allocation7 + $0x50] sm:$0xff] }
 0x2e4   :  { %9582 = vst [vmem:[#allocation70_spill] sm:$0xff] %v7827_v46  ;;  %9583 = vst [vmem:[#allocation71_spill] sm:$0xff] %v7830_v27  ;;  %v2394_v7 = vsel %vm2290_vm2, %v2393_v38, %v2392_v12  ;;  %v3394_v18 = vadd.f32 %v3393_v8, %v3277_v34  ;;  %v7842_v24 = vrot.slane %v2535_v10, %v6679_v20  ;;  %v7844_v35 = vpop.eup %5535  ;;  %v2399_v3 = vrot.slane %v7837_v62, 3  ;;  %v2607_v38 = vld [vmem:[#allocation7 + $0x150] sm:$0xff] }
 0x2e5   :  { %9585 = vst [vmem:[#allocation103_spill] sm:$0xff] %v7837_v62  ;;  %9587 = vst [vmem:[#allocation105_spill] sm:$0xff] %v7844_v35  ;;  %v2396_v53 = vsel %vm2293_vm3, %v2395_v44, %v2394_v7  ;;  %v2476_v16 = vrot.slane %v2436_v37, %v6679_v20  ;;  %v7849_v15 = vadd.f32 %v3338_v51, %v3301_v17  ;;  %v2401_v34 = vrot.slane %v7844_v35, 2  ;;  %v2631_v10 = vld [vmem:[#allocation7 + $0x210] sm:$0xff] }
 0x2e6   :  { %9586 = vst [vmem:[#allocation104_spill] sm:$0xff] %v7842_v24  ;;  %v2398_v12 = vsel %vm2296_vm4, %v2397_v43, %v2396_v53  ;;  %v7853_v8 = vadd.f32 %v3394_v18, %v3309_v25  ;;  %v7856_v4 = vrot.slane %v2543_v49, %v6679_v20  ;;  %v2639_v7 = vld [vmem:[#allocation7 + $0x250] sm:$0xff]  ;;  %v7860_v17 = vrot.slane %v2551_v47, %v6679_v20 }
 0x2e7   :  { %v2400_v44 = vsel %vm2299_vm5, %v2399_v3, %v2398_v12  ;;  %v2663_v62 = vld [vmem:[#allocation7 + $0x310] sm:$0xff]  ;;  %v3079_v37 = vmul.f32 %v7814_v13, %v2567_v2  ;;  %v3111_v51 = vmul.f32 %v7817_v32, %v2599_v50  ;;  %v3087_v3 = vmul.f32 %v7814_v13, %v2575_v48 }
 0x2e8   :  { %9588 = vst [vmem:[#allocation106_spill] sm:$0xff] %v7856_v4  ;;  %v2671_v6 = vld [vmem:[#allocation7 + $0x350] sm:$0xff]  ;;  %9589 = vst [vmem:[#allocation107_spill] sm:$0xff] %v7860_v17  ;;  %v7865_v43 = vsel %vm2302_vm6, %v2401_v34, %v2400_v44  ;;  %v3119_v12 = vmul.f32 %v7817_v32, %v2607_v38  ;;  %5539 = vrcp.f32 %v2476_v16  ;;  %v7873_v2 = vrot.slane %v7805_v26, %v6679_v20  ;;  %v2581_v16 = vld [vmem:[#allocation7 + $0x80] sm:$0xff] }
 0x2e9   :  { %9590 = vst [vmem:[#allocation108_spill] sm:$0xff] %v7865_v43  ;;  %v2695_v49 = vld [vmem:[#allocation7 + $0x410] sm:$0xff]  ;;  %v3143_v44 = vmul.f32 %v7827_v46, %v2631_v10  ;;  %v7877_v25 = vmul.f32 %v7827_v46, %v2639_v7  ;;  %v7880_v21 = vmul.f32 %v7830_v27, %v2663_v62  ;;  %v7883_v48 = vmul.f32 %v7830_v27, %v2671_v6  ;;  %v2766_v32 = vld [vmem:[#allocation7 + $0x648] sm:$0xff] }
 0x2ea   :  { %v2703_v18 = vld [vmem:[#allocation7 + $0x450] sm:$0xff]  ;;  %9591 = vst [vmem:[#allocation109_spill] sm:$0xff] %v7873_v2  ;;  %v7886_v38 = vmul.f32 %v7842_v24, %v2695_v49  ;;  %v3347_v10 = vadd.f32 %v3111_v51, %v3079_v37  ;;  %v7903_v43 = vadd.f32 %v3119_v12, %v3087_v3  ;;  %v7914_v51 = vmul.f32 %v7716_v11, %v2581_v16  ;;  %v9596_v12 = vld [vmem:[#allocation79_spill] sm:$0xff] }
 0x2eb   :  { %v2727_v53 = vld [vmem:[#allocation7 + $0x510] sm:$0xff]  ;;  %v7889_v26 = vmul.f32 %v7842_v24, %v2703_v18 }
 0x2ec   :  { %v2735_v47 = vld [vmem:[#allocation7 + $0x550] sm:$0xff]  ;;  %v7892_v1 = vmul.f32 %v7856_v4, %v2727_v53  ;;  %v7911_v37 = vadd.f32 %v3347_v10, %v3143_v44  ;;  %9592 = vst [vmem:[#allocation110_spill] sm:$0xff] %v7914_v51  ;;  %v2736_v51 = vld [vmem:[#allocation7 + $0x558] sm:$0xff] }
 0x2ed   :  { %v2759_v35 = vld [vmem:[#allocation7 + $0x610] sm:$0xff]  ;;  %v7895_v7 = vmul.f32 %v7856_v4, %v2735_v47  ;;  %v5538_v49 = vpop.eup %5537  ;;  %v2734_v4 = vld [vmem:[#allocation7 + $0x548] sm:$0xff] }
 0x2ee   :  { %v2767_v52 = vld [vmem:[#allocation7 + $0x650] sm:$0xff]  ;;  %v7898_v62 = vmul.f32 %v7860_v17, %v2759_v35  ;;  %v9593_v35 = vld [vmem:[#allocation76_spill] sm:$0xff]  ;;  %v2518_v3 = vmul.f32 %v5538_v49, %v9595_v63  ;;  %v2526_v61 = vmul.f32 %v5538_v49, %v9596_v12  ;;  %v2534_v42 = vmul.f32 %v5538_v49, %v9597_v59 }
 0x2ef   :  { %v2791_v50 = vld [vmem:[#allocation7 + $0x710] sm:$0xff]  ;;  %v7901_v6 = vmul.f32 %v7860_v17, %v2767_v52  ;;  %v2496_v47 = vmul.f32 %v5538_v49, %v9593_v35  ;;  %v2510_v52 = vmul.f32 %v5538_v49, %v9594_v58  ;;  %v2589_v17 = vld [vmem:[#allocation7 + $0xc0] sm:$0xff]  ;;  %v2558_v16 = vmul.f32 %v5538_v49, %v7724_v40  ;;  %v2630_v35 = vld [vmem:[#allocation7 + $0x208] sm:$0xff] }
 0x2f0   :  { %v2799_v34 = vld [vmem:[#allocation7 + $0x750] sm:$0xff]  ;;  %v7906_v18 = vmul.f32 %v7873_v2, %v2791_v50  ;;  %v2613_v50 = vld [vmem:[#allocation7 + $0x180] sm:$0xff]  ;;  %v7931_v12 = vrot.slane %v2518_v3, %v6679_v20  ;;  %v7934_v59 = vrot.slane %v2526_v61, %v6679_v20  ;;  %v2662_v40 = vld [vmem:[#allocation7 + $0x308] sm:$0xff]  ;;  %v7937_v56 = vrot.slane %v2534_v42, %v6679_v20 }
 0x2f1   :  { %v7909_v53 = vmul.f32 %v7873_v2, %v2799_v34  ;;  %v9598_v34 = vld [vmem:[#allocation81_spill] sm:$0xff]  ;;  %v9599_v44 = vld [vmem:[#allocation82_spill] sm:$0xff]  ;;  %v7925_v58 = vrot.slane %v2496_v47, %v6679_v20  ;;  %v7928_v63 = vrot.slane %v2510_v52, %v6679_v20  ;;  %v7943_v52 = vmul.f32 %v7716_v11, %v2589_v17 }
 0x2f2   :  { %v2542_v2 = vmul.f32 %v5538_v49, %v9598_v34  ;;  %v2550_v10 = vmul.f32 %v5538_v49, %v9599_v44  ;;  %v2621_v34 = vld [vmem:[#allocation7 + $0x1c0] sm:$0xff]  ;;  %v2670_v49 = vld [vmem:[#allocation7 + $0x348] sm:$0xff]  ;;  %v7946_v3 = vmul.f32 %v7719_v60, %v2613_v50  ;;  %v5540_v22 = vpop.eup %5539  ;;  %v7959_v17 = vmul.f32 %v7722_v28, %v2645_v29  ;;  %v9606_v46 = vld [vmem:[#allocation46_spill] sm:$0xff] }
 0x2f3   :  { %v2653_v44 = vld [vmem:[#allocation7 + $0x2c0] sm:$0xff]  ;;  %9600 = vst [vmem:[#allocation76_spill] sm:$0xff] %v7943_v52  ;;  %v2694_v61 = vld [vmem:[#allocation7 + $0x408] sm:$0xff]  ;;  %v3078_v23 = vmul.f32 %v7925_v58, %v2566_v33  ;;  %v3086_v41 = vmul.f32 %v7925_v58, %v2574_v19  ;;  %v3110_v55 = vmul.f32 %v7928_v63, %v2598_v39  ;;  %v3118_v42 = vmul.f32 %v7928_v63, %v2606_v9 }
 0x2f4   :  { %v7940_v47 = vrot.slane %v2542_v2, %v6679_v20  ;;  %9601 = vst [vmem:[#allocation77_spill] sm:$0xff] %v7946_v3  ;;  %v7953_v2 = vrot.slane %v2550_v10, %v6679_v20  ;;  %v7956_v11 = vmul.f32 %v7719_v60, %v2621_v34  ;;  %9603 = vst [vmem:[#allocation79_spill] sm:$0xff] %v7959_v17  ;;  %v9611_v52 = vld [vmem:[#allocation49_spill] sm:$0xff] }
 0x2f5   :  { %v7962_v50 = vmul.f32 %v7722_v28, %v2653_v44  ;;  %v7965_v33 = vrot.slane %v2558_v16, %v6679_v20  ;;  %v3142_v39 = vmul.f32 %v7931_v12, %v2630_v35  ;;  %v3150_v9 = vmul.f32 %v7931_v12, %v2638_v0  ;;  %v2758_v28 = vld [vmem:[#allocation7 + $0x608] sm:$0xff]  ;;  %v9607_v0 = vld [vmem:[#allocation47_spill] sm:$0xff] }
 0x2f6   :  { %9602 = vst [vmem:[#allocation78_spill] sm:$0xff] %v7956_v11  ;;  %v3174_v19 = vmul.f32 %v7934_v59, %v2662_v40  ;;  %v3182_v10 = vmul.f32 %v7934_v59, %v2670_v49  ;;  %v3206_v60 = vmul.f32 %v7937_v56, %v2694_v61  ;;  %v3214_v34 = vmul.f32 %v7937_v56, %v2702_v45  ;;  %v9605_v16 = vld [vmem:[#allocation45_spill] sm:$0xff]  ;;  %v9608_v40 = vld [vmem:[#allocation48_spill] sm:$0xff]  ;;  %v9610_v61 = vld [vmem:[#allocation86_spill] sm:$0xff] }
 0x2f7   :  { %9604 = vst [vmem:[#allocation80_spill] sm:$0xff] %v7962_v50  ;;  %v3238_v29 = vmul.f32 %v7940_v47, %v2726_v57  ;;  %v3340_v44 = vadd.f32 %v3110_v55, %v3078_v23  ;;  %v3396_v24 = vadd.f32 %v3118_v42, %v3086_v41  ;;  %v2500_v27 = vmul.f32 %v5540_v22, %v9605_v16  ;;  %v9609_v49 = vld [vmem:[#allocation85_spill] sm:$0xff]  ;;  %v2568_v42 = vld [vmem:[#allocation7 + $0x18] sm:$0xff] }
 0x2f8   :  { %v2512_v35 = vmul.f32 %v5540_v22, %v9606_v46  ;;  %v2520_v13 = vmul.f32 %v5540_v22, %v9607_v0  ;;  %v2528_v50 = vmul.f32 %v5540_v22, %v9608_v40  ;;  %v2536_v17 = vmul.f32 %v5540_v22, %v9609_v49  ;;  %v2790_v45 = vld [vmem:[#allocation7 + $0x708] sm:$0xff] }
 0x2f9   :  { %v2544_v14 = vmul.f32 %v5540_v22, %v9610_v61  ;;  %v3341_v57 = vadd.f32 %v3340_v44, %v3142_v39  ;;  %v3397_v11 = vadd.f32 %v3396_v24, %v3150_v9  ;;  %v2552_v55 = vmul.f32 %v5540_v22, %v9611_v52  ;;  %v2576_v24 = vld [vmem:[#allocation7 + $0x58] sm:$0xff] }
 0x2fa   :  { %v2560_v41 = vmul.f32 %v5540_v22, %v7763_v36  ;;  %v3246_v23 = vmul.f32 %v7940_v47, %v2734_v4  ;;  %v3270_v46 = vmul.f32 %v7953_v2, %v2758_v28  ;;  %v7985_v16 = vrot.slane %v2500_v27, %v6679_v20  ;;  %v2600_v9 = vld [vmem:[#allocation7 + $0x118] sm:$0xff] }
 0x2fb   :  { %v7988_v0 = vrot.slane %v2512_v35, %v6679_v20  ;;  %v3278_v40 = vmul.f32 %v7953_v2, %v2766_v32  ;;  %v3342_v49 = vadd.f32 %v3341_v57, %v3174_v19  ;;  %v3398_v39 = vadd.f32 %v3397_v11, %v3182_v10  ;;  %v2608_v52 = vld [vmem:[#allocation7 + $0x158] sm:$0xff] }
 0x2fc   :  { %v7992_v22 = vrot.slane %v2520_v13, %v6679_v20  ;;  %v3302_v36 = vmul.f32 %v7965_v33, %v2790_v45  ;;  %v3310_v4 = vmul.f32 %v7965_v33, %v2798_v5  ;;  %v2632_v28 = vld [vmem:[#allocation7 + $0x218] sm:$0xff]  ;;  %v7997_v44 = vrot.slane %v2528_v50, %v6679_v20 }
 0x2fd   :  { %v2640_v27 = vld [vmem:[#allocation7 + $0x258] sm:$0xff]  ;;  %v8000_v35 = vrot.slane %v2536_v17, %v6679_v20  ;;  %v3343_v32 = vadd.f32 %v3342_v49, %v3206_v60  ;;  %v3399_v11 = vadd.f32 %v3398_v39, %v3214_v34  ;;  %v8003_v13 = vrot.slane %v2544_v14, %v6679_v20 }
 0x2fe   :  { %v2664_v19 = vld [vmem:[#allocation7 + $0x318] sm:$0xff]  ;;  %v8006_v45 = vrot.slane %v2552_v55, %v6679_v20  ;;  %v3080_v3 = vmul.f32 %v7985_v16, %v2568_v42  ;;  %v3088_v50 = vmul.f32 %v7985_v16, %v2576_v24  ;;  %v3112_v17 = vmul.f32 %v7988_v0, %v2600_v9 }
 0x2ff   :  { %v2672_v10 = vld [vmem:[#allocation7 + $0x358] sm:$0xff]  ;;  %v3120_v60 = vmul.f32 %v7988_v0, %v2608_v52  ;;  %v3344_v34 = vadd.f32 %v3343_v32, %v3238_v29  ;;  %v3400_v49 = vadd.f32 %v3399_v11, %v3246_v23  ;;  %v8013_v39 = vrot.slane %v2560_v41, %v6679_v20 }
 0x300   :  { %v2696_v61 = vld [vmem:[#allocation7 + $0x418] sm:$0xff]  ;;  %v3144_v14 = vmul.f32 %v7992_v22, %v2632_v28  ;;  %v3152_v31 = vmul.f32 %v7992_v22, %v2640_v27  ;;  %v3176_v30 = vmul.f32 %v7997_v44, %v2664_v19  ;;  %v3184_v42 = vmul.f32 %v7997_v44, %v2672_v10 }
 0x301   :  { %v2704_v5 = vld [vmem:[#allocation7 + $0x458] sm:$0xff]  ;;  %v3208_v24 = vmul.f32 %v8000_v35, %v2696_v61  ;;  %v3345_v9 = vadd.f32 %v3344_v34, %v3270_v46  ;;  %v3401_v54 = vadd.f32 %v3400_v49, %v3278_v40  ;;  %v3354_v28 = vadd.f32 %v3112_v17, %v3080_v3  ;;  %v2582_v61 = vld [vmem:[#allocation7 + $0x88] sm:$0xff] }
 0x302   :  { %v2728_v57 = vld [vmem:[#allocation7 + $0x518] sm:$0xff]  ;;  %v3216_v29 = vmul.f32 %v8000_v35, %v2704_v5  ;;  %v3410_v11 = vadd.f32 %v3120_v60, %v3088_v50  ;;  %v3349_v27 = vadd.f32 %v7911_v37, %v7880_v21  ;;  %v3404_v19 = vadd.f32 %v7903_v43, %v7877_v25  ;;  %v2590_v50 = vld [vmem:[#allocation7 + $0xc8] sm:$0xff] }
 0x303   :  { %v2760_v55 = vld [vmem:[#allocation7 + $0x618] sm:$0xff]  ;;  %v3240_v23 = vmul.f32 %v8003_v13, %v2728_v57  ;;  %v3346_v10 = vadd.f32 %v3345_v9, %v3302_v36  ;;  %v3402_v20 = vadd.f32 %v3401_v54, %v3310_v4  ;;  %v3248_v46 = vmul.f32 %v8003_v13, %v2736_v51  ;;  %v2614_v17 = vld [vmem:[#allocation7 + $0x188] sm:$0xff] }
 0x304   :  { %v2768_v41 = vld [vmem:[#allocation7 + $0x658] sm:$0xff]  ;;  %v3272_v40 = vmul.f32 %v8006_v45, %v2760_v55  ;;  %v3355_v5 = vadd.f32 %v3354_v28, %v3144_v14  ;;  %v3411_v57 = vadd.f32 %v3410_v11, %v3152_v31  ;;  %v3350_v34 = vadd.f32 %v3349_v27, %v7886_v38  ;;  %v2622_v60 = vld [vmem:[#allocation7 + $0x1c8] sm:$0xff] }
 0x305   :  { %v2792_v52 = vld [vmem:[#allocation7 + $0x718] sm:$0xff]  ;;  %v3405_v3 = vadd.f32 %v3404_v19, %v7883_v48  ;;  %v5283_v21 = vpack.c.bf16 %v3402_v20, %v3346_v10  ;;  %v3280_v37 = vmul.f32 %v8006_v45, %v2768_v41  ;;  %v2646_v25 = vld [vmem:[#allocation7 + $0x288] sm:$0xff]  ;;  %v3094_v14 = vmul.f32 %v7925_v58, %v2582_v61 }
 0x306   :  { %v2800_v32 = vld [vmem:[#allocation7 + $0x758] sm:$0xff]  ;;  %v3304_v43 = vmul.f32 %v8013_v39, %v2792_v52  ;;  %v3356_v51 = vadd.f32 %v3355_v5, %v3176_v30  ;;  %v3412_v36 = vadd.f32 %v3411_v57, %v3184_v42  ;;  %v3351_v4 = vadd.f32 %v3350_v34, %v7892_v1  ;;  %v2654_v38 = vld [vmem:[#allocation7 + $0x2c8] sm:$0xff] }
 0x307   :  { %v3312_v54 = vmul.f32 %v8013_v39, %v2800_v32  ;;  %v3406_v31 = vadd.f32 %v3405_v3, %v7889_v26  ;;  %v2678_v49 = vld [vmem:[#allocation7 + $0x388] sm:$0xff]  ;;  %5284 = vmatprep.subr.bf16.mxu0 %v5283_v21  ;;  %v3102_v20 = vmul.f32 %v7925_v58, %v2590_v50  ;;  %v3126_v55 = vmul.f32 %v7928_v63, %v2614_v17  ;;  %v2584_v3 = vld [vmem:[#allocation7 + $0x98] sm:$0xff] }
 0x308   :  { %v2686_v48 = vld [vmem:[#allocation7 + $0x3c8] sm:$0xff]  ;;  %v3134_v9 = vmul.f32 %v7928_v63, %v2622_v60  ;;  %v3357_v41 = vadd.f32 %v3356_v51, %v3208_v24  ;;  %v3413_v52 = vadd.f32 %v3412_v36, %v3216_v29  ;;  %v9612_v30 = vpack.c.bf16 %v7853_v8, %v7849_v15  ;;  %v2592_v21 = vld [vmem:[#allocation7 + $0xd8] sm:$0xff] }
 0x309   :  { %v3352_v1 = vadd.f32 %v3351_v4, %v7898_v62  ;;  %v3407_v26 = vadd.f32 %v3406_v31, %v7895_v7  ;;  %v2710_v42 = vld [vmem:[#allocation7 + $0x488] sm:$0xff]  ;;  %v3158_v11 = vmul.f32 %v7931_v12, %v2646_v25  ;;  %v3166_v58 = vmul.f32 %v7931_v12, %v2654_v38  ;;  %v2648_v4 = vld [vmem:[#allocation7 + $0x298] sm:$0xff] }
 0x30a   :  { %5286 = vmatpush1.bf16.msra.mxu0 %v9612_v30  ;;  %v2718_v32 = vld [vmem:[#allocation7 + $0x4c8] sm:$0xff]  ;;  %v3190_v27 = vmul.f32 %v7934_v59, %v2678_v49  ;;  %v3198_v63 = vmul.f32 %v7934_v59, %v2686_v48  ;;  %v3358_v24 = vadd.f32 %v3357_v41, %v3240_v23  ;;  %v3414_v29 = vadd.f32 %v3413_v52, %v3248_v46  ;;  %v2680_v49 = vld [vmem:[#allocation7 + $0x398] sm:$0xff] }
 0x30b   :  { %v2742_v28 = vld [vmem:[#allocation7 + $0x588] sm:$0xff]  ;;  %v3353_v15 = vadd.f32 %v3352_v1, %v7906_v18  ;;  %v3408_v8 = vadd.f32 %v3407_v26, %v7901_v6  ;;  %v3222_v10 = vmul.f32 %v7937_v56, %v2710_v42  ;;  %v3230_v61 = vmul.f32 %v7937_v56, %v2718_v32  ;;  %v2616_v18 = vld [vmem:[#allocation7 + $0x198] sm:$0xff] }
 0x30c   :  { %v2750_v62 = vld [vmem:[#allocation7 + $0x5c8] sm:$0xff]  ;;  %v3254_v5 = vmul.f32 %v7940_v47, %v2742_v28  ;;  %v3452_v12 = vadd.f32 %v3126_v55, %v3094_v14  ;;  %v3359_v57 = vadd.f32 %v3358_v24, %v3272_v40  ;;  %v3415_v34 = vadd.f32 %v3414_v29, %v3280_v37  ;;  %v2624_v56 = vld [vmem:[#allocation7 + $0x1d8] sm:$0xff] }
 0x30d   :  { %v2774_v19 = vld [vmem:[#allocation7 + $0x688] sm:$0xff]  ;;  %v3409_v59 = vadd.f32 %v3408_v8, %v7909_v53  ;;  %v3508_v46 = vadd.f32 %v3134_v9, %v3102_v20  ;;  %v3262_v6 = vmul.f32 %v7940_v47, %v2750_v62  ;;  %v2656_v53 = vld [vmem:[#allocation7 + $0x2d8] sm:$0xff]  ;;  %v3096_v14 = vmul.f32 %v7985_v16, %v2584_v3  ;;  %v2677_v8 = vld [vmem:[#allocation7 + $0x380] sm:$0xff] }
 0x30e   :  { %v2782_v7 = vld [vmem:[#allocation7 + $0x6c8] sm:$0xff]  ;;  %v3286_v50 = vmul.f32 %v7953_v2, %v2774_v19  ;;  %v3453_v60 = vadd.f32 %v3452_v12, %v3158_v11  ;;  %v3360_v25 = vadd.f32 %v3359_v57, %v3304_v43  ;;  %v3416_v51 = vadd.f32 %v3415_v34, %v3312_v54  ;;  %v2688_v48 = vld [vmem:[#allocation7 + $0x3d8] sm:$0xff]  ;;  %v2717_v34 = vld [vmem:[#allocation7 + $0x4c0] sm:$0xff] }
 0x30f   :  { %v2806_v23 = vld [vmem:[#allocation7 + $0x788] sm:$0xff]  ;;  %v3294_v17 = vmul.f32 %v7953_v2, %v2782_v7  ;;  %v5293_v36 = vpack.c.bf16 %v3409_v59, %v3353_v15  ;;  %v3509_v37 = vadd.f32 %v3508_v46, %v3166_v58  ;;  %v2712_v47 = vld [vmem:[#allocation7 + $0x498] sm:$0xff]  ;;  %v3128_v2 = vmul.f32 %v7988_v0, %v2616_v18  ;;  %v2749_v3 = vld [vmem:[#allocation7 + $0x5c0] sm:$0xff] }
 0x310   :  { %v2814_v40 = vld [vmem:[#allocation7 + $0x7c8] sm:$0xff]  ;;  %v3318_v31 = vmul.f32 %v7965_v33, %v2806_v23  ;;  %v3454_v38 = vadd.f32 %v3453_v60, %v3190_v27  ;;  %v5291_v20 = vpack.c.bf16 %v3416_v51, %v3360_v25  ;;  %v2720_v9 = vld [vmem:[#allocation7 + $0x4d8] sm:$0xff]  ;;  %v3104_v54 = vmul.f32 %v7985_v16, %v2592_v21  ;;  %v2773_v21 = vld [vmem:[#allocation7 + $0x680] sm:$0xff] }
 0x311   :  { %v3510_v55 = vadd.f32 %v3509_v37, %v3198_v63  ;;  %v2744_v43 = vld [vmem:[#allocation7 + $0x598] sm:$0xff]  ;;  %v3136_v41 = vmul.f32 %v7988_v0, %v2624_v56  ;;  %v3326_v52 = vmul.f32 %v7965_v33, %v2814_v40  ;;  %v3160_v42 = vmul.f32 %v7992_v22, %v2648_v4  ;;  %v9613_v18 = vld [vmem:[#allocation57_spill] sm:$0xff]  ;;  %v2781_v56 = vld [vmem:[#allocation7 + $0x6c0] sm:$0xff] }
 0x312   :  { %v3455_v30 = vadd.f32 %v3454_v38, %v3222_v10  ;;  %v2752_v1 = vld [vmem:[#allocation7 + $0x5d8] sm:$0xff]  ;;  %v3168_v32 = vmul.f32 %v7992_v22, %v2656_v53  ;;  %5292 = vmatprep.subr.bf16.mxu1 %v5291_v20  ;;  %v3192_v27 = vmul.f32 %v7997_v44, %v2680_v49  ;;  %v3200_v63 = vmul.f32 %v7997_v44, %v2688_v48  ;;  %v2685_v10 = vld [vmem:[#allocation7 + $0x3c0] sm:$0xff]  ;;  %v9614_v25 = vld [vmem:[#allocation58_spill] sm:$0xff] }
 0x313   :  { %v2776_v26 = vld [vmem:[#allocation7 + $0x698] sm:$0xff]  ;;  %v3511_v28 = vadd.f32 %v3510_v55, %v3230_v61  ;;  %v3224_v16 = vmul.f32 %v8000_v35, %v2712_v47  ;;  %5294 = vmatpush1.bf16.msra.mxu1 %v5293_v36  ;;  %v3232_v24 = vmul.f32 %v8000_v35, %v2720_v9  ;;  %v3256_v29 = vmul.f32 %v8003_v13, %v2744_v43  ;;  %v2709_v61 = vld [vmem:[#allocation7 + $0x480] sm:$0xff]  ;;  %v9616_v49 = vld [vmem:[#allocation110_spill] sm:$0xff] }
 0x314   :  { %v2784_v11 = vld [vmem:[#allocation7 + $0x6d8] sm:$0xff]  ;;  %v3456_v0 = vadd.f32 %v3455_v30, %v3254_v5  ;;  %v3466_v15 = vadd.f32 %v3128_v2, %v3096_v14  ;;  %v3264_v62 = vmul.f32 %v8003_v13, %v2752_v1  ;;  %v3288_v19 = vmul.f32 %v8006_v45, %v2776_v26  ;;  %v2741_v35 = vld [vmem:[#allocation7 + $0x580] sm:$0xff]  ;;  %v9619_v14 = vld [vmem:[#allocation78_spill] sm:$0xff] }
 0x315   :  { %v2808_v58 = vld [vmem:[#allocation7 + $0x798] sm:$0xff]  ;;  %v3512_v22 = vadd.f32 %v3511_v28, %v3262_v6  ;;  %v3522_v7 = vadd.f32 %v3136_v41, %v3104_v54  ;;  %v3296_v12 = vmul.f32 %v8006_v45, %v2784_v11  ;;  %v3189_v13 = vmul.f32 %v9613_v18, %v2677_v8  ;;  %v2805_v40 = vld [vmem:[#allocation7 + $0x780] sm:$0xff]  ;;  %v2583_v20 = vld [vmem:[#allocation7 + $0x90] sm:$0xff] }
 0x316   :  { %v2816_v33 = vld [vmem:[#allocation7 + $0x7d8] sm:$0xff]  ;;  %v3457_v44 = vadd.f32 %v3456_v0, %v3286_v50  ;;  %v3320_v5 = vmul.f32 %v8013_v39, %v2808_v58  ;;  %v3467_v57 = vadd.f32 %v3466_v15, %v3160_v42  ;;  %v3197_v50 = vmul.f32 %v9613_v18, %v2685_v10  ;;  %v2813_v53 = vld [vmem:[#allocation7 + $0x7c0] sm:$0xff]  ;;  %v2591_v55 = vld [vmem:[#allocation7 + $0xd0] sm:$0xff] }
 0x317   :  { %v3513_v59 = vadd.f32 %v3512_v22, %v3294_v17  ;;  %v3328_v23 = vmul.f32 %v8013_v39, %v2816_v33  ;;  %v3523_v46 = vadd.f32 %v3522_v7, %v3168_v32  ;;  %v3221_v45 = vmul.f32 %v9614_v25, %v2709_v61  ;;  %v9615_v17 = vld [vmem:[#allocation59_spill] sm:$0xff]  ;;  %v9618_v47 = vld [vmem:[#allocation76_spill] sm:$0xff]  ;;  %v2615_v30 = vld [vmem:[#allocation7 + $0x190] sm:$0xff] }
 0x318   :  { %v3458_v6 = vadd.f32 %v3457_v44, %v3318_v31  ;;  %v3468_v60 = vadd.f32 %v3467_v57, %v3192_v27  ;;  %v3229_v37 = vmul.f32 %v9614_v25, %v2717_v34  ;;  %v3253_v4 = vmul.f32 %v9615_v17, %v2741_v35  ;;  %v9617_v31 = vld [vmem:[#allocation77_spill] sm:$0xff]  ;;  %v9620_v54 = vld [vmem:[#allocation60_spill] sm:$0xff]  ;;  %v9621_v26 = vld [vmem:[#allocation62_spill] sm:$0xff] }
 0x319   :  { %v3514_v51 = vadd.f32 %v3513_v59, %v3326_v52  ;;  %v3524_v36 = vadd.f32 %v3523_v46, %v3200_v63  ;;  %v3261_v38 = vmul.f32 %v9615_v17, %v2749_v3  ;;  %v3445_v48 = vadd.f32 %v9617_v31, %v9616_v49  ;;  %v9622_v32 = vld [vmem:[#allocation79_spill] sm:$0xff]  ;;  %v9623_v11 = vld [vmem:[#allocation80_spill] sm:$0xff]  ;;  %v2623_v27 = vld [vmem:[#allocation7 + $0x1d0] sm:$0xff] }
 0x31a   :  { %v3469_v39 = vadd.f32 %v3468_v60, %v3224_v16  ;;  %v3501_v2 = vadd.f32 %v9619_v14, %v9618_v47  ;;  %v3285_v41 = vmul.f32 %v9620_v54, %v2773_v21  ;;  %v3293_v52 = vmul.f32 %v9620_v54, %v2781_v56  ;;  %v2647_v63 = vld [vmem:[#allocation7 + $0x290] sm:$0xff]  ;;  %v9625_v34 = vld [vmem:[#allocation67_spill] sm:$0xff] }
 0x31b   :  { %v5287_v9 = vpack.c.bf16 %v3514_v51, %v3458_v6  ;;  %v3525_v43 = vadd.f32 %v3524_v36, %v3232_v24  ;;  %v3317_v42 = vmul.f32 %v9621_v26, %v2805_v40  ;;  %v3446_v28 = vadd.f32 %v3445_v48, %v9622_v32  ;;  %v2655_v16 = vld [vmem:[#allocation7 + $0x2d0] sm:$0xff]  ;;  %v9627_v25 = vld [vmem:[#allocation71_spill] sm:$0xff]  ;;  %v9628_v51 = vld [vmem:[#allocation104_spill] sm:$0xff] }
 0x31c   :  { %v3470_v1 = vadd.f32 %v3469_v39, %v3256_v29  ;;  %v3502_v58 = vadd.f32 %v3501_v2, %v9623_v11  ;;  %v3325_v33 = vmul.f32 %v9621_v26, %v2813_v53  ;;  %v2679_v24 = vld [vmem:[#allocation7 + $0x390] sm:$0xff]  ;;  %v3127_v35 = vmul.f32 %v9625_v34, %v2615_v30  ;;  %v9630_v47 = vld [vmem:[#allocation95_spill] sm:$0xff]  ;;  %v9634_v2 = vld [vmem:[#allocation61_spill] sm:$0xff] }
 0x31d   :  { %5288 = vmatprep.subr.bf16.mxu0 %v5287_v9  ;;  %v3526_v0 = vadd.f32 %v3525_v43, %v3264_v62  ;;  %v9624_v15 = vld [vmem:[#allocation66_spill] sm:$0xff]  ;;  %v3447_v29 = vadd.f32 %v3446_v28, %v3189_v13  ;;  %v3135_v3 = vmul.f32 %v9625_v34, %v2623_v27  ;;  %v9633_v14 = vld [vmem:[#allocation83_spill] sm:$0xff]  ;;  %v9639_v32 = vld [vmem:[#allocation53_spill] sm:$0xff] }
 0x31e   :  { %v3095_v8 = vmul.f32 %v9624_v15, %v2583_v20  ;;  %v3103_v22 = vmul.f32 %v9624_v15, %v2591_v55  ;;  %v3471_v7 = vadd.f32 %v3470_v1, %v3288_v19  ;;  %v3503_v10 = vadd.f32 %v3502_v58, %v3197_v50  ;;  %v2687_v61 = vld [vmem:[#allocation7 + $0x3d0] sm:$0xff]  ;;  %v9637_v30 = vld [vmem:[#allocation63_spill] sm:$0xff] }
 0x31f   :  { %v2711_v44 = vld [vmem:[#allocation7 + $0x490] sm:$0xff]  ;;  %v3527_v59 = vadd.f32 %v3526_v0, %v3296_v12  ;;  %v3448_v21 = vadd.f32 %v3447_v29, %v3221_v45  ;;  %v3191_v19 = vmul.f32 %v9627_v25, %v2679_v24  ;;  %v3199_v50 = vmul.f32 %v9627_v25, %v2687_v61  ;;  %v9638_v1 = vld [vmem:[#allocation51_spill] sm:$0xff] }
 0x320   :  { %v2719_v57 = vld [vmem:[#allocation7 + $0x4d0] sm:$0xff]  ;;  %v3472_v60 = vadd.f32 %v3471_v7, %v3320_v5  ;;  %v3504_v56 = vadd.f32 %v3503_v10, %v3229_v37  ;;  %v3223_v36 = vmul.f32 %v9628_v51, %v2711_v44  ;;  %v3459_v49 = vadd.f32 %v3127_v35, %v3095_v8  ;;  %v9631_v5 = vld [vmem:[#allocation96_spill] sm:$0xff]  ;;  %v9641_v15 = vld [vmem:[#allocation75_spill] sm:$0xff] }
 0x321   :  { %v2743_v46 = vld [vmem:[#allocation7 + $0x590] sm:$0xff]  ;;  %v3528_v13 = vadd.f32 %v3527_v59, %v3328_v23  ;;  %v3231_v40 = vmul.f32 %v9628_v51, %v2719_v57  ;;  %v3449_v12 = vadd.f32 %v3448_v21, %v3253_v4  ;;  %v3515_v48 = vadd.f32 %v3135_v3, %v3103_v22  ;;  %v9642_v22 = vld [vmem:[#allocation55_spill] sm:$0xff]  ;;  %v2569_v3 = vld [vmem:[#allocation7 + $0x20] sm:$0xff] }
 0x322   :  { %v9626_v62 = vld [vmem:[#allocation70_spill] sm:$0xff]  ;;  %v3505_v17 = vadd.f32 %v3504_v56, %v3261_v38  ;;  %v9632_v45 = vsub.f32 %v9630_v47, %v9631_v5  ;;  %v9635_v23 = vsub.f32 %v9633_v14, %v9634_v2  ;;  %v2513_v26 = vmul.f32 %v9637_v30, %v9638_v1  ;;  %v9644_v44 = vld [vmem:[#allocation87_spill] sm:$0xff]  ;;  %v9648_v51 = vld [vmem:[#allocation109_spill] sm:$0xff] }
 0x323   :  { %v3159_v18 = vmul.f32 %v9626_v62, %v2647_v63  ;;  %v3167_v6 = vmul.f32 %v9626_v62, %v2655_v16  ;;  %v9629_v39 = vld [vmem:[#allocation106_spill] sm:$0xff]  ;;  %v5295_v31 = vpack.c.bf16 %v3528_v13, %v3472_v60  ;;  %v3450_v55 = vadd.f32 %v3449_v12, %v3285_v41  ;;  %v9646_v62 = vld [vmem:[#allocation52_spill] sm:$0xff]  ;;  %v9647_v60 = vld [vmem:[#allocation107_spill] sm:$0xff] }
 0x324   :  { %v3255_v53 = vmul.f32 %v9629_v39, %v2743_v46  ;;  %v2216_v37 = vmul.f32 1.442695, %v9632_v45  ;;  %v2220_v20 = vmul.f32 1.442695, %v9635_v23  ;;  %v3506_v9 = vadd.f32 %v3505_v17, %v3293_v52  ;;  %v9636_v54 = vld [vmem:[#allocation50_spill] sm:$0xff]  ;;  %v8130_v46 = vld [vmem:[%s9202_s4] sm:$0xff] }
 0x325   :  { %v3460_v43 = vadd.f32 %v3459_v49, %v3159_v18  ;;  %v2502_v4 = vmul.f32 %v9637_v30, %v9636_v54  ;;  %5296 = vmatprep.subr.bf16.mxu1 %v5295_v31  ;;  %v3516_v38 = vadd.f32 %v3515_v48, %v3167_v6  ;;  %v2521_v28 = vmul.f32 %v9637_v30, %v9639_v32  ;;  %v2751_v27 = vld [vmem:[#allocation7 + $0x5d0] sm:$0xff]  ;;  %v2601_v13 = vld [vmem:[#allocation7 + $0x120] sm:$0xff]  ;;  %v8161_v54 = vld [vmem:[%s9202_s4 + $0x8] sm:$0xff] }
 0x326   :  { %5541 = vpow2.f32 %v2216_v37  ;;  %v3451_v11 = vadd.f32 %v3450_v55, %v3317_v42  ;;  %v3507_v58 = vadd.f32 %v3506_v9, %v3325_v33  ;;  %v2775_v41 = vld [vmem:[#allocation7 + $0x690] sm:$0xff]  ;;  %v2537_v8 = vmul.f32 %v9637_v30, %v9641_v15  ;;  %v9643_v42 = vld [vmem:[#allocation64_spill] sm:$0xff]  ;;  %9645 = vst [vmem:[#allocation81_spill] sm:$0xff] %v8130_v46  ;;  %9650 = vst [vmem:[#allocation82_spill] sm:$0xff] %v8161_v54 }
 0x327   :  { %v3461_v63 = vadd.f32 %v3460_v43, %v3191_v19  ;;  %5543 = vpow2.f32 %v2220_v20  ;;  %v2783_v52 = vld [vmem:[#allocation7 + $0x6d0] sm:$0xff]  ;;  %v3517_v16 = vadd.f32 %v3516_v38, %v3199_v50  ;;  %v2545_v7 = vmul.f32 %v9637_v30, %v9642_v22  ;;  %v2577_v19 = vld [vmem:[#allocation7 + $0x60] sm:$0xff] }
 0x328   :  { %v9640_v0 = vld [vmem:[#allocation54_spill] sm:$0xff]  ;;  %v5289_v29 = vpack.c.bf16 %v3507_v58, %v3451_v11  ;;  %v2553_v33 = vmul.f32 %v9637_v30, %v9643_v42  ;;  %v8124_v57 = vmul.f32 %v9637_v30, %v9644_v44  ;;  %v3263_v35 = vmul.f32 %v9629_v39, %v2751_v27  ;;  %v2609_v50 = vld [vmem:[#allocation7 + $0x160] sm:$0xff] }
 0x329   :  { %v2529_v24 = vmul.f32 %v9637_v30, %v9640_v0  ;;  %v2807_v10 = vld [vmem:[#allocation7 + $0x790] sm:$0xff]  ;;  %v3462_v61 = vadd.f32 %v3461_v63, %v3223_v36  ;;  %v3518_v59 = vadd.f32 %v3517_v16, %v3231_v40  ;;  %v8133_v18 = vrot.slane %v2502_v4, %v9646_v62  ;;  %v2633_v31 = vld [vmem:[#allocation7 + $0x220] sm:$0xff] }
 0x32a   :  { %v2815_v34 = vld [vmem:[#allocation7 + $0x7d0] sm:$0xff]  ;;  %v8136_v6 = vrot.slane %v2513_v26, %v9646_v62  ;;  %5290 = vmatpush1.bf16.msra.mxu0 %v5289_v29  ;;  %v3287_v21 = vmul.f32 %v9647_v60, %v2775_v41  ;;  %v3295_v56 = vmul.f32 %v9647_v60, %v2783_v52  ;;  %v3319_v36 = vmul.f32 %v9648_v51, %v2807_v10  ;;  %v2641_v48 = vld [vmem:[#allocation7 + $0x260] sm:$0xff] }
 0x32b   :  { %v3463_v25 = vadd.f32 %v3462_v61, %v3255_v53  ;;  %v3519_v40 = vadd.f32 %v3518_v59, %v3263_v35  ;;  %v8142_v12 = vrot.slane %v2521_v28, %v9646_v62  ;;  %v8145_v17 = vrot.slane %v2529_v24, %v9646_v62  ;;  %v2665_v47 = vld [vmem:[#allocation7 + $0x320] sm:$0xff]  ;;  %v8187_v15 = vld [vmem:[%s9202_s4 + $0x10] sm:$0xff] }
 0x32c   :  { %v3327_v39 = vmul.f32 %v9648_v51, %v2815_v34  ;;  %v8149_v53 = vrot.slane %v2537_v8, %v9646_v62  ;;  %v3081_v5 = vmul.f32 %v8133_v18, %v2569_v3  ;;  %v2673_v37 = vld [vmem:[#allocation7 + $0x360] sm:$0xff]  ;;  %v3089_v23 = vmul.f32 %v8133_v18, %v2577_v19  ;;  %9651 = vst [vmem:[#allocation45_spill] sm:$0xff] %v8187_v15  ;;  %v9655_v61 = vld [vmem:[#allocation74_spill] sm:$0xff] }
 0x32d   :  { %v3464_v49 = vadd.f32 %v3463_v25, %v3287_v21  ;;  %v3520_v45 = vadd.f32 %v3519_v40, %v3295_v56  ;;  %5203 = vmatmul.mubr.msk.f32.vlgmr.msra.gmra.mrb[16].mxu0 %vm517_vm0, %v8130_v46  ;;  %v2697_v14 = vld [vmem:[#allocation7 + $0x420] sm:$0xff]  ;;  %v3113_v20 = vmul.f32 %v8136_v6, %v2601_v13  ;;  %v3121_v55 = vmul.f32 %v8136_v6, %v2609_v50  ;;  %v9658_v19 = vld [vmem:[#allocation90_spill] sm:$0xff]  ;;  %v9659_v50 = vld [vmem:[#allocation91_spill] sm:$0xff] }
 0x32e   :  { %v2705_v2 = vld [vmem:[#allocation7 + $0x460] sm:$0xff]  ;;  %v9649_v43 = vmov 0.0   ;;  %v8164_v30 = vrot.slane %v2545_v7, %v9646_v62  ;;  %v8167_v4 = vrot.slane %v2553_v33, %v9646_v62  ;;  %v3145_v26 = vmul.f32 %v8142_v12, %v2633_v31  ;;  %v9656_v33 = vld [vmem:[#allocation89_spill] sm:$0xff] }
 0x32f   :  { %v3465_v9 = vadd.f32 %v3464_v49, %v3319_v36  ;;  %3643 = vmatprep.mubr.f32.mxu0 %v9649_v43  ;;  %v3521_v1 = vadd.f32 %v3520_v45, %v3327_v39  ;;  %v3153_v32 = vmul.f32 %v8142_v12, %v2641_v48  ;;  %v3177_v28 = vmul.f32 %v8145_v17, %v2665_v47  ;;  %v9652_v8 = vld [vmem:[#allocation56_spill] sm:$0xff]  ;;  %v9661_v47 = vld [vmem:[#allocation93_spill] sm:$0xff] }
 0x330   :  { %v8169_v38 = vpop.eup %5541  ;;  %v3185_v27 = vmul.f32 %v8145_v17, %v2673_v37  ;;  %v3209_v63 = vmul.f32 %v8149_v53, %v2697_v14  ;;  %v3217_v41 = vmul.f32 %v8149_v53, %v2705_v2  ;;  %v3361_v0 = vadd.f32 %v3113_v20, %v3081_v5  ;;  %v9653_v7 = vld [vmem:[#allocation88_spill] sm:$0xff] }
 0x331   :  { %v8174_v11 = vpop.eup %5543  ;;  %v2375_v58 = vrot.slane %v8169_v38, 1  ;;  %v5297_v52 = vpack.c.bf16 %v3521_v1, %v3465_v9  ;;  %5204 = vmatmul.mubr.msk.f32.gmra.mrb[18].mxu0 %vm517_vm0, %v8161_v54  ;;  %v3417_v24 = vadd.f32 %v3121_v55, %v3089_v23  ;;  %v9654_v29 = vld [vmem:[#allocation84_spill] sm:$0xff]  ;;  %v8219_v14 = vrot.slane %v8124_v57, %v9646_v62  ;;  %v9662_v23 = vld [vmem:[#allocation94_spill] sm:$0xff]  ;;  %v8229_v55 = vld [vmem:[%s9202_s4 + $0x18] sm:$0xff] }
 0x332   :  { %v2403_v16 = vrot.slane %v8174_v11, 1  ;;  %3649 = vmatprep.mubr.f32.mxu0 %v9649_v43  ;;  %v2506_v10 = vmul.f32 %v9654_v29, %v9653_v7  ;;  %v2515_v42 = vmul.f32 %v9654_v29, %v9655_v61  ;;  %v2523_v44 = vmul.f32 %v9654_v29, %v9656_v33  ;;  %v9657_v35 = vld [vmem:[#allocation108_spill] sm:$0xff]  ;;  %9663 = vst [vmem:[#allocation46_spill] sm:$0xff] %v8229_v55  ;;  %v2571_v7 = vld [vmem:[#allocation7 + $0x30] sm:$0xff] }
 0x333   :  { %v2376_v22 = vsel %vm2305_vm7, %v2375_v58, %v9652_v8  ;;  %5298 = vmatpush1.bf16.msra.mxu1 %v5297_v52  ;;  %v2729_v3 = vld [vmem:[#allocation7 + $0x520] sm:$0xff]  ;;  %v3362_v60 = vadd.f32 %v3361_v0, %v3145_v26  ;;  %v3418_v21 = vadd.f32 %v3417_v24, %v3153_v32  ;;  %v2531_v13 = vmul.f32 %v9654_v29, %v9658_v19 }
 0x334   :  { %v2443_v34 = vrot.slane %v2376_v22, 4  ;;  %v2404_v59 = vsel %vm2305_vm7, %v2403_v16, %v9657_v35  ;;  %v2737_v25 = vld [vmem:[#allocation7 + $0x560] sm:$0xff]  ;;  %v8203_v51 = vmul.f32 %v9654_v29, %v9659_v50  ;;  %v8213_v5 = vmul.f32 %v9654_v29, %v9661_v47  ;;  %v2627_v47 = vld [vmem:[#allocation7 + $0x1f0] sm:$0xff] }
 0x335   :  { %v2455_v56 = vrot.slane %v2404_v59, 4  ;;  %v9660_v36 = vld [vmem:[#allocation92_spill] sm:$0xff]  ;;  %5205 = vmatmul.mubr.msk.f32.gmra.mrb[20].mxu0 %vm517_vm0, %v8187_v15  ;;  %v3363_v31 = vadd.f32 %v3362_v60, %v3177_v28  ;;  %v3419_v48 = vadd.f32 %v3418_v21, %v3185_v27  ;;  %v3241_v2 = vmul.f32 %v8164_v30, %v2729_v3 }
 0x336   :  { %v8207_v40 = vmul.f32 %v9654_v29, %v9660_v36  ;;  %v2444_v39 = vadd.f32 %v2443_v34, %v2376_v22  ;;  %v2761_v49 = vld [vmem:[#allocation7 + $0x620] sm:$0xff]  ;;  %5207 = vmatmul.mubr.msk.f32.vlgmr.msra.gmra.mrb[16].mxu1 %vm517_vm0, %v8130_v46  ;;  %v8224_v20 = vmul.f32 %v9654_v29, %v9662_v23  ;;  %v3249_v32 = vmul.f32 %v8164_v30, %v2737_v25  ;;  %v2579_v29 = vld [vmem:[#allocation7 + $0x70] sm:$0xff] }
 0x337   :  { %v2456_v45 = vadd.f32 %v2455_v56, %v2404_v59  ;;  %v2769_v37 = vld [vmem:[#allocation7 + $0x660] sm:$0xff]  ;;  %3732 = vmatprep.mubr.f32.mxu1 %v9649_v43  ;;  %v3364_v57 = vadd.f32 %v3363_v31, %v3209_v63  ;;  %v3420_v28 = vadd.f32 %v3419_v48, %v3217_v41  ;;  %3655 = vmatprep.mubr.f32.mxu0 %v9649_v43  ;;  %v2603_v63 = vld [vmem:[#allocation7 + $0x130] sm:$0xff] }
 0x338   :  { %v2445_v9 = vrot.slane %v2444_v39, 2  ;;  %v2793_v1 = vld [vmem:[#allocation7 + $0x720] sm:$0xff]  ;;  %v3273_v27 = vmul.f32 %v8167_v4, %v2761_v49  ;;  %v8236_v52 = vrot.slane %v2506_v10, %v9646_v62  ;;  %v8239_v16 = vrot.slane %v2515_v42, %v9646_v62  ;;  %v2611_v42 = vld [vmem:[#allocation7 + $0x170] sm:$0xff] }
 0x339   :  { %v2801_v26 = vld [vmem:[#allocation7 + $0x760] sm:$0xff]  ;;  %v2457_v58 = vrot.slane %v2456_v45, 2  ;;  %v3281_v24 = vmul.f32 %v8167_v4, %v2769_v37  ;;  %v3365_v8 = vadd.f32 %v3364_v57, %v3241_v2  ;;  %v3421_v22 = vadd.f32 %v3420_v28, %v3249_v32  ;;  %5206 = vmatmul.mubr.msk.f32.gmra.mrb[22].mxu0 %vm517_vm0, %v8229_v55  ;;  %v2635_v36 = vld [vmem:[#allocation7 + $0x230] sm:$0xff] }
 0x33a   :  { %v2446_v0 = vadd.f32 %v2445_v9, %v2444_v39  ;;  %5208 = vmatmul.mubr.msk.f32.gmra.mrb[18].mxu1 %vm517_vm0, %v8161_v54  ;;  %v3305_v10 = vmul.f32 %v8219_v14, %v2793_v1  ;;  %v3313_v61 = vmul.f32 %v8219_v14, %v2801_v26  ;;  %v8250_v59 = vrot.slane %v2523_v44, %v9646_v62  ;;  %v2643_v49 = vld [vmem:[#allocation7 + $0x270] sm:$0xff]  ;;  %v2585_v9 = vld [vmem:[#allocation7 + $0xa0] sm:$0xff] }
 0x33b   :  { %v2458_v41 = vadd.f32 %v2457_v58, %v2456_v45  ;;  %3738 = vmatprep.mubr.f32.mxu1 %v9649_v43  ;;  %v3366_v34 = vadd.f32 %v3365_v8, %v3273_v27  ;;  %v3422_v35 = vadd.f32 %v3421_v22, %v3281_v24  ;;  %3815 = vmatprep.mubr.f32.mxu0 %v9649_v43  ;;  %v2667_v45 = vld [vmem:[#allocation7 + $0x330] sm:$0xff]  ;;  %v2617_v1 = vld [vmem:[#allocation7 + $0x1a0] sm:$0xff] }
 0x33c   :  { %v2447_v33 = vrot.slane %v2446_v0, 1  ;;  %v3083_v60 = vmul.f32 %v8236_v52, %v2571_v7  ;;  %v3091_v21 = vmul.f32 %v8236_v52, %v2579_v29  ;;  %v3115_v56 = vmul.f32 %v8239_v16, %v2603_v63  ;;  %v2675_v37 = vld [vmem:[#allocation7 + $0x370] sm:$0xff]  ;;  %v2593_v58 = vld [vmem:[#allocation7 + $0xe0] sm:$0xff] }
 0x33d   :  { %v2459_v3 = vrot.slane %v2458_v41, 1  ;;  %v8256_v19 = vadd.f32 %v3366_v34, %v3305_v10  ;;  %v8258_v50 = vadd.f32 %v3422_v35, %v3313_v61  ;;  %v3123_v39 = vmul.f32 %v8239_v16, %v2611_v42  ;;  %v2699_v26 = vld [vmem:[#allocation7 + $0x430] sm:$0xff]  ;;  %v2625_v27 = vld [vmem:[#allocation7 + $0x1e0] sm:$0xff] }
 0x33e   :  { %v2448_v25 = vadd.f32 %v2447_v33, %v2446_v0  ;;  %5209 = vmatmul.mubr.msk.f32.gmra.mrb[20].mxu1 %vm517_vm0, %v8187_v15  ;;  %v8264_v31 = vrot.slane %v2531_v13, %v9646_v62  ;;  %v8272_v2 = vrot.slane %v8203_v51, %v9646_v62  ;;  %v8276_v23 = vrot.slane %v8207_v40, %v9646_v62  ;;  %v2707_v51 = vld [vmem:[#allocation7 + $0x470] sm:$0xff]  ;;  %v2649_v34 = vld [vmem:[#allocation7 + $0x2a0] sm:$0xff]  ;;  %v2706_v15 = vld [vmem:[#allocation7 + $0x468] sm:$0xff] }
 0x33f   :  { %v2460_v44 = vadd.f32 %v2459_v3, %v2458_v41  ;;  %3744 = vmatprep.mubr.f32.mxu1 %v9649_v43  ;;  %v3147_v13 = vmul.f32 %v8250_v59, %v2635_v36  ;;  %v3155_v32 = vmul.f32 %v8250_v59, %v2643_v49  ;;  %v3375_v57 = vadd.f32 %v3115_v56, %v3083_v60  ;;  %v2731_v24 = vld [vmem:[#allocation7 + $0x530] sm:$0xff]  ;;  %v9679_v54 = vld [vmem:[#allocation68_spill] sm:$0xff] }
 0x340   :  { %v2484_v48 = vrot.slane %v2448_v25, %v9646_v62  ;;  %9664 = vst [vmem:[#allocation47_spill] sm:$0xff] %v8272_v2  ;;  %9665 = vst [vmem:[#allocation48_spill] sm:$0xff] %v8276_v23  ;;  %v3431_v28 = vadd.f32 %v3123_v39, %v3091_v21  ;;  %v8283_v40 = vrot.slane %v8213_v5, %v9646_v62  ;;  %v2739_v7 = vld [vmem:[#allocation7 + $0x570] sm:$0xff] }
 0x341   :  { %v2492_v0 = vrot.slane %v2460_v44, %v9646_v62  ;;  %v3179_v8 = vmul.f32 %v8264_v31, %v2667_v45  ;;  %v3187_v22 = vmul.f32 %v8264_v31, %v2675_v37  ;;  %v2763_v29 = vld [vmem:[#allocation7 + $0x630] sm:$0xff]  ;;  %v3376_v41 = vadd.f32 %v3375_v57, %v3147_v13  ;;  %v2657_v44 = vld [vmem:[#allocation7 + $0x2e0] sm:$0xff] }
 0x342   :  { %5545 = vrcp.f32 %v2484_v48  ;;  %9666 = vst [vmem:[#allocation85_spill] sm:$0xff] %v8283_v40  ;;  %5210 = vmatmul.mubr.msk.f32.gmra.mrb[22].mxu1 %vm517_vm0, %v8229_v55  ;;  %v2771_v63 = vld [vmem:[#allocation7 + $0x670] sm:$0xff]  ;;  %v3432_v10 = vadd.f32 %v3431_v28, %v3155_v32  ;;  %v3097_v61 = vmul.f32 %v8133_v18, %v2585_v9  ;;  %v3129_v42 = vmul.f32 %v8136_v6, %v2617_v1  ;;  %v2681_v45 = vld [vmem:[#allocation7 + $0x3a0] sm:$0xff]  ;;  %v2698_v55 = vld [vmem:[#allocation7 + $0x428] sm:$0xff] }
 0x343   :  { %3904 = vmatprep.mubr.f32.mxu1 %v9649_v43  ;;  %v8294_v5 = vrot.slane %v8224_v20, %v9646_v62  ;;  %v3211_v33 = vmul.f32 %v8272_v2, %v2699_v26  ;;  %v3105_v35 = vmul.f32 %v8133_v18, %v2593_v58  ;;  %v3137_v3 = vmul.f32 %v8136_v6, %v2625_v27  ;;  %v2795_v60 = vld [vmem:[#allocation7 + $0x730] sm:$0xff]  ;;  %v2689_v6 = vld [vmem:[#allocation7 + $0x3e0] sm:$0xff] }
 0x344   :  { %v2803_v21 = vld [vmem:[#allocation7 + $0x770] sm:$0xff]  ;;  %v3219_v56 = vmul.f32 %v8272_v2, %v2707_v51  ;;  %v3243_v25 = vmul.f32 %v8276_v23, %v2731_v24  ;;  %v3377_v36 = vadd.f32 %v3376_v41, %v3179_v8  ;;  %v3433_v39 = vadd.f32 %v3432_v10, %v3187_v22  ;;  %v2713_v13 = vld [vmem:[#allocation7 + $0x4a0] sm:$0xff]  ;;  %v2570_v10 = vld [vmem:[#allocation7 + $0x28] sm:$0xff] }
 0x345   :  { %9667 = vst [vmem:[#allocation86_spill] sm:$0xff] %v8294_v5  ;;  %5547 = vrcp.f32 %v2492_v0  ;;  %v3251_v20 = vmul.f32 %v8276_v23, %v2739_v7  ;;  %v3275_v49 = vmul.f32 %v8283_v40, %v2763_v29  ;;  %v3283_v48 = vmul.f32 %v8283_v40, %v2771_v63  ;;  %v2721_v9 = vld [vmem:[#allocation7 + $0x4e0] sm:$0xff]  ;;  %v2794_v2 = vld [vmem:[#allocation7 + $0x728] sm:$0xff] }
 0x346   :  { %v3378_v18 = vadd.f32 %v3377_v36, %v3211_v33  ;;  %v3434_v37 = vadd.f32 %v3433_v39, %v3219_v56  ;;  %v3161_v1 = vmul.f32 %v8142_v12, %v2649_v34  ;;  %v3473_v26 = vadd.f32 %v3129_v42, %v3097_v61  ;;  %v2745_v28 = vld [vmem:[#allocation7 + $0x5a0] sm:$0xff]  ;;  %v2578_v39 = vld [vmem:[#allocation7 + $0x68] sm:$0xff] }
 0x347   :  { %v8306_v32 = vmul.f32 %v8294_v5, %v2795_v60  ;;  %v8309_v57 = vmul.f32 %v8294_v5, %v2803_v21  ;;  %v3169_v58 = vmul.f32 %v8142_v12, %v2657_v44  ;;  %v3529_v27 = vadd.f32 %v3137_v3, %v3105_v35  ;;  %v2753_v42 = vld [vmem:[#allocation7 + $0x5e0] sm:$0xff]  ;;  %v9668_v35 = vld [vmem:[#allocation97_spill] sm:$0xff]  ;;  %v9669_v60 = vld [vmem:[#allocation98_spill] sm:$0xff] }
 0x348   :  { %v3379_v0 = vadd.f32 %v3378_v18, %v3243_v25  ;;  %v3435_v51 = vadd.f32 %v3434_v37, %v3251_v20  ;;  %v3193_v24 = vmul.f32 %v8145_v17, %v2681_v45  ;;  %v3474_v8 = vadd.f32 %v3473_v26, %v3161_v1  ;;  %v2777_v33 = vld [vmem:[#allocation7 + $0x6a0] sm:$0xff]  ;;  %v9671_v25 = vld [vmem:[#allocation73_spill] sm:$0xff] }
 0x349   :  { %v8314_v22 = vmul.f32 %v8145_v17, %v2689_v6  ;;  %v8317_v7 = vmul.f32 %v8149_v53, %v2713_v13  ;;  %v8320_v29 = vmul.f32 %v8149_v53, %v2721_v9  ;;  %v8322_v63 = vadd.f32 %v3529_v27, %v3169_v58  ;;  %v9670_v21 = vld [vmem:[#allocation72_spill] sm:$0xff]  ;;  %v9674_v37 = vld [vmem:[#allocation101_spill] sm:$0xff] }
 0x34a   :  { %v8324_v12 = vadd.f32 %v3379_v0, %v3275_v49  ;;  %v8326_v61 = vadd.f32 %v3435_v51, %v3283_v48  ;;  %v8329_v34 = vmul.f32 %v8164_v30, %v2745_v28  ;;  %v8331_v17 = vadd.f32 %v3474_v8, %v3193_v24  ;;  %v2785_v44 = vld [vmem:[#allocation7 + $0x6e0] sm:$0xff]  ;;  %v9672_v49 = vld [vmem:[#allocation99_spill] sm:$0xff]  ;;  %v2602_v9 = vld [vmem:[#allocation7 + $0x128] sm:$0xff] }
 0x34b   :  { %v2809_v20 = vld [vmem:[#allocation7 + $0x7a0] sm:$0xff]  ;;  %v2610_v1 = vld [vmem:[#allocation7 + $0x168] sm:$0xff]  ;;  %v8348_v27 = vmul.f32 %v8164_v30, %v2753_v42  ;;  %v8351_v0 = vmul.f32 %v8167_v4, %v2777_v33  ;;  %v2587_v51 = vld [vmem:[#allocation7 + $0xb0] sm:$0xff] }
 0x34c   :  { %v5546_v41 = vpop.eup %5545  ;;  %v9673_v45 = vld [vmem:[#allocation100_spill] sm:$0xff]  ;;  %v2595_v24 = vld [vmem:[#allocation7 + $0xf0] sm:$0xff]  ;;  %v2642_v42 = vld [vmem:[#allocation7 + $0x268] sm:$0xff] }
 0x34d   :  { %v2504_v3 = vmul.f32 %v5546_v41, %v9668_v35  ;;  %v2514_v53 = vmul.f32 %v5546_v41, %v9669_v60  ;;  %v2522_v56 = vmul.f32 %v5546_v41, %v9670_v21  ;;  %v2530_v36 = vmul.f32 %v5546_v41, %v9671_v25  ;;  %v2817_v26 = vld [vmem:[#allocation7 + $0x7e0] sm:$0xff]  ;;  %v2619_v8 = vld [vmem:[#allocation7 + $0x1b0] sm:$0xff]  ;;  %v2634_v35 = vld [vmem:[#allocation7 + $0x228] sm:$0xff] }
 0x34e   :  { %v2538_v48 = vmul.f32 %v5546_v41, %v9672_v49  ;;  %v2546_v18 = vmul.f32 %v5546_v41, %v9673_v45  ;;  %v2554_v6 = vmul.f32 %v5546_v41, %v9674_v37  ;;  %v2562_v13 = vmul.f32 %v5546_v41, %v8169_v38  ;;  %v2666_v33 = vld [vmem:[#allocation7 + $0x328] sm:$0xff] }
 0x34f   :  { %v8342_v28 = vrot.slane %v2504_v3, %v9646_v62  ;;  %v8345_v58 = vrot.slane %v2514_v53, %v9646_v62  ;;  %v8354_v38 = vrot.slane %v2522_v56, %v9646_v62  ;;  %v8357_v41 = vrot.slane %v2530_v36, %v9646_v62  ;;  %v5548_v30 = vpop.eup %5547  ;;  %v2674_v53 = vld [vmem:[#allocation7 + $0x368] sm:$0xff] }
 0x350   :  { %v8360_v3 = vmul.f32 %v8167_v4, %v2785_v44  ;;  %v8363_v60 = vmul.f32 %v8219_v14, %v2809_v20  ;;  %v8370_v36 = vmul.f32 %v8219_v14, %v2817_v26  ;;  %v8373_v4 = vmul.f32 %v8236_v52, %v2587_v51  ;;  %v9677_v51 = vld [vmem:[#allocation65_spill] sm:$0xff] }
 0x351   :  { %v3082_v21 = vmul.f32 %v8342_v28, %v2570_v10  ;;  %v3090_v25 = vmul.f32 %v8342_v28, %v2578_v39  ;;  %v3114_v56 = vmul.f32 %v8345_v58, %v2602_v9  ;;  %v3122_v49 = vmul.f32 %v8345_v58, %v2610_v1 }
 0x352   :  { %9675 = vst [vmem:[#allocation49_spill] sm:$0xff] %v8370_v36  ;;  %v8376_v44 = vmul.f32 %v8236_v52, %v2595_v24  ;;  %v8379_v20 = vmul.f32 %v8239_v16, %v2619_v8  ;;  %v8382_v10 = vrot.slane %v2538_v48, %v9646_v62  ;;  %v8385_v39 = vrot.slane %v2546_v18, %v9646_v62  ;;  %v9678_v18 = vld [vmem:[#allocation44_spill] sm:$0xff]  ;;  %v2572_v36 = vld [vmem:[#allocation7 + $0x38] sm:$0xff] }
 0x353   :  { %v8388_v45 = vrot.slane %v2554_v6, %v9646_v62  ;;  %v8391_v14 = vrot.slane %v2562_v13, %v9646_v62  ;;  %v3146_v37 = vmul.f32 %v8354_v38, %v2634_v35  ;;  %v3154_v52 = vmul.f32 %v8354_v38, %v2642_v42  ;;  %v2651_v6 = vld [vmem:[#allocation7 + $0x2b0] sm:$0xff]  ;;  %v2730_v13 = vld [vmem:[#allocation7 + $0x528] sm:$0xff] }
 0x354   :  { %9676 = vst [vmem:[#allocation57_spill] sm:$0xff] %v8376_v44  ;;  %v3178_v9 = vmul.f32 %v8357_v41, %v2666_v33  ;;  %v3186_v1 = vmul.f32 %v8357_v41, %v2674_v53  ;;  %v3368_v26 = vadd.f32 %v3114_v56, %v3082_v21  ;;  %v3424_v48 = vadd.f32 %v3122_v49, %v3090_v25  ;;  %v9680_v35 = vld [vmem:[#allocation69_spill] sm:$0xff]  ;;  %v9681_v42 = vld [vmem:[#allocation102_spill] sm:$0xff]  ;;  %v9682_v33 = vld [vmem:[#allocation103_spill] sm:$0xff] }
 0x355   :  { %v2508_v24 = vmul.f32 %v5548_v30, %v9677_v51  ;;  %v2516_v8 = vmul.f32 %v5548_v30, %v9678_v18  ;;  %v2524_v5 = vmul.f32 %v5548_v30, %v9679_v54  ;;  %v2532_v43 = vmul.f32 %v5548_v30, %v9680_v35  ;;  %v2738_v53 = vld [vmem:[#allocation7 + $0x568] sm:$0xff] }
 0x356   :  { %v2540_v46 = vmul.f32 %v5548_v30, %v9681_v42  ;;  %v2548_v40 = vmul.f32 %v5548_v30, %v9682_v33  ;;  %v2762_v21 = vld [vmem:[#allocation7 + $0x628] sm:$0xff]  ;;  %v3369_v56 = vadd.f32 %v3368_v26, %v3146_v37  ;;  %v3425_v49 = vadd.f32 %v3424_v48, %v3154_v52  ;;  %v2604_v48 = vld [vmem:[#allocation7 + $0x138] sm:$0xff] }
 0x357   :  { %v2770_v25 = vld [vmem:[#allocation7 + $0x668] sm:$0xff]  ;;  %v2564_v23 = vmul.f32 %v5548_v30, %v8174_v11  ;;  %v8406_v44 = vrot.slane %v2508_v24, %v9646_v62  ;;  %v8409_v54 = vrot.slane %v2516_v8, %v9646_v62  ;;  %v8412_v35 = vmul.f32 %v8239_v16, %v2627_v47  ;;  %v2612_v33 = vld [vmem:[#allocation7 + $0x178] sm:$0xff] }
 0x358   :  { %v9683_v51 = vld [vmem:[#allocation105_spill] sm:$0xff]  ;;  %v8415_v42 = vmul.f32 %v8250_v59, %v2651_v6  ;;  %v3210_v37 = vmul.f32 %v8382_v10, %v2698_v55  ;;  %v3218_v52 = vmul.f32 %v8382_v10, %v2706_v15  ;;  %v3370_v26 = vadd.f32 %v3369_v56, %v3178_v9  ;;  %v2636_v9 = vld [vmem:[#allocation7 + $0x238] sm:$0xff] }
 0x359   :  { %v2556_v18 = vmul.f32 %v5548_v30, %v9683_v51  ;;  %9684 = vst [vmem:[#allocation58_spill] sm:$0xff] %v8412_v35  ;;  %v3426_v11 = vadd.f32 %v3425_v49, %v3186_v1  ;;  %v2580_v30 = vld [vmem:[#allocation7 + $0x78] sm:$0xff]  ;;  %v2802_v24 = vld [vmem:[#allocation7 + $0x768] sm:$0xff]  ;;  %v3242_v51 = vmul.f32 %v8385_v39, %v2730_v13  ;;  %v3250_v8 = vmul.f32 %v8385_v39, %v2738_v53 }
 0x35a   :  { %9685 = vst [vmem:[#allocation59_spill] sm:$0xff] %v8415_v42  ;;  %v3274_v16 = vmul.f32 %v8388_v45, %v2762_v21  ;;  %v3282_v47 = vmul.f32 %v8388_v45, %v2770_v25  ;;  %v3306_v6 = vmul.f32 %v8391_v14, %v2794_v2  ;;  %v3371_v42 = vadd.f32 %v3370_v26, %v3210_v37  ;;  %v2644_v1 = vld [vmem:[#allocation7 + $0x278] sm:$0xff] }
 0x35b   :  { %v3427_v55 = vadd.f32 %v3426_v11, %v3218_v52  ;;  %v8425_v15 = vrot.slane %v2524_v5, %v9646_v62  ;;  %v3084_v56 = vmul.f32 %v8406_v44, %v2572_v36  ;;  %v3092_v49 = vmul.f32 %v8406_v44, %v2580_v30  ;;  %v2668_v37 = vld [vmem:[#allocation7 + $0x338] sm:$0xff] }
 0x35c   :  { %v3116_v13 = vmul.f32 %v8409_v54, %v2604_v48  ;;  %v3124_v53 = vmul.f32 %v8409_v54, %v2612_v33  ;;  %v3314_v21 = vmul.f32 %v8391_v14, %v2802_v24  ;;  %v3372_v25 = vadd.f32 %v3371_v42, %v3242_v51  ;;  %v2676_v5 = vld [vmem:[#allocation7 + $0x378] sm:$0xff]  ;;  %v2586_v33 = vld [vmem:[#allocation7 + $0xa8] sm:$0xff] }
 0x35d   :  { %v3428_v35 = vadd.f32 %v3427_v55, %v3250_v8  ;;  %v8433_v2 = vrot.slane %v2532_v43, %v9646_v62  ;;  %v8436_v52 = vrot.slane %v2540_v46, %v9646_v62  ;;  %v8439_v36 = vrot.slane %v2548_v40, %v9646_v62  ;;  %v2732_v55 = vld [vmem:[#allocation7 + $0x538] sm:$0xff] }
 0x35e   :  { %v8442_v26 = vrot.slane %v2556_v18, %v9646_v62  ;;  %v8445_v11 = vrot.slane %v2564_v23, %v9646_v62  ;;  %v3373_v30 = vadd.f32 %v3372_v25, %v3274_v16  ;;  %v3148_v48 = vmul.f32 %v8425_v15, %v2636_v9  ;;  %v2594_v18 = vld [vmem:[#allocation7 + $0xe8] sm:$0xff]  ;;  %v2700_v16 = vld [vmem:[#allocation7 + $0x438] sm:$0xff] }
 0x35f   :  { %v3429_v42 = vadd.f32 %v3428_v35, %v3282_v47  ;;  %v3156_v43 = vmul.f32 %v8425_v15, %v2644_v1  ;;  %v3382_v24 = vadd.f32 %v3116_v13, %v3084_v56  ;;  %v3438_v51 = vadd.f32 %v3124_v53, %v3092_v49  ;;  %v2618_v62 = vld [vmem:[#allocation7 + $0x1a8] sm:$0xff]  ;;  %v2708_v47 = vld [vmem:[#allocation7 + $0x478] sm:$0xff]  ;;  %v2659_v13 = vld [vmem:[#allocation7 + $0x2f0] sm:$0xff] }
 0x360   :  { %v8451_v46 = vadd.f32 %v8324_v12, %v8306_v32  ;;  %v8455_v40 = vadd.f32 %v8326_v61, %v8309_v57  ;;  %v2626_v23 = vld [vmem:[#allocation7 + $0x1e8] sm:$0xff]  ;;  %v3374_v8 = vadd.f32 %v3373_v30, %v3306_v6  ;;  %v3180_v9 = vmul.f32 %v8433_v2, %v2668_v37  ;;  %v2740_v56 = vld [vmem:[#allocation7 + $0x578] sm:$0xff] }
 0x361   :  { %v3430_v35 = vadd.f32 %v3429_v42, %v3314_v21  ;;  %v3188_v1 = vmul.f32 %v8433_v2, %v2676_v5  ;;  %v2764_v49 = vld [vmem:[#allocation7 + $0x638] sm:$0xff]  ;;  %v3383_v32 = vadd.f32 %v3382_v24, %v3148_v48  ;;  %v3439_v12 = vadd.f32 %v3438_v51, %v3156_v43  ;;  %v2650_v24 = vld [vmem:[#allocation7 + $0x2a8] sm:$0xff] }
 0x362   :  { %v3098_v61 = vmul.f32 %v8342_v28, %v2586_v33  ;;  %v2772_v6 = vld [vmem:[#allocation7 + $0x678] sm:$0xff]  ;;  %v3106_v25 = vmul.f32 %v8342_v28, %v2594_v18  ;;  %v3130_v30 = vmul.f32 %v8345_v58, %v2618_v62  ;;  %v3138_v37 = vmul.f32 %v8345_v58, %v2626_v23  ;;  %v2658_v51 = vld [vmem:[#allocation7 + $0x2e8] sm:$0xff] }
 0x363   :  { %v5299_v53 = vpack.c.bf16 %v3430_v35, %v3374_v8  ;;  %v2796_v21 = vld [vmem:[#allocation7 + $0x738] sm:$0xff]  ;;  %v3212_v5 = vmul.f32 %v8436_v52, %v2700_v16  ;;  %v3220_v42 = vmul.f32 %v8436_v52, %v2708_v47  ;;  %v3384_v48 = vadd.f32 %v3383_v32, %v3180_v9  ;;  %v2682_v18 = vld [vmem:[#allocation7 + $0x3a8] sm:$0xff] }
 0x364   :  { %v3440_v43 = vadd.f32 %v3439_v12, %v3188_v1  ;;  %v2804_v33 = vld [vmem:[#allocation7 + $0x778] sm:$0xff]  ;;  %v3244_v8 = vmul.f32 %v8439_v36, %v2732_v55  ;;  %v3252_v35 = vmul.f32 %v8439_v36, %v2740_v56  ;;  %v3276_v28 = vmul.f32 %v8442_v26, %v2764_v49  ;;  %v2690_v1 = vld [vmem:[#allocation7 + $0x3e8] sm:$0xff] }
 0x365   :  { %5300 = vmatprep.subr.bf16.mxu0 %v5299_v53  ;;  %v8471_v62 = vmul.f32 %v8250_v59, %v2659_v13  ;;  %v3284_v58 = vmul.f32 %v8442_v26, %v2772_v6  ;;  %v3308_v23 = vmul.f32 %v8445_v11, %v2796_v21  ;;  %v3385_v16 = vadd.f32 %v3384_v48, %v3212_v5  ;;  %v2714_v55 = vld [vmem:[#allocation7 + $0x4a8] sm:$0xff]  ;;  %v2620_v48 = vld [vmem:[#allocation7 + $0x1b8] sm:$0xff] }
 0x366   :  { %v3441_v47 = vadd.f32 %v3440_v43, %v3220_v42  ;;  %v9687_v9 = vpack.c.bf16 %v8258_v50, %v8256_v19  ;;  %v2722_v32 = vld [vmem:[#allocation7 + $0x4e8] sm:$0xff]  ;;  %v3162_v49 = vmul.f32 %v8354_v38, %v2650_v24  ;;  %v3170_v12 = vmul.f32 %v8354_v38, %v2658_v51  ;;  %v2588_v42 = vld [vmem:[#allocation7 + $0xb8] sm:$0xff] }
 0x367   :  { %9686 = vst [vmem:[#allocation110_spill] sm:$0xff] %v8471_v62  ;;  %v2746_v56 = vld [vmem:[#allocation7 + $0x5a8] sm:$0xff]  ;;  %v3480_v59 = vadd.f32 %v3130_v30, %v3098_v61  ;;  %v3536_v13 = vadd.f32 %v3138_v37, %v3106_v25  ;;  %v3316_v53 = vmul.f32 %v8445_v11, %v2804_v33  ;;  %v3386_v6 = vadd.f32 %v3385_v16, %v3244_v8  ;;  %v2596_v57 = vld [vmem:[#allocation7 + $0xf8] sm:$0xff] }
 0x368   :  { %5302 = vmatpush1.bf16.msra.mxu0 %v9687_v9  ;;  %v3442_v21 = vadd.f32 %v3441_v47, %v3252_v35  ;;  %v3194_v5 = vmul.f32 %v8357_v41, %v2682_v18  ;;  %v3202_v19 = vmul.f32 %v8357_v41, %v2690_v1  ;;  %v3226_v50 = vmul.f32 %v8382_v10, %v2714_v55  ;;  %v2628_v24 = vld [vmem:[#allocation7 + $0x1f8] sm:$0xff]  ;;  %v2754_v61 = vld [vmem:[#allocation7 + $0x5e8] sm:$0xff] }
 0x369   :  { %v3481_v43 = vadd.f32 %v3480_v59, %v3162_v49  ;;  %v3537_v9 = vadd.f32 %v3536_v13, %v3170_v12  ;;  %v3387_v62 = vadd.f32 %v3386_v6, %v3276_v28  ;;  %v2778_v25 = vld [vmem:[#allocation7 + $0x6a8] sm:$0xff]  ;;  %v3234_v30 = vmul.f32 %v8382_v10, %v2722_v32  ;;  %v2652_v55 = vld [vmem:[#allocation7 + $0x2b8] sm:$0xff] }
 0x36a   :  { %v3443_v38 = vadd.f32 %v3442_v21, %v3284_v58  ;;  %v3258_v37 = vmul.f32 %v8385_v39, %v2746_v56  ;;  %v2786_v51 = vld [vmem:[#allocation7 + $0x6e8] sm:$0xff]  ;;  %v3100_v41 = vmul.f32 %v8406_v44, %v2588_v42  ;;  %v3132_v16 = vmul.f32 %v8409_v54, %v2620_v48  ;;  %v2660_v12 = vld [vmem:[#allocation7 + $0x2f8] sm:$0xff] }
 0x36b   :  { %v2810_v33 = vld [vmem:[#allocation7 + $0x7a8] sm:$0xff]  ;;  %v3482_v35 = vadd.f32 %v3481_v43, %v3194_v5  ;;  %v3538_v18 = vadd.f32 %v3537_v9, %v3202_v19  ;;  %v3388_v47 = vadd.f32 %v3387_v62, %v3308_v23  ;;  %v3108_v28 = vmul.f32 %v8406_v44, %v2596_v57  ;;  %v2684_v23 = vld [vmem:[#allocation7 + $0x3b8] sm:$0xff] }
 0x36c   :  { %v2818_v8 = vld [vmem:[#allocation7 + $0x7e8] sm:$0xff]  ;;  %v3444_v1 = vadd.f32 %v3443_v38, %v3316_v53  ;;  %v3140_v58 = vmul.f32 %v8409_v54, %v2628_v24  ;;  %v3266_v10 = vmul.f32 %v8385_v39, %v2754_v61  ;;  %v3290_v32 = vmul.f32 %v8388_v45, %v2778_v25  ;;  %v2692_v44 = vld [vmem:[#allocation7 + $0x3f8] sm:$0xff] }
 0x36d   :  { %v3483_v56 = vadd.f32 %v3482_v35, %v3226_v50  ;;  %v3539_v49 = vadd.f32 %v3538_v18, %v3234_v30  ;;  %v3298_v13 = vmul.f32 %v8388_v45, %v2786_v51  ;;  %v3322_v6 = vmul.f32 %v8391_v14, %v2810_v33  ;;  %v2716_v39 = vld [vmem:[#allocation7 + $0x4b8] sm:$0xff] }
 0x36e   :  { %v5307_v59 = vpack.c.bf16 %v3444_v1, %v3388_v47  ;;  %v3330_v62 = vmul.f32 %v8391_v14, %v2818_v8  ;;  %v3164_v54 = vmul.f32 %v8425_v15, %v2652_v55  ;;  %v3494_v57 = vadd.f32 %v3132_v16, %v3100_v41  ;;  %v2724_v43 = vld [vmem:[#allocation7 + $0x4f8] sm:$0xff]  ;;  %v2691_v41 = vld [vmem:[#allocation7 + $0x3f0] sm:$0xff] }
 0x36f   :  { %v3484_v53 = vadd.f32 %v3483_v56, %v3258_v37  ;;  %v3540_v21 = vadd.f32 %v3539_v49, %v3266_v10  ;;  %v3172_v5 = vmul.f32 %v8425_v15, %v2660_v12  ;;  %v3550_v42 = vadd.f32 %v3140_v58, %v3108_v28  ;;  %v2748_v38 = vld [vmem:[#allocation7 + $0x5b8] sm:$0xff]  ;;  %v2715_v10 = vld [vmem:[#allocation7 + $0x4b0] sm:$0xff]  ;;  %v9689_v56 = vld [vmem:[#allocation57_spill] sm:$0xff] }
 0x370   :  { %5308 = vmatprep.subr.bf16.mxu1 %v5307_v59  ;;  %v3476_v48 = vadd.f32 %v8331_v17, %v8317_v7  ;;  %v3531_v45 = vadd.f32 %v8322_v63, %v8314_v22  ;;  %v9688_v14 = vpack.c.bf16 %v8455_v40, %v8451_v46  ;;  %v3196_v9 = vmul.f32 %v8433_v2, %v2684_v23  ;;  %v2683_v17 = vld [vmem:[#allocation7 + $0x3b0] sm:$0xff]  ;;  %v2756_v30 = vld [vmem:[#allocation7 + $0x5f8] sm:$0xff] }
 0x371   :  { %v3485_v19 = vadd.f32 %v3484_v53, %v3290_v32  ;;  %v3541_v50 = vadd.f32 %v3540_v21, %v3298_v13  ;;  %v3495_v24 = vadd.f32 %v3494_v57, %v3164_v54  ;;  %v3204_v15 = vmul.f32 %v8433_v2, %v2692_v44  ;;  %v2780_v37 = vld [vmem:[#allocation7 + $0x6b8] sm:$0xff]  ;;  %v9690_v49 = vld [vmem:[#allocation58_spill] sm:$0xff]  ;;  %v9691_v13 = vld [vmem:[#allocation49_spill] sm:$0xff] }
 0x372   :  { %5310 = vmatpush1.bf16.msra.mxu1 %v9688_v14  ;;  %v3551_v61 = vadd.f32 %v3550_v42, %v3172_v5  ;;  %v3477_v25 = vadd.f32 %v3476_v48, %v8329_v34  ;;  %v3532_v7 = vadd.f32 %v3531_v45, %v8320_v29  ;;  %v3228_v46 = vmul.f32 %v8436_v52, %v2716_v39  ;;  %v2788_v18 = vld [vmem:[#allocation7 + $0x6f8] sm:$0xff]  ;;  %v9693_v44 = vld [vmem:[#allocation110_spill] sm:$0xff] }
 0x373   :  { %v3486_v22 = vadd.f32 %v3485_v19, %v3322_v6  ;;  %v3542_v63 = vadd.f32 %v3541_v50, %v3330_v62  ;;  %v3496_v40 = vadd.f32 %v3495_v24, %v3196_v9  ;;  %v3236_v51 = vmul.f32 %v8436_v52, %v2724_v43  ;;  %v2812_v47 = vld [vmem:[#allocation7 + $0x7b8] sm:$0xff]  ;;  %v2747_v39 = vld [vmem:[#allocation7 + $0x5b0] sm:$0xff]  ;;  %v9695_v9 = vld [vmem:[#allocation48_spill] sm:$0xff] }
 0x374   :  { %v3552_v33 = vadd.f32 %v3551_v61, %v3204_v15  ;;  %v3478_v8 = vadd.f32 %v3477_v25, %v8351_v0  ;;  %v3533_v2 = vadd.f32 %v3532_v7, %v8348_v27  ;;  %v3260_v34 = vmul.f32 %v8439_v36, %v2748_v38  ;;  %v2820_v0 = vld [vmem:[#allocation7 + $0x7f8] sm:$0xff]  ;;  %v2755_v5 = vld [vmem:[#allocation7 + $0x5f0] sm:$0xff] }
 0x375   :  { %v5303_v35 = vpack.c.bf16 %v3542_v63, %v3486_v22  ;;  %v3497_v29 = vadd.f32 %v3496_v40, %v3228_v46  ;;  %v3195_v16 = vmul.f32 %v8264_v31, %v2683_v17  ;;  %v3268_v1 = vmul.f32 %v8439_v36, %v2756_v30  ;;  %v9692_v53 = vld [vmem:[#allocation59_spill] sm:$0xff]  ;;  %v2779_v50 = vld [vmem:[#allocation7 + $0x6b0] sm:$0xff]  ;;  %v9696_v17 = vld [vmem:[#allocation85_spill] sm:$0xff] }
 0x376   :  { %v3553_v55 = vadd.f32 %v3552_v33, %v3236_v51  ;;  %v3479_v28 = vadd.f32 %v3478_v8, %v8363_v60  ;;  %v3534_v52 = vadd.f32 %v3533_v2, %v8360_v3  ;;  %v3292_v27 = vmul.f32 %v8442_v26, %v2780_v37  ;;  %v2723_v60 = vld [vmem:[#allocation7 + $0x4f0] sm:$0xff]  ;;  %v9697_v40 = vld [vmem:[#allocation81_spill] sm:$0xff] }
 0x377   :  { %5304 = vmatprep.subr.bf16.mxu0 %v5303_v35  ;;  %v3498_v58 = vadd.f32 %v3497_v29, %v3260_v34  ;;  %v3487_v32 = vadd.f32 %v8379_v20, %v8373_v4  ;;  %v3543_v12 = vadd.f32 %v9690_v49, %v9689_v56  ;;  %v3300_v59 = vmul.f32 %v8442_v26, %v2788_v18  ;;  %v9694_v26 = vld [vmem:[#allocation47_spill] sm:$0xff]  ;;  %v2787_v43 = vld [vmem:[#allocation7 + $0x6f0] sm:$0xff] }
 0x378   :  { %v3554_v36 = vadd.f32 %v3553_v55, %v3268_v1  ;;  %v3535_v6 = vadd.f32 %v3534_v52, %v9691_v13  ;;  %v3203_v3 = vmul.f32 %v8264_v31, %v2691_v41  ;;  %v3324_v62 = vmul.f32 %v8445_v11, %v2812_v47  ;;  %v2811_v25 = vld [vmem:[#allocation7 + $0x7b0] sm:$0xff] }
 0x379   :  { %v3499_v23 = vadd.f32 %v3498_v58, %v3292_v27  ;;  %v3488_v21 = vadd.f32 %v3487_v32, %v9692_v53  ;;  %v3544_v54 = vadd.f32 %v3543_v12, %v9693_v44  ;;  %v3332_v4 = vmul.f32 %v8445_v11, %v2820_v0  ;;  %v2819_v7 = vld [vmem:[#allocation7 + $0x7f0] sm:$0xff]  ;;  %v9704_v0 = vld [vmem:[#allocation21_spill] sm:$0xff] }
 0x37a   :  { %v3555_v20 = vadd.f32 %v3554_v36, %v3300_v59  ;;  %v5305_v57 = vpack.c.bf16 %v3535_v6, %v3479_v28  ;;  %v3227_v42 = vmul.f32 %v9694_v26, %v2715_v10  ;;  %v3235_v45 = vmul.f32 %v9694_v26, %v2723_v60  ;;  %v9699_v51 = vld [vmem:[#allocation86_spill] sm:$0xff]  ;;  %v9703_v28 = vld [vmem:[#allocation13_spill] sm:$0xff]  ;;  %v9705_v10 = vld [vmem:[#allocation19_spill] sm:$0xff] }
 0x37b   :  { %v3500_v48 = vadd.f32 %v3499_v23, %v3324_v62  ;;  %v3489_v14 = vadd.f32 %v3488_v21, %v3195_v16  ;;  %v3545_v31 = vadd.f32 %v3544_v54, %v3203_v3  ;;  %v3259_v24 = vmul.f32 %v9695_v9, %v2747_v39  ;;  %v9700_v29 = vld [vmem:[#allocation82_spill] sm:$0xff]  ;;  %v9701_v16 = vld [vmem:[#allocation45_spill] sm:$0xff]  ;;  %v9707_v21 = vld [vmem:[#allocation32_spill] sm:$0xff] }
 0x37c   :  { %v3556_v19 = vadd.f32 %v3555_v20, %v3332_v4  ;;  %5306 = vmatpush1.bf16.msra.mxu0 %v5305_v57  ;;  %v3267_v38 = vmul.f32 %v9695_v9, %v2755_v5  ;;  %v3291_v22 = vmul.f32 %v9696_v17, %v2779_v50  ;;  %v3299_v63 = vmul.f32 %v9696_v17, %v2787_v43  ;;  %v9702_v47 = vld [vmem:[#allocation46_spill] sm:$0xff]  ;;  %v9709_v5 = vld [vmem:[#allocation28_spill] sm:$0xff] }
 0x37d   :  { %v3490_v11 = vadd.f32 %v3489_v14, %v3227_v42  ;;  %v3546_v15 = vadd.f32 %v3545_v31, %v3235_v45  ;;  %v9698_v37 = vmov 0.0   ;;  %v3323_v33 = vmul.f32 %v9699_v51, %v2811_v25  ;;  %v9706_v49 = vld [vmem:[#allocation22_spill] sm:$0xff]  ;;  %v9710_v42 = vld [vmem:[#allocation12_spill] sm:$0xff] }
 0x37e   :  { %v5311_v61 = vpack.c.bf16 %v3556_v19, %v3500_v48  ;;  %v3331_v8 = vmul.f32 %v9699_v51, %v2819_v7  ;;  %v9708_v4 = vld [vmem:[#allocation14_spill] sm:$0xff] }
 0x37f   :  { %v3491_v30 = vadd.f32 %v3490_v11, %v3259_v24  ;;  %v3547_v46 = vadd.f32 %v3546_v15, %v3267_v38  ;;  %5211 = vmatmul.mubr.msk.f32.vlgmr.msra.gmra.mrb[24].mxu0 %vm517_vm0, %v9697_v40  ;;  %v9711_v24 = vld [vmem:[#allocation33_spill] sm:$0xff] }
 0x380   :  { %5312 = vmatprep.subr.bf16.mxu1 %v5311_v61  ;;  %3821 = vmatprep.mubr.f32.mxu0 %v9698_v37  ;;  %v9712_v61 = vld [vmem:[#allocation23_spill] sm:$0xff] }
 0x381   :  { %v3492_v2 = vadd.f32 %v3491_v30, %v3291_v22  ;;  %v3548_v35 = vadd.f32 %v3547_v46, %v3299_v63  ;;  %v9713_v22 = vld [vmem:[#allocation29_spill] sm:$0xff] }
 0x382   :  { %v9714_v46 = vld [vmem:[#allocation17_spill] sm:$0xff] }
 0x383   :  { %v3493_v18 = vadd.f32 %v3492_v2, %v3323_v33  ;;  %v3549_v34 = vadd.f32 %v3548_v35, %v3331_v8  ;;  %5212 = vmatmul.mubr.msk.f32.gmra.mrb[26].mxu0 %vm517_vm0, %v9700_v29 }
 0x384   :  { %3827 = vmatprep.mubr.f32.mxu0 %v9698_v37 }
 0x385   :  { %v5313_v41 = vpack.c.bf16 %v3549_v34, %v3493_v18 }
 0x387   :  { %5314 = vmatpush1.bf16.msra.mxu1 %v5313_v41  ;;  %5213 = vmatmul.mubr.msk.f32.gmra.mrb[28].mxu0 %vm517_vm0, %v9701_v16 }
 0x388   :  { %3833 = vmatprep.mubr.f32.mxu0 %v9698_v37 }
 0x38a   :  { %5215 = vmatmul.mubr.msk.f32.vlgmr.msra.gmra.mrb[24].mxu1 %vm517_vm0, %v9697_v40 }
 0x38b   :  { %3910 = vmatprep.mubr.f32.mxu1 %v9698_v37  ;;  %5214 = vmatmul.mubr.msk.f32.gmra.mrb[30].mxu0 %vm517_vm0, %v9702_v47 }
 0x38c   :  { %4409 = vmatprep.mubr.f32.mxu0 %v9698_v37 }
 0x38e   :  { %5216 = vmatmul.mubr.msk.f32.gmra.mrb[26].mxu1 %vm517_vm0, %v9700_v29 }
 0x38f   :  { %3916 = vmatprep.mubr.f32.mxu1 %v9698_v37 }
 0x392   :  { %5217 = vmatmul.mubr.msk.f32.gmra.mrb[28].mxu1 %vm517_vm0, %v9701_v16 }
 0x393   :  { %3922 = vmatprep.mubr.f32.mxu1 %v9698_v37 }
 0x396   :  { %5218 = vmatmul.mubr.msk.f32.gmra.mrb[30].mxu1 %vm517_vm0, %v9702_v47 }
 0x397   :  { %4498 = vmatprep.mubr.f32.mxu1 %v9698_v37 }
 0x400   :  { %v3639_v1 = vpop.f32.mrb[16].mxu0 }
 0x401   :  { %v3641_v55 = vpop.f32.mrb[17].mxu0  ;;  %v8562_v52 = vadd.f32 %v3639_v1, %v9703_v28 }
 0x402   :  { %v8565_v27 = vadd.f32 %v3641_v55, %v9704_v0  ;;  %v9715_v55 = vld [vmem:[#allocation34_spill] sm:$0xff] }
 0x403   :  { %v4017_v59 = vmul.f32 %v8562_v52, %v8562_v52 }
 0x404   :  { %v3645_v58 = vpop.f32.mrb[18].mxu0  ;;  %v4018_v6 = vmul.f32 %v8565_v27, %v8565_v27 }
 0x405   :  { %v8568_v32 = vadd.f32 %v3645_v58, %v9705_v10  ;;  %v3647_v56 = vpop.f32.mrb[19].mxu0 }
 0x406   :  { %v8571_v12 = vadd.f32 %v3647_v56, %v9706_v49  ;;  %v9716_v49 = vld [vmem:[#allocation30_spill] sm:$0xff] }
 0x407   :  { %v3937_v36 = vadd.f32 %v8568_v32, %v8562_v52  ;;  %v4025_v13 = vmul.f32 %v8568_v32, %v8568_v32 }
 0x408   :  { %v3946_v60 = vadd.f32 %v8571_v12, %v8565_v27  ;;  %v4026_v3 = vmul.f32 %v8571_v12, %v8571_v12  ;;  %v3651_v62 = vpop.f32.mrb[20].mxu0 }
 0x409   :  { %v3728_v23 = vpop.f32.mrb[16].mxu1  ;;  %v4049_v53 = vadd.f32 %v4025_v13, %v4017_v59  ;;  %v8586_v44 = vadd.f32 %v3651_v62, %v9707_v21  ;;  %v3653_v54 = vpop.f32.mrb[21].mxu0 }
 0x40a   :  { %v8589_v20 = vadd.f32 %v3728_v23, %v9708_v4  ;;  %v3730_v57 = vpop.f32.mrb[17].mxu1  ;;  %v4058_v39 = vadd.f32 %v4026_v3, %v4018_v6  ;;  %v8592_v26 = vadd.f32 %v3653_v54, %v9709_v5 }
 0x40b   :  { %v8595_v48 = vadd.f32 %v3730_v57, %v9710_v42  ;;  %v3938_v45 = vadd.f32 %v3937_v36, %v8586_v44  ;;  %v4033_v14 = vmul.f32 %v8586_v44, %v8586_v44 }
 0x40c   :  { %v3947_v31 = vadd.f32 %v3946_v60, %v8592_v26  ;;  %v4034_v19 = vmul.f32 %v8592_v26, %v8592_v26  ;;  %v3657_v50 = vpop.f32.mrb[22].mxu0  ;;  %v4019_v15 = vmul.f32 %v8589_v20, %v8589_v20 }
 0x40d   :  { %v3734_v43 = vpop.f32.mrb[18].mxu1  ;;  %v4050_v9 = vadd.f32 %v4049_v53, %v4033_v14  ;;  %v8604_v38 = vadd.f32 %v3657_v50, %v9711_v24  ;;  %v3659_v11 = vpop.f32.mrb[23].mxu0  ;;  %v4020_v30 = vmul.f32 %v8595_v48, %v8595_v48 }
 0x40e   :  { %v8609_v25 = vadd.f32 %v3734_v43, %v9712_v61  ;;  %v3736_v7 = vpop.f32.mrb[19].mxu1  ;;  %v4059_v17 = vadd.f32 %v4058_v39, %v4034_v19  ;;  %v8612_v63 = vadd.f32 %v3659_v11, %v9713_v22  ;;  %v9717_v39 = vld [vmem:[#allocation35_spill] sm:$0xff] }
 0x40f   :  { %v8617_v40 = vadd.f32 %v3736_v7, %v9714_v46  ;;  %v3939_v51 = vadd.f32 %v3938_v45, %v8604_v38  ;;  %v4041_v33 = vmul.f32 %v8604_v38, %v8604_v38  ;;  %v9718_v43 = vld [vmem:[#allocation31_spill] sm:$0xff] }
 0x410   :  { %v3955_v8 = vadd.f32 %v8609_v25, %v8589_v20  ;;  %v4027_v2 = vmul.f32 %v8609_v25, %v8609_v25  ;;  %v3948_v35 = vadd.f32 %v3947_v31, %v8612_v63  ;;  %v4042_v18 = vmul.f32 %v8612_v63, %v8612_v63 }
 0x411   :  { %v3964_v34 = vadd.f32 %v8617_v40, %v8595_v48  ;;  %v4028_v29 = vmul.f32 %v8617_v40, %v8617_v40  ;;  %v3740_v41 = vpop.f32.mrb[20].mxu1  ;;  %v3940_v16 = vrot.slane %v3939_v51, 4  ;;  %v4051_v47 = vadd.f32 %v4050_v9, %v4041_v33 }
 0x412   :  { %v4067_v1 = vadd.f32 %v4027_v2, %v4019_v15  ;;  %v8634_v28 = vadd.f32 %v3740_v41, %v9715_v55  ;;  %v3742_v0 = vpop.f32.mrb[21].mxu1  ;;  %v3949_v58 = vrot.slane %v3948_v35, 4  ;;  %v4060_v10 = vadd.f32 %v4059_v17, %v4042_v18 }
 0x413   :  { %v4076_v56 = vadd.f32 %v4028_v29, %v4020_v30  ;;  %v8637_v59 = vadd.f32 %v3742_v0, %v9716_v49  ;;  %v3941_v36 = vadd.f32 %v3940_v16, %v3939_v51  ;;  %v4052_v13 = vrot.slane %v4051_v47, 4 }
 0x414   :  { %v3956_v6 = vadd.f32 %v3955_v8, %v8634_v28  ;;  %v4035_v60 = vmul.f32 %v8634_v28, %v8634_v28  ;;  %v3950_v3 = vadd.f32 %v3949_v58, %v3948_v35  ;;  %v4061_v62 = vrot.slane %v4060_v10, 4 }
 0x415   :  { %v3965_v23 = vadd.f32 %v3964_v34, %v8637_v59  ;;  %v4036_v53 = vmul.f32 %v8637_v59, %v8637_v59  ;;  %v3942_v21 = vrot.slane %v3941_v36, 2  ;;  %v4053_v54 = vadd.f32 %v4052_v13, %v4051_v47  ;;  %v3746_v4 = vpop.f32.mrb[22].mxu1 }
 0x416   :  { %v4068_v57 = vadd.f32 %v4067_v1, %v4035_v60  ;;  %v8646_v5 = vadd.f32 %v3746_v4, %v9717_v39  ;;  %v3951_v42 = vrot.slane %v3950_v3, 2  ;;  %v4062_v45 = vadd.f32 %v4061_v62, %v4060_v10  ;;  %v3748_v14 = vpop.f32.mrb[23].mxu1 }
 0x417   :  { %v4077_v31 = vadd.f32 %v4076_v56, %v4036_v53  ;;  %v3943_v19 = vadd.f32 %v3942_v21, %v3941_v36  ;;  %v4054_v50 = vrot.slane %v4053_v54, 2  ;;  %v8649_v9 = vadd.f32 %v3748_v14, %v9718_v43 }
 0x418   :  { %v3957_v24 = vadd.f32 %v3956_v6, %v8646_v5  ;;  %v4043_v11 = vmul.f32 %v8646_v5, %v8646_v5  ;;  %v3952_v15 = vadd.f32 %v3951_v42, %v3950_v3  ;;  %v4063_v61 = vrot.slane %v4062_v45, 2  ;;  %v8669_v42 = vpop.permute.xlu1 %4232 }
 0x419   :  { %v3944_v7 = vrot.slane %v3943_v19, 1  ;;  %v4055_v17 = vadd.f32 %v4054_v50, %v4053_v54  ;;  %v3966_v22 = vadd.f32 %v3965_v23, %v8649_v9  ;;  %v4044_v30 = vmul.f32 %v8649_v9, %v8649_v9 }
 0x41a   :  { %v3958_v46 = vrot.slane %v3957_v24, 4  ;;  %v4069_v51 = vadd.f32 %v4068_v57, %v4043_v11  ;;  %v3953_v33 = vrot.slane %v3952_v15, 1  ;;  %v4064_v8 = vadd.f32 %v4063_v61, %v4062_v45 }
 0x41b   :  { %v3945_v2 = vadd.f32 %v3944_v7, %v3943_v19  ;;  %v4056_v35 = vrot.slane %v4055_v17, 1  ;;  %v3967_v18 = vrot.slane %v3966_v22, 4  ;;  %v4078_v34 = vadd.f32 %v4077_v31, %v4044_v30  ;;  %v8673_v19 = vpop.permute.xlu0 %4227 }
 0x41c   :  { %v3959_v29 = vadd.f32 %v3958_v46, %v3957_v24  ;;  %v4070_v41 = vrot.slane %v4069_v51, 4  ;;  %v3954_v16 = vadd.f32 %v3953_v33, %v3952_v15  ;;  %v4065_v47 = vrot.slane %v4064_v8, 1 }
 0x41d   :  { %v8657_v1 = vmul.f32 0.03125, %v3945_v2  ;;  %v4057_v55 = vadd.f32 %v4056_v35, %v4055_v17  ;;  %v3968_v0 = vadd.f32 %v3967_v18, %v3966_v22  ;;  %v4079_v58 = vrot.slane %v4078_v34, 4 }
 0x41e   :  { %v3960_v10 = vrot.slane %v3959_v29, 2  ;;  %v4071_v56 = vadd.f32 %v4070_v41, %v4069_v51  ;;  %v8659_v49 = vmul.f32 0.03125, %v3954_v16  ;;  %v4066_v36 = vadd.f32 %v4065_v47, %v4064_v8 }
 0x41f   :  { %v4121_v13 = vmul.f32 0.03125, %v4057_v55  ;;  %v4129_v6 = vmul.f32 %v8657_v1, %v8657_v1  ;;  %v4169_v60 = vsub.f32 %v8604_v38, %v8657_v1  ;;  %v3969_v3 = vrot.slane %v3968_v0, 2 }
 0x420   :  { %v3961_v62 = vadd.f32 %v3960_v10, %v3959_v29  ;;  %v4072_v23 = vrot.slane %v4071_v56, 2  ;;  %v4122_v53 = vmul.f32 0.03125, %v4066_v36  ;;  %v4130_v21 = vmul.f32 %v8659_v49, %v8659_v49 }
 0x421   :  { %v4137_v54 = vsub.f32 %v4121_v13, %v4129_v6  ;;  %v4170_v4 = vsub.f32 %v8612_v63, %v8659_v49  ;;  %v3970_v57 = vadd.f32 %v3969_v3, %v3968_v0  ;;  %v4080_v39 = vadd.f32 %v4079_v58, %v4078_v34  ;;  %v8697_v34 = vpop.permute.xlu0 %4279 }
 0x422   :  { %v3962_v45 = vrot.slane %v3961_v62, 1  ;;  %v4073_v14 = vadd.f32 %v4072_v23, %v4071_v56  ;;  %v4138_v31 = vsub.f32 %v4122_v53, %v4130_v21  ;;  %v4146_v38 = vsub.f32 %v8565_v27, %v8659_v49 }
 0x423   :  { %v4177_v50 = vadd.f32 1e-05, %v4137_v54  ;;  %v3971_v43 = vrot.slane %v3970_v57, 1  ;;  %v4081_v24 = vrot.slane %v4080_v39, 2  ;;  %v4154_v11 = vsub.f32 %v8571_v12, %v8659_v49 }
 0x424   :  { %v3963_v15 = vadd.f32 %v3962_v45, %v3961_v62  ;;  %v4074_v63 = vrot.slane %v4073_v14, 1  ;;  %v4178_v61 = vadd.f32 1e-05, %v4138_v31  ;;  %v4145_v7 = vsub.f32 %v8562_v52, %v8657_v1  ;;  %v8689_v52 = vpop.permute.xlu1 %4284 }
 0x425   :  { %5549 = vrsqrt.f32 %v4177_v50  ;;  %v3972_v17 = vadd.f32 %v3971_v43, %v3970_v57  ;;  %v4082_v22 = vadd.f32 %v4081_v24, %v4080_v39  ;;  %v4153_v27 = vsub.f32 %v8568_v32, %v8657_v1  ;;  %v8715_v10 = vpop.permute.xlu0 %4237 }
 0x426   :  { %v8681_v30 = vmul.f32 0.03125, %v3963_v15  ;;  %v4075_v46 = vadd.f32 %v4074_v63, %v4073_v14  ;;  %5551 = vrsqrt.f32 %v4178_v61  ;;  %v4162_v51 = vsub.f32 %v8592_v26, %v8659_v49 }
 0x427   :  { %v8685_v12 = vmul.f32 0.03125, %v3972_v17  ;;  %v4083_v33 = vrot.slane %v4082_v22, 1  ;;  %v4161_v8 = vsub.f32 %v8586_v44, %v8657_v1 }
 0x428   :  { %v4123_v2 = vmul.f32 0.03125, %v4075_v46  ;;  %v4131_v35 = vmul.f32 %v8681_v30, %v8681_v30  ;;  %v4171_v32 = vsub.f32 %v8646_v5, %v8681_v30  ;;  %v4147_v18 = vsub.f32 %v8589_v20, %v8681_v30 }
 0x429   :  { %v4084_v26 = vadd.f32 %v4083_v33, %v4082_v22  ;;  %v4132_v29 = vmul.f32 %v8685_v12, %v8685_v12  ;;  %v4172_v44 = vsub.f32 %v8649_v9, %v8685_v12  ;;  %v4148_v41 = vsub.f32 %v8595_v48, %v8685_v12  ;;  %v8713_v9 = vpop.permute.xlu1 %4242  ;;  %v8733_v31 = vpop.permute.xlu0 %4289 }
 0x42a   :  { %v4139_v16 = vsub.f32 %v4123_v2, %v4131_v35  ;;  %v4156_v47 = vsub.f32 %v8617_v40, %v8685_v12  ;;  %v4155_v5 = vsub.f32 %v8609_v25, %v8681_v30  ;;  %v4164_v20 = vsub.f32 %v8637_v59, %v8685_v12 }
 0x42b   :  { %v4124_v1 = vmul.f32 0.03125, %v4084_v26  ;;  %v4163_v55 = vsub.f32 %v8634_v28, %v8681_v30 }
 0x42c   :  { %v4179_v0 = vadd.f32 1e-05, %v4139_v16 }
 0x42d   :  { %v4140_v58 = vsub.f32 %v4124_v1, %v4132_v29  ;;  %v8724_v39 = vpop.permute.xlu1 %4294  ;;  %v8770_v1 = vld [vmem:[%s9203_s5] sm:$0xff] }
 0x42e   :  { %5553 = vrsqrt.f32 %v4179_v0 }
 0x42f   :  { %v5550_v48 = vpop.eup %5549  ;;  %v4180_v56 = vadd.f32 1e-05, %v4140_v58 }
 0x430   :  { %v5552_v40 = vpop.eup %5551  ;;  %v4217_v49 = vmul.f32 %v5550_v48, %v4169_v60  ;;  %v4193_v36 = vmul.f32 %v5550_v48, %v4145_v7  ;;  %v4201_v25 = vmul.f32 %v5550_v48, %v4153_v27  ;;  %v4209_v13 = vmul.f32 %v5550_v48, %v4161_v8 }
 0x431   :  { %v4218_v6 = vmul.f32 %v5552_v40, %v4170_v4  ;;  %5555 = vrsqrt.f32 %v4180_v56  ;;  %v4194_v59 = vmul.f32 %v5552_v40, %v4146_v38  ;;  %v4202_v3 = vmul.f32 %v5552_v40, %v4154_v11 }
 0x432   :  { %v4269_v28 = vmul.f32 %v8713_v9, %v4217_v49  ;;  %v4245_v62 = vmul.f32 %v8673_v19, %v4193_v36  ;;  %v4253_v23 = vmul.f32 %v8669_v42, %v4201_v25  ;;  %v4210_v53 = vmul.f32 %v5552_v40, %v4162_v51  ;;  %v8800_v40 = vld [vmem:[%s9203_s5 + $0x8] sm:$0xff] }
 0x433   :  { %v4246_v21 = vmul.f32 %v8673_v19, %v4194_v59  ;;  %v4254_v54 = vmul.f32 %v8669_v42, %v4202_v3  ;;  %v4270_v60 = vmul.f32 %v8713_v9, %v4218_v6  ;;  %v4261_v57 = vmul.f32 %v8715_v10, %v4209_v13  ;;  %v8818_v6 = vld [vmem:[%s9203_s5 + $0x10] sm:$0xff]  ;;  %v8828_v3 = vld [vmem:[%s9203_s5 + $0x18] sm:$0xff] }
 0x434   :  { %v8727_v4 = vadd.f32 %v8697_v34, %v4245_v62  ;;  %v8730_v45 = vadd.f32 %v8689_v52, %v4253_v23  ;;  %v4262_v14 = vmul.f32 %v8715_v10, %v4210_v53  ;;  %v8753_v63 = vadd.f32 %v8724_v39, %v4269_v28  ;;  %v9728_v23 = vld [vmem:[#allocation18_spill] sm:$0xff] }
 0x435   :  { %v8736_v38 = vadd.f32 %v8697_v34, %v4246_v21  ;;  %v8739_v50 = vadd.f32 %v8689_v52, %v4254_v54  ;;  %v8742_v43 = vadd.f32 %v8724_v39, %v4270_v60  ;;  %v8750_v15 = vadd.f32 %v8733_v31, %v4261_v57  ;;  %v9729_v21 = vld [vmem:[#allocation15_spill] sm:$0xff]  ;;  %v9730_v57 = vld [vmem:[#allocation25_spill] sm:$0xff] }
 0x436   :  { %v8745_v24 = vadd.f32 %v8733_v31, %v4262_v14  ;;  %9720 = vst [vmem:[#allocation76_spill] sm:$0xff] %v8753_v63  ;;  %v5317_v7 = vpack.c.bf16 %v8730_v45, %v8727_v4 }
 0x437   :  { %9719 = vst [vmem:[#allocation77_spill] sm:$0xff] %v8742_v43  ;;  %v5315_v11 = vpack.c.bf16 %v8739_v50, %v8736_v38  ;;  %v5321_v8 = vpack.c.bf16 %v8753_v63, %v8750_v15 }
 0x438   :  { %v5554_v61 = vpop.eup %5553  ;;  %v5319_v17 = vpack.c.bf16 %v8742_v43, %v8745_v24  ;;  %v9743_v43 = vld [vmem:[#allocation39_spill] sm:$0xff] }
 0x439   :  { %v4219_v22 = vmul.f32 %v5554_v61, %v4171_v32  ;;  %5316 = vmatprep.subr.bf16.mxu0 %v5315_v11  ;;  %v4195_v27 = vmul.f32 %v5554_v61, %v4147_v18  ;;  %v4203_v30 = vmul.f32 %v5554_v61, %v4155_v5  ;;  %v4211_v46 = vmul.f32 %v5554_v61, %v4163_v55  ;;  %v9731_v61 = vld [vmem:[#allocation20_spill] sm:$0xff] }
 0x43a   :  { %5318 = vmatpush1.bf16.msra.mxu0 %v5317_v7 }
 0x43b   :  { %v5556_v51 = vpop.eup %5555  ;;  %v4247_v12 = vmul.f32 %v8673_v19, %v4195_v27  ;;  %v4255_v33 = vmul.f32 %v8669_v42, %v4203_v30  ;;  %5320 = vmatprep.subr.bf16.mxu0 %v5319_v17  ;;  %v4271_v55 = vmul.f32 %v8713_v9, %v4219_v22 }
 0x43c   :  { %v4220_v2 = vmul.f32 %v5556_v51, %v4172_v44  ;;  %v4196_v35 = vmul.f32 %v5556_v51, %v4148_v41  ;;  %v4204_v26 = vmul.f32 %v5556_v51, %v4156_v47  ;;  %v4212_v29 = vmul.f32 %v5556_v51, %v4164_v20 }
 0x43d   :  { %v8774_v44 = vadd.f32 %v8697_v34, %v4247_v12  ;;  %v8777_v41 = vadd.f32 %v8689_v52, %v4255_v33  ;;  %v4263_v47 = vmul.f32 %v8715_v10, %v4211_v46  ;;  %v8808_v25 = vadd.f32 %v8724_v39, %v4271_v55  ;;  %v9734_v55 = vld [vmem:[#allocation26_spill] sm:$0xff] }
 0x43e   :  { %v4248_v32 = vmul.f32 %v8673_v19, %v4196_v35  ;;  %v4256_v18 = vmul.f32 %v8669_v42, %v4204_v26  ;;  %v4264_v16 = vmul.f32 %v8715_v10, %v4212_v29  ;;  %v4272_v5 = vmul.f32 %v8713_v9, %v4220_v2  ;;  %5322 = vmatpush1.bf16.msra.mxu0 %v5321_v8  ;;  %v9732_v8 = vld [vmem:[#allocation40_spill] sm:$0xff] }
 0x43f   :  { %9721 = vst [vmem:[#allocation78_spill] sm:$0xff] %v8777_v41  ;;  %v5325_v49 = vpack.c.bf16 %v8777_v41, %v8774_v44  ;;  %v8805_v36 = vadd.f32 %v8733_v31, %v4263_v47  ;;  %9727 = vst [vmem:[#allocation67_spill] sm:$0xff] %v8808_v25  ;;  %v9733_v29 = vld [vmem:[#allocation36_spill] sm:$0xff] }
 0x440   :  { %v8781_v20 = vadd.f32 %v8697_v34, %v4248_v32  ;;  %v8784_v0 = vadd.f32 %v8689_v52, %v4256_v18  ;;  %v8787_v58 = vadd.f32 %v8733_v31, %v4264_v16  ;;  %v8790_v48 = vadd.f32 %v8724_v39, %v4272_v5 }
 0x441   :  { %5219 = vmatmul.mubr.msk.f32.vlgmr.msra.gmra.mrb[32].mxu0 %vm517_vm0, %v8770_v1  ;;  %9726 = vst [vmem:[#allocation66_spill] sm:$0xff] %v8805_v36  ;;  %v5329_v59 = vpack.c.bf16 %v8808_v25, %v8805_v36  ;;  %v9741_v25 = vld [vmem:[#allocation38_spill] sm:$0xff] }
 0x442   :  { %9722 = vst [vmem:[#allocation60_spill] sm:$0xff] %v8781_v20  ;;  %9723 = vst [vmem:[#allocation62_spill] sm:$0xff] %v8784_v0  ;;  %v5323_v56 = vpack.c.bf16 %v8784_v0, %v8781_v20  ;;  %4415 = vmatprep.mubr.f32.mxu0 %v9698_v37  ;;  %v5327_v13 = vpack.c.bf16 %v8790_v48, %v8787_v58 }
 0x443   :  { %9724 = vst [vmem:[#allocation79_spill] sm:$0xff] %v8787_v58  ;;  %9725 = vst [vmem:[#allocation80_spill] sm:$0xff] %v8790_v48 }
 0x444   :  { %5324 = vmatprep.subr.bf16.mxu1 %v5323_v56 }
 0x445   :  { %5326 = vmatpush1.bf16.msra.mxu1 %v5325_v49  ;;  %5220 = vmatmul.mubr.msk.f32.gmra.mrb[34].mxu0 %vm517_vm0, %v8800_v40 }
 0x446   :  { %5328 = vmatprep.subr.bf16.mxu1 %v5327_v13  ;;  %4421 = vmatprep.mubr.f32.mxu0 %v9698_v37 }
 0x449   :  { %5330 = vmatpush1.bf16.msra.mxu1 %v5329_v59  ;;  %5221 = vmatmul.mubr.msk.f32.gmra.mrb[36].mxu0 %vm517_vm0, %v8818_v6 }
 0x44a   :  { %4427 = vmatprep.mubr.f32.mxu0 %v9698_v37 }
 0x44c   :  { %5223 = vmatmul.mubr.msk.f32.vlgmr.msra.gmra.mrb[32].mxu1 %vm517_vm0, %v8770_v1 }
 0x44d   :  { %4504 = vmatprep.mubr.f32.mxu1 %v9698_v37  ;;  %5222 = vmatmul.mubr.msk.f32.gmra.mrb[38].mxu0 %vm517_vm0, %v8828_v3 }
 0x44e   :  { %4587 = vmatprep.mubr.f32.mxu0 %v9698_v37 }
 0x450   :  { %5224 = vmatmul.mubr.msk.f32.gmra.mrb[34].mxu1 %vm517_vm0, %v8800_v40 }
 0x451   :  { %4510 = vmatprep.mubr.f32.mxu1 %v9698_v37 }
 0x452   :  { %v3817_v28 = vpop.f32.mrb[24].mxu0 }
 0x453   :  { %v3819_v62 = vpop.f32.mrb[25].mxu0  ;;  %v8840_v53 = vadd.f32 %v3817_v28, %v9728_v23  ;;  %v9735_v28 = vld [vmem:[#allocation16_spill] sm:$0xff] }
 0x454   :  { %5225 = vmatmul.mubr.msk.f32.gmra.mrb[36].mxu1 %vm517_vm0, %v8818_v6  ;;  %v8845_v54 = vadd.f32 %v3819_v62, %v9729_v21  ;;  %v9736_v21 = vld [vmem:[#allocation41_spill] sm:$0xff] }
 0x455   :  { %4516 = vmatprep.mubr.f32.mxu1 %v9698_v37  ;;  %v4021_v17 = vmul.f32 %v8840_v53, %v8840_v53 }
 0x456   :  { %v3823_v60 = vpop.f32.mrb[26].mxu0  ;;  %v4022_v30 = vmul.f32 %v8845_v54, %v8845_v54 }
 0x457   :  { %v8849_v14 = vadd.f32 %v3823_v60, %v9730_v57  ;;  %v3825_v11 = vpop.f32.mrb[27].mxu0 }
 0x458   :  { %v8852_v7 = vadd.f32 %v3825_v11, %v9731_v61  ;;  %5226 = vmatmul.mubr.msk.f32.gmra.mrb[38].mxu1 %vm517_vm0, %v8828_v3  ;;  %v9737_v61 = vld [vmem:[#allocation37_spill] sm:$0xff] }
 0x459   :  { %v3973_v22 = vadd.f32 %v8849_v14, %v8840_v53  ;;  %v4029_v27 = vmul.f32 %v8849_v14, %v8849_v14  ;;  %4676 = vmatprep.mubr.f32.mxu1 %v9698_v37 }
 0x45a   :  { %v3982_v46 = vadd.f32 %v8852_v7, %v8845_v54  ;;  %v4030_v51 = vmul.f32 %v8852_v7, %v8852_v7  ;;  %v3829_v12 = vpop.f32.mrb[28].mxu0 }
 0x45b   :  { %v4085_v33 = vadd.f32 %v4029_v27, %v4021_v17  ;;  %v8870_v2 = vadd.f32 %v3829_v12, %v9732_v8  ;;  %v3831_v35 = vpop.f32.mrb[29].mxu0 }
 0x45c   :  { %v4094_v26 = vadd.f32 %v4030_v51, %v4022_v30  ;;  %v8873_v32 = vadd.f32 %v3831_v35, %v9733_v29  ;;  %v9738_v51 = vld [vmem:[#allocation27_spill] sm:$0xff]  ;;  %v9739_v29 = vld [vmem:[#allocation24_spill] sm:$0xff] }
 0x45d   :  { %v3906_v18 = vpop.f32.mrb[24].mxu1  ;;  %v3974_v16 = vadd.f32 %v3973_v22, %v8870_v2  ;;  %v4037_v5 = vmul.f32 %v8870_v2, %v8870_v2 }
 0x45e   :  { %v8879_v47 = vadd.f32 %v3906_v18, %v9734_v55  ;;  %v3908_v56 = vpop.f32.mrb[25].mxu1  ;;  %v3983_v49 = vadd.f32 %v3982_v46, %v8873_v32  ;;  %v4038_v13 = vmul.f32 %v8873_v32, %v8873_v32  ;;  %v3835_v59 = vpop.f32.mrb[30].mxu0 }
 0x45f   :  { %v8885_v62 = vadd.f32 %v3908_v56, %v9735_v28  ;;  %v4086_v23 = vadd.f32 %v4085_v33, %v4037_v5  ;;  %v8888_v60 = vadd.f32 %v3835_v59, %v9736_v21  ;;  %v3837_v57 = vpop.f32.mrb[31].mxu0 }
 0x460   :  { %v4095_v11 = vadd.f32 %v4094_v26, %v4038_v13  ;;  %v8891_v17 = vadd.f32 %v3837_v57, %v9737_v61  ;;  %v4023_v46 = vmul.f32 %v8879_v47, %v8879_v47 }
 0x461   :  { %v3912_v22 = vpop.f32.mrb[26].mxu1  ;;  %v3975_v27 = vadd.f32 %v3974_v16, %v8888_v60  ;;  %v4045_v30 = vmul.f32 %v8888_v60, %v8888_v60  ;;  %v4024_v26 = vmul.f32 %v8885_v62, %v8885_v62 }
 0x462   :  { %v8899_v12 = vadd.f32 %v3912_v22, %v9738_v51  ;;  %v3914_v33 = vpop.f32.mrb[27].mxu1  ;;  %v3984_v8 = vadd.f32 %v3983_v49, %v8891_v17  ;;  %v4046_v35 = vmul.f32 %v8891_v17, %v8891_v17  ;;  %v9740_v51 = vld [vmem:[#allocation42_spill] sm:$0xff] }
 0x463   :  { %v8907_v18 = vadd.f32 %v3914_v33, %v9739_v29  ;;  %v3976_v16 = vrot.slane %v3975_v27, 4  ;;  %v4087_v5 = vadd.f32 %v4086_v23, %v4045_v30 }
 0x464   :  { %v3991_v55 = vadd.f32 %v8899_v12, %v8879_v47  ;;  %v4031_v56 = vmul.f32 %v8899_v12, %v8899_v12  ;;  %v3985_v13 = vrot.slane %v3984_v8, 4  ;;  %v4096_v59 = vadd.f32 %v4095_v11, %v4046_v35 }
 0x465   :  { %v4000_v49 = vadd.f32 %v8907_v18, %v8885_v62  ;;  %v4032_v28 = vmul.f32 %v8907_v18, %v8907_v18  ;;  %v3918_v21 = vpop.f32.mrb[28].mxu1  ;;  %v3977_v57 = vadd.f32 %v3976_v16, %v3975_v27  ;;  %v4088_v61 = vrot.slane %v4087_v5, 4 }
 0x466   :  { %v4103_v22 = vadd.f32 %v4031_v56, %v4023_v46  ;;  %v8918_v23 = vadd.f32 %v3918_v21, %v9740_v51  ;;  %v3920_v30 = vpop.f32.mrb[29].mxu1  ;;  %v3986_v33 = vadd.f32 %v3985_v13, %v3984_v8  ;;  %v4097_v29 = vrot.slane %v4096_v59, 4 }
 0x467   :  { %v4112_v48 = vadd.f32 %v4032_v28, %v4024_v26  ;;  %v8921_v58 = vadd.f32 %v3920_v30, %v9741_v25  ;;  %v3978_v11 = vrot.slane %v3977_v57, 2  ;;  %v4089_v35 = vadd.f32 %v4088_v61, %v4087_v5  ;;  %v9742_v25 = vld [vmem:[#allocation43_spill] sm:$0xff] }
 0x468   :  { %v3992_v36 = vadd.f32 %v3991_v55, %v8918_v23  ;;  %v4039_v0 = vmul.f32 %v8918_v23, %v8918_v23  ;;  %v3987_v27 = vrot.slane %v3986_v33, 2  ;;  %v4098_v16 = vadd.f32 %v4097_v29, %v4096_v59 }
 0x469   :  { %v4001_v46 = vadd.f32 %v4000_v49, %v8921_v58  ;;  %v4040_v56 = vmul.f32 %v8921_v58, %v8921_v58  ;;  %v3979_v8 = vadd.f32 %v3978_v11, %v3977_v57  ;;  %v4090_v13 = vrot.slane %v4089_v35, 2  ;;  %v3924_v26 = vpop.f32.mrb[30].mxu1 }
 0x46a   :  { %v4104_v28 = vadd.f32 %v4103_v22, %v4039_v0  ;;  %v8930_v21 = vadd.f32 %v3924_v26, %v9742_v25  ;;  %v3988_v5 = vadd.f32 %v3987_v27, %v3986_v33  ;;  %v4099_v61 = vrot.slane %v4098_v16, 2  ;;  %v3926_v55 = vpop.f32.mrb[31].mxu1 }
 0x46b   :  { %v4113_v51 = vadd.f32 %v4112_v48, %v4040_v56  ;;  %v3980_v30 = vrot.slane %v3979_v8, 1  ;;  %v4091_v41 = vadd.f32 %v4090_v13, %v4089_v35  ;;  %v8933_v59 = vadd.f32 %v3926_v55, %v9743_v43 }
 0x46c   :  { %v3993_v49 = vadd.f32 %v3992_v36, %v8930_v21  ;;  %v4047_v57 = vmul.f32 %v8930_v21, %v8930_v21  ;;  %v3989_v29 = vrot.slane %v3988_v5, 1  ;;  %v4100_v11 = vadd.f32 %v4099_v61, %v4098_v16 }
 0x46d   :  { %v3981_v0 = vadd.f32 %v3980_v30, %v3979_v8  ;;  %v4092_v22 = vrot.slane %v4091_v41, 1  ;;  %v4002_v26 = vadd.f32 %v4001_v46, %v8933_v59  ;;  %v4048_v33 = vmul.f32 %v8933_v59, %v8933_v59 }
 0x46e   :  { %v3994_v48 = vrot.slane %v3993_v49, 4  ;;  %v4105_v27 = vadd.f32 %v4104_v28, %v4047_v57  ;;  %v3990_v35 = vadd.f32 %v3989_v29, %v3988_v5  ;;  %v4101_v56 = vrot.slane %v4100_v11, 1 }
 0x46f   :  { %v8941_v43 = vmul.f32 0.03125, %v3981_v0  ;;  %v4093_v13 = vadd.f32 %v4092_v22, %v4091_v41  ;;  %v4003_v36 = vrot.slane %v4002_v26, 4  ;;  %v4114_v25 = vadd.f32 %v4113_v51, %v4048_v33 }
 0x470   :  { %v3995_v55 = vadd.f32 %v3994_v48, %v3993_v49  ;;  %v4106_v63 = vrot.slane %v4105_v27, 4  ;;  %v8943_v20 = vmul.f32 0.03125, %v3990_v35  ;;  %v4102_v16 = vadd.f32 %v4101_v56, %v4100_v11 }
 0x471   :  { %v4125_v8 = vmul.f32 0.03125, %v4093_v13  ;;  %v4133_v46 = vmul.f32 %v8941_v43, %v8941_v43  ;;  %v4173_v61 = vsub.f32 %v8888_v60, %v8941_v43  ;;  %v4004_v28 = vadd.f32 %v4003_v36, %v4002_v26 }
 0x472   :  { %v3996_v5 = vrot.slane %v3995_v55, 2  ;;  %v4107_v30 = vadd.f32 %v4106_v63, %v4105_v27  ;;  %v4126_v57 = vmul.f32 0.03125, %v4102_v16  ;;  %v4134_v41 = vmul.f32 %v8943_v20, %v8943_v20 }
 0x473   :  { %v4141_v51 = vsub.f32 %v4125_v8, %v4133_v46  ;;  %v4174_v49 = vsub.f32 %v8891_v17, %v8943_v20  ;;  %v4005_v29 = vrot.slane %v4004_v28, 2  ;;  %v4115_v11 = vrot.slane %v4114_v25, 4 }
 0x474   :  { %v3997_v0 = vadd.f32 %v3996_v5, %v3995_v55  ;;  %v4108_v22 = vrot.slane %v4107_v30, 2  ;;  %v4142_v33 = vsub.f32 %v4126_v57, %v4134_v41  ;;  %v4150_v48 = vsub.f32 %v8845_v54, %v8943_v20 }
 0x475   :  { %v4181_v60 = vadd.f32 1e-05, %v4141_v51  ;;  %v4006_v26 = vadd.f32 %v4005_v29, %v4004_v28  ;;  %v4116_v35 = vadd.f32 %v4115_v11, %v4114_v25  ;;  %v4158_v63 = vsub.f32 %v8852_v7, %v8943_v20 }
 0x476   :  { %v3998_v27 = vrot.slane %v3997_v0, 1  ;;  %v4109_v56 = vadd.f32 %v4108_v22, %v4107_v30  ;;  %v4182_v13 = vadd.f32 1e-05, %v4142_v33  ;;  %v4149_v17 = vsub.f32 %v8840_v53, %v8941_v43 }
 0x477   :  { %5557 = vrsqrt.f32 %v4181_v60  ;;  %v4007_v36 = vrot.slane %v4006_v26, 1  ;;  %v4117_v55 = vrot.slane %v4116_v35, 2  ;;  %v4157_v16 = vsub.f32 %v8849_v14, %v8941_v43 }
 0x478   :  { %v3999_v8 = vadd.f32 %v3998_v27, %v3997_v0  ;;  %v4110_v54 = vrot.slane %v4109_v56, 1  ;;  %5559 = vrsqrt.f32 %v4182_v13  ;;  %v4166_v25 = vsub.f32 %v8873_v32, %v8943_v20 }
 0x479   :  { %v4008_v46 = vadd.f32 %v4007_v36, %v4006_v26  ;;  %v4118_v7 = vadd.f32 %v4117_v55, %v4116_v35  ;;  %v4165_v28 = vsub.f32 %v8870_v2, %v8941_v43 }
 0x47a   :  { %v4015_v5 = vmul.f32 0.03125, %v3999_v8  ;;  %v4111_v30 = vadd.f32 %v4110_v54, %v4109_v56 }
 0x47b   :  { %v8965_v53 = vmul.f32 0.03125, %v4008_v46  ;;  %v4119_v57 = vrot.slane %v4118_v7, 1 }
 0x47c   :  { %v4127_v41 = vmul.f32 0.03125, %v4111_v30  ;;  %v4135_v51 = vmul.f32 %v4015_v5, %v4015_v5  ;;  %v4175_v14 = vsub.f32 %v8930_v21, %v4015_v5  ;;  %v4151_v29 = vsub.f32 %v8879_v47, %v4015_v5 }
 0x47d   :  { %v4120_v11 = vadd.f32 %v4119_v57, %v4118_v7  ;;  %v4136_v20 = vmul.f32 %v8965_v53, %v8965_v53  ;;  %v4176_v32 = vsub.f32 %v8933_v59, %v8965_v53  ;;  %v4152_v2 = vsub.f32 %v8885_v62, %v8965_v53 }
 0x47e   :  { %v4143_v43 = vsub.f32 %v4127_v41, %v4135_v51  ;;  %v4160_v0 = vsub.f32 %v8907_v18, %v8965_v53  ;;  %v4159_v22 = vsub.f32 %v8899_v12, %v4015_v5  ;;  %v4168_v21 = vsub.f32 %v8921_v58, %v8965_v53 }
 0x47f   :  { %v4128_v47 = vmul.f32 0.03125, %v4120_v11  ;;  %v4167_v33 = vsub.f32 %v8918_v23, %v4015_v5 }
 0x480   :  { %v4183_v60 = vadd.f32 1e-05, %v4143_v43 }
 0x481   :  { %v5558_v26 = vpop.eup %5557  ;;  %v4144_v35 = vsub.f32 %v4128_v47, %v4136_v20 }
 0x482   :  { %v5560_v27 = vpop.eup %5559  ;;  %v4221_v59 = vmul.f32 %v5558_v26, %v4173_v61  ;;  %5561 = vrsqrt.f32 %v4183_v60  ;;  %v4197_v56 = vmul.f32 %v5558_v26, %v4149_v17  ;;  %v4205_v62 = vmul.f32 %v5558_v26, %v4157_v16 }
 0x483   :  { %v4222_v13 = vmul.f32 %v5560_v27, %v4174_v49  ;;  %v4184_v36 = vadd.f32 1e-05, %v4144_v35  ;;  %v4198_v55 = vmul.f32 %v5560_v27, %v4150_v48  ;;  %v4206_v18 = vmul.f32 %v5560_v27, %v4158_v63 }
 0x484   :  { %v4273_v12 = vmul.f32 %v8713_v9, %v4221_v59  ;;  %v4249_v8 = vmul.f32 %v8673_v19, %v4197_v56  ;;  %v4257_v58 = vmul.f32 %v8669_v42, %v4205_v62  ;;  %v4214_v54 = vmul.f32 %v5560_v27, %v4166_v25 }
 0x485   :  { %5563 = vrsqrt.f32 %v4184_v36  ;;  %v4250_v23 = vmul.f32 %v8673_v19, %v4198_v55  ;;  %v4258_v46 = vmul.f32 %v8669_v42, %v4206_v18  ;;  %v4274_v61 = vmul.f32 %v8713_v9, %v4222_v13 }
 0x486   :  { %v8988_v17 = vadd.f32 %v8697_v34, %v4249_v8  ;;  %v8991_v49 = vadd.f32 %v8689_v52, %v4257_v58  ;;  %v4266_v48 = vmul.f32 %v8715_v10, %v4214_v54  ;;  %v4213_v63 = vmul.f32 %v5558_v26, %v4165_v28 }
 0x487   :  { %v8995_v16 = vadd.f32 %v8697_v34, %v4250_v23  ;;  %v8998_v25 = vadd.f32 %v8689_v52, %v4258_v46  ;;  %v9001_v7 = vadd.f32 %v8724_v39, %v4274_v61  ;;  %v9015_v41 = vadd.f32 %v8724_v39, %v4273_v12 }
 0x488   :  { %v9004_v5 = vadd.f32 %v8733_v31, %v4266_v48  ;;  %v4265_v30 = vmul.f32 %v8715_v10, %v4213_v63  ;;  %v5333_v28 = vpack.c.bf16 %v8991_v49, %v8988_v17 }
 0x489   :  { %v5331_v53 = vpack.c.bf16 %v8998_v25, %v8995_v16 }
 0x48a   :  { %v9012_v57 = vadd.f32 %v8733_v31, %v4265_v30  ;;  %v5335_v51 = vpack.c.bf16 %v9001_v7, %v9004_v5 }
 0x48b   :  { %5332 = vmatprep.subr.bf16.mxu0 %v5331_v53 }
 0x48c   :  { %v5562_v11 = vpop.eup %5561  ;;  %5334 = vmatpush1.bf16.msra.mxu0 %v5333_v28  ;;  %v5337_v26 = vpack.c.bf16 %v9015_v41, %v9012_v57 }
 0x48d   :  { %v4223_v20 = vmul.f32 %v5562_v11, %v4175_v14  ;;  %v4199_v43 = vmul.f32 %v5562_v11, %v4151_v29  ;;  %v4207_v47 = vmul.f32 %v5562_v11, %v4159_v22  ;;  %5336 = vmatprep.subr.bf16.mxu0 %v5335_v51  ;;  %v4215_v60 = vmul.f32 %v5562_v11, %v4167_v33 }
 0x48f   :  { %v5564_v35 = vpop.eup %5563  ;;  %v4251_v27 = vmul.f32 %v8673_v19, %v4199_v43  ;;  %v4259_v59 = vmul.f32 %v8669_v42, %v4207_v47  ;;  %v4275_v33 = vmul.f32 %v8713_v9, %v4223_v20 }
 0x490   :  { %v4224_v56 = vmul.f32 %v5564_v35, %v4176_v32  ;;  %v4200_v62 = vmul.f32 %v5564_v35, %v4152_v2  ;;  %v4208_v13 = vmul.f32 %v5564_v35, %v4160_v0  ;;  %v4216_v36 = vmul.f32 %v5564_v35, %v4168_v21  ;;  %5338 = vmatpush1.bf16.msra.mxu0 %v5337_v26 }
 0x491   :  { %v9029_v18 = vadd.f32 %v8697_v34, %v4251_v27  ;;  %v9032_v12 = vadd.f32 %v8689_v52, %v4259_v59  ;;  %v4267_v32 = vmul.f32 %v8715_v10, %v4215_v60 }
 0x492   :  { %v4252_v55 = vmul.f32 %v8673_v19, %v4200_v62  ;;  %v4260_v14 = vmul.f32 %v8669_v42, %v4208_v13  ;;  %v4268_v29 = vmul.f32 %v8715_v10, %v4216_v36  ;;  %v4276_v22 = vmul.f32 %v8713_v9, %v4224_v56 }
 0x493   :  { %5227 = vmatmul.mubr.msk.f32.vlgmr.msra.gmra.mrb[40].mxu0 %vm517_vm0, %v8770_v1  ;;  %v5341_v0 = vpack.c.bf16 %v9032_v12, %v9029_v18 }
 0x494   :  { %v9038_v19 = vadd.f32 %v8697_v34, %v4252_v55  ;;  %v9041_v42 = vadd.f32 %v8689_v52, %v4260_v14  ;;  %v9044_v2 = vadd.f32 %v8733_v31, %v4268_v29  ;;  %v9047_v9 = vadd.f32 %v8724_v39, %v4276_v22  ;;  %4593 = vmatprep.mubr.f32.mxu0 %v9698_v37  ;;  %v9088_v14 = vld [vmem:[%s9204_s6] sm:$0xff] }
 0x495   :  { %v9055_v34 = vadd.f32 %v8733_v31, %v4267_v32  ;;  %v9058_v52 = vadd.f32 %v8724_v39, %v4275_v33  ;;  %v9096_v33 = vld [vmem:[%s9204_s6 + $0x8] sm:$0xff] }
 0x496   :  { %v5339_v10 = vpack.c.bf16 %v9041_v42, %v9038_v19  ;;  %v5343_v21 = vpack.c.bf16 %v9047_v9, %v9044_v2 }
 0x497   :  { %5228 = vmatmul.mubr.msk.f32.gmra.mrb[42].mxu0 %vm517_vm0, %v8800_v40  ;;  %v5345_v8 = vpack.c.bf16 %v9058_v52, %v9055_v34 }
 0x498   :  { %5340 = vmatprep.subr.bf16.mxu1 %v5339_v10  ;;  %4599 = vmatprep.mubr.f32.mxu0 %v9698_v37 }
 0x499   :  { %5342 = vmatpush1.bf16.msra.mxu1 %v5341_v0 }
 0x49a   :  { %5344 = vmatprep.subr.bf16.mxu1 %v5343_v21 }
 0x49b   :  { %5229 = vmatmul.mubr.msk.f32.gmra.mrb[44].mxu0 %vm517_vm0, %v8818_v6 }
 0x49c   :  { %4605 = vmatprep.mubr.f32.mxu0 %v9698_v37 }
 0x49d   :  { %5346 = vmatpush1.bf16.msra.mxu1 %v5345_v8 }
 0x49f   :  { %5230 = vmatmul.mubr.msk.f32.gmra.mrb[46].mxu0 %vm517_vm0, %v8828_v3 }
 0x4a0   :  { %5231 = vmatmul.mubr.msk.f32.vlgmr.msra.gmra.mrb[40].mxu1 %vm517_vm0, %v8770_v1  ;;  %4813 = vmatprep.mubr.f32.mxu0 %v9698_v37 }
 0x4a1   :  { %4682 = vmatprep.mubr.f32.mxu1 %v9698_v37 }
 0x4a4   :  { %5232 = vmatmul.mubr.msk.f32.gmra.mrb[42].mxu1 %vm517_vm0, %v8800_v40 }
 0x4a5   :  { %4688 = vmatprep.mubr.f32.mxu1 %v9698_v37 }
 0x4a8   :  { %5233 = vmatmul.mubr.msk.f32.gmra.mrb[44].mxu1 %vm517_vm0, %v8818_v6 }
 0x4a9   :  { %4694 = vmatprep.mubr.f32.mxu1 %v9698_v37 }
 0x4ac   :  { %5234 = vmatmul.mubr.msk.f32.gmra.mrb[46].mxu1 %vm517_vm0, %v8828_v3 }
 0x4ad   :  { %4902 = vmatprep.mubr.f32.mxu1 %v9698_v37 }
 0x514   :  { %v4411_v39 = vpop.f32.mrb[32].mxu0 }
 0x515   :  { %v4413_v31 = vpop.f32.mrb[33].mxu0  ;;  %v4701_v58 = vmax.f32 %v4411_v39, 0.0 }
 0x516   :  { %v4702_v46 = vmax.f32 %v4413_v31, 0.0 }
 0x518   :  { %v4417_v1 = vpop.f32.mrb[34].mxu0 }
 0x519   :  { %v4709_v54 = vmax.f32 %v4417_v1, 0.0  ;;  %v4419_v23 = vpop.f32.mrb[35].mxu0  ;;  %v9104_v1 = vld [vmem:[%s9204_s6 + $0x10] sm:$0xff] }
 0x51a   :  { %v4710_v40 = vmax.f32 %v4419_v23, 0.0 }
 0x51b   :  { %v5349_v61 = vpack.c.bf16 %v4709_v54, %v4701_v58  ;;  %v9112_v58 = vld [vmem:[%s9204_s6 + $0x18] sm:$0xff]  ;;  %s5666_s6 = smov [#allocation8]  }
 0x51c   :  { %v5347_v48 = vpack.c.bf16 %v4710_v40, %v4702_v46  ;;  %v4423_v63 = vpop.f32.mrb[36].mxu0  ;;  %s5174_s12 = sshll.u32 %s5666_s6, 4  ;;  %s5175_s12 = int_to_ptr.vmem [resolvable:$true] %s5174_s12 }
 0x51d   :  { %v4425_v30 = vpop.f32.mrb[37].mxu0  ;;  %v4717_v3 = vmax.f32 %v4423_v63, 0.0  ;;  %s5631_s13 = scalar_lea.vmem %s5175_s12, 4096  ;;  %p5636_p11 = scmp.lt.s32.totalorder %s5175_s12, %s5175_s12 }
 0x51e   :  { %5348 = vmatprep.subr.bf16.mxu0 %v5347_v48  ;;  %v4718_v20 = vmax.f32 %v4425_v30, 0.0  ;;  %p5632_p10 = scmp.ne.s32.totalorder %s5175_s12, %s5631_s13  ;;  %p5637_p12 = scmp.lt.s32.totalorder %s5631_s13, %s5631_s13 }
 0x51f   :  { %v4500_v6 = vpop.f32.mrb[32].mxu1  ;;  %5350 = vmatpush1.bf16.msra.mxu0 %v5349_v61 }
 0x520   :  { %v4502_v53 = vpop.f32.mrb[33].mxu1  ;;  %v4429_v28 = vpop.f32.mrb[38].mxu0  ;;  %v4703_v26 = vmax.f32 %v4500_v6, 0.0  ;;  %p5638_p13 = por %p5637_p12, %p5636_p11 }
 0x521   :  { %v4725_v51 = vmax.f32 %v4429_v28, 0.0  ;;  %v4431_v11 = vpop.f32.mrb[39].mxu0  ;;  %v4704_v56 = vmax.f32 %v4502_v53, 0.0 }
 0x522   :  { %v4726_v43 = vmax.f32 %v4431_v11, 0.0  ;;  %p5639_p0 = pnand %p5638_p13, %p5632_p10 }
 0x523   :  { %v4506_v47 = vpop.f32.mrb[34].mxu1  ;;  %v5353_v60 = vpack.c.bf16 %v4725_v51, %v4717_v3 }
 0x524   :  { %v4711_v35 = vmax.f32 %v4506_v47, 0.0  ;;  %v4508_v27 = vpop.f32.mrb[35].mxu1  ;;  %v5351_v59 = vpack.c.bf16 %v4726_v43, %v4718_v20 }
 0x525   :  { %v4712_v62 = vmax.f32 %v4508_v27, 0.0 }
 0x526   :  { %v5357_v13 = vpack.c.bf16 %v4711_v35, %v4703_v26  ;;  %5352 = vmatprep.subr.bf16.mxu0 %v5351_v59 }
 0x527   :  { %v5355_v36 = vpack.c.bf16 %v4712_v62, %v4704_v56  ;;  %v4512_v55 = vpop.f32.mrb[36].mxu1  ;;  %5354 = vmatpush1.bf16.msra.mxu0 %v5353_v60 }
 0x528   :  { %v4514_v29 = vpop.f32.mrb[37].mxu1  ;;  %v4719_v32 = vmax.f32 %v4512_v55, 0.0 }
 0x529   :  { %5356 = vmatprep.subr.bf16.mxu1 %v5355_v36  ;;  %v4720_v21 = vmax.f32 %v4514_v29, 0.0 }
 0x52a   :  { %5358 = vmatpush1.bf16.msra.mxu1 %v5357_v13  ;;  %5235 = vmatmul.mubr.msk.f32.vlgmr.msra.gmra.mrb[48].mxu0 %vm517_vm0, %v9088_v14 }
 0x52b   :  { %v4518_v22 = vpop.f32.mrb[38].mxu1  ;;  %4819 = vmatprep.mubr.f32.mxu0 %v9698_v37 }
 0x52c   :  { %v4727_v10 = vmax.f32 %v4518_v22, 0.0  ;;  %v4520_v0 = vpop.f32.mrb[39].mxu1 }
 0x52d   :  { %v4728_v8 = vmax.f32 %v4520_v0, 0.0 }
 0x52e   :  { %v5361_v39 = vpack.c.bf16 %v4727_v10, %v4719_v32  ;;  %5236 = vmatmul.mubr.msk.f32.gmra.mrb[50].mxu0 %vm517_vm0, %v9096_v33 }
 0x52f   :  { %v5359_v31 = vpack.c.bf16 %v4728_v8, %v4720_v21  ;;  %4825 = vmatprep.mubr.f32.mxu0 %v9698_v37 }
 0x531   :  { %5360 = vmatprep.subr.bf16.mxu1 %v5359_v31 }
 0x532   :  { %5362 = vmatpush1.bf16.msra.mxu1 %v5361_v39  ;;  %5237 = vmatmul.mubr.msk.f32.gmra.mrb[52].mxu0 %vm517_vm0, %v9104_v1 }
 0x533   :  { %4831 = vmatprep.mubr.f32.mxu0 %v9698_v37 }
 0x535   :  { %5239 = vmatmul.mubr.msk.f32.vlgmr.msra.gmra.mrb[48].mxu1 %vm517_vm0, %v9088_v14 }
 0x536   :  { %4908 = vmatprep.mubr.f32.mxu1 %v9698_v37  ;;  %5238 = vmatmul.mubr.msk.f32.gmra.mrb[54].mxu0 %vm517_vm0, %v9112_v58 }
 0x537   :  { %4991 = vmatprep.mubr.f32.mxu0 %v9698_v37 }
 0x539   :  { %5240 = vmatmul.mubr.msk.f32.gmra.mrb[50].mxu1 %vm517_vm0, %v9096_v33 }
 0x53a   :  { %4914 = vmatprep.mubr.f32.mxu1 %v9698_v37 }
 0x53d   :  { %5241 = vmatmul.mubr.msk.f32.gmra.mrb[52].mxu1 %vm517_vm0, %v9104_v1 }
 0x53e   :  { %4920 = vmatprep.mubr.f32.mxu1 %v9698_v37 }
 0x541   :  { %5242 = vmatmul.mubr.msk.f32.gmra.mrb[54].mxu1 %vm517_vm0, %v9112_v58 }
 0x542   :  { %5080 = vmatprep.mubr.f32.mxu1 %v9698_v37 }
 0x566   :  { %v4589_v54 = vpop.f32.mrb[40].mxu0 }
 0x567   :  { %v4591_v23 = vpop.f32.mrb[41].mxu0  ;;  %v4705_v40 = vmax.f32 %v4589_v54, 0.0 }
 0x568   :  { %v4706_v63 = vmax.f32 %v4591_v23, 0.0 }
 0x56a   :  { %v4595_v46 = vpop.f32.mrb[42].mxu0 }
 0x56b   :  { %v4713_v61 = vmax.f32 %v4595_v46, 0.0  ;;  %v4597_v48 = vpop.f32.mrb[43].mxu0 }
 0x56c   :  { %v4714_v30 = vmax.f32 %v4597_v48, 0.0 }
 0x56d   :  { %v5365_v6 = vpack.c.bf16 %v4713_v61, %v4705_v40 }
 0x56e   :  { %v5363_v53 = vpack.c.bf16 %v4714_v30, %v4706_v63  ;;  %v4601_v28 = vpop.f32.mrb[44].mxu0 }
 0x56f   :  { %v4603_v3 = vpop.f32.mrb[45].mxu0  ;;  %v4721_v20 = vmax.f32 %v4601_v28, 0.0 }
 0x570   :  { %5364 = vmatprep.subr.bf16.mxu0 %v5363_v53  ;;  %v4722_v26 = vmax.f32 %v4603_v3, 0.0 }
 0x571   :  { %5366 = vmatpush1.bf16.msra.mxu0 %v5365_v6 }
 0x572   :  { %v4607_v51 = vpop.f32.mrb[46].mxu0 }
 0x573   :  { %v4678_v11 = vpop.f32.mrb[40].mxu1  ;;  %v4729_v43 = vmax.f32 %v4607_v51, 0.0  ;;  %v4609_v47 = vpop.f32.mrb[47].mxu0 }
 0x574   :  { %v4680_v60 = vpop.f32.mrb[41].mxu1  ;;  %v4730_v35 = vmax.f32 %v4609_v47, 0.0  ;;  %v4707_v62 = vmax.f32 %v4678_v11, 0.0  ;;  %v9744_v11 = vld [vmem:[#allocation60_spill] sm:$0xff]  ;;  %v9746_v47 = vld [vmem:[#allocation77_spill] sm:$0xff] }
 0x575   :  { %v5369_v27 = vpack.c.bf16 %v4729_v43, %v4721_v20  ;;  %v4708_v55 = vmax.f32 %v4680_v60, 0.0  ;;  %v9745_v20 = vld [vmem:[#allocation76_spill] sm:$0xff] }
 0x576   :  { %v5367_v59 = vpack.c.bf16 %v4730_v35, %v4722_v26  ;;  %v9747_v26 = vld [vmem:[#allocation78_spill] sm:$0xff] }
 0x577   :  { %v4684_v56 = vpop.f32.mrb[42].mxu1 }
 0x578   :  { %v4715_v13 = vmax.f32 %v4684_v56, 0.0  ;;  %v4686_v36 = vpop.f32.mrb[43].mxu1  ;;  %5368 = vmatprep.subr.bf16.mxu0 %v5367_v59  ;;  %v9749_v56 = vld [vmem:[#allocation66_spill] sm:$0xff] }
 0x579   :  { %v4716_v29 = vmax.f32 %v4686_v36, 0.0  ;;  %5370 = vmatpush1.bf16.msra.mxu0 %v5369_v27  ;;  %v9748_v27 = vld [vmem:[#allocation62_spill] sm:$0xff]  ;;  %v9750_v36 = vld [vmem:[#allocation79_spill] sm:$0xff] }
 0x57a   :  { %v5373_v22 = vpack.c.bf16 %v4715_v13, %v4707_v62 }
 0x57b   :  { %v5371_v32 = vpack.c.bf16 %v4716_v29, %v4708_v55  ;;  %v4690_v10 = vpop.f32.mrb[44].mxu1 }
 0x57c   :  { %v4692_v0 = vpop.f32.mrb[45].mxu1  ;;  %5243 = vmatmul.mubr.msk.f32.vlgmr.msra.gmra.mrb[56].mxu0 %vm517_vm0, %v9088_v14  ;;  %v4723_v8 = vmax.f32 %v4690_v10, 0.0 }
 0x57d   :  { %5372 = vmatprep.subr.bf16.mxu1 %v5371_v32  ;;  %4997 = vmatprep.mubr.f32.mxu0 %v9698_v37  ;;  %v4724_v54 = vmax.f32 %v4692_v0, 0.0  ;;  %v9752_v0 = vld [vmem:[#allocation80_spill] sm:$0xff] }
 0x57e   :  { %5374 = vmatpush1.bf16.msra.mxu1 %v5373_v22  ;;  %v9751_v22 = vld [vmem:[#allocation67_spill] sm:$0xff] }
 0x57f   :  { %v4696_v21 = vpop.f32.mrb[46].mxu1 }
 0x580   :  { %v4731_v39 = vmax.f32 %v4696_v21, 0.0  ;;  %v4698_v31 = vpop.f32.mrb[47].mxu1  ;;  %5244 = vmatmul.mubr.msk.f32.gmra.mrb[58].mxu0 %vm517_vm0, %v9096_v33 }
 0x581   :  { %v4732_v23 = vmax.f32 %v4698_v31, 0.0  ;;  %5003 = vmatprep.mubr.f32.mxu0 %v9698_v37 }
 0x582   :  { %v5377_v46 = vpack.c.bf16 %v4731_v39, %v4723_v8 }
 0x583   :  { %v5375_v40 = vpack.c.bf16 %v4732_v23, %v4724_v54 }
 0x584   :  { %5245 = vmatmul.mubr.msk.f32.gmra.mrb[60].mxu0 %vm517_vm0, %v9104_v1 }
 0x585   :  { %5376 = vmatprep.subr.bf16.mxu1 %v5375_v40  ;;  %5009 = vmatprep.mubr.f32.mxu0 %v9698_v37 }
 0x586   :  { %5378 = vmatpush1.bf16.msra.mxu1 %v5377_v46 }
 0x588   :  { %5246 = vmatmul.mubr.msk.f32.gmra.mrb[62].mxu0 %vm517_vm0, %v9112_v58 }
 0x589   :  { %5247 = vmatmul.mubr.msk.f32.vlgmr.msra.gmra.mrb[56].mxu1 %vm517_vm0, %v9088_v14 }
 0x58a   :  { %5086 = vmatprep.mubr.f32.mxu1 %v9698_v37 }
 0x58d   :  { %5248 = vmatmul.mubr.msk.f32.gmra.mrb[58].mxu1 %vm517_vm0, %v9096_v33 }
 0x58e   :  { %5092 = vmatprep.mubr.f32.mxu1 %v9698_v37 }
 0x591   :  { %5249 = vmatmul.mubr.msk.f32.gmra.mrb[60].mxu1 %vm517_vm0, %v9104_v1 }
 0x592   :  { %5098 = vmatprep.mubr.f32.mxu1 %v9698_v37 }
 0x595   :  { %5250 = vmatmul.mubr.msk.f32.gmra.mrb[62].mxu1 %vm517_vm0, %v9112_v58 }
 0x5fd   :  { %v4815_v61 = vpop.f32.mrb[48].mxu0 }
 0x5fe   :  { %v5105_v48 = vadd.f32 %v4815_v61, %v8727_v4  ;;  %v4817_v63 = vpop.f32.mrb[49].mxu0 }
 0x5ff   :  { %v5106_v14 = vadd.f32 %v4817_v63, %v8736_v38 }
 0x600   :  { %5137 = vst [vmem:[#allocation8] sm:$0xff] %v5105_v48 }
 0x601   :  { %5138 = vst [vmem:[#allocation8 + $0x8] sm:$0xff] %v5106_v14  ;;  %v4821_v30 = vpop.f32.mrb[50].mxu0 }
 0x602   :  { %v5113_v33 = vadd.f32 %v4821_v30, %v8730_v45  ;;  %v4823_v6 = vpop.f32.mrb[51].mxu0 }
 0x603   :  { %v5114_v53 = vadd.f32 %v4823_v6, %v8739_v50 }
 0x604   :  { %5145 = vst [vmem:[#allocation8 + $0x40] sm:$0xff] %v5113_v33 }
 0x605   :  { %5146 = vst [vmem:[#allocation8 + $0x48] sm:$0xff] %v5114_v53  ;;  %v4827_v37 = vpop.f32.mrb[52].mxu0 }
 0x606   :  { %v5121_v1 = vadd.f32 %v4827_v37, %v8750_v15  ;;  %v4829_v58 = vpop.f32.mrb[53].mxu0 }
 0x607   :  { %v5122_v28 = vadd.f32 %v4829_v58, %v8745_v24 }
 0x608   :  { %v4904_v4 = vpop.f32.mrb[48].mxu1  ;;  %5153 = vst [vmem:[#allocation8 + $0x80] sm:$0xff] %v5121_v1 }
 0x609   :  { %v5107_v38 = vadd.f32 %v4904_v4, %v8774_v44  ;;  %v4906_v3 = vpop.f32.mrb[49].mxu1  ;;  %5154 = vst [vmem:[#allocation8 + $0x88] sm:$0xff] %v5122_v28  ;;  %v4833_v51 = vpop.f32.mrb[54].mxu0 }
 0x60a   :  { %v5108_v45 = vadd.f32 %v4906_v3, %v9744_v11  ;;  %v5129_v43 = vadd.f32 %v4833_v51, %v9745_v20  ;;  %v4835_v50 = vpop.f32.mrb[55].mxu0 }
 0x60b   :  { %5139 = vst [vmem:[#allocation8 + $0x10] sm:$0xff] %v5107_v38  ;;  %v5130_v60 = vadd.f32 %v4835_v50, %v9746_v47 }
 0x60c   :  { %5140 = vst [vmem:[#allocation8 + $0x18] sm:$0xff] %v5108_v45  ;;  %v4910_v15 = vpop.f32.mrb[50].mxu1  ;;  %5161 = vst [vmem:[#allocation8 + $0xc0] sm:$0xff] %v5129_v43 }
 0x60d   :  { %v5115_v24 = vadd.f32 %v4910_v15, %v9747_v26  ;;  %v4912_v35 = vpop.f32.mrb[51].mxu1  ;;  %5162 = vst [vmem:[#allocation8 + $0xc8] sm:$0xff] %v5130_v60 }
 0x60e   :  { %v5116_v44 = vadd.f32 %v4912_v35, %v9748_v27 }
 0x60f   :  { %5147 = vst [vmem:[#allocation8 + $0x50] sm:$0xff] %v5115_v24 }
 0x610   :  { %5148 = vst [vmem:[#allocation8 + $0x58] sm:$0xff] %v5116_v44  ;;  %v4916_v59 = vpop.f32.mrb[52].mxu1 }
 0x611   :  { %v5123_v62 = vadd.f32 %v4916_v59, %v9749_v56  ;;  %v4918_v13 = vpop.f32.mrb[53].mxu1 }
 0x612   :  { %v5124_v55 = vadd.f32 %v4918_v13, %v9750_v36 }
 0x613   :  { %5155 = vst [vmem:[#allocation8 + $0x90] sm:$0xff] %v5123_v62 }
 0x614   :  { %5156 = vst [vmem:[#allocation8 + $0x98] sm:$0xff] %v5124_v55  ;;  %v4922_v29 = vpop.f32.mrb[54].mxu1 }
 0x615   :  { %v5131_v32 = vadd.f32 %v4922_v29, %v9751_v22  ;;  %v4924_v10 = vpop.f32.mrb[55].mxu1 }
 0x616   :  { %v5132_v21 = vadd.f32 %v4924_v10, %v9752_v0 }
 0x617   :  { %5163 = vst [vmem:[#allocation8 + $0xd0] sm:$0xff] %v5131_v32 }
 0x618   :  { %5164 = vst [vmem:[#allocation8 + $0xd8] sm:$0xff] %v5132_v21 }
 0x64f   :  { %v4993_v8 = vpop.f32.mrb[56].mxu0 }
 0x650   :  { %v5109_v39 = vadd.f32 %v4993_v8, %v8988_v17  ;;  %v4995_v31 = vpop.f32.mrb[57].mxu0 }
 0x651   :  { %v5110_v54 = vadd.f32 %v4995_v31, %v8995_v16 }
 0x652   :  { %5141 = vst [vmem:[#allocation8 + $0x20] sm:$0xff] %v5109_v39 }
 0x653   :  { %5142 = vst [vmem:[#allocation8 + $0x28] sm:$0xff] %v5110_v54  ;;  %v4999_v23 = vpop.f32.mrb[58].mxu0 }
 0x654   :  { %v5117_v46 = vadd.f32 %v4999_v23, %v8991_v49  ;;  %v5001_v40 = vpop.f32.mrb[59].mxu0 }
 0x655   :  { %v5118_v61 = vadd.f32 %v5001_v40, %v8998_v25 }
 0x656   :  { %5149 = vst [vmem:[#allocation8 + $0x60] sm:$0xff] %v5117_v46 }
 0x657   :  { %5150 = vst [vmem:[#allocation8 + $0x68] sm:$0xff] %v5118_v61  ;;  %v5005_v48 = vpop.f32.mrb[60].mxu0 }
 0x658   :  { %v5125_v63 = vadd.f32 %v5005_v48, %v9012_v57  ;;  %v5007_v14 = vpop.f32.mrb[61].mxu0 }
 0x659   :  { %v5126_v30 = vadd.f32 %v5007_v14, %v9004_v5 }
 0x65a   :  { %5157 = vst [vmem:[#allocation8 + $0xa0] sm:$0xff] %v5125_v63 }
 0x65b   :  { %5158 = vst [vmem:[#allocation8 + $0xa8] sm:$0xff] %v5126_v30  ;;  %v5011_v17 = vpop.f32.mrb[62].mxu0 }
 0x65c   :  { %v5082_v16 = vpop.f32.mrb[56].mxu1  ;;  %v5133_v33 = vadd.f32 %v5011_v17, %v9015_v41  ;;  %v5013_v6 = vpop.f32.mrb[63].mxu0 }
 0x65d   :  { %v5111_v49 = vadd.f32 %v5082_v16, %v9029_v18  ;;  %v5084_v53 = vpop.f32.mrb[57].mxu1  ;;  %v5134_v25 = vadd.f32 %v5013_v6, %v9001_v7 }
 0x65e   :  { %v5112_v37 = vadd.f32 %v5084_v53, %v9038_v19  ;;  %5165 = vst [vmem:[#allocation8 + $0xe0] sm:$0xff] %v5133_v33 }
 0x65f   :  { %5143 = vst [vmem:[#allocation8 + $0x30] sm:$0xff] %v5111_v49  ;;  %5166 = vst [vmem:[#allocation8 + $0xe8] sm:$0xff] %v5134_v25 }
 0x660   :  { %5144 = vst [vmem:[#allocation8 + $0x38] sm:$0xff] %v5112_v37  ;;  %v5088_v57 = vpop.f32.mrb[58].mxu1 }
 0x661   :  { %v5119_v5 = vadd.f32 %v5088_v57, %v9032_v12  ;;  %v5090_v1 = vpop.f32.mrb[59].mxu1 }
 0x662   :  { %v5120_v58 = vadd.f32 %v5090_v1, %v9041_v42 }
 0x663   :  { %5151 = vst [vmem:[#allocation8 + $0x70] sm:$0xff] %v5119_v5 }
 0x664   :  { %5152 = vst [vmem:[#allocation8 + $0x78] sm:$0xff] %v5120_v58  ;;  %v5094_v41 = vpop.f32.mrb[60].mxu1 }
 0x665   :  { %v5127_v18 = vadd.f32 %v5094_v41, %v9055_v34  ;;  %v5096_v28 = vpop.f32.mrb[61].mxu1 }
 0x666   :  { %v5128_v7 = vadd.f32 %v5096_v28, %v9044_v2 }
 0x667   :  { %5159 = vst [vmem:[#allocation8 + $0xb0] sm:$0xff] %v5127_v18 }
 0x668   :  { %5160 = vst [vmem:[#allocation8 + $0xb8] sm:$0xff] %v5128_v7  ;;  %v5100_v19 = vpop.f32.mrb[62].mxu1 }
 0x669   :  { %v5135_v4 = vadd.f32 %v5100_v19, %v9058_v52  ;;  %v5102_v38 = vpop.f32.mrb[63].mxu1 }
 0x66a   :  { %v5136_v12 = vadd.f32 %v5102_v38, %v9047_v9 }
 0x66b   :  { %5167 = vst [vmem:[#allocation8 + $0xf0] sm:$0xff] %v5135_v4 }
 0x66c   :  { %5168 = vst [vmem:[#allocation8 + $0xf8] sm:$0xff] %v5136_v12 }
 0x66d   :  { %5642 = shalt.err (!%p5639_p0)
}
 0x66e   :  { %s5643_s15 = scalar_lea.hbm %s9209_s11, 4096 }
 0x66f   :  { %p5644_p1 = scmp.ne.s32.totalorder %s9209_s11, %s5643_s15  ;;  %p5647_p2 = scmp.lt.u32.totalorder %s5643_s15, %s9209_s11 }
 0x671   :  { %p5649_p3 = pnand %p5647_p2, %p5644_p1 }
 0x673   :  { %5652 = shalt.err (!%p5649_p3)
}
 0x674   :  { %5180 = dma.vmem_to_hbm [thread:$0]  %s5175_s12, 4096, %s9209_s11, [#allocation4], %s5661_s29, %s5661_s29, %s5662_s30  }
 0x675   :  { %5657 = dma.done.wait [#allocation4], 4096  }
 0x676   :  { %5658 = vsyncadd [#allocation4], 4294963200 }
 0x677   :  { %5184 = vsyncpa [#allocation3], 1 }
 0x678   :  { %5185 = vsyncpa [#allocation6], 1 }
 0x679   :  { %5186 = vsyncpa [#allocation4], 1 }

</bundles_post_ra>
